<compile_context>
chip_gen: v7x
topology: tpu7x:2x2x1
jax: 0.10.0
libtpu: 0.0.40
codegen_flags: <defaults>
</compile_context>

<pallas_src>
import math
from functools import partial

import jax
import jax.numpy as jnp
from jax.experimental import pallas as pl
from jax.experimental.pallas import tpu as pltpu

BN_EPS = 1e-5
VMEM_LIMIT = 48 * 1024 * 1024   # <= v7x's 64 MiB physical VMEM; generous on v5e/v6e


def _round_up(x, m):
    return (x + m - 1) // m * m


def _cparams(n_grid_dims):
    if n_grid_dims == 0:
        return pltpu.CompilerParams(vmem_limit_bytes=VMEM_LIMIT)
    return pltpu.CompilerParams(
        dimension_semantics=("parallel",) * n_grid_dims,
        vmem_limit_bytes=VMEM_LIMIT,
    )


# ----------------------------- Pallas kernels -----------------------------

def _dense1x1_kernel(x_ref, w_ref, sh_ref, o_ref, *, relu):
    # x: (tm, Cin) bf16, w: (Cin, Cout) bf16 (block-diag dense grouped conv, BN scale
    # folded into the columns), sh: (1, Cout) f32.
    y = jnp.dot(x_ref[...], w_ref[...], preferred_element_type=jnp.float32)
    y = y + sh_ref[...]
    if relu:
        y = jnp.maximum(y, 0.0)
    o_ref[...] = y.astype(o_ref.dtype)


def _unit_add_kernel(x_ref, w1_ref, sh1_ref, wdw_ref, sh2_ref, w3_ref, sh3_ref,
                     o_ref, mid_ref):
    """Whole non-downsample ShuffleUnit for one image, fully fused:
    compress 1x1 (+shuffle+BN+ReLU) -> depthwise 3x3 s1 (+BN) -> expand 1x1 (+BN)
    -> residual add -> ReLU.  The bottleneck activation stays in VMEM."""
    _, H, W, C = x_ref.shape
    Bp = mid_ref.shape[-1]
    x2d = x_ref[0].reshape(H * W, C)                       # bf16 (matmul input + residual)

    # compress (BN scale and channel shuffle folded into the weight columns) + ReLU
    y = jnp.dot(x2d, w1_ref[...], preferred_element_type=jnp.float32)
    y = jnp.maximum(y + sh1_ref[...], 0.0)                 # (H*W, Bp) f32

    # zero-padded halo scratch (re-zeroed every grid step: safe under megacore sharding)
    mid_ref[...] = jnp.zeros_like(mid_ref)
    mid_ref[1:H + 1, 1:W + 1, :] = y.reshape(H, W, Bp)

    # depthwise 3x3, stride 1, pad 1 (BN scale folded into the per-tap weights)
    acc = None
    for k in range(9):
        kh, kw = divmod(k, 3)
        t = mid_ref[kh:kh + H, kw:kw + W, :] * wdw_ref[k]
        acc = t if acc is None else acc + t
    z = acc + sh2_ref[...].reshape(1, 1, Bp)

    # expand 1x1 + BN shift, fused residual add + final ReLU
    out = jnp.dot(z.reshape(H * W, Bp).astype(jnp.bfloat16), w3_ref[...],
                  preferred_element_type=jnp.float32)
    out = jnp.maximum(out + sh3_ref[...] + x2d.astype(jnp.float32), 0.0)
    o_ref[0] = out.reshape(H, W, C).astype(o_ref.dtype)


def _tap_parity(ref, k, Ho, Wo):
    # ref: (4, Hh, Wh, C) = (row,col)-parity split of the padded input; tap k = (kh, kw)
    kh, kw = divmod(k, 3)
    return ref[(kh % 2) * 2 + (kw % 2),
               kh // 2:kh // 2 + Ho,
               kw // 2:kw // 2 + Wo, :]


def _concat_tail_kernel(y_ref, x_ref, wdw_ref, sh2_ref, w3_ref, sh3_ref, o_ref):
    """Downsample ShuffleUnit tail for one image: depthwise 3x3 s2 (+BN) on the compress
    output, expand 1x1 (+BN+ReLU), avg-pooled 3x3 s2 residual (+ReLU), both written
    directly into disjoint channel ranges of one output (no XLA concat)."""
    _, Ho, Wo, Ctot = o_ref.shape
    Bp = wdw_ref.shape[-1]
    Cin = x_ref.shape[-1]
    Coutc = Ctot - Cin

    # depthwise 3x3, stride 2 (taps are contiguous slices of the parity-split input)
    acc = None
    for k in range(9):
        t = _tap_parity(y_ref, k, Ho, Wo).astype(jnp.float32) * wdw_ref[k]
        acc = t if acc is None else acc + t
    z = acc + sh2_ref[...].reshape(1, 1, Bp)

    # expand 1x1 + BN + ReLU   (relu(concat(a,b)) == concat(relu(a), relu(b)))
    out = jnp.dot(z.reshape(Ho * Wo, Bp).astype(jnp.bfloat16), w3_ref[...],
                  preferred_element_type=jnp.float32)
    out = jnp.maximum(out + sh3_ref[...], 0.0)

    # avg-pooled residual (count_include_pad=True like F.avg_pool2d default) + ReLU
    r = None
    for k in range(9):
        t = _tap_parity(x_ref, k, Ho, Wo).astype(jnp.float32)
        r = t if r is None else r + t
    r = jnp.maximum(r * (1.0 / 9.0), 0.0)

    o_ref[0, :, :, :Cin] = r.astype(o_ref.dtype)
    o_ref[0, :, :, Cin:] = out.reshape(Ho, Wo, Coutc).astype(o_ref.dtype)


def _conv1_kernel(xs_ref, w_ref, b_ref, o_ref):
    """Full (non-grouped) 3x3 stride-2 conv with bias (conv1) as 9 per-tap matmuls."""
    _, Ho, Wo, Cout = o_ref.shape
    Cin = w_ref.shape[1]
    acc = jnp.zeros((Ho * Wo, Cout), jnp.float32)
    for k in range(9):
        t = _tap_parity(xs_ref, k, Ho, Wo)
        acc = acc + jnp.dot(t.reshape(Ho * Wo, Cin), w_ref[k],
                            preferred_element_type=jnp.float32)
    o_ref[0] = (acc + b_ref[...]).reshape(Ho, Wo, Cout).astype(o_ref.dtype)


def _maxpool_s2_kernel(xs_ref, o_ref):
    _, Ho, Wo, C = o_ref.shape
    r = None
    for k in range(9):
        t = _tap_parity(xs_ref, k, Ho, Wo)
        r = t if r is None else jnp.maximum(r, t)
    o_ref[0] = r.astype(o_ref.dtype)


def _head_kernel(x_ref, w_ref, b_ref, o_ref):
    """Fused global average pool + fc + log_softmax."""
    feat = jnp.mean(x_ref[...].astype(jnp.float32), axis=1)             # (N, C)
    logits = jnp.dot(feat.astype(jnp.bfloat16), w_ref[...],
                     preferred_element_type=jnp.float32) + b_ref[...]
    m = jnp.max(logits, axis=-1, keepdims=True)
    lse = jnp.log(jnp.sum(jnp.exp(logits - m), axis=-1, keepdims=True)) + m
    o_ref[...] = logits - lse


# ----------------------------- Pallas wrappers -----------------------------

def dense1x1(x2d, w, shift, *, relu=False):
    """(Grouped) 1x1 conv + folded BN (+ReLU) as a lane-dense M-tiled matmul.
    bf16 in/out, f32 accumulation.  Fixed tile + cdiv grid (masked ragged tail)."""
    M, Cin = x2d.shape
    Cout = w.shape[1]
    tm = M if M <= 512 else 512
    return pl.pallas_call(
        partial(_dense1x1_kernel, relu=relu),
        out_shape=jax.ShapeDtypeStruct((M, Cout), jnp.bfloat16),
        grid=(pl.cdiv(M, tm),),
        in_specs=[pl.BlockSpec((tm, Cin), lambda m: (m, 0)),
                  pl.BlockSpec((Cin, Cout), lambda m: (0, 0)),
                  pl.BlockSpec((1, Cout), lambda m: (0, 0))],
        out_specs=pl.BlockSpec((tm, Cout), lambda m: (m, 0)),
        compiler_params=_cparams(1),
    )(x2d, w, shift)


def _pad_and_split_s2(x_nhwc, pad_value=0.0):
    """Pad by 1 (rounding H, W up to even) and split into the 4 (row,col)-parity
    sub-grids so the 9 stride-2 window taps become contiguous in-VMEM slices."""
    N, H, W, C = x_nhwc.shape
    Ho, Wo = (H - 1) // 2 + 1, (W - 1) // 2 + 1
    xp = jnp.pad(x_nhwc, ((0, 0), (1, 1 + H % 2), (1, 1 + W % 2), (0, 0)),
                 constant_values=pad_value)
    Hp, Wp = xp.shape[1], xp.shape[2]
    xs = xp.reshape(N, Hp // 2, 2, Wp // 2, 2, C).transpose(0, 2, 4, 1, 3, 5)
    xs = xs.reshape(N * 4, Hp // 2, Wp // 2, C)
    return xs, Ho, Wo


def conv3x3_s2(x_nhwc, w_tap, bias):
    """Full 3x3, stride-2, pad-1 conv with bias (conv1).  w_tap: (9, Cin, Cout) bf16."""
    N, _, _, Cin = x_nhwc.shape
    Cout = w_tap.shape[2]
    xs, Ho, Wo = _pad_and_split_s2(x_nhwc)
    _, Hh, Wh, _ = xs.shape
    return pl.pallas_call(
        _conv1_kernel,
        out_shape=jax.ShapeDtypeStruct((N, Ho, Wo, Cout), jnp.bfloat16),
        grid=(N,),
        in_specs=[pl.BlockSpec((4, Hh, Wh, Cin), lambda n: (n, 0, 0, 0)),
                  pl.BlockSpec((9, Cin, Cout), lambda n: (0, 0, 0)),
                  pl.BlockSpec((1, Cout), lambda n: (0, 0))],
        out_specs=pl.BlockSpec((1, Ho, Wo, Cout), lambda n: (n, 0, 0, 0)),
        compiler_params=_cparams(1),
    )(xs, w_tap, bias.reshape(1, Cout))


def maxpool3x3_s2(x_nhwc):
    """3x3, stride-2, pad-1 max pool."""
    N, _, _, C = x_nhwc.shape
    xs, Ho, Wo = _pad_and_split_s2(x_nhwc, pad_value=-1e30)
    _, Hh, Wh, _ = xs.shape
    return pl.pallas_call(
        _maxpool_s2_kernel,
        out_shape=jax.ShapeDtypeStruct((N, Ho, Wo, C), x_nhwc.dtype),
        grid=(N,),
        in_specs=[pl.BlockSpec((4, Hh, Wh, C), lambda n: (n, 0, 0, 0))],
        out_specs=pl.BlockSpec((1, Ho, Wo, C), lambda n: (n, 0, 0, 0)),
        compiler_params=_cparams(1),
    )(xs)


# ----------------------------- parameters -----------------------------

def _kaiming_conv(key, out_ch, in_per_group, kh, kw):
    fan_out = out_ch * kh * kw                      # kaiming_normal_, mode='fan_out'
    std = math.sqrt(2.0 / fan_out)
    return std * jax.random.normal(key, (out_ch, in_per_group, kh, kw), jnp.float32)


def _bn_params(c):
    return dict(gamma=jnp.ones((c,), jnp.float32), beta=jnp.zeros((c,), jnp.float32),
                mean=jnp.zeros((c,), jnp.float32), var=jnp.ones((c,), jnp.float32))


def _bn_fold(conv_bias, bn):
    scale = bn["gamma"] / jnp.sqrt(bn["var"] + BN_EPS)
    shift = bn["beta"] - bn["mean"] * scale + conv_bias * scale
    return scale, shift


def make_shufflenet_params(key, groups, in_planes, num_class):
    stage_out = {1: [-1, 24, 144, 288, 567], 2: [-1, 24, 200, 400, 800],
                 3: [-1, 24, 240, 480, 960], 4: [-1, 24, 272, 544, 1088],
                 8: [-1, 24, 384, 768, 1536]}[groups]
    keys = iter(jax.random.split(key, 256))
    params = {"conv1_w": _kaiming_conv(next(keys), stage_out[1], in_planes, 3, 3),
              "conv1_b": jnp.zeros((stage_out[1],), jnp.float32)}

    def make_unit(in_p, out_p, grouped_conv, combine):
        bott = out_p // 4                           # computed before the concat reduction
        out_conv = out_p - in_p if combine == "concat" else out_p
        g1 = groups if grouped_conv else 1
        return dict(
            combine=combine, first_groups=g1,
            w_compress=_kaiming_conv(next(keys), bott, in_p // g1, 1, 1).reshape(bott, in_p // g1),
            b_compress=jnp.zeros((bott,), jnp.float32),
            bn1=_bn_params(bott),
            w_dw=_kaiming_conv(next(keys), bott, 1, 3, 3),
            b_dw=jnp.zeros((bott,), jnp.float32),
            bn2=_bn_params(bott),
            w_expand=_kaiming_conv(next(keys), out_conv, bott // groups, 1, 1).reshape(out_conv, bott // groups),
            b_expand=jnp.zeros((out_conv,), jnp.float32),
            bn3=_bn_params(out_conv),
        )

    stage_repeats = [3, 7, 3]
    stages = []
    for stage in (2, 3, 4):
        units = [make_unit(stage_out[stage - 1], stage_out[stage], stage > 2, "concat")]
        for _ in range(stage_repeats[stage - 2]):
            units.append(make_unit(stage_out[stage], stage_out[stage], True, "add"))
        stages.append(units)
    params["stages"] = stages
    params["fc_w"] = 0.001 * jax.random.normal(next(keys), (num_class, stage_out[-1]), jnp.float32)
    params["fc_b"] = jnp.zeros((num_class,), jnp.float32)
    return params


def _block_diag_dense(w, groups):
    """PyTorch grouped-1x1 weight (Cout, Cin//groups) -> dense block-diag (Cin, Cout)."""
    Cout, cin_g = w.shape
    cout_g = Cout // groups
    Wd = jnp.zeros((cin_g * groups, Cout), jnp.float32)
    for g in range(groups):
        Wd = Wd.at[g * cin_g:(g + 1) * cin_g, g * cout_g:(g + 1) * cout_g].set(
            jnp.transpose(w[g * cout_g:(g + 1) * cout_g, :]))
    return Wd


def fuse_params(params, groups):
    """Host-side, one-time fusion: BN scale folded into the weights (only shifts stay in
    the kernel epilogues), block-diagonal dense grouped-conv weights, channel shuffle
    folded into the compress output columns, bottleneck channels zero-padded to a
    multiple of 128, bf16 cast of all matmul weights."""
    fp = {}
    w1 = params["conv1_w"]                                   # (Cout, Cin, 3, 3)
    c1, cin = w1.shape[0], w1.shape[1]
    cin_p = _round_up(cin, 8)                                # pad conv1 input channels
    wt = jnp.transpose(w1.reshape(c1, cin, 9), (2, 1, 0))    # (9, Cin, Cout)
    wt = jnp.pad(wt, ((0, 0), (0, cin_p - cin), (0, 0)))
    fp["conv1_w"] = wt.astype(jnp.bfloat16)
    fp["conv1_b"] = params["conv1_b"]
    fp["cin_pad"] = cin_p

    def fuse_unit(u):
        fu = {"combine": u["combine"]}
        bott = u["w_compress"].shape[0]
        bp = _round_up(bott, 128)
        pad_b = bp - bott
        # compress 1x1: block-diag dense, shuffle perm + BN scale folded into columns,
        # output channels zero-padded to a lane-dense multiple of 128.
        Wc = _block_diag_dense(u["w_compress"], u["first_groups"])      # (Cin, bott)
        sc1, sh1 = _bn_fold(u["b_compress"], u["bn1"])
        perm = jnp.arange(bott).reshape(groups, bott // groups).T.reshape(-1)
        Wc = Wc[:, perm] * sc1[perm][None, :]
        fu["w1"] = jnp.pad(Wc, ((0, 0), (0, pad_b))).astype(jnp.bfloat16)
        fu["sh1"] = jnp.pad(sh1[perm], (0, pad_b)).reshape(1, bp)
        # depthwise 3x3: per-channel taps, BN scale folded in.  Its input channels are
        # already in shuffled (== reference) order, so no permutation; padded channels
        # have zero weight and zero shift, so they stay identically zero.
        sc2, sh2 = _bn_fold(u["b_dw"], u["bn2"])
        wdw = u["w_dw"].reshape(bott, 9).T * sc2[None, :]               # (9, bott)
        fu["wdw"] = jnp.pad(wdw, ((0, 0), (0, pad_b))).reshape(9, 1, 1, bp)
        fu["sh2"] = jnp.pad(sh2, (0, pad_b)).reshape(1, bp)
        # expand 1x1: block-diag dense, BN scale folded into columns, zero rows for the
        # padded bottleneck channels.
        We = _block_diag_dense(u["w_expand"], groups)                   # (bott, Cout)
        sc3, sh3 = _bn_fold(u["b_expand"], u["bn3"])
        We = We * sc3[None, :]
        fu["w3"] = jnp.pad(We, ((0, pad_b), (0, 0))).astype(jnp.bfloat16)
        fu["sh3"] = sh3.reshape(1, -1)
        return fu

    fp["stages"] = [[fuse_unit(u) for u in stage] for stage in params["stages"]]
    fp["fc_w"] = params["fc_w"].T.astype(jnp.bfloat16)                  # (C, num_class)
    fp["fc_b"] = params["fc_b"].reshape(1, -1)
    return fp


# ----------------------------- model forward -----------------------------

def shuffle_unit_forward(x, up):
    N, H, W, Cin = x.shape
    bp = up["w1"].shape[1]

    if up["combine"] == "concat":
        # compress 1x1 (+shuffle+BN+ReLU) on the pre-downsample slab
        y = dense1x1(x.reshape(N * H * W, Cin), up["w1"], up["sh1"], relu=True)
        y = y.reshape(N, H, W, bp)
        ysplit, Ho, Wo = _pad_and_split_s2(y)
        xsplit, _, _ = _pad_and_split_s2(x)
        _, Hh, Wh, _ = ysplit.shape
        _, Hhx, Whx, _ = xsplit.shape
        coutc = up["w3"].shape[1]
        ctot = Cin + coutc
        # fused tail: dw 3x3 s2 + expand + avg-pool residual + ReLU + channel concat
        return pl.pallas_call(
            _concat_tail_kernel,
            out_shape=jax.ShapeDtypeStruct((N, Ho, Wo, ctot), jnp.bfloat16),
            grid=(N,),
            in_specs=[pl.BlockSpec((4, Hh, Wh, bp), lambda n: (n, 0, 0, 0)),
                      pl.BlockSpec((4, Hhx, Whx, Cin), lambda n: (n, 0, 0, 0)),
                      pl.BlockSpec((9, 1, 1, bp), lambda n: (0, 0, 0, 0)),
                      pl.BlockSpec((1, bp), lambda n: (0, 0)),
                      pl.BlockSpec((bp, coutc), lambda n: (0, 0)),
                      pl.BlockSpec((1, coutc), lambda n: (0, 0))],
            out_specs=pl.BlockSpec((1, Ho, Wo, ctot), lambda n: (n, 0, 0, 0)),
            compiler_params=_cparams(1),
        )(ysplit, xsplit, up["wdw"], up["sh2"], up["w3"], up["sh3"])

    # 'add' unit: the whole compress -> depthwise -> expand -> +residual -> ReLU chain
    # is fused into one per-image pallas_call (bottleneck tensor never touches HBM).
    return pl.pallas_call(
        _unit_add_kernel,
        out_shape=jax.ShapeDtypeStruct((N, H, W, Cin), jnp.bfloat16),
        grid=(N,),
        in_specs=[pl.BlockSpec((1, H, W, Cin), lambda n: (n, 0, 0, 0)),
                  pl.BlockSpec((Cin, bp), lambda n: (0, 0)),
                  pl.BlockSpec((1, bp), lambda n: (0, 0)),
                  pl.BlockSpec((9, 1, 1, bp), lambda n: (0, 0, 0, 0)),
                  pl.BlockSpec((1, bp), lambda n: (0, 0)),
                  pl.BlockSpec((bp, Cin), lambda n: (0, 0)),
                  pl.BlockSpec((1, Cin), lambda n: (0, 0))],
        out_specs=pl.BlockSpec((1, H, W, Cin), lambda n: (n, 0, 0, 0)),
        scratch_shapes=[pltpu.VMEM((H + 2, W + 2, bp), jnp.float32)],
        compiler_params=_cparams(1),
    )(x, up["w1"], up["sh1"], up["wdw"], up["sh2"], up["w3"], up["sh3"])


def shufflenet_forward(x_nchw, fp):
    # interface layout: NCHW (PyTorch) -> NHWC internally (C on the lane axis), bf16
    x = jnp.transpose(x_nchw, (0, 2, 3, 1)).astype(jnp.bfloat16)
    cin_p = fp["cin_pad"]
    if x.shape[-1] < cin_p:
        x = jnp.pad(x, ((0, 0), (0, 0), (0, 0), (0, cin_p - x.shape[-1])))

    # conv1: 3x3, stride 2, pad 1, with bias (no BN / no ReLU in the reference)
    x = conv3x3_s2(x, fp["conv1_w"], fp["conv1_b"])
    # maxpool 3x3, stride 2, pad 1
    x = maxpool3x3_s2(x)

    # stages 2, 3, 4
    for stage_units in fp["stages"]:
        for up in stage_units:
            x = shuffle_unit_forward(x, up)

    # fused head: global average pool + fc + log_softmax (dim=1)
    N, H, W, C = x.shape
    K = fp["fc_w"].shape[1]
    return pl.pallas_call(
        _head_kernel,
        out_shape=jax.ShapeDtypeStruct((N, K), jnp.float32),
        compiler_params=_cparams(0),
    )(x.reshape(N, H * W, C), fp["fc_w"], fp["fc_b"])


# ----------------------------- main -----------------------------

if __name__ == "__main__":
    GROUPS, IN_PLANES, NUM_CLASS = 3, 3, 10
    key = jax.random.PRNGKey(0)
    pkey, xkey = jax.random.split(key)
    raw_params = make_shufflenet_params(pkey, GROUPS, IN_PLANES, NUM_CLASS)
    fused_params = fuse_params(raw_params, GROUPS)

    # small input: batch=2, channels=3, spatial 16x16 (spatial halves at conv1, maxpool,
    # and each stage's downsample unit)
    x = jax.random.normal(xkey, (2, IN_PLANES, 16, 16), jnp.float32)

    fwd = jax.jit(lambda xin: shufflenet_forward(xin, fused_params))
    out = jax.block_until_ready(fwd(x))

    assert out.shape == (2, NUM_CLASS), out.shape
    assert bool(jnp.all(jnp.isfinite(out)))
    # rows of log_softmax must exponentiate-sum to 1
    assert bool(jnp.allclose(jnp.exp(out).sum(axis=1), 1.0, atol=2e-3))
    print("KERNEL_OK")
</pallas_src>

<mosaic_0001>
module attributes {stable_mosaic.version = 11 : i64} {
  func.func @_conv1_kernel(%arg0: i32, %arg1: memref<4x9x9x8xbf16, #tpu.memory_space<vmem>>, %arg2: memref<9x8x24xbf16, #tpu.memory_space<vmem>>, %arg3: memref<1x24xf32, #tpu.memory_space<vmem>>, %arg4: memref<1x8x8x24xbf16, #tpu.memory_space<vmem>>) attributes {dimension_semantics = [#tpu.dimension_semantics<parallel>], iteration_bounds = array<i64: 2>, scalar_prefetch = 0 : i64, scratch_operands = 0 : i64, tpu.core_type = #tpu.core_type<tc>, window_params = [{transform_indices = @transform_0, window_bounds = array<i64: 4, 9, 9, 8>}, {pipeline_mode = #tpu.pipeline_mode<synchronous>, transform_indices = @transform_1, window_bounds = array<i64: 9, 8, 24>}, {pipeline_mode = #tpu.pipeline_mode<synchronous>, transform_indices = @transform_2, window_bounds = array<i64: 1, 24>}, {transform_indices = @transform_3, window_bounds = array<i64: 1, 8, 8, 24>}]} {
    %cst = arith.constant 0.000000e+00 : f32
    %0 = vector.broadcast %cst : f32 to vector<64x24xf32>
    %c0 = arith.constant 0 : index
    %c0_0 = arith.constant 0 : index
    %c0_1 = arith.constant 0 : index
    %c0_2 = arith.constant 0 : index
    %1 = vector.load %arg1[%c0, %c0_0, %c0_1, %c0_2] : memref<4x9x9x8xbf16, #tpu.memory_space<vmem>>, vector<1x8x8x8xbf16>
    %2 = vector.shape_cast %1 : vector<1x8x8x8xbf16> to vector<8x8x8xbf16>
    %3 = vector.shape_cast %2 : vector<8x8x8xbf16> to vector<64x8xbf16>
    %c0_3 = arith.constant 0 : index
    %c0_4 = arith.constant 0 : index
    %c0_5 = arith.constant 0 : index
    %4 = vector.load %arg2[%c0_3, %c0_4, %c0_5] : memref<9x8x24xbf16, #tpu.memory_space<vmem>>, vector<1x8x24xbf16>
    %5 = vector.shape_cast %4 : vector<1x8x24xbf16> to vector<8x24xbf16>
    %cst_6 = arith.constant dense<0.000000e+00> : vector<64x24xf32>
    %6 = tpu.matmul %3, %5, %cst_6 {dimension_numbers = #tpu.dot_dimension_numbers<[1], [0], [0], [1], [0, 0, 1, 1], [], []>} : vector<64x8xbf16>, vector<8x24xbf16>, vector<64x24xf32> -> vector<64x24xf32>
    %7 = arith.addf %0, %6 : vector<64x24xf32>
    %c1 = arith.constant 1 : index
    %c0_7 = arith.constant 0 : index
    %c0_8 = arith.constant 0 : index
    %c0_9 = arith.constant 0 : index
    %8 = vector.load %arg1[%c1, %c0_7, %c0_8, %c0_9] : memref<4x9x9x8xbf16, #tpu.memory_space<vmem>>, vector<1x8x8x8xbf16>
    %9 = vector.shape_cast %8 : vector<1x8x8x8xbf16> to vector<8x8x8xbf16>
    %10 = vector.shape_cast %9 : vector<8x8x8xbf16> to vector<64x8xbf16>
    %c1_10 = arith.constant 1 : index
    %c0_11 = arith.constant 0 : index
    %c0_12 = arith.constant 0 : index
    %11 = vector.load %arg2[%c1_10, %c0_11, %c0_12] : memref<9x8x24xbf16, #tpu.memory_space<vmem>>, vector<1x8x24xbf16>
    %12 = vector.shape_cast %11 : vector<1x8x24xbf16> to vector<8x24xbf16>
    %cst_13 = arith.constant dense<0.000000e+00> : vector<64x24xf32>
    %13 = tpu.matmul %10, %12, %cst_13 {dimension_numbers = #tpu.dot_dimension_numbers<[1], [0], [0], [1], [0, 0, 1, 1], [], []>} : vector<64x8xbf16>, vector<8x24xbf16>, vector<64x24xf32> -> vector<64x24xf32>
    %14 = arith.addf %7, %13 : vector<64x24xf32>
    %c0_14 = arith.constant 0 : index
    %c0_15 = arith.constant 0 : index
    %c1_16 = arith.constant 1 : index
    %c0_17 = arith.constant 0 : index
    %15 = vector.load %arg1[%c0_14, %c0_15, %c1_16, %c0_17] : memref<4x9x9x8xbf16, #tpu.memory_space<vmem>>, vector<1x8x8x8xbf16>
    %16 = vector.shape_cast %15 : vector<1x8x8x8xbf16> to vector<8x8x8xbf16>
    %17 = vector.shape_cast %16 : vector<8x8x8xbf16> to vector<64x8xbf16>
    %c2 = arith.constant 2 : index
    %c0_18 = arith.constant 0 : index
    %c0_19 = arith.constant 0 : index
    %18 = vector.load %arg2[%c2, %c0_18, %c0_19] : memref<9x8x24xbf16, #tpu.memory_space<vmem>>, vector<1x8x24xbf16>
    %19 = vector.shape_cast %18 : vector<1x8x24xbf16> to vector<8x24xbf16>
    %cst_20 = arith.constant dense<0.000000e+00> : vector<64x24xf32>
    %20 = tpu.matmul %17, %19, %cst_20 {dimension_numbers = #tpu.dot_dimension_numbers<[1], [0], [0], [1], [0, 0, 1, 1], [], []>} : vector<64x8xbf16>, vector<8x24xbf16>, vector<64x24xf32> -> vector<64x24xf32>
    %21 = arith.addf %14, %20 : vector<64x24xf32>
    %c2_21 = arith.constant 2 : index
    %c0_22 = arith.constant 0 : index
    %c0_23 = arith.constant 0 : index
    %c0_24 = arith.constant 0 : index
    %22 = vector.load %arg1[%c2_21, %c0_22, %c0_23, %c0_24] : memref<4x9x9x8xbf16, #tpu.memory_space<vmem>>, vector<1x8x8x8xbf16>
    %23 = vector.shape_cast %22 : vector<1x8x8x8xbf16> to vector<8x8x8xbf16>
    %24 = vector.shape_cast %23 : vector<8x8x8xbf16> to vector<64x8xbf16>
    %c3 = arith.constant 3 : index
    %c0_25 = arith.constant 0 : index
    %c0_26 = arith.constant 0 : index
    %25 = vector.load %arg2[%c3, %c0_25, %c0_26] : memref<9x8x24xbf16, #tpu.memory_space<vmem>>, vector<1x8x24xbf16>
    %26 = vector.shape_cast %25 : vector<1x8x24xbf16> to vector<8x24xbf16>
    %cst_27 = arith.constant dense<0.000000e+00> : vector<64x24xf32>
    %27 = tpu.matmul %24, %26, %cst_27 {dimension_numbers = #tpu.dot_dimension_numbers<[1], [0], [0], [1], [0, 0, 1, 1], [], []>} : vector<64x8xbf16>, vector<8x24xbf16>, vector<64x24xf32> -> vector<64x24xf32>
    %28 = arith.addf %21, %27 : vector<64x24xf32>
    %c3_28 = arith.constant 3 : index
    %c0_29 = arith.constant 0 : index
    %c0_30 = arith.constant 0 : index
    %c0_31 = arith.constant 0 : index
    %29 = vector.load %arg1[%c3_28, %c0_29, %c0_30, %c0_31] : memref<4x9x9x8xbf16, #tpu.memory_space<vmem>>, vector<1x8x8x8xbf16>
    %30 = vector.shape_cast %29 : vector<1x8x8x8xbf16> to vector<8x8x8xbf16>
    %31 = vector.shape_cast %30 : vector<8x8x8xbf16> to vector<64x8xbf16>
    %c4 = arith.constant 4 : index
    %c0_32 = arith.constant 0 : index
    %c0_33 = arith.constant 0 : index
    %32 = vector.load %arg2[%c4, %c0_32, %c0_33] : memref<9x8x24xbf16, #tpu.memory_space<vmem>>, vector<1x8x24xbf16>
    %33 = vector.shape_cast %32 : vector<1x8x24xbf16> to vector<8x24xbf16>
    %cst_34 = arith.constant dense<0.000000e+00> : vector<64x24xf32>
    %34 = tpu.matmul %31, %33, %cst_34 {dimension_numbers = #tpu.dot_dimension_numbers<[1], [0], [0], [1], [0, 0, 1, 1], [], []>} : vector<64x8xbf16>, vector<8x24xbf16>, vector<64x24xf32> -> vector<64x24xf32>
    %35 = arith.addf %28, %34 : vector<64x24xf32>
    %c2_35 = arith.constant 2 : index
    %c0_36 = arith.constant 0 : index
    %c1_37 = arith.constant 1 : index
    %c0_38 = arith.constant 0 : index
    %36 = vector.load %arg1[%c2_35, %c0_36, %c1_37, %c0_38] : memref<4x9x9x8xbf16, #tpu.memory_space<vmem>>, vector<1x8x8x8xbf16>
    %37 = vector.shape_cast %36 : vector<1x8x8x8xbf16> to vector<8x8x8xbf16>
    %38 = vector.shape_cast %37 : vector<8x8x8xbf16> to vector<64x8xbf16>
    %c5 = arith.constant 5 : index
    %c0_39 = arith.constant 0 : index
    %c0_40 = arith.constant 0 : index
    %39 = vector.load %arg2[%c5, %c0_39, %c0_40] : memref<9x8x24xbf16, #tpu.memory_space<vmem>>, vector<1x8x24xbf16>
    %40 = vector.shape_cast %39 : vector<1x8x24xbf16> to vector<8x24xbf16>
    %cst_41 = arith.constant dense<0.000000e+00> : vector<64x24xf32>
    %41 = tpu.matmul %38, %40, %cst_41 {dimension_numbers = #tpu.dot_dimension_numbers<[1], [0], [0], [1], [0, 0, 1, 1], [], []>} : vector<64x8xbf16>, vector<8x24xbf16>, vector<64x24xf32> -> vector<64x24xf32>
    %42 = arith.addf %35, %41 : vector<64x24xf32>
    %c0_42 = arith.constant 0 : index
    %c1_43 = arith.constant 1 : index
    %c0_44 = arith.constant 0 : index
    %c0_45 = arith.constant 0 : index
    %43 = vector.load %arg1[%c0_42, %c1_43, %c0_44, %c0_45] : memref<4x9x9x8xbf16, #tpu.memory_space<vmem>>, vector<1x8x8x8xbf16>
    %44 = vector.shape_cast %43 : vector<1x8x8x8xbf16> to vector<8x8x8xbf16>
    %45 = vector.shape_cast %44 : vector<8x8x8xbf16> to vector<64x8xbf16>
    %c6 = arith.constant 6 : index
    %c0_46 = arith.constant 0 : index
    %c0_47 = arith.constant 0 : index
    %46 = vector.load %arg2[%c6, %c0_46, %c0_47] : memref<9x8x24xbf16, #tpu.memory_space<vmem>>, vector<1x8x24xbf16>
    %47 = vector.shape_cast %46 : vector<1x8x24xbf16> to vector<8x24xbf16>
    %cst_48 = arith.constant dense<0.000000e+00> : vector<64x24xf32>
    %48 = tpu.matmul %45, %47, %cst_48 {dimension_numbers = #tpu.dot_dimension_numbers<[1], [0], [0], [1], [0, 0, 1, 1], [], []>} : vector<64x8xbf16>, vector<8x24xbf16>, vector<64x24xf32> -> vector<64x24xf32>
    %49 = arith.addf %42, %48 : vector<64x24xf32>
    %c1_49 = arith.constant 1 : index
    %c1_50 = arith.constant 1 : index
    %c0_51 = arith.constant 0 : index
    %c0_52 = arith.constant 0 : index
    %50 = vector.load %arg1[%c1_49, %c1_50, %c0_51, %c0_52] : memref<4x9x9x8xbf16, #tpu.memory_space<vmem>>, vector<1x8x8x8xbf16>
    %51 = vector.shape_cast %50 : vector<1x8x8x8xbf16> to vector<8x8x8xbf16>
    %52 = vector.shape_cast %51 : vector<8x8x8xbf16> to vector<64x8xbf16>
    %c7 = arith.constant 7 : index
    %c0_53 = arith.constant 0 : index
    %c0_54 = arith.constant 0 : index
    %53 = vector.load %arg2[%c7, %c0_53, %c0_54] : memref<9x8x24xbf16, #tpu.memory_space<vmem>>, vector<1x8x24xbf16>
    %54 = vector.shape_cast %53 : vector<1x8x24xbf16> to vector<8x24xbf16>
    %cst_55 = arith.constant dense<0.000000e+00> : vector<64x24xf32>
    %55 = tpu.matmul %52, %54, %cst_55 {dimension_numbers = #tpu.dot_dimension_numbers<[1], [0], [0], [1], [0, 0, 1, 1], [], []>} : vector<64x8xbf16>, vector<8x24xbf16>, vector<64x24xf32> -> vector<64x24xf32>
    %56 = arith.addf %49, %55 : vector<64x24xf32>
    %c0_56 = arith.constant 0 : index
    %c1_57 = arith.constant 1 : index
    %c1_58 = arith.constant 1 : index
    %c0_59 = arith.constant 0 : index
    %57 = vector.load %arg1[%c0_56, %c1_57, %c1_58, %c0_59] : memref<4x9x9x8xbf16, #tpu.memory_space<vmem>>, vector<1x8x8x8xbf16>
    %58 = vector.shape_cast %57 : vector<1x8x8x8xbf16> to vector<8x8x8xbf16>
    %59 = vector.shape_cast %58 : vector<8x8x8xbf16> to vector<64x8xbf16>
    %c8 = arith.constant 8 : index
    %c0_60 = arith.constant 0 : index
    %c0_61 = arith.constant 0 : index
    %60 = vector.load %arg2[%c8, %c0_60, %c0_61] : memref<9x8x24xbf16, #tpu.memory_space<vmem>>, vector<1x8x24xbf16>
    %61 = vector.shape_cast %60 : vector<1x8x24xbf16> to vector<8x24xbf16>
    %cst_62 = arith.constant dense<0.000000e+00> : vector<64x24xf32>
    %62 = tpu.matmul %59, %61, %cst_62 {dimension_numbers = #tpu.dot_dimension_numbers<[1], [0], [0], [1], [0, 0, 1, 1], [], []>} : vector<64x8xbf16>, vector<8x24xbf16>, vector<64x24xf32> -> vector<64x24xf32>
    %63 = arith.addf %56, %62 : vector<64x24xf32>
    %c0_63 = arith.constant 0 : index
    %c0_64 = arith.constant 0 : index
    %64 = vector.load %arg3[%c0_63, %c0_64] : memref<1x24xf32, #tpu.memory_space<vmem>>, vector<1x24xf32>
    %65 = vector.broadcast %64 : vector<1x24xf32> to vector<64x24xf32>
    %66 = arith.addf %63, %65 : vector<64x24xf32>
    %67 = vector.shape_cast %66 : vector<64x24xf32> to vector<8x8x24xf32>
    %68 = arith.truncf %67 : vector<8x8x24xf32> to vector<8x8x24xbf16>
    %c0_65 = arith.constant 0 : index
    %c0_66 = arith.constant 0 : index
    %c0_67 = arith.constant 0 : index
    %c0_68 = arith.constant 0 : index
    %69 = vector.load %arg4[%c0_65, %c0_66, %c0_67, %c0_68] : memref<1x8x8x24xbf16, #tpu.memory_space<vmem>>, vector<1x8x8x24xbf16>
    %70 = vector.shape_cast %69 : vector<1x8x8x24xbf16> to vector<8x8x24xbf16>
    %71 = vector.shape_cast %68 : vector<8x8x24xbf16> to vector<1x8x8x24xbf16>
    tpu.vector_store %arg4[%c0_65, %c0_66, %c0_67, %c0_68], %71 {strides = array<i32>} : memref<1x8x8x24xbf16, #tpu.memory_space<vmem>>, vector<1x8x8x24xbf16>,
    return
  }
  func.func @transform_0(%arg0: i32) -> (i32, i32, i32, i32) {
    %c0_i32 = arith.constant 0 : i32
    %c0_i32_0 = arith.constant 0 : i32
    %c0_i32_1 = arith.constant 0 : i32
    %c0_i32_2 = arith.constant 0 : i32
    return %arg0, %c0_i32, %c0_i32_0, %c0_i32_1 : i32, i32, i32, i32
  }
  func.func @transform_1(%arg0: i32) -> (i32, i32, i32) {
    %c0_i32 = arith.constant 0 : i32
    %c0_i32_0 = arith.constant 0 : i32
    %c0_i32_1 = arith.constant 0 : i32
    %c0_i32_2 = arith.constant 0 : i32
    return %c0_i32, %c0_i32_0, %c0_i32_1 : i32, i32, i32
  }
  func.func @transform_2(%arg0: i32) -> (i32, i32) {
    %c0_i32 = arith.constant 0 : i32
    %c0_i32_0 = arith.constant 0 : i32
    %c0_i32_1 = arith.constant 0 : i32
    return %c0_i32, %c0_i32_0 : i32, i32
  }
  func.func @transform_3(%arg0: i32) -> (i32, i32, i32, i32) {
    %c0_i32 = arith.constant 0 : i32
    %c0_i32_0 = arith.constant 0 : i32
    %c0_i32_1 = arith.constant 0 : i32
    %c0_i32_2 = arith.constant 0 : i32
    return %arg0, %c0_i32, %c0_i32_0, %c0_i32_1 : i32, i32, i32, i32
  }
}

module attributes {stable_mosaic.version = 11 : i64} {
  func.func @_maxpool_s2_kernel(%arg0: i32, %arg1: memref<4x5x5x24xbf16, #tpu.memory_space<vmem>>, %arg2: memref<1x4x4x24xbf16, #tpu.memory_space<vmem>>) attributes {dimension_semantics = [#tpu.dimension_semantics<parallel>], iteration_bounds = array<i64: 2>, scalar_prefetch = 0 : i64, scratch_operands = 0 : i64, tpu.core_type = #tpu.core_type<tc>, window_params = [{transform_indices = @transform_0, window_bounds = array<i64: 4, 5, 5, 24>}, {transform_indices = @transform_1, window_bounds = array<i64: 1, 4, 4, 24>}]} {
    %c0 = arith.constant 0 : index
    %c0_0 = arith.constant 0 : index
    %c0_1 = arith.constant 0 : index
    %c0_2 = arith.constant 0 : index
    %0 = vector.load %arg1[%c0, %c0_0, %c0_1, %c0_2] : memref<4x5x5x24xbf16, #tpu.memory_space<vmem>>, vector<1x4x4x24xbf16>
    %1 = vector.shape_cast %0 : vector<1x4x4x24xbf16> to vector<4x4x24xbf16>
    %c1 = arith.constant 1 : index
    %c0_3 = arith.constant 0 : index
    %c0_4 = arith.constant 0 : index
    %c0_5 = arith.constant 0 : index
    %2 = vector.load %arg1[%c1, %c0_3, %c0_4, %c0_5] : memref<4x5x5x24xbf16, #tpu.memory_space<vmem>>, vector<1x4x4x24xbf16>
    %3 = vector.shape_cast %2 : vector<1x4x4x24xbf16> to vector<4x4x24xbf16>
    %4 = arith.maximumf %1, %3 : vector<4x4x24xbf16>
    %c0_6 = arith.constant 0 : index
    %c0_7 = arith.constant 0 : index
    %c1_8 = arith.constant 1 : index
    %c0_9 = arith.constant 0 : index
    %5 = vector.load %arg1[%c0_6, %c0_7, %c1_8, %c0_9] : memref<4x5x5x24xbf16, #tpu.memory_space<vmem>>, vector<1x4x4x24xbf16>
    %6 = vector.shape_cast %5 : vector<1x4x4x24xbf16> to vector<4x4x24xbf16>
    %7 = arith.maximumf %4, %6 : vector<4x4x24xbf16>
    %c2 = arith.constant 2 : index
    %c0_10 = arith.constant 0 : index
    %c0_11 = arith.constant 0 : index
    %c0_12 = arith.constant 0 : index
    %8 = vector.load %arg1[%c2, %c0_10, %c0_11, %c0_12] : memref<4x5x5x24xbf16, #tpu.memory_space<vmem>>, vector<1x4x4x24xbf16>
    %9 = vector.shape_cast %8 : vector<1x4x4x24xbf16> to vector<4x4x24xbf16>
    %10 = arith.maximumf %7, %9 : vector<4x4x24xbf16>
    %c3 = arith.constant 3 : index
    %c0_13 = arith.constant 0 : index
    %c0_14 = arith.constant 0 : index
    %c0_15 = arith.constant 0 : index
    %11 = vector.load %arg1[%c3, %c0_13, %c0_14, %c0_15] : memref<4x5x5x24xbf16, #tpu.memory_space<vmem>>, vector<1x4x4x24xbf16>
    %12 = vector.shape_cast %11 : vector<1x4x4x24xbf16> to vector<4x4x24xbf16>
    %13 = arith.maximumf %10, %12 : vector<4x4x24xbf16>
    %c2_16 = arith.constant 2 : index
    %c0_17 = arith.constant 0 : index
    %c1_18 = arith.constant 1 : index
    %c0_19 = arith.constant 0 : index
    %14 = vector.load %arg1[%c2_16, %c0_17, %c1_18, %c0_19] : memref<4x5x5x24xbf16, #tpu.memory_space<vmem>>, vector<1x4x4x24xbf16>
    %15 = vector.shape_cast %14 : vector<1x4x4x24xbf16> to vector<4x4x24xbf16>
    %16 = arith.maximumf %13, %15 : vector<4x4x24xbf16>
    %c0_20 = arith.constant 0 : index
    %c1_21 = arith.constant 1 : index
    %c0_22 = arith.constant 0 : index
    %c0_23 = arith.constant 0 : index
    %17 = vector.load %arg1[%c0_20, %c1_21, %c0_22, %c0_23] : memref<4x5x5x24xbf16, #tpu.memory_space<vmem>>, vector<1x4x4x24xbf16>
    %18 = vector.shape_cast %17 : vector<1x4x4x24xbf16> to vector<4x4x24xbf16>
    %19 = arith.maximumf %16, %18 : vector<4x4x24xbf16>
    %c1_24 = arith.constant 1 : index
    %c1_25 = arith.constant 1 : index
    %c0_26 = arith.constant 0 : index
    %c0_27 = arith.constant 0 : index
    %20 = vector.load %arg1[%c1_24, %c1_25, %c0_26, %c0_27] : memref<4x5x5x24xbf16, #tpu.memory_space<vmem>>, vector<1x4x4x24xbf16>
    %21 = vector.shape_cast %20 : vector<1x4x4x24xbf16> to vector<4x4x24xbf16>
    %22 = arith.maximumf %19, %21 : vector<4x4x24xbf16>
    %c0_28 = arith.constant 0 : index
    %c1_29 = arith.constant 1 : index
    %c1_30 = arith.constant 1 : index
    %c0_31 = arith.constant 0 : index
    %23 = vector.load %arg1[%c0_28, %c1_29, %c1_30, %c0_31] : memref<4x5x5x24xbf16, #tpu.memory_space<vmem>>, vector<1x4x4x24xbf16>
    %24 = vector.shape_cast %23 : vector<1x4x4x24xbf16> to vector<4x4x24xbf16>
    %25 = arith.maximumf %22, %24 : vector<4x4x24xbf16>
    %c0_32 = arith.constant 0 : index
    %c0_33 = arith.constant 0 : index
    %c0_34 = arith.constant 0 : index
    %c0_35 = arith.constant 0 : index
    %26 = vector.load %arg2[%c0_32, %c0_33, %c0_34, %c0_35] : memref<1x4x4x24xbf16, #tpu.memory_space<vmem>>, vector<1x4x4x24xbf16>
    %27 = vector.shape_cast %26 : vector<1x4x4x24xbf16> to vector<4x4x24xbf16>
    %28 = vector.shape_cast %25 : vector<4x4x24xbf16> to vector<1x4x4x24xbf16>
    tpu.vector_store %arg2[%c0_32, %c0_33, %c0_34, %c0_35], %28 {strides = array<i32>} : memref<1x4x4x24xbf16, #tpu.memory_space<vmem>>, vector<1x4x4x24xbf16>,
    return
  }
  func.func @transform_0(%arg0: i32) -> (i32, i32, i32, i32) {
    %c0_i32 = arith.constant 0 : i32
    %c0_i32_0 = arith.constant 0 : i32
    %c0_i32_1 = arith.constant 0 : i32
    %c0_i32_2 = arith.constant 0 : i32
    return %arg0, %c0_i32, %c0_i32_0, %c0_i32_1 : i32, i32, i32, i32
  }
  func.func @transform_1(%arg0: i32) -> (i32, i32, i32, i32) {
    %c0_i32 = arith.constant 0 : i32
    %c0_i32_0 = arith.constant 0 : i32
    %c0_i32_1 = arith.constant 0 : i32
    %c0_i32_2 = arith.constant 0 : i32
    return %arg0, %c0_i32, %c0_i32_0, %c0_i32_1 : i32, i32, i32, i32
  }
}

module attributes {stable_mosaic.version = 11 : i64} {
  func.func @_dense1x1_kernel(%arg0: i32, %arg1: memref<32x24xbf16, #tpu.memory_space<vmem>>, %arg2: memref<24x128xbf16, #tpu.memory_space<vmem>>, %arg3: memref<1x128xf32, #tpu.memory_space<vmem>>, %arg4: memref<32x128xbf16, #tpu.memory_space<vmem>>) attributes {dimension_semantics = [#tpu.dimension_semantics<parallel>], iteration_bounds = array<i64: 1>, scalar_prefetch = 0 : i64, scratch_operands = 0 : i64, tpu.core_type = #tpu.core_type<tc>, window_params = [{transform_indices = @transform_0, window_bounds = array<i64: 32, 24>}, {pipeline_mode = #tpu.pipeline_mode<synchronous>, transform_indices = @transform_1, window_bounds = array<i64: 24, 128>}, {pipeline_mode = #tpu.pipeline_mode<synchronous>, transform_indices = @transform_2, window_bounds = array<i64: 1, 128>}, {transform_indices = @transform_3, window_bounds = array<i64: 32, 128>}]} {
    %c0 = arith.constant 0 : index
    %c0_0 = arith.constant 0 : index
    %0 = vector.load %arg1[%c0, %c0_0] : memref<32x24xbf16, #tpu.memory_space<vmem>>, vector<32x24xbf16>
    %c0_1 = arith.constant 0 : index
    %c0_2 = arith.constant 0 : index
    %1 = vector.load %arg2[%c0_1, %c0_2] : memref<24x128xbf16, #tpu.memory_space<vmem>>, vector<24x128xbf16>
    %cst = arith.constant dense<0.000000e+00> : vector<32x128xf32>
    %2 = tpu.matmul %0, %1, %cst {dimension_numbers = #tpu.dot_dimension_numbers<[1], [0], [0], [1], [0, 0, 1, 1], [], []>} : vector<32x24xbf16>, vector<24x128xbf16>, vector<32x128xf32> -> vector<32x128xf32>
    %c0_3 = arith.constant 0 : index
    %c0_4 = arith.constant 0 : index
    %3 = vector.load %arg3[%c0_3, %c0_4] : memref<1x128xf32, #tpu.memory_space<vmem>>, vector<1x128xf32>
    %4 = vector.broadcast %3 : vector<1x128xf32> to vector<32x128xf32>
    %5 = arith.addf %2, %4 : vector<32x128xf32>
    %cst_5 = arith.constant 0.000000e+00 : f32
    %6 = vector.broadcast %cst_5 : f32 to vector<32x128xf32>
    %7 = arith.maximumf %5, %6 : vector<32x128xf32>
    %8 = arith.truncf %7 : vector<32x128xf32> to vector<32x128xbf16>
    %c0_6 = arith.constant 0 : index
    %c0_7 = arith.constant 0 : index
    %9 = vector.load %arg4[%c0_6, %c0_7] : memref<32x128xbf16, #tpu.memory_space<vmem>>, vector<32x128xbf16>
    tpu.vector_store %arg4[%c0_6, %c0_7], %8 {strides = array<i32>} : memref<32x128xbf16, #tpu.memory_space<vmem>>, vector<32x128xbf16>,
    return
  }
  func.func @transform_0(%arg0: i32) -> (i32, i32) {
    %c0_i32 = arith.constant 0 : i32
    %c0_i32_0 = arith.constant 0 : i32
    return %arg0, %c0_i32 : i32, i32
  }
  func.func @transform_1(%arg0: i32) -> (i32, i32) {
    %c0_i32 = arith.constant 0 : i32
    %c0_i32_0 = arith.constant 0 : i32
    %c0_i32_1 = arith.constant 0 : i32
    return %c0_i32, %c0_i32_0 : i32, i32
  }
  func.func @transform_2(%arg0: i32) -> (i32, i32) {
    %c0_i32 = arith.constant 0 : i32
    %c0_i32_0 = arith.constant 0 : i32
    %c0_i32_1 = arith.constant 0 : i32
    return %c0_i32, %c0_i32_0 : i32, i32
  }
  func.func @transform_3(%arg0: i32) -> (i32, i32) {
    %c0_i32 = arith.constant 0 : i32
    %c0_i32_0 = arith.constant 0 : i32
    return %arg0, %c0_i32 : i32, i32
  }
}

module attributes {stable_mosaic.version = 11 : i64} {
  func.func @_unit_add_kernel(%arg0: i32, %arg1: memref<1x2x2x240xbf16, #tpu.memory_space<vmem>>, %arg2: memref<240x128xbf16, #tpu.memory_space<vmem>>, %arg3: memref<1x128xf32, #tpu.memory_space<vmem>>, %arg4: memref<9x1x1x128xf32, #tpu.memory_space<vmem>>, %arg5: memref<1x128xf32, #tpu.memory_space<vmem>>, %arg6: memref<128x240xbf16, #tpu.memory_space<vmem>>, %arg7: memref<1x240xf32, #tpu.memory_space<vmem>>, %arg8: memref<1x2x2x240xbf16, #tpu.memory_space<vmem>>, %arg9: memref<4x4x128xf32, #tpu.memory_space<vmem>>) attributes {dimension_semantics = [#tpu.dimension_semantics<parallel>], iteration_bounds = array<i64: 2>, scalar_prefetch = 0 : i64, scratch_operands = 1 : i64, tpu.core_type = #tpu.core_type<tc>, window_params = [{transform_indices = @transform_0, window_bounds = array<i64: 1, 2, 2, 240>}, {pipeline_mode = #tpu.pipeline_mode<synchronous>, transform_indices = @transform_1, window_bounds = array<i64: 240, 128>}, {pipeline_mode = #tpu.pipeline_mode<synchronous>, transform_indices = @transform_2, window_bounds = array<i64: 1, 128>}, {pipeline_mode = #tpu.pipeline_mode<synchronous>, transform_indices = @transform_3, window_bounds = array<i64: 9, 1, 1, 128>}, {pipeline_mode = #tpu.pipeline_mode<synchronous>, transform_indices = @transform_4, window_bounds = array<i64: 1, 128>}, {pipeline_mode = #tpu.pipeline_mode<synchronous>, transform_indices = @transform_5, window_bounds = array<i64: 128, 240>}, {pipeline_mode = #tpu.pipeline_mode<synchronous>, transform_indices = @transform_6, window_bounds = array<i64: 1, 240>}, {transform_indices = @transform_7, window_bounds = array<i64: 1, 2, 2, 240>}]} {
    %c0 = arith.constant 0 : index
    %c0_0 = arith.constant 0 : index
    %c0_1 = arith.constant 0 : index
    %c0_2 = arith.constant 0 : index
    %0 = vector.load %arg1[%c0, %c0_0, %c0_1, %c0_2] : memref<1x2x2x240xbf16, #tpu.memory_space<vmem>>, vector<1x2x2x240xbf16>
    %1 = vector.shape_cast %0 : vector<1x2x2x240xbf16> to vector<2x2x240xbf16>
    %2 = vector.shape_cast %1 : vector<2x2x240xbf16> to vector<4x240xbf16>
    %c0_3 = arith.constant 0 : index
    %c0_4 = arith.constant 0 : index
    %3 = vector.load %arg2[%c0_3, %c0_4] : memref<240x128xbf16, #tpu.memory_space<vmem>>, vector<240x128xbf16>
    %cst = arith.constant dense<0.000000e+00> : vector<4x128xf32>
    %4 = tpu.matmul %2, %3, %cst {dimension_numbers = #tpu.dot_dimension_numbers<[1], [0], [0], [1], [0, 0, 1, 1], [], []>} : vector<4x240xbf16>, vector<240x128xbf16>, vector<4x128xf32> -> vector<4x128xf32>
    %c0_5 = arith.constant 0 : index
    %c0_6 = arith.constant 0 : index
    %5 = vector.load %arg3[%c0_5, %c0_6] : memref<1x128xf32, #tpu.memory_space<vmem>>, vector<1x128xf32>
    %6 = vector.broadcast %5 : vector<1x128xf32> to vector<4x128xf32>
    %7 = arith.addf %4, %6 : vector<4x128xf32>
    %cst_7 = arith.constant 0.000000e+00 : f32
    %8 = vector.broadcast %cst_7 : f32 to vector<4x128xf32>
    %9 = arith.maximumf %7, %8 : vector<4x128xf32>
    %cst_8 = arith.constant 0.000000e+00 : f32
    %10 = vector.broadcast %cst_8 : f32 to vector<4x4x128xf32>
    %c0_9 = arith.constant 0 : index
    %c0_10 = arith.constant 0 : index
    %c0_11 = arith.constant 0 : index
    %11 = vector.load %arg9[%c0_9, %c0_10, %c0_11] : memref<4x4x128xf32, #tpu.memory_space<vmem>>, vector<4x4x128xf32>
    tpu.vector_store %arg9[%c0_9, %c0_10, %c0_11], %10 {strides = array<i32>} : memref<4x4x128xf32, #tpu.memory_space<vmem>>, vector<4x4x128xf32>,
    %12 = vector.shape_cast %9 : vector<4x128xf32> to vector<2x2x128xf32>
    %c1 = arith.constant 1 : index
    %c1_12 = arith.constant 1 : index
    %c0_13 = arith.constant 0 : index
    %13 = vector.load %arg9[%c1, %c1_12, %c0_13] : memref<4x4x128xf32, #tpu.memory_space<vmem>>, vector<2x2x128xf32>
    tpu.vector_store %arg9[%c1, %c1_12, %c0_13], %12 {strides = array<i32>} : memref<4x4x128xf32, #tpu.memory_space<vmem>>, vector<2x2x128xf32>,
    %c0_14 = arith.constant 0 : index
    %c0_15 = arith.constant 0 : index
    %c0_16 = arith.constant 0 : index
    %14 = vector.load %arg9[%c0_14, %c0_15, %c0_16] : memref<4x4x128xf32, #tpu.memory_space<vmem>>, vector<2x2x128xf32>
    %c0_17 = arith.constant 0 : index
    %c0_18 = arith.constant 0 : index
    %c0_19 = arith.constant 0 : index
    %c0_20 = arith.constant 0 : index
    %15 = vector.load %arg4[%c0_17, %c0_18, %c0_19, %c0_20] : memref<9x1x1x128xf32, #tpu.memory_space<vmem>>, vector<1x1x1x128xf32>
    %16 = vector.shape_cast %15 : vector<1x1x1x128xf32> to vector<1x1x128xf32>
    %17 = vector.broadcast %16 : vector<1x1x128xf32> to vector<2x2x128xf32>
    %18 = arith.mulf %14, %17 : vector<2x2x128xf32>
    %c0_21 = arith.constant 0 : index
    %c1_22 = arith.constant 1 : index
    %c0_23 = arith.constant 0 : index
    %19 = vector.load %arg9[%c0_21, %c1_22, %c0_23] : memref<4x4x128xf32, #tpu.memory_space<vmem>>, vector<2x2x128xf32>
    %c1_24 = arith.constant 1 : index
    %c0_25 = arith.constant 0 : index
    %c0_26 = arith.constant 0 : index
    %c0_27 = arith.constant 0 : index
    %20 = vector.load %arg4[%c1_24, %c0_25, %c0_26, %c0_27] : memref<9x1x1x128xf32, #tpu.memory_space<vmem>>, vector<1x1x1x128xf32>
    %21 = vector.shape_cast %20 : vector<1x1x1x128xf32> to vector<1x1x128xf32>
    %22 = vector.broadcast %21 : vector<1x1x128xf32> to vector<2x2x128xf32>
    %23 = arith.mulf %19, %22 : vector<2x2x128xf32>
    %24 = arith.addf %18, %23 : vector<2x2x128xf32>
    %c0_28 = arith.constant 0 : index
    %c2 = arith.constant 2 : index
    %c0_29 = arith.constant 0 : index
    %25 = vector.load %arg9[%c0_28, %c2, %c0_29] : memref<4x4x128xf32, #tpu.memory_space<vmem>>, vector<2x2x128xf32>
    %c2_30 = arith.constant 2 : index
    %c0_31 = arith.constant 0 : index
    %c0_32 = arith.constant 0 : index
    %c0_33 = arith.constant 0 : index
    %26 = vector.load %arg4[%c2_30, %c0_31, %c0_32, %c0_33] : memref<9x1x1x128xf32, #tpu.memory_space<vmem>>, vector<1x1x1x128xf32>
    %27 = vector.shape_cast %26 : vector<1x1x1x128xf32> to vector<1x1x128xf32>
    %28 = vector.broadcast %27 : vector<1x1x128xf32> to vector<2x2x128xf32>
    %29 = arith.mulf %25, %28 : vector<2x2x128xf32>
    %30 = arith.addf %24, %29 : vector<2x2x128xf32>
    %c1_34 = arith.constant 1 : index
    %c0_35 = arith.constant 0 : index
    %c0_36 = arith.constant 0 : index
    %31 = vector.load %arg9[%c1_34, %c0_35, %c0_36] : memref<4x4x128xf32, #tpu.memory_space<vmem>>, vector<2x2x128xf32>
    %c3 = arith.constant 3 : index
    %c0_37 = arith.constant 0 : index
    %c0_38 = arith.constant 0 : index
    %c0_39 = arith.constant 0 : index
    %32 = vector.load %arg4[%c3, %c0_37, %c0_38, %c0_39] : memref<9x1x1x128xf32, #tpu.memory_space<vmem>>, vector<1x1x1x128xf32>
    %33 = vector.shape_cast %32 : vector<1x1x1x128xf32> to vector<1x1x128xf32>
    %34 = vector.broadcast %33 : vector<1x1x128xf32> to vector<2x2x128xf32>
    %35 = arith.mulf %31, %34 : vector<2x2x128xf32>
    %36 = arith.addf %30, %35 : vector<2x2x128xf32>
    %c1_40 = arith.constant 1 : index
    %c1_41 = arith.constant 1 : index
    %c0_42 = arith.constant 0 : index
    %37 = vector.load %arg9[%c1_40, %c1_41, %c0_42] : memref<4x4x128xf32, #tpu.memory_space<vmem>>, vector<2x2x128xf32>
    %c4 = arith.constant 4 : index
    %c0_43 = arith.constant 0 : index
    %c0_44 = arith.constant 0 : index
    %c0_45 = arith.constant 0 : index
    %38 = vector.load %arg4[%c4, %c0_43, %c0_44, %c0_45] : memref<9x1x1x128xf32, #tpu.memory_space<vmem>>, vector<1x1x1x128xf32>
    %39 = vector.shape_cast %38 : vector<1x1x1x128xf32> to vector<1x1x128xf32>
    %40 = vector.broadcast %39 : vector<1x1x128xf32> to vector<2x2x128xf32>
    %41 = arith.mulf %37, %40 : vector<2x2x128xf32>
    %42 = arith.addf %36, %41 : vector<2x2x128xf32>
    %c1_46 = arith.constant 1 : index
    %c2_47 = arith.constant 2 : index
    %c0_48 = arith.constant 0 : index
    %43 = vector.load %arg9[%c1_46, %c2_47, %c0_48] : memref<4x4x128xf32, #tpu.memory_space<vmem>>, vector<2x2x128xf32>
    %c5 = arith.constant 5 : index
    %c0_49 = arith.constant 0 : index
    %c0_50 = arith.constant 0 : index
    %c0_51 = arith.constant 0 : index
    %44 = vector.load %arg4[%c5, %c0_49, %c0_50, %c0_51] : memref<9x1x1x128xf32, #tpu.memory_space<vmem>>, vector<1x1x1x128xf32>
    %45 = vector.shape_cast %44 : vector<1x1x1x128xf32> to vector<1x1x128xf32>
    %46 = vector.broadcast %45 : vector<1x1x128xf32> to vector<2x2x128xf32>
    %47 = arith.mulf %43, %46 : vector<2x2x128xf32>
    %48 = arith.addf %42, %47 : vector<2x2x128xf32>
    %c2_52 = arith.constant 2 : index
    %c0_53 = arith.constant 0 : index
    %c0_54 = arith.constant 0 : index
    %49 = vector.load %arg9[%c2_52, %c0_53, %c0_54] : memref<4x4x128xf32, #tpu.memory_space<vmem>>, vector<2x2x128xf32>
    %c6 = arith.constant 6 : index
    %c0_55 = arith.constant 0 : index
    %c0_56 = arith.constant 0 : index
    %c0_57 = arith.constant 0 : index
    %50 = vector.load %arg4[%c6, %c0_55, %c0_56, %c0_57] : memref<9x1x1x128xf32, #tpu.memory_space<vmem>>, vector<1x1x1x128xf32>
    %51 = vector.shape_cast %50 : vector<1x1x1x128xf32> to vector<1x1x128xf32>
    %52 = vector.broadcast %51 : vector<1x1x128xf32> to vector<2x2x128xf32>
    %53 = arith.mulf %49, %52 : vector<2x2x128xf32>
    %54 = arith.addf %48, %53 : vector<2x2x128xf32>
    %c2_58 = arith.constant 2 : index
    %c1_59 = arith.constant 1 : index
    %c0_60 = arith.constant 0 : index
    %55 = vector.load %arg9[%c2_58, %c1_59, %c0_60] : memref<4x4x128xf32, #tpu.memory_space<vmem>>, vector<2x2x128xf32>
    %c7 = arith.constant 7 : index
    %c0_61 = arith.constant 0 : index
    %c0_62 = arith.constant 0 : index
    %c0_63 = arith.constant 0 : index
    %56 = vector.load %arg4[%c7, %c0_61, %c0_62, %c0_63] : memref<9x1x1x128xf32, #tpu.memory_space<vmem>>, vector<1x1x1x128xf32>
    %57 = vector.shape_cast %56 : vector<1x1x1x128xf32> to vector<1x1x128xf32>
    %58 = vector.broadcast %57 : vector<1x1x128xf32> to vector<2x2x128xf32>
    %59 = arith.mulf %55, %58 : vector<2x2x128xf32>
    %60 = arith.addf %54, %59 : vector<2x2x128xf32>
    %c2_64 = arith.constant 2 : index
    %c2_65 = arith.constant 2 : index
    %c0_66 = arith.constant 0 : index
    %61 = vector.load %arg9[%c2_64, %c2_65, %c0_66] : memref<4x4x128xf32, #tpu.memory_space<vmem>>, vector<2x2x128xf32>
    %c8 = arith.constant 8 : index
    %c0_67 = arith.constant 0 : index
    %c0_68 = arith.constant 0 : index
    %c0_69 = arith.constant 0 : index
    %62 = vector.load %arg4[%c8, %c0_67, %c0_68, %c0_69] : memref<9x1x1x128xf32, #tpu.memory_space<vmem>>, vector<1x1x1x128xf32>
    %63 = vector.shape_cast %62 : vector<1x1x1x128xf32> to vector<1x1x128xf32>
    %64 = vector.broadcast %63 : vector<1x1x128xf32> to vector<2x2x128xf32>
    %65 = arith.mulf %61, %64 : vector<2x2x128xf32>
    %66 = arith.addf %60, %65 : vector<2x2x128xf32>
    %c0_70 = arith.constant 0 : index
    %c0_71 = arith.constant 0 : index
    %67 = vector.load %arg5[%c0_70, %c0_71] : memref<1x128xf32, #tpu.memory_space<vmem>>, vector<1x128xf32>
    %68 = vector.shape_cast %67 : vector<1x128xf32> to vector<1x1x128xf32>
    %69 = vector.broadcast %68 : vector<1x1x128xf32> to vector<2x2x128xf32>
    %70 = arith.addf %66, %69 : vector<2x2x128xf32>
    %71 = vector.shape_cast %70 : vector<2x2x128xf32> to vector<4x128xf32>
    %72 = arith.truncf %71 : vector<4x128xf32> to vector<4x128xbf16>
    %c0_72 = arith.constant 0 : index
    %c0_73 = arith.constant 0 : index
    %73 = vector.load %arg6[%c0_72, %c0_73] : memref<128x240xbf16, #tpu.memory_space<vmem>>, vector<128x240xbf16>
    %cst_74 = arith.constant dense<0.000000e+00> : vector<4x240xf32>
    %74 = tpu.matmul %72, %73, %cst_74 {dimension_numbers = #tpu.dot_dimension_numbers<[1], [0], [0], [1], [0, 0, 1, 1], [], []>} : vector<4x128xbf16>, vector<128x240xbf16>, vector<4x240xf32> -> vector<4x240xf32>
    %c0_75 = arith.constant 0 : index
    %c0_76 = arith.constant 0 : index
    %75 = vector.load %arg7[%c0_75, %c0_76] : memref<1x240xf32, #tpu.memory_space<vmem>>, vector<1x240xf32>
    %76 = vector.broadcast %75 : vector<1x240xf32> to vector<4x240xf32>
    %77 = arith.addf %74, %76 : vector<4x240xf32>
    %78 = arith.extf %2 : vector<4x240xbf16> to vector<4x240xf32>
    %79 = arith.addf %77, %78 : vector<4x240xf32>
    %cst_77 = arith.constant 0.000000e+00 : f32
    %80 = vector.broadcast %cst_77 : f32 to vector<4x240xf32>
    %81 = arith.maximumf %79, %80 : vector<4x240xf32>
    %82 = vector.shape_cast %81 : vector<4x240xf32> to vector<2x2x240xf32>
    %83 = arith.truncf %82 : vector<2x2x240xf32> to vector<2x2x240xbf16>
    %c0_78 = arith.constant 0 : index
    %c0_79 = arith.constant 0 : index
    %c0_80 = arith.constant 0 : index
    %c0_81 = arith.constant 0 : index
    %84 = vector.load %arg8[%c0_78, %c0_79, %c0_80, %c0_81] : memref<1x2x2x240xbf16, #tpu.memory_space<vmem>>, vector<1x2x2x240xbf16>
    %85 = vector.shape_cast %84 : vector<1x2x2x240xbf16> to vector<2x2x240xbf16>
    %86 = vector.shape_cast %83 : vector<2x2x240xbf16> to vector<1x2x2x240xbf16>
    tpu.vector_store %arg8[%c0_78, %c0_79, %c0_80, %c0_81], %86 {strides = array<i32>} : memref<1x2x2x240xbf16, #tpu.memory_space<vmem>>, vector<1x2x2x240xbf16>,
    return
  }
  func.func @transform_0(%arg0: i32) -> (i32, i32, i32, i32) {
    %c0_i32 = arith.constant 0 : i32
    %c0_i32_0 = arith.constant 0 : i32
    %c0_i32_1 = arith.constant 0 : i32
    %c0_i32_2 = arith.constant 0 : i32
    return %arg0, %c0_i32, %c0_i32_0, %c0_i32_1 : i32, i32, i32, i32
  }
  func.func @transform_1(%arg0: i32) -> (i32, i32) {
    %c0_i32 = arith.constant 0 : i32
    %c0_i32_0 = arith.constant 0 : i32
    %c0_i32_1 = arith.constant 0 : i32
    return %c0_i32, %c0_i32_0 : i32, i32
  }
  func.func @transform_2(%arg0: i32) -> (i32, i32) {
    %c0_i32 = arith.constant 0 : i32
    %c0_i32_0 = arith.constant 0 : i32
    %c0_i32_1 = arith.constant 0 : i32
    return %c0_i32, %c0_i32_0 : i32, i32
  }
  func.func @transform_3(%arg0: i32) -> (i32, i32, i32, i32) {
    %c0_i32 = arith.constant 0 : i32
    %c0_i32_0 = arith.constant 0 : i32
    %c0_i32_1 = arith.constant 0 : i32
    %c0_i32_2 = arith.constant 0 : i32
    %c0_i32_3 = arith.constant 0 : i32
    return %c0_i32, %c0_i32_0, %c0_i32_1, %c0_i32_2 : i32, i32, i32, i32
  }
  func.func @transform_4(%arg0: i32) -> (i32, i32) {
    %c0_i32 = arith.constant 0 : i32
    %c0_i32_0 = arith.constant 0 : i32
    %c0_i32_1 = arith.constant 0 : i32
    return %c0_i32, %c0_i32_0 : i32, i32
  }
  func.func @transform_5(%arg0: i32) -> (i32, i32) {
    %c0_i32 = arith.constant 0 : i32
    %c0_i32_0 = arith.constant 0 : i32
    %c0_i32_1 = arith.constant 0 : i32
    return %c0_i32, %c0_i32_0 : i32, i32
  }
  func.func @transform_6(%arg0: i32) -> (i32, i32) {
    %c0_i32 = arith.constant 0 : i32
    %c0_i32_0 = arith.constant 0 : i32
    %c0_i32_1 = arith.constant 0 : i32
    return %c0_i32, %c0_i32_0 : i32, i32
  }
  func.func @transform_7(%arg0: i32) -> (i32, i32, i32, i32) {
    %c0_i32 = arith.constant 0 : i32
    %c0_i32_0 = arith.constant 0 : i32
    %c0_i32_1 = arith.constant 0 : i32
    %c0_i32_2 = arith.constant 0 : i32
    return %arg0, %c0_i32, %c0_i32_0, %c0_i32_1 : i32, i32, i32, i32
  }
}

module attributes {stable_mosaic.version = 11 : i64} {
  func.func @_dense1x1_kernel(%arg0: i32, %arg1: memref<8x240xbf16, #tpu.memory_space<vmem>>, %arg2: memref<240x128xbf16, #tpu.memory_space<vmem>>, %arg3: memref<1x128xf32, #tpu.memory_space<vmem>>, %arg4: memref<8x128xbf16, #tpu.memory_space<vmem>>) attributes {dimension_semantics = [#tpu.dimension_semantics<parallel>], iteration_bounds = array<i64: 1>, scalar_prefetch = 0 : i64, scratch_operands = 0 : i64, tpu.core_type = #tpu.core_type<tc>, window_params = [{transform_indices = @transform_0, window_bounds = array<i64: 8, 240>}, {pipeline_mode = #tpu.pipeline_mode<synchronous>, transform_indices = @transform_1, window_bounds = array<i64: 240, 128>}, {pipeline_mode = #tpu.pipeline_mode<synchronous>, transform_indices = @transform_2, window_bounds = array<i64: 1, 128>}, {transform_indices = @transform_3, window_bounds = array<i64: 8, 128>}]} {
    %c0 = arith.constant 0 : index
    %c0_0 = arith.constant 0 : index
    %0 = vector.load %arg1[%c0, %c0_0] : memref<8x240xbf16, #tpu.memory_space<vmem>>, vector<8x240xbf16>
    %c0_1 = arith.constant 0 : index
    %c0_2 = arith.constant 0 : index
    %1 = vector.load %arg2[%c0_1, %c0_2] : memref<240x128xbf16, #tpu.memory_space<vmem>>, vector<240x128xbf16>
    %cst = arith.constant dense<0.000000e+00> : vector<8x128xf32>
    %2 = tpu.matmul %0, %1, %cst {dimension_numbers = #tpu.dot_dimension_numbers<[1], [0], [0], [1], [0, 0, 1, 1], [], []>} : vector<8x240xbf16>, vector<240x128xbf16>, vector<8x128xf32> -> vector<8x128xf32>
    %c0_3 = arith.constant 0 : index
    %c0_4 = arith.constant 0 : index
    %3 = vector.load %arg3[%c0_3, %c0_4] : memref<1x128xf32, #tpu.memory_space<vmem>>, vector<1x128xf32>
    %4 = vector.broadcast %3 : vector<1x128xf32> to vector<8x128xf32>
    %5 = arith.addf %2, %4 : vector<8x128xf32>
    %cst_5 = arith.constant 0.000000e+00 : f32
    %6 = vector.broadcast %cst_5 : f32 to vector<8x128xf32>
    %7 = arith.maximumf %5, %6 : vector<8x128xf32>
    %8 = arith.truncf %7 : vector<8x128xf32> to vector<8x128xbf16>
    %c0_6 = arith.constant 0 : index
    %c0_7 = arith.constant 0 : index
    %9 = vector.load %arg4[%c0_6, %c0_7] : memref<8x128xbf16, #tpu.memory_space<vmem>>, vector<8x128xbf16>
    tpu.vector_store %arg4[%c0_6, %c0_7], %8 {strides = array<i32>} : memref<8x128xbf16, #tpu.memory_space<vmem>>, vector<8x128xbf16>,
    return
  }
  func.func @transform_0(%arg0: i32) -> (i32, i32) {
    %c0_i32 = arith.constant 0 : i32
    %c0_i32_0 = arith.constant 0 : i32
    return %arg0, %c0_i32 : i32, i32
  }
  func.func @transform_1(%arg0: i32) -> (i32, i32) {
    %c0_i32 = arith.constant 0 : i32
    %c0_i32_0 = arith.constant 0 : i32
    %c0_i32_1 = arith.constant 0 : i32
    return %c0_i32, %c0_i32_0 : i32, i32
  }
  func.func @transform_2(%arg0: i32) -> (i32, i32) {
    %c0_i32 = arith.constant 0 : i32
    %c0_i32_0 = arith.constant 0 : i32
    %c0_i32_1 = arith.constant 0 : i32
    return %c0_i32, %c0_i32_0 : i32, i32
  }
  func.func @transform_3(%arg0: i32) -> (i32, i32) {
    %c0_i32 = arith.constant 0 : i32
    %c0_i32_0 = arith.constant 0 : i32
    return %arg0, %c0_i32 : i32, i32
  }
}

module attributes {stable_mosaic.version = 11 : i64} {
  func.func @_concat_tail_kernel(%arg0: i32, %arg1: memref<4x3x3x128xbf16, #tpu.memory_space<vmem>>, %arg2: memref<4x3x3x24xbf16, #tpu.memory_space<vmem>>, %arg3: memref<9x1x1x128xf32, #tpu.memory_space<vmem>>, %arg4: memref<1x128xf32, #tpu.memory_space<vmem>>, %arg5: memref<128x216xbf16, #tpu.memory_space<vmem>>, %arg6: memref<1x216xf32, #tpu.memory_space<vmem>>, %arg7: memref<1x2x2x240xbf16, #tpu.memory_space<vmem>>) attributes {dimension_semantics = [#tpu.dimension_semantics<parallel>], iteration_bounds = array<i64: 2>, scalar_prefetch = 0 : i64, scratch_operands = 0 : i64, tpu.core_type = #tpu.core_type<tc>, window_params = [{transform_indices = @transform_0, window_bounds = array<i64: 4, 3, 3, 128>}, {transform_indices = @transform_1, window_bounds = array<i64: 4, 3, 3, 24>}, {pipeline_mode = #tpu.pipeline_mode<synchronous>, transform_indices = @transform_2, window_bounds = array<i64: 9, 1, 1, 128>}, {pipeline_mode = #tpu.pipeline_mode<synchronous>, transform_indices = @transform_3, window_bounds = array<i64: 1, 128>}, {pipeline_mode = #tpu.pipeline_mode<synchronous>, transform_indices = @transform_4, window_bounds = array<i64: 128, 216>}, {pipeline_mode = #tpu.pipeline_mode<synchronous>, transform_indices = @transform_5, window_bounds = array<i64: 1, 216>}, {transform_indices = @transform_6, window_bounds = array<i64: 1, 2, 2, 240>}]} {
    %c0 = arith.constant 0 : index
    %c0_0 = arith.constant 0 : index
    %c0_1 = arith.constant 0 : index
    %c0_2 = arith.constant 0 : index
    %0 = vector.load %arg1[%c0, %c0_0, %c0_1, %c0_2] : memref<4x3x3x128xbf16, #tpu.memory_space<vmem>>, vector<1x2x2x128xbf16>
    %1 = vector.shape_cast %0 : vector<1x2x2x128xbf16> to vector<2x2x128xbf16>
    %2 = arith.extf %1 : vector<2x2x128xbf16> to vector<2x2x128xf32>
    %c0_3 = arith.constant 0 : index
    %c0_4 = arith.constant 0 : index
    %c0_5 = arith.constant 0 : index
    %c0_6 = arith.constant 0 : index
    %3 = vector.load %arg3[%c0_3, %c0_4, %c0_5, %c0_6] : memref<9x1x1x128xf32, #tpu.memory_space<vmem>>, vector<1x1x1x128xf32>
    %4 = vector.shape_cast %3 : vector<1x1x1x128xf32> to vector<1x1x128xf32>
    %5 = vector.broadcast %4 : vector<1x1x128xf32> to vector<2x2x128xf32>
    %6 = arith.mulf %2, %5 : vector<2x2x128xf32>
    %c1 = arith.constant 1 : index
    %c0_7 = arith.constant 0 : index
    %c0_8 = arith.constant 0 : index
    %c0_9 = arith.constant 0 : index
    %7 = vector.load %arg1[%c1, %c0_7, %c0_8, %c0_9] : memref<4x3x3x128xbf16, #tpu.memory_space<vmem>>, vector<1x2x2x128xbf16>
    %8 = vector.shape_cast %7 : vector<1x2x2x128xbf16> to vector<2x2x128xbf16>
    %9 = arith.extf %8 : vector<2x2x128xbf16> to vector<2x2x128xf32>
    %c1_10 = arith.constant 1 : index
    %c0_11 = arith.constant 0 : index
    %c0_12 = arith.constant 0 : index
    %c0_13 = arith.constant 0 : index
    %10 = vector.load %arg3[%c1_10, %c0_11, %c0_12, %c0_13] : memref<9x1x1x128xf32, #tpu.memory_space<vmem>>, vector<1x1x1x128xf32>
    %11 = vector.shape_cast %10 : vector<1x1x1x128xf32> to vector<1x1x128xf32>
    %12 = vector.broadcast %11 : vector<1x1x128xf32> to vector<2x2x128xf32>
    %13 = arith.mulf %9, %12 : vector<2x2x128xf32>
    %14 = arith.addf %6, %13 : vector<2x2x128xf32>
    %c0_14 = arith.constant 0 : index
    %c0_15 = arith.constant 0 : index
    %c1_16 = arith.constant 1 : index
    %c0_17 = arith.constant 0 : index
    %15 = vector.load %arg1[%c0_14, %c0_15, %c1_16, %c0_17] : memref<4x3x3x128xbf16, #tpu.memory_space<vmem>>, vector<1x2x2x128xbf16>
    %16 = vector.shape_cast %15 : vector<1x2x2x128xbf16> to vector<2x2x128xbf16>
    %17 = arith.extf %16 : vector<2x2x128xbf16> to vector<2x2x128xf32>
    %c2 = arith.constant 2 : index
    %c0_18 = arith.constant 0 : index
    %c0_19 = arith.constant 0 : index
    %c0_20 = arith.constant 0 : index
    %18 = vector.load %arg3[%c2, %c0_18, %c0_19, %c0_20] : memref<9x1x1x128xf32, #tpu.memory_space<vmem>>, vector<1x1x1x128xf32>
    %19 = vector.shape_cast %18 : vector<1x1x1x128xf32> to vector<1x1x128xf32>
    %20 = vector.broadcast %19 : vector<1x1x128xf32> to vector<2x2x128xf32>
    %21 = arith.mulf %17, %20 : vector<2x2x128xf32>
    %22 = arith.addf %14, %21 : vector<2x2x128xf32>
    %c2_21 = arith.constant 2 : index
    %c0_22 = arith.constant 0 : index
    %c0_23 = arith.constant 0 : index
    %c0_24 = arith.constant 0 : index
    %23 = vector.load %arg1[%c2_21, %c0_22, %c0_23, %c0_24] : memref<4x3x3x128xbf16, #tpu.memory_space<vmem>>, vector<1x2x2x128xbf16>
    %24 = vector.shape_cast %23 : vector<1x2x2x128xbf16> to vector<2x2x128xbf16>
    %25 = arith.extf %24 : vector<2x2x128xbf16> to vector<2x2x128xf32>
    %c3 = arith.constant 3 : index
    %c0_25 = arith.constant 0 : index
    %c0_26 = arith.constant 0 : index
    %c0_27 = arith.constant 0 : index
    %26 = vector.load %arg3[%c3, %c0_25, %c0_26, %c0_27] : memref<9x1x1x128xf32, #tpu.memory_space<vmem>>, vector<1x1x1x128xf32>
    %27 = vector.shape_cast %26 : vector<1x1x1x128xf32> to vector<1x1x128xf32>
    %28 = vector.broadcast %27 : vector<1x1x128xf32> to vector<2x2x128xf32>
    %29 = arith.mulf %25, %28 : vector<2x2x128xf32>
    %30 = arith.addf %22, %29 : vector<2x2x128xf32>
    %c3_28 = arith.constant 3 : index
    %c0_29 = arith.constant 0 : index
    %c0_30 = arith.constant 0 : index
    %c0_31 = arith.constant 0 : index
    %31 = vector.load %arg1[%c3_28, %c0_29, %c0_30, %c0_31] : memref<4x3x3x128xbf16, #tpu.memory_space<vmem>>, vector<1x2x2x128xbf16>
    %32 = vector.shape_cast %31 : vector<1x2x2x128xbf16> to vector<2x2x128xbf16>
    %33 = arith.extf %32 : vector<2x2x128xbf16> to vector<2x2x128xf32>
    %c4 = arith.constant 4 : index
    %c0_32 = arith.constant 0 : index
    %c0_33 = arith.constant 0 : index
    %c0_34 = arith.constant 0 : index
    %34 = vector.load %arg3[%c4, %c0_32, %c0_33, %c0_34] : memref<9x1x1x128xf32, #tpu.memory_space<vmem>>, vector<1x1x1x128xf32>
    %35 = vector.shape_cast %34 : vector<1x1x1x128xf32> to vector<1x1x128xf32>
    %36 = vector.broadcast %35 : vector<1x1x128xf32> to vector<2x2x128xf32>
    %37 = arith.mulf %33, %36 : vector<2x2x128xf32>
    %38 = arith.addf %30, %37 : vector<2x2x128xf32>
    %c2_35 = arith.constant 2 : index
    %c0_36 = arith.constant 0 : index
    %c1_37 = arith.constant 1 : index
    %c0_38 = arith.constant 0 : index
    %39 = vector.load %arg1[%c2_35, %c0_36, %c1_37, %c0_38] : memref<4x3x3x128xbf16, #tpu.memory_space<vmem>>, vector<1x2x2x128xbf16>
    %40 = vector.shape_cast %39 : vector<1x2x2x128xbf16> to vector<2x2x128xbf16>
    %41 = arith.extf %40 : vector<2x2x128xbf16> to vector<2x2x128xf32>
    %c5 = arith.constant 5 : index
    %c0_39 = arith.constant 0 : index
    %c0_40 = arith.constant 0 : index
    %c0_41 = arith.constant 0 : index
    %42 = vector.load %arg3[%c5, %c0_39, %c0_40, %c0_41] : memref<9x1x1x128xf32, #tpu.memory_space<vmem>>, vector<1x1x1x128xf32>
    %43 = vector.shape_cast %42 : vector<1x1x1x128xf32> to vector<1x1x128xf32>
    %44 = vector.broadcast %43 : vector<1x1x128xf32> to vector<2x2x128xf32>
    %45 = arith.mulf %41, %44 : vector<2x2x128xf32>
    %46 = arith.addf %38, %45 : vector<2x2x128xf32>
    %c0_42 = arith.constant 0 : index
    %c1_43 = arith.constant 1 : index
    %c0_44 = arith.constant 0 : index
    %c0_45 = arith.constant 0 : index
    %47 = vector.load %arg1[%c0_42, %c1_43, %c0_44, %c0_45] : memref<4x3x3x128xbf16, #tpu.memory_space<vmem>>, vector<1x2x2x128xbf16>
    %48 = vector.shape_cast %47 : vector<1x2x2x128xbf16> to vector<2x2x128xbf16>
    %49 = arith.extf %48 : vector<2x2x128xbf16> to vector<2x2x128xf32>
    %c6 = arith.constant 6 : index
    %c0_46 = arith.constant 0 : index
    %c0_47 = arith.constant 0 : index
    %c0_48 = arith.constant 0 : index
    %50 = vector.load %arg3[%c6, %c0_46, %c0_47, %c0_48] : memref<9x1x1x128xf32, #tpu.memory_space<vmem>>, vector<1x1x1x128xf32>
    %51 = vector.shape_cast %50 : vector<1x1x1x128xf32> to vector<1x1x128xf32>
    %52 = vector.broadcast %51 : vector<1x1x128xf32> to vector<2x2x128xf32>
    %53 = arith.mulf %49, %52 : vector<2x2x128xf32>
    %54 = arith.addf %46, %53 : vector<2x2x128xf32>
    %c1_49 = arith.constant 1 : index
    %c1_50 = arith.constant 1 : index
    %c0_51 = arith.constant 0 : index
    %c0_52 = arith.constant 0 : index
    %55 = vector.load %arg1[%c1_49, %c1_50, %c0_51, %c0_52] : memref<4x3x3x128xbf16, #tpu.memory_space<vmem>>, vector<1x2x2x128xbf16>
    %56 = vector.shape_cast %55 : vector<1x2x2x128xbf16> to vector<2x2x128xbf16>
    %57 = arith.extf %56 : vector<2x2x128xbf16> to vector<2x2x128xf32>
    %c7 = arith.constant 7 : index
    %c0_53 = arith.constant 0 : index
    %c0_54 = arith.constant 0 : index
    %c0_55 = arith.constant 0 : index
    %58 = vector.load %arg3[%c7, %c0_53, %c0_54, %c0_55] : memref<9x1x1x128xf32, #tpu.memory_space<vmem>>, vector<1x1x1x128xf32>
    %59 = vector.shape_cast %58 : vector<1x1x1x128xf32> to vector<1x1x128xf32>
    %60 = vector.broadcast %59 : vector<1x1x128xf32> to vector<2x2x128xf32>
    %61 = arith.mulf %57, %60 : vector<2x2x128xf32>
    %62 = arith.addf %54, %61 : vector<2x2x128xf32>
    %c0_56 = arith.constant 0 : index
    %c1_57 = arith.constant 1 : index
    %c1_58 = arith.constant 1 : index
    %c0_59 = arith.constant 0 : index
    %63 = vector.load %arg1[%c0_56, %c1_57, %c1_58, %c0_59] : memref<4x3x3x128xbf16, #tpu.memory_space<vmem>>, vector<1x2x2x128xbf16>
    %64 = vector.shape_cast %63 : vector<1x2x2x128xbf16> to vector<2x2x128xbf16>
    %65 = arith.extf %64 : vector<2x2x128xbf16> to vector<2x2x128xf32>
    %c8 = arith.constant 8 : index
    %c0_60 = arith.constant 0 : index
    %c0_61 = arith.constant 0 : index
    %c0_62 = arith.constant 0 : index
    %66 = vector.load %arg3[%c8, %c0_60, %c0_61, %c0_62] : memref<9x1x1x128xf32, #tpu.memory_space<vmem>>, vector<1x1x1x128xf32>
    %67 = vector.shape_cast %66 : vector<1x1x1x128xf32> to vector<1x1x128xf32>
    %68 = vector.broadcast %67 : vector<1x1x128xf32> to vector<2x2x128xf32>
    %69 = arith.mulf %65, %68 : vector<2x2x128xf32>
    %70 = arith.addf %62, %69 : vector<2x2x128xf32>
    %c0_63 = arith.constant 0 : index
    %c0_64 = arith.constant 0 : index
    %71 = vector.load %arg4[%c0_63, %c0_64] : memref<1x128xf32, #tpu.memory_space<vmem>>, vector<1x128xf32>
    %72 = vector.shape_cast %71 : vector<1x128xf32> to vector<1x1x128xf32>
    %73 = vector.broadcast %72 : vector<1x1x128xf32> to vector<2x2x128xf32>
    %74 = arith.addf %70, %73 : vector<2x2x128xf32>
    %75 = vector.shape_cast %74 : vector<2x2x128xf32> to vector<4x128xf32>
    %76 = arith.truncf %75 : vector<4x128xf32> to vector<4x128xbf16>
    %c0_65 = arith.constant 0 : index
    %c0_66 = arith.constant 0 : index
    %77 = vector.load %arg5[%c0_65, %c0_66] : memref<128x216xbf16, #tpu.memory_space<vmem>>, vector<128x216xbf16>
    %cst = arith.constant dense<0.000000e+00> : vector<4x216xf32>
    %78 = tpu.matmul %76, %77, %cst {dimension_numbers = #tpu.dot_dimension_numbers<[1], [0], [0], [1], [0, 0, 1, 1], [], []>} : vector<4x128xbf16>, vector<128x216xbf16>, vector<4x216xf32> -> vector<4x216xf32>
    %c0_67 = arith.constant 0 : index
    %c0_68 = arith.constant 0 : index
    %79 = vector.load %arg6[%c0_67, %c0_68] : memref<1x216xf32, #tpu.memory_space<vmem>>, vector<1x216xf32>
    %80 = vector.broadcast %79 : vector<1x216xf32> to vector<4x216xf32>
    %81 = arith.addf %78, %80 : vector<4x216xf32>
    %cst_69 = arith.constant 0.000000e+00 : f32
    %82 = vector.broadcast %cst_69 : f32 to vector<4x216xf32>
    %83 = arith.maximumf %81, %82 : vector<4x216xf32>
    %c0_70 = arith.constant 0 : index
    %c0_71 = arith.constant 0 : index
    %c0_72 = arith.constant 0 : index
    %c0_73 = arith.constant 0 : index
    %84 = vector.load %arg2[%c0_70, %c0_71, %c0_72, %c0_73] : memref<4x3x3x24xbf16, #tpu.memory_space<vmem>>, vector<1x2x2x24xbf16>
    %85 = vector.shape_cast %84 : vector<1x2x2x24xbf16> to vector<2x2x24xbf16>
    %86 = arith.extf %85 : vector<2x2x24xbf16> to vector<2x2x24xf32>
    %c1_74 = arith.constant 1 : index
    %c0_75 = arith.constant 0 : index
    %c0_76 = arith.constant 0 : index
    %c0_77 = arith.constant 0 : index
    %87 = vector.load %arg2[%c1_74, %c0_75, %c0_76, %c0_77] : memref<4x3x3x24xbf16, #tpu.memory_space<vmem>>, vector<1x2x2x24xbf16>
    %88 = vector.shape_cast %87 : vector<1x2x2x24xbf16> to vector<2x2x24xbf16>
    %89 = arith.extf %88 : vector<2x2x24xbf16> to vector<2x2x24xf32>
    %90 = arith.addf %86, %89 : vector<2x2x24xf32>
    %c0_78 = arith.constant 0 : index
    %c0_79 = arith.constant 0 : index
    %c1_80 = arith.constant 1 : index
    %c0_81 = arith.constant 0 : index
    %91 = vector.load %arg2[%c0_78, %c0_79, %c1_80, %c0_81] : memref<4x3x3x24xbf16, #tpu.memory_space<vmem>>, vector<1x2x2x24xbf16>
    %92 = vector.shape_cast %91 : vector<1x2x2x24xbf16> to vector<2x2x24xbf16>
    %93 = arith.extf %92 : vector<2x2x24xbf16> to vector<2x2x24xf32>
    %94 = arith.addf %90, %93 : vector<2x2x24xf32>
    %c2_82 = arith.constant 2 : index
    %c0_83 = arith.constant 0 : index
    %c0_84 = arith.constant 0 : index
    %c0_85 = arith.constant 0 : index
    %95 = vector.load %arg2[%c2_82, %c0_83, %c0_84, %c0_85] : memref<4x3x3x24xbf16, #tpu.memory_space<vmem>>, vector<1x2x2x24xbf16>
    %96 = vector.shape_cast %95 : vector<1x2x2x24xbf16> to vector<2x2x24xbf16>
    %97 = arith.extf %96 : vector<2x2x24xbf16> to vector<2x2x24xf32>
    %98 = arith.addf %94, %97 : vector<2x2x24xf32>
    %c3_86 = arith.constant 3 : index
    %c0_87 = arith.constant 0 : index
    %c0_88 = arith.constant 0 : index
    %c0_89 = arith.constant 0 : index
    %99 = vector.load %arg2[%c3_86, %c0_87, %c0_88, %c0_89] : memref<4x3x3x24xbf16, #tpu.memory_space<vmem>>, vector<1x2x2x24xbf16>
    %100 = vector.shape_cast %99 : vector<1x2x2x24xbf16> to vector<2x2x24xbf16>
    %101 = arith.extf %100 : vector<2x2x24xbf16> to vector<2x2x24xf32>
    %102 = arith.addf %98, %101 : vector<2x2x24xf32>
    %c2_90 = arith.constant 2 : index
    %c0_91 = arith.constant 0 : index
    %c1_92 = arith.constant 1 : index
    %c0_93 = arith.constant 0 : index
    %103 = vector.load %arg2[%c2_90, %c0_91, %c1_92, %c0_93] : memref<4x3x3x24xbf16, #tpu.memory_space<vmem>>, vector<1x2x2x24xbf16>
    %104 = vector.shape_cast %103 : vector<1x2x2x24xbf16> to vector<2x2x24xbf16>
    %105 = arith.extf %104 : vector<2x2x24xbf16> to vector<2x2x24xf32>
    %106 = arith.addf %102, %105 : vector<2x2x24xf32>
    %c0_94 = arith.constant 0 : index
    %c1_95 = arith.constant 1 : index
    %c0_96 = arith.constant 0 : index
    %c0_97 = arith.constant 0 : index
    %107 = vector.load %arg2[%c0_94, %c1_95, %c0_96, %c0_97] : memref<4x3x3x24xbf16, #tpu.memory_space<vmem>>, vector<1x2x2x24xbf16>
    %108 = vector.shape_cast %107 : vector<1x2x2x24xbf16> to vector<2x2x24xbf16>
    %109 = arith.extf %108 : vector<2x2x24xbf16> to vector<2x2x24xf32>
    %110 = arith.addf %106, %109 : vector<2x2x24xf32>
    %c1_98 = arith.constant 1 : index
    %c1_99 = arith.constant 1 : index
    %c0_100 = arith.constant 0 : index
    %c0_101 = arith.constant 0 : index
    %111 = vector.load %arg2[%c1_98, %c1_99, %c0_100, %c0_101] : memref<4x3x3x24xbf16, #tpu.memory_space<vmem>>, vector<1x2x2x24xbf16>
    %112 = vector.shape_cast %111 : vector<1x2x2x24xbf16> to vector<2x2x24xbf16>
    %113 = arith.extf %112 : vector<2x2x24xbf16> to vector<2x2x24xf32>
    %114 = arith.addf %110, %113 : vector<2x2x24xf32>
    %c0_102 = arith.constant 0 : index
    %c1_103 = arith.constant 1 : index
    %c1_104 = arith.constant 1 : index
    %c0_105 = arith.constant 0 : index
    %115 = vector.load %arg2[%c0_102, %c1_103, %c1_104, %c0_105] : memref<4x3x3x24xbf16, #tpu.memory_space<vmem>>, vector<1x2x2x24xbf16>
    %116 = vector.shape_cast %115 : vector<1x2x2x24xbf16> to vector<2x2x24xbf16>
    %117 = arith.extf %116 : vector<2x2x24xbf16> to vector<2x2x24xf32>
    %118 = arith.addf %114, %117 : vector<2x2x24xf32>
    %cst_106 = arith.constant 0.111111112 : f32
    %119 = vector.broadcast %cst_106 : f32 to vector<2x2x24xf32>
    %120 = arith.mulf %118, %119 : vector<2x2x24xf32>
    %cst_107 = arith.constant 0.000000e+00 : f32
    %121 = vector.broadcast %cst_107 : f32 to vector<2x2x24xf32>
    %122 = arith.maximumf %120, %121 : vector<2x2x24xf32>
    %123 = arith.truncf %122 : vector<2x2x24xf32> to vector<2x2x24xbf16>
    %c0_108 = arith.constant 0 : index
    %c0_109 = arith.constant 0 : index
    %c0_110 = arith.constant 0 : index
    %c0_111 = arith.constant 0 : index
    %124 = vector.load %arg7[%c0_108, %c0_109, %c0_110, %c0_111] : memref<1x2x2x240xbf16, #tpu.memory_space<vmem>>, vector<1x2x2x24xbf16>
    %125 = vector.shape_cast %124 : vector<1x2x2x24xbf16> to vector<2x2x24xbf16>
    %126 = vector.shape_cast %123 : vector<2x2x24xbf16> to vector<1x2x2x24xbf16>
    tpu.vector_store %arg7[%c0_108, %c0_109, %c0_110, %c0_111], %126 {strides = array<i32>} : memref<1x2x2x240xbf16, #tpu.memory_space<vmem>>, vector<1x2x2x24xbf16>,
    %127 = vector.shape_cast %83 : vector<4x216xf32> to vector<2x2x216xf32>
    %128 = arith.truncf %127 : vector<2x2x216xf32> to vector<2x2x216xbf16>
    %c0_112 = arith.constant 0 : index
    %c0_113 = arith.constant 0 : index
    %c0_114 = arith.constant 0 : index
    %c24 = arith.constant 24 : index
    %129 = vector.load %arg7[%c0_112, %c0_113, %c0_114, %c24] : memref<1x2x2x240xbf16, #tpu.memory_space<vmem>>, vector<1x2x2x216xbf16>
    %130 = vector.shape_cast %129 : vector<1x2x2x216xbf16> to vector<2x2x216xbf16>
    %131 = vector.shape_cast %128 : vector<2x2x216xbf16> to vector<1x2x2x216xbf16>
    tpu.vector_store %arg7[%c0_112, %c0_113, %c0_114, %c24], %131 {strides = array<i32>} : memref<1x2x2x240xbf16, #tpu.memory_space<vmem>>, vector<1x2x2x216xbf16>,
    return
  }
  func.func @transform_0(%arg0: i32) -> (i32, i32, i32, i32) {
    %c0_i32 = arith.constant 0 : i32
    %c0_i32_0 = arith.constant 0 : i32
    %c0_i32_1 = arith.constant 0 : i32
    %c0_i32_2 = arith.constant 0 : i32
    return %arg0, %c0_i32, %c0_i32_0, %c0_i32_1 : i32, i32, i32, i32
  }
  func.func @transform_1(%arg0: i32) -> (i32, i32, i32, i32) {
    %c0_i32 = arith.constant 0 : i32
    %c0_i32_0 = arith.constant 0 : i32
    %c0_i32_1 = arith.constant 0 : i32
    %c0_i32_2 = arith.constant 0 : i32
    return %arg0, %c0_i32, %c0_i32_0, %c0_i32_1 : i32, i32, i32, i32
  }
  func.func @transform_2(%arg0: i32) -> (i32, i32, i32, i32) {
    %c0_i32 = arith.constant 0 : i32
    %c0_i32_0 = arith.constant 0 : i32
    %c0_i32_1 = arith.constant 0 : i32
    %c0_i32_2 = arith.constant 0 : i32
    %c0_i32_3 = arith.constant 0 : i32
    return %c0_i32, %c0_i32_0, %c0_i32_1, %c0_i32_2 : i32, i32, i32, i32
  }
  func.func @transform_3(%arg0: i32) -> (i32, i32) {
    %c0_i32 = arith.constant 0 : i32
    %c0_i32_0 = arith.constant 0 : i32
    %c0_i32_1 = arith.constant 0 : i32
    return %c0_i32, %c0_i32_0 : i32, i32
  }
  func.func @transform_4(%arg0: i32) -> (i32, i32) {
    %c0_i32 = arith.constant 0 : i32
    %c0_i32_0 = arith.constant 0 : i32
    %c0_i32_1 = arith.constant 0 : i32
    return %c0_i32, %c0_i32_0 : i32, i32
  }
  func.func @transform_5(%arg0: i32) -> (i32, i32) {
    %c0_i32 = arith.constant 0 : i32
    %c0_i32_0 = arith.constant 0 : i32
    %c0_i32_1 = arith.constant 0 : i32
    return %c0_i32, %c0_i32_0 : i32, i32
  }
  func.func @transform_6(%arg0: i32) -> (i32, i32, i32, i32) {
    %c0_i32 = arith.constant 0 : i32
    %c0_i32_0 = arith.constant 0 : i32
    %c0_i32_1 = arith.constant 0 : i32
    %c0_i32_2 = arith.constant 0 : i32
    return %arg0, %c0_i32, %c0_i32_0, %c0_i32_1 : i32, i32, i32, i32
  }
}

module attributes {stable_mosaic.version = 11 : i64} {
  func.func @_concat_tail_kernel(%arg0: i32, %arg1: memref<4x2x2x128xbf16, #tpu.memory_space<vmem>>, %arg2: memref<4x2x2x240xbf16, #tpu.memory_space<vmem>>, %arg3: memref<9x1x1x128xf32, #tpu.memory_space<vmem>>, %arg4: memref<1x128xf32, #tpu.memory_space<vmem>>, %arg5: memref<128x240xbf16, #tpu.memory_space<vmem>>, %arg6: memref<1x240xf32, #tpu.memory_space<vmem>>, %arg7: memref<1x1x1x480xbf16, #tpu.memory_space<vmem>>) attributes {dimension_semantics = [#tpu.dimension_semantics<parallel>], iteration_bounds = array<i64: 2>, scalar_prefetch = 0 : i64, scratch_operands = 0 : i64, tpu.core_type = #tpu.core_type<tc>, window_params = [{transform_indices = @transform_0, window_bounds = array<i64: 4, 2, 2, 128>}, {transform_indices = @transform_1, window_bounds = array<i64: 4, 2, 2, 240>}, {pipeline_mode = #tpu.pipeline_mode<synchronous>, transform_indices = @transform_2, window_bounds = array<i64: 9, 1, 1, 128>}, {pipeline_mode = #tpu.pipeline_mode<synchronous>, transform_indices = @transform_3, window_bounds = array<i64: 1, 128>}, {pipeline_mode = #tpu.pipeline_mode<synchronous>, transform_indices = @transform_4, window_bounds = array<i64: 128, 240>}, {pipeline_mode = #tpu.pipeline_mode<synchronous>, transform_indices = @transform_5, window_bounds = array<i64: 1, 240>}, {transform_indices = @transform_6, window_bounds = array<i64: 1, 1, 1, 480>}]} {
    %c0 = arith.constant 0 : index
    %c0_0 = arith.constant 0 : index
    %c0_1 = arith.constant 0 : index
    %c0_2 = arith.constant 0 : index
    %0 = vector.load %arg1[%c0, %c0_0, %c0_1, %c0_2] : memref<4x2x2x128xbf16, #tpu.memory_space<vmem>>, vector<1x1x1x128xbf16>
    %1 = vector.shape_cast %0 : vector<1x1x1x128xbf16> to vector<1x1x128xbf16>
    %2 = arith.extf %1 : vector<1x1x128xbf16> to vector<1x1x128xf32>
    %c0_3 = arith.constant 0 : index
    %c0_4 = arith.constant 0 : index
    %c0_5 = arith.constant 0 : index
    %c0_6 = arith.constant 0 : index
    %3 = vector.load %arg3[%c0_3, %c0_4, %c0_5, %c0_6] : memref<9x1x1x128xf32, #tpu.memory_space<vmem>>, vector<1x1x1x128xf32>
    %4 = vector.shape_cast %3 : vector<1x1x1x128xf32> to vector<1x1x128xf32>
    %5 = arith.mulf %2, %4 : vector<1x1x128xf32>
    %c1 = arith.constant 1 : index
    %c0_7 = arith.constant 0 : index
    %c0_8 = arith.constant 0 : index
    %c0_9 = arith.constant 0 : index
    %6 = vector.load %arg1[%c1, %c0_7, %c0_8, %c0_9] : memref<4x2x2x128xbf16, #tpu.memory_space<vmem>>, vector<1x1x1x128xbf16>
    %7 = vector.shape_cast %6 : vector<1x1x1x128xbf16> to vector<1x1x128xbf16>
    %8 = arith.extf %7 : vector<1x1x128xbf16> to vector<1x1x128xf32>
    %c1_10 = arith.constant 1 : index
    %c0_11 = arith.constant 0 : index
    %c0_12 = arith.constant 0 : index
    %c0_13 = arith.constant 0 : index
    %9 = vector.load %arg3[%c1_10, %c0_11, %c0_12, %c0_13] : memref<9x1x1x128xf32, #tpu.memory_space<vmem>>, vector<1x1x1x128xf32>
    %10 = vector.shape_cast %9 : vector<1x1x1x128xf32> to vector<1x1x128xf32>
    %11 = arith.mulf %8, %10 : vector<1x1x128xf32>
    %12 = arith.addf %5, %11 : vector<1x1x128xf32>
    %c0_14 = arith.constant 0 : index
    %c0_15 = arith.constant 0 : index
    %c1_16 = arith.constant 1 : index
    %c0_17 = arith.constant 0 : index
    %13 = vector.load %arg1[%c0_14, %c0_15, %c1_16, %c0_17] : memref<4x2x2x128xbf16, #tpu.memory_space<vmem>>, vector<1x1x1x128xbf16>
    %14 = vector.shape_cast %13 : vector<1x1x1x128xbf16> to vector<1x1x128xbf16>
    %15 = arith.extf %14 : vector<1x1x128xbf16> to vector<1x1x128xf32>
    %c2 = arith.constant 2 : index
    %c0_18 = arith.constant 0 : index
    %c0_19 = arith.constant 0 : index
    %c0_20 = arith.constant 0 : index
    %16 = vector.load %arg3[%c2, %c0_18, %c0_19, %c0_20] : memref<9x1x1x128xf32, #tpu.memory_space<vmem>>, vector<1x1x1x128xf32>
    %17 = vector.shape_cast %16 : vector<1x1x1x128xf32> to vector<1x1x128xf32>
    %18 = arith.mulf %15, %17 : vector<1x1x128xf32>
    %19 = arith.addf %12, %18 : vector<1x1x128xf32>
    %c2_21 = arith.constant 2 : index
    %c0_22 = arith.constant 0 : index
    %c0_23 = arith.constant 0 : index
    %c0_24 = arith.constant 0 : index
    %20 = vector.load %arg1[%c2_21, %c0_22, %c0_23, %c0_24] : memref<4x2x2x128xbf16, #tpu.memory_space<vmem>>, vector<1x1x1x128xbf16>
    %21 = vector.shape_cast %20 : vector<1x1x1x128xbf16> to vector<1x1x128xbf16>
    %22 = arith.extf %21 : vector<1x1x128xbf16> to vector<1x1x128xf32>
    %c3 = arith.constant 3 : index
    %c0_25 = arith.constant 0 : index
    %c0_26 = arith.constant 0 : index
    %c0_27 = arith.constant 0 : index
    %23 = vector.load %arg3[%c3, %c0_25, %c0_26, %c0_27] : memref<9x1x1x128xf32, #tpu.memory_space<vmem>>, vector<1x1x1x128xf32>
    %24 = vector.shape_cast %23 : vector<1x1x1x128xf32> to vector<1x1x128xf32>
    %25 = arith.mulf %22, %24 : vector<1x1x128xf32>
    %26 = arith.addf %19, %25 : vector<1x1x128xf32>
    %c3_28 = arith.constant 3 : index
    %c0_29 = arith.constant 0 : index
    %c0_30 = arith.constant 0 : index
    %c0_31 = arith.constant 0 : index
    %27 = vector.load %arg1[%c3_28, %c0_29, %c0_30, %c0_31] : memref<4x2x2x128xbf16, #tpu.memory_space<vmem>>, vector<1x1x1x128xbf16>
    %28 = vector.shape_cast %27 : vector<1x1x1x128xbf16> to vector<1x1x128xbf16>
    %29 = arith.extf %28 : vector<1x1x128xbf16> to vector<1x1x128xf32>
    %c4 = arith.constant 4 : index
    %c0_32 = arith.constant 0 : index
    %c0_33 = arith.constant 0 : index
    %c0_34 = arith.constant 0 : index
    %30 = vector.load %arg3[%c4, %c0_32, %c0_33, %c0_34] : memref<9x1x1x128xf32, #tpu.memory_space<vmem>>, vector<1x1x1x128xf32>
    %31 = vector.shape_cast %30 : vector<1x1x1x128xf32> to vector<1x1x128xf32>
    %32 = arith.mulf %29, %31 : vector<1x1x128xf32>
    %33 = arith.addf %26, %32 : vector<1x1x128xf32>
    %c2_35 = arith.constant 2 : index
    %c0_36 = arith.constant 0 : index
    %c1_37 = arith.constant 1 : index
    %c0_38 = arith.constant 0 : index
    %34 = vector.load %arg1[%c2_35, %c0_36, %c1_37, %c0_38] : memref<4x2x2x128xbf16, #tpu.memory_space<vmem>>, vector<1x1x1x128xbf16>
    %35 = vector.shape_cast %34 : vector<1x1x1x128xbf16> to vector<1x1x128xbf16>
    %36 = arith.extf %35 : vector<1x1x128xbf16> to vector<1x1x128xf32>
    %c5 = arith.constant 5 : index
    %c0_39 = arith.constant 0 : index
    %c0_40 = arith.constant 0 : index
    %c0_41 = arith.constant 0 : index
    %37 = vector.load %arg3[%c5, %c0_39, %c0_40, %c0_41] : memref<9x1x1x128xf32, #tpu.memory_space<vmem>>, vector<1x1x1x128xf32>
    %38 = vector.shape_cast %37 : vector<1x1x1x128xf32> to vector<1x1x128xf32>
    %39 = arith.mulf %36, %38 : vector<1x1x128xf32>
    %40 = arith.addf %33, %39 : vector<1x1x128xf32>
    %c0_42 = arith.constant 0 : index
    %c1_43 = arith.constant 1 : index
    %c0_44 = arith.constant 0 : index
    %c0_45 = arith.constant 0 : index
    %41 = vector.load %arg1[%c0_42, %c1_43, %c0_44, %c0_45] : memref<4x2x2x128xbf16, #tpu.memory_space<vmem>>, vector<1x1x1x128xbf16>
    %42 = vector.shape_cast %41 : vector<1x1x1x128xbf16> to vector<1x1x128xbf16>
    %43 = arith.extf %42 : vector<1x1x128xbf16> to vector<1x1x128xf32>
    %c6 = arith.constant 6 : index
    %c0_46 = arith.constant 0 : index
    %c0_47 = arith.constant 0 : index
    %c0_48 = arith.constant 0 : index
    %44 = vector.load %arg3[%c6, %c0_46, %c0_47, %c0_48] : memref<9x1x1x128xf32, #tpu.memory_space<vmem>>, vector<1x1x1x128xf32>
    %45 = vector.shape_cast %44 : vector<1x1x1x128xf32> to vector<1x1x128xf32>
    %46 = arith.mulf %43, %45 : vector<1x1x128xf32>
    %47 = arith.addf %40, %46 : vector<1x1x128xf32>
    %c1_49 = arith.constant 1 : index
    %c1_50 = arith.constant 1 : index
    %c0_51 = arith.constant 0 : index
    %c0_52 = arith.constant 0 : index
    %48 = vector.load %arg1[%c1_49, %c1_50, %c0_51, %c0_52] : memref<4x2x2x128xbf16, #tpu.memory_space<vmem>>, vector<1x1x1x128xbf16>
    %49 = vector.shape_cast %48 : vector<1x1x1x128xbf16> to vector<1x1x128xbf16>
    %50 = arith.extf %49 : vector<1x1x128xbf16> to vector<1x1x128xf32>
    %c7 = arith.constant 7 : index
    %c0_53 = arith.constant 0 : index
    %c0_54 = arith.constant 0 : index
    %c0_55 = arith.constant 0 : index
    %51 = vector.load %arg3[%c7, %c0_53, %c0_54, %c0_55] : memref<9x1x1x128xf32, #tpu.memory_space<vmem>>, vector<1x1x1x128xf32>
    %52 = vector.shape_cast %51 : vector<1x1x1x128xf32> to vector<1x1x128xf32>
    %53 = arith.mulf %50, %52 : vector<1x1x128xf32>
    %54 = arith.addf %47, %53 : vector<1x1x128xf32>
    %c0_56 = arith.constant 0 : index
    %c1_57 = arith.constant 1 : index
    %c1_58 = arith.constant 1 : index
    %c0_59 = arith.constant 0 : index
    %55 = vector.load %arg1[%c0_56, %c1_57, %c1_58, %c0_59] : memref<4x2x2x128xbf16, #tpu.memory_space<vmem>>, vector<1x1x1x128xbf16>
    %56 = vector.shape_cast %55 : vector<1x1x1x128xbf16> to vector<1x1x128xbf16>
    %57 = arith.extf %56 : vector<1x1x128xbf16> to vector<1x1x128xf32>
    %c8 = arith.constant 8 : index
    %c0_60 = arith.constant 0 : index
    %c0_61 = arith.constant 0 : index
    %c0_62 = arith.constant 0 : index
    %58 = vector.load %arg3[%c8, %c0_60, %c0_61, %c0_62] : memref<9x1x1x128xf32, #tpu.memory_space<vmem>>, vector<1x1x1x128xf32>
    %59 = vector.shape_cast %58 : vector<1x1x1x128xf32> to vector<1x1x128xf32>
    %60 = arith.mulf %57, %59 : vector<1x1x128xf32>
    %61 = arith.addf %54, %60 : vector<1x1x128xf32>
    %c0_63 = arith.constant 0 : index
    %c0_64 = arith.constant 0 : index
    %62 = vector.load %arg4[%c0_63, %c0_64] : memref<1x128xf32, #tpu.memory_space<vmem>>, vector<1x128xf32>
    %63 = vector.shape_cast %62 : vector<1x128xf32> to vector<1x1x128xf32>
    %64 = arith.addf %61, %63 : vector<1x1x128xf32>
    %65 = vector.shape_cast %64 : vector<1x1x128xf32> to vector<1x128xf32>
    %66 = arith.truncf %65 : vector<1x128xf32> to vector<1x128xbf16>
    %c0_65 = arith.constant 0 : index
    %c0_66 = arith.constant 0 : index
    %67 = vector.load %arg5[%c0_65, %c0_66] : memref<128x240xbf16, #tpu.memory_space<vmem>>, vector<128x240xbf16>
    %cst = arith.constant dense<0.000000e+00> : vector<1x240xf32>
    %68 = tpu.matmul %66, %67, %cst {dimension_numbers = #tpu.dot_dimension_numbers<[1], [0], [0], [1], [0, 0, 1, 1], [], []>} : vector<1x128xbf16>, vector<128x240xbf16>, vector<1x240xf32> -> vector<1x240xf32>
    %c0_67 = arith.constant 0 : index
    %c0_68 = arith.constant 0 : index
    %69 = vector.load %arg6[%c0_67, %c0_68] : memref<1x240xf32, #tpu.memory_space<vmem>>, vector<1x240xf32>
    %70 = arith.addf %68, %69 : vector<1x240xf32>
    %cst_69 = arith.constant 0.000000e+00 : f32
    %71 = vector.broadcast %cst_69 : f32 to vector<1x240xf32>
    %72 = arith.maximumf %70, %71 : vector<1x240xf32>
    %c0_70 = arith.constant 0 : index
    %c0_71 = arith.constant 0 : index
    %c0_72 = arith.constant 0 : index
    %c0_73 = arith.constant 0 : index
    %73 = vector.load %arg2[%c0_70, %c0_71, %c0_72, %c0_73] : memref<4x2x2x240xbf16, #tpu.memory_space<vmem>>, vector<1x1x1x240xbf16>
    %74 = vector.shape_cast %73 : vector<1x1x1x240xbf16> to vector<1x1x240xbf16>
    %75 = arith.extf %74 : vector<1x1x240xbf16> to vector<1x1x240xf32>
    %c1_74 = arith.constant 1 : index
    %c0_75 = arith.constant 0 : index
    %c0_76 = arith.constant 0 : index
    %c0_77 = arith.constant 0 : index
    %76 = vector.load %arg2[%c1_74, %c0_75, %c0_76, %c0_77] : memref<4x2x2x240xbf16, #tpu.memory_space<vmem>>, vector<1x1x1x240xbf16>
    %77 = vector.shape_cast %76 : vector<1x1x1x240xbf16> to vector<1x1x240xbf16>
    %78 = arith.extf %77 : vector<1x1x240xbf16> to vector<1x1x240xf32>
    %79 = arith.addf %75, %78 : vector<1x1x240xf32>
    %c0_78 = arith.constant 0 : index
    %c0_79 = arith.constant 0 : index
    %c1_80 = arith.constant 1 : index
    %c0_81 = arith.constant 0 : index
    %80 = vector.load %arg2[%c0_78, %c0_79, %c1_80, %c0_81] : memref<4x2x2x240xbf16, #tpu.memory_space<vmem>>, vector<1x1x1x240xbf16>
    %81 = vector.shape_cast %80 : vector<1x1x1x240xbf16> to vector<1x1x240xbf16>
    %82 = arith.extf %81 : vector<1x1x240xbf16> to vector<1x1x240xf32>
    %83 = arith.addf %79, %82 : vector<1x1x240xf32>
    %c2_82 = arith.constant 2 : index
    %c0_83 = arith.constant 0 : index
    %c0_84 = arith.constant 0 : index
    %c0_85 = arith.constant 0 : index
    %84 = vector.load %arg2[%c2_82, %c0_83, %c0_84, %c0_85] : memref<4x2x2x240xbf16, #tpu.memory_space<vmem>>, vector<1x1x1x240xbf16>
    %85 = vector.shape_cast %84 : vector<1x1x1x240xbf16> to vector<1x1x240xbf16>
    %86 = arith.extf %85 : vector<1x1x240xbf16> to vector<1x1x240xf32>
    %87 = arith.addf %83, %86 : vector<1x1x240xf32>
    %c3_86 = arith.constant 3 : index
    %c0_87 = arith.constant 0 : index
    %c0_88 = arith.constant 0 : index
    %c0_89 = arith.constant 0 : index
    %88 = vector.load %arg2[%c3_86, %c0_87, %c0_88, %c0_89] : memref<4x2x2x240xbf16, #tpu.memory_space<vmem>>, vector<1x1x1x240xbf16>
    %89 = vector.shape_cast %88 : vector<1x1x1x240xbf16> to vector<1x1x240xbf16>
    %90 = arith.extf %89 : vector<1x1x240xbf16> to vector<1x1x240xf32>
    %91 = arith.addf %87, %90 : vector<1x1x240xf32>
    %c2_90 = arith.constant 2 : index
    %c0_91 = arith.constant 0 : index
    %c1_92 = arith.constant 1 : index
    %c0_93 = arith.constant 0 : index
    %92 = vector.load %arg2[%c2_90, %c0_91, %c1_92, %c0_93] : memref<4x2x2x240xbf16, #tpu.memory_space<vmem>>, vector<1x1x1x240xbf16>
    %93 = vector.shape_cast %92 : vector<1x1x1x240xbf16> to vector<1x1x240xbf16>
    %94 = arith.extf %93 : vector<1x1x240xbf16> to vector<1x1x240xf32>
    %95 = arith.addf %91, %94 : vector<1x1x240xf32>
    %c0_94 = arith.constant 0 : index
    %c1_95 = arith.constant 1 : index
    %c0_96 = arith.constant 0 : index
    %c0_97 = arith.constant 0 : index
    %96 = vector.load %arg2[%c0_94, %c1_95, %c0_96, %c0_97] : memref<4x2x2x240xbf16, #tpu.memory_space<vmem>>, vector<1x1x1x240xbf16>
    %97 = vector.shape_cast %96 : vector<1x1x1x240xbf16> to vector<1x1x240xbf16>
    %98 = arith.extf %97 : vector<1x1x240xbf16> to vector<1x1x240xf32>
    %99 = arith.addf %95, %98 : vector<1x1x240xf32>
    %c1_98 = arith.constant 1 : index
    %c1_99 = arith.constant 1 : index
    %c0_100 = arith.constant 0 : index
    %c0_101 = arith.constant 0 : index
    %100 = vector.load %arg2[%c1_98, %c1_99, %c0_100, %c0_101] : memref<4x2x2x240xbf16, #tpu.memory_space<vmem>>, vector<1x1x1x240xbf16>
    %101 = vector.shape_cast %100 : vector<1x1x1x240xbf16> to vector<1x1x240xbf16>
    %102 = arith.extf %101 : vector<1x1x240xbf16> to vector<1x1x240xf32>
    %103 = arith.addf %99, %102 : vector<1x1x240xf32>
    %c0_102 = arith.constant 0 : index
    %c1_103 = arith.constant 1 : index
    %c1_104 = arith.constant 1 : index
    %c0_105 = arith.constant 0 : index
    %104 = vector.load %arg2[%c0_102, %c1_103, %c1_104, %c0_105] : memref<4x2x2x240xbf16, #tpu.memory_space<vmem>>, vector<1x1x1x240xbf16>
    %105 = vector.shape_cast %104 : vector<1x1x1x240xbf16> to vector<1x1x240xbf16>
    %106 = arith.extf %105 : vector<1x1x240xbf16> to vector<1x1x240xf32>
    %107 = arith.addf %103, %106 : vector<1x1x240xf32>
    %cst_106 = arith.constant 0.111111112 : f32
    %108 = vector.broadcast %cst_106 : f32 to vector<1x1x240xf32>
    %109 = arith.mulf %107, %108 : vector<1x1x240xf32>
    %cst_107 = arith.constant 0.000000e+00 : f32
    %110 = vector.broadcast %cst_107 : f32 to vector<1x1x240xf32>
    %111 = arith.maximumf %109, %110 : vector<1x1x240xf32>
    %112 = arith.truncf %111 : vector<1x1x240xf32> to vector<1x1x240xbf16>
    %c0_108 = arith.constant 0 : index
    %c0_109 = arith.constant 0 : index
    %c0_110 = arith.constant 0 : index
    %c0_111 = arith.constant 0 : index
    %113 = vector.load %arg7[%c0_108, %c0_109, %c0_110, %c0_111] : memref<1x1x1x480xbf16, #tpu.memory_space<vmem>>, vector<1x1x1x240xbf16>
    %114 = vector.shape_cast %113 : vector<1x1x1x240xbf16> to vector<1x1x240xbf16>
    %115 = vector.shape_cast %112 : vector<1x1x240xbf16> to vector<1x1x1x240xbf16>
    tpu.vector_store %arg7[%c0_108, %c0_109, %c0_110, %c0_111], %115 {strides = array<i32>} : memref<1x1x1x480xbf16, #tpu.memory_space<vmem>>, vector<1x1x1x240xbf16>,
    %116 = vector.shape_cast %72 : vector<1x240xf32> to vector<1x1x240xf32>
    %117 = arith.truncf %116 : vector<1x1x240xf32> to vector<1x1x240xbf16>
    %c0_112 = arith.constant 0 : index
    %c0_113 = arith.constant 0 : index
    %c0_114 = arith.constant 0 : index
    %c240 = arith.constant 240 : index
    %118 = vector.load %arg7[%c0_112, %c0_113, %c0_114, %c240] : memref<1x1x1x480xbf16, #tpu.memory_space<vmem>>, vector<1x1x1x240xbf16>
    %119 = vector.shape_cast %118 : vector<1x1x1x240xbf16> to vector<1x1x240xbf16>
    %120 = vector.shape_cast %117 : vector<1x1x240xbf16> to vector<1x1x1x240xbf16>
    tpu.vector_store %arg7[%c0_112, %c0_113, %c0_114, %c240], %120 {strides = array<i32>} : memref<1x1x1x480xbf16, #tpu.memory_space<vmem>>, vector<1x1x1x240xbf16>,
    return
  }
  func.func @transform_0(%arg0: i32) -> (i32, i32, i32, i32) {
    %c0_i32 = arith.constant 0 : i32
    %c0_i32_0 = arith.constant 0 : i32
    %c0_i32_1 = arith.constant 0 : i32
    %c0_i32_2 = arith.constant 0 : i32
    return %arg0, %c0_i32, %c0_i32_0, %c0_i32_1 : i32, i32, i32, i32
  }
  func.func @transform_1(%arg0: i32) -> (i32, i32, i32, i32) {
    %c0_i32 = arith.constant 0 : i32
    %c0_i32_0 = arith.constant 0 : i32
    %c0_i32_1 = arith.constant 0 : i32
    %c0_i32_2 = arith.constant 0 : i32
    return %arg0, %c0_i32, %c0_i32_0, %c0_i32_1 : i32, i32, i32, i32
  }
  func.func @transform_2(%arg0: i32) -> (i32, i32, i32, i32) {
    %c0_i32 = arith.constant 0 : i32
    %c0_i32_0 = arith.constant 0 : i32
    %c0_i32_1 = arith.constant 0 : i32
    %c0_i32_2 = arith.constant 0 : i32
    %c0_i32_3 = arith.constant 0 : i32
    return %c0_i32, %c0_i32_0, %c0_i32_1, %c0_i32_2 : i32, i32, i32, i32
  }
  func.func @transform_3(%arg0: i32) -> (i32, i32) {
    %c0_i32 = arith.constant 0 : i32
    %c0_i32_0 = arith.constant 0 : i32
    %c0_i32_1 = arith.constant 0 : i32
    return %c0_i32, %c0_i32_0 : i32, i32
  }
  func.func @transform_4(%arg0: i32) -> (i32, i32) {
    %c0_i32 = arith.constant 0 : i32
    %c0_i32_0 = arith.constant 0 : i32
    %c0_i32_1 = arith.constant 0 : i32
    return %c0_i32, %c0_i32_0 : i32, i32
  }
  func.func @transform_5(%arg0: i32) -> (i32, i32) {
    %c0_i32 = arith.constant 0 : i32
    %c0_i32_0 = arith.constant 0 : i32
    %c0_i32_1 = arith.constant 0 : i32
    return %c0_i32, %c0_i32_0 : i32, i32
  }
  func.func @transform_6(%arg0: i32) -> (i32, i32, i32, i32) {
    %c0_i32 = arith.constant 0 : i32
    %c0_i32_0 = arith.constant 0 : i32
    %c0_i32_1 = arith.constant 0 : i32
    %c0_i32_2 = arith.constant 0 : i32
    return %arg0, %c0_i32, %c0_i32_0, %c0_i32_1 : i32, i32, i32, i32
  }
}

module attributes {stable_mosaic.version = 11 : i64} {
  func.func @_unit_add_kernel(%arg0: i32, %arg1: memref<1x1x1x480xbf16, #tpu.memory_space<vmem>>, %arg2: memref<480x128xbf16, #tpu.memory_space<vmem>>, %arg3: memref<1x128xf32, #tpu.memory_space<vmem>>, %arg4: memref<9x1x1x128xf32, #tpu.memory_space<vmem>>, %arg5: memref<1x128xf32, #tpu.memory_space<vmem>>, %arg6: memref<128x480xbf16, #tpu.memory_space<vmem>>, %arg7: memref<1x480xf32, #tpu.memory_space<vmem>>, %arg8: memref<1x1x1x480xbf16, #tpu.memory_space<vmem>>, %arg9: memref<3x3x128xf32, #tpu.memory_space<vmem>>) attributes {dimension_semantics = [#tpu.dimension_semantics<parallel>], iteration_bounds = array<i64: 2>, scalar_prefetch = 0 : i64, scratch_operands = 1 : i64, tpu.core_type = #tpu.core_type<tc>, window_params = [{transform_indices = @transform_0, window_bounds = array<i64: 1, 1, 1, 480>}, {pipeline_mode = #tpu.pipeline_mode<synchronous>, transform_indices = @transform_1, window_bounds = array<i64: 480, 128>}, {pipeline_mode = #tpu.pipeline_mode<synchronous>, transform_indices = @transform_2, window_bounds = array<i64: 1, 128>}, {pipeline_mode = #tpu.pipeline_mode<synchronous>, transform_indices = @transform_3, window_bounds = array<i64: 9, 1, 1, 128>}, {pipeline_mode = #tpu.pipeline_mode<synchronous>, transform_indices = @transform_4, window_bounds = array<i64: 1, 128>}, {pipeline_mode = #tpu.pipeline_mode<synchronous>, transform_indices = @transform_5, window_bounds = array<i64: 128, 480>}, {pipeline_mode = #tpu.pipeline_mode<synchronous>, transform_indices = @transform_6, window_bounds = array<i64: 1, 480>}, {transform_indices = @transform_7, window_bounds = array<i64: 1, 1, 1, 480>}]} {
    %c0 = arith.constant 0 : index
    %c0_0 = arith.constant 0 : index
    %c0_1 = arith.constant 0 : index
    %c0_2 = arith.constant 0 : index
    %0 = vector.load %arg1[%c0, %c0_0, %c0_1, %c0_2] : memref<1x1x1x480xbf16, #tpu.memory_space<vmem>>, vector<1x1x1x480xbf16>
    %1 = vector.shape_cast %0 : vector<1x1x1x480xbf16> to vector<1x1x480xbf16>
    %2 = vector.shape_cast %1 : vector<1x1x480xbf16> to vector<1x480xbf16>
    %c0_3 = arith.constant 0 : index
    %c0_4 = arith.constant 0 : index
    %3 = vector.load %arg2[%c0_3, %c0_4] : memref<480x128xbf16, #tpu.memory_space<vmem>>, vector<480x128xbf16>
    %cst = arith.constant dense<0.000000e+00> : vector<1x128xf32>
    %4 = tpu.matmul %2, %3, %cst {dimension_numbers = #tpu.dot_dimension_numbers<[1], [0], [0], [1], [0, 0, 1, 1], [], []>} : vector<1x480xbf16>, vector<480x128xbf16>, vector<1x128xf32> -> vector<1x128xf32>
    %c0_5 = arith.constant 0 : index
    %c0_6 = arith.constant 0 : index
    %5 = vector.load %arg3[%c0_5, %c0_6] : memref<1x128xf32, #tpu.memory_space<vmem>>, vector<1x128xf32>
    %6 = arith.addf %4, %5 : vector<1x128xf32>
    %cst_7 = arith.constant 0.000000e+00 : f32
    %7 = vector.broadcast %cst_7 : f32 to vector<1x128xf32>
    %8 = arith.maximumf %6, %7 : vector<1x128xf32>
    %cst_8 = arith.constant 0.000000e+00 : f32
    %9 = vector.broadcast %cst_8 : f32 to vector<3x3x128xf32>
    %c0_9 = arith.constant 0 : index
    %c0_10 = arith.constant 0 : index
    %c0_11 = arith.constant 0 : index
    %10 = vector.load %arg9[%c0_9, %c0_10, %c0_11] : memref<3x3x128xf32, #tpu.memory_space<vmem>>, vector<3x3x128xf32>
    tpu.vector_store %arg9[%c0_9, %c0_10, %c0_11], %9 {strides = array<i32>} : memref<3x3x128xf32, #tpu.memory_space<vmem>>, vector<3x3x128xf32>,
    %11 = vector.shape_cast %8 : vector<1x128xf32> to vector<1x1x128xf32>
    %c1 = arith.constant 1 : index
    %c1_12 = arith.constant 1 : index
    %c0_13 = arith.constant 0 : index
    %12 = vector.load %arg9[%c1, %c1_12, %c0_13] : memref<3x3x128xf32, #tpu.memory_space<vmem>>, vector<1x1x128xf32>
    tpu.vector_store %arg9[%c1, %c1_12, %c0_13], %11 {strides = array<i32>} : memref<3x3x128xf32, #tpu.memory_space<vmem>>, vector<1x1x128xf32>,
    %c0_14 = arith.constant 0 : index
    %c0_15 = arith.constant 0 : index
    %c0_16 = arith.constant 0 : index
    %13 = vector.load %arg9[%c0_14, %c0_15, %c0_16] : memref<3x3x128xf32, #tpu.memory_space<vmem>>, vector<1x1x128xf32>
    %c0_17 = arith.constant 0 : index
    %c0_18 = arith.constant 0 : index
    %c0_19 = arith.constant 0 : index
    %c0_20 = arith.constant 0 : index
    %14 = vector.load %arg4[%c0_17, %c0_18, %c0_19, %c0_20] : memref<9x1x1x128xf32, #tpu.memory_space<vmem>>, vector<1x1x1x128xf32>
    %15 = vector.shape_cast %14 : vector<1x1x1x128xf32> to vector<1x1x128xf32>
    %16 = arith.mulf %13, %15 : vector<1x1x128xf32>
    %c0_21 = arith.constant 0 : index
    %c1_22 = arith.constant 1 : index
    %c0_23 = arith.constant 0 : index
    %17 = vector.load %arg9[%c0_21, %c1_22, %c0_23] : memref<3x3x128xf32, #tpu.memory_space<vmem>>, vector<1x1x128xf32>
    %c1_24 = arith.constant 1 : index
    %c0_25 = arith.constant 0 : index
    %c0_26 = arith.constant 0 : index
    %c0_27 = arith.constant 0 : index
    %18 = vector.load %arg4[%c1_24, %c0_25, %c0_26, %c0_27] : memref<9x1x1x128xf32, #tpu.memory_space<vmem>>, vector<1x1x1x128xf32>
    %19 = vector.shape_cast %18 : vector<1x1x1x128xf32> to vector<1x1x128xf32>
    %20 = arith.mulf %17, %19 : vector<1x1x128xf32>
    %21 = arith.addf %16, %20 : vector<1x1x128xf32>
    %c0_28 = arith.constant 0 : index
    %c2 = arith.constant 2 : index
    %c0_29 = arith.constant 0 : index
    %22 = vector.load %arg9[%c0_28, %c2, %c0_29] : memref<3x3x128xf32, #tpu.memory_space<vmem>>, vector<1x1x128xf32>
    %c2_30 = arith.constant 2 : index
    %c0_31 = arith.constant 0 : index
    %c0_32 = arith.constant 0 : index
    %c0_33 = arith.constant 0 : index
    %23 = vector.load %arg4[%c2_30, %c0_31, %c0_32, %c0_33] : memref<9x1x1x128xf32, #tpu.memory_space<vmem>>, vector<1x1x1x128xf32>
    %24 = vector.shape_cast %23 : vector<1x1x1x128xf32> to vector<1x1x128xf32>
    %25 = arith.mulf %22, %24 : vector<1x1x128xf32>
    %26 = arith.addf %21, %25 : vector<1x1x128xf32>
    %c1_34 = arith.constant 1 : index
    %c0_35 = arith.constant 0 : index
    %c0_36 = arith.constant 0 : index
    %27 = vector.load %arg9[%c1_34, %c0_35, %c0_36] : memref<3x3x128xf32, #tpu.memory_space<vmem>>, vector<1x1x128xf32>
    %c3 = arith.constant 3 : index
    %c0_37 = arith.constant 0 : index
    %c0_38 = arith.constant 0 : index
    %c0_39 = arith.constant 0 : index
    %28 = vector.load %arg4[%c3, %c0_37, %c0_38, %c0_39] : memref<9x1x1x128xf32, #tpu.memory_space<vmem>>, vector<1x1x1x128xf32>
    %29 = vector.shape_cast %28 : vector<1x1x1x128xf32> to vector<1x1x128xf32>
    %30 = arith.mulf %27, %29 : vector<1x1x128xf32>
    %31 = arith.addf %26, %30 : vector<1x1x128xf32>
    %c1_40 = arith.constant 1 : index
    %c1_41 = arith.constant 1 : index
    %c0_42 = arith.constant 0 : index
    %32 = vector.load %arg9[%c1_40, %c1_41, %c0_42] : memref<3x3x128xf32, #tpu.memory_space<vmem>>, vector<1x1x128xf32>
    %c4 = arith.constant 4 : index
    %c0_43 = arith.constant 0 : index
    %c0_44 = arith.constant 0 : index
    %c0_45 = arith.constant 0 : index
    %33 = vector.load %arg4[%c4, %c0_43, %c0_44, %c0_45] : memref<9x1x1x128xf32, #tpu.memory_space<vmem>>, vector<1x1x1x128xf32>
    %34 = vector.shape_cast %33 : vector<1x1x1x128xf32> to vector<1x1x128xf32>
    %35 = arith.mulf %32, %34 : vector<1x1x128xf32>
    %36 = arith.addf %31, %35 : vector<1x1x128xf32>
    %c1_46 = arith.constant 1 : index
    %c2_47 = arith.constant 2 : index
    %c0_48 = arith.constant 0 : index
    %37 = vector.load %arg9[%c1_46, %c2_47, %c0_48] : memref<3x3x128xf32, #tpu.memory_space<vmem>>, vector<1x1x128xf32>
    %c5 = arith.constant 5 : index
    %c0_49 = arith.constant 0 : index
    %c0_50 = arith.constant 0 : index
    %c0_51 = arith.constant 0 : index
    %38 = vector.load %arg4[%c5, %c0_49, %c0_50, %c0_51] : memref<9x1x1x128xf32, #tpu.memory_space<vmem>>, vector<1x1x1x128xf32>
    %39 = vector.shape_cast %38 : vector<1x1x1x128xf32> to vector<1x1x128xf32>
    %40 = arith.mulf %37, %39 : vector<1x1x128xf32>
    %41 = arith.addf %36, %40 : vector<1x1x128xf32>
    %c2_52 = arith.constant 2 : index
    %c0_53 = arith.constant 0 : index
    %c0_54 = arith.constant 0 : index
    %42 = vector.load %arg9[%c2_52, %c0_53, %c0_54] : memref<3x3x128xf32, #tpu.memory_space<vmem>>, vector<1x1x128xf32>
    %c6 = arith.constant 6 : index
    %c0_55 = arith.constant 0 : index
    %c0_56 = arith.constant 0 : index
    %c0_57 = arith.constant 0 : index
    %43 = vector.load %arg4[%c6, %c0_55, %c0_56, %c0_57] : memref<9x1x1x128xf32, #tpu.memory_space<vmem>>, vector<1x1x1x128xf32>
    %44 = vector.shape_cast %43 : vector<1x1x1x128xf32> to vector<1x1x128xf32>
    %45 = arith.mulf %42, %44 : vector<1x1x128xf32>
    %46 = arith.addf %41, %45 : vector<1x1x128xf32>
    %c2_58 = arith.constant 2 : index
    %c1_59 = arith.constant 1 : index
    %c0_60 = arith.constant 0 : index
    %47 = vector.load %arg9[%c2_58, %c1_59, %c0_60] : memref<3x3x128xf32, #tpu.memory_space<vmem>>, vector<1x1x128xf32>
    %c7 = arith.constant 7 : index
    %c0_61 = arith.constant 0 : index
    %c0_62 = arith.constant 0 : index
    %c0_63 = arith.constant 0 : index
    %48 = vector.load %arg4[%c7, %c0_61, %c0_62, %c0_63] : memref<9x1x1x128xf32, #tpu.memory_space<vmem>>, vector<1x1x1x128xf32>
    %49 = vector.shape_cast %48 : vector<1x1x1x128xf32> to vector<1x1x128xf32>
    %50 = arith.mulf %47, %49 : vector<1x1x128xf32>
    %51 = arith.addf %46, %50 : vector<1x1x128xf32>
    %c2_64 = arith.constant 2 : index
    %c2_65 = arith.constant 2 : index
    %c0_66 = arith.constant 0 : index
    %52 = vector.load %arg9[%c2_64, %c2_65, %c0_66] : memref<3x3x128xf32, #tpu.memory_space<vmem>>, vector<1x1x128xf32>
    %c8 = arith.constant 8 : index
    %c0_67 = arith.constant 0 : index
    %c0_68 = arith.constant 0 : index
    %c0_69 = arith.constant 0 : index
    %53 = vector.load %arg4[%c8, %c0_67, %c0_68, %c0_69] : memref<9x1x1x128xf32, #tpu.memory_space<vmem>>, vector<1x1x1x128xf32>
    %54 = vector.shape_cast %53 : vector<1x1x1x128xf32> to vector<1x1x128xf32>
    %55 = arith.mulf %52, %54 : vector<1x1x128xf32>
    %56 = arith.addf %51, %55 : vector<1x1x128xf32>
    %c0_70 = arith.constant 0 : index
    %c0_71 = arith.constant 0 : index
    %57 = vector.load %arg5[%c0_70, %c0_71] : memref<1x128xf32, #tpu.memory_space<vmem>>, vector<1x128xf32>
    %58 = vector.shape_cast %57 : vector<1x128xf32> to vector<1x1x128xf32>
    %59 = arith.addf %56, %58 : vector<1x1x128xf32>
    %60 = vector.shape_cast %59 : vector<1x1x128xf32> to vector<1x128xf32>
    %61 = arith.truncf %60 : vector<1x128xf32> to vector<1x128xbf16>
    %c0_72 = arith.constant 0 : index
    %c0_73 = arith.constant 0 : index
    %62 = vector.load %arg6[%c0_72, %c0_73] : memref<128x480xbf16, #tpu.memory_space<vmem>>, vector<128x480xbf16>
    %cst_74 = arith.constant dense<0.000000e+00> : vector<1x480xf32>
    %63 = tpu.matmul %61, %62, %cst_74 {dimension_numbers = #tpu.dot_dimension_numbers<[1], [0], [0], [1], [0, 0, 1, 1], [], []>} : vector<1x128xbf16>, vector<128x480xbf16>, vector<1x480xf32> -> vector<1x480xf32>
    %c0_75 = arith.constant 0 : index
    %c0_76 = arith.constant 0 : index
    %64 = vector.load %arg7[%c0_75, %c0_76] : memref<1x480xf32, #tpu.memory_space<vmem>>, vector<1x480xf32>
    %65 = arith.addf %63, %64 : vector<1x480xf32>
    %66 = arith.extf %2 : vector<1x480xbf16> to vector<1x480xf32>
    %67 = arith.addf %65, %66 : vector<1x480xf32>
    %cst_77 = arith.constant 0.000000e+00 : f32
    %68 = vector.broadcast %cst_77 : f32 to vector<1x480xf32>
    %69 = arith.maximumf %67, %68 : vector<1x480xf32>
    %70 = vector.shape_cast %69 : vector<1x480xf32> to vector<1x1x480xf32>
    %71 = arith.truncf %70 : vector<1x1x480xf32> to vector<1x1x480xbf16>
    %c0_78 = arith.constant 0 : index
    %c0_79 = arith.constant 0 : index
    %c0_80 = arith.constant 0 : index
    %c0_81 = arith.constant 0 : index
    %72 = vector.load %arg8[%c0_78, %c0_79, %c0_80, %c0_81] : memref<1x1x1x480xbf16, #tpu.memory_space<vmem>>, vector<1x1x1x480xbf16>
    %73 = vector.shape_cast %72 : vector<1x1x1x480xbf16> to vector<1x1x480xbf16>
    %74 = vector.shape_cast %71 : vector<1x1x480xbf16> to vector<1x1x1x480xbf16>
    tpu.vector_store %arg8[%c0_78, %c0_79, %c0_80, %c0_81], %74 {strides = array<i32>} : memref<1x1x1x480xbf16, #tpu.memory_space<vmem>>, vector<1x1x1x480xbf16>,
    return
  }
  func.func @transform_0(%arg0: i32) -> (i32, i32, i32, i32) {
    %c0_i32 = arith.constant 0 : i32
    %c0_i32_0 = arith.constant 0 : i32
    %c0_i32_1 = arith.constant 0 : i32
    %c0_i32_2 = arith.constant 0 : i32
    return %arg0, %c0_i32, %c0_i32_0, %c0_i32_1 : i32, i32, i32, i32
  }
  func.func @transform_1(%arg0: i32) -> (i32, i32) {
    %c0_i32 = arith.constant 0 : i32
    %c0_i32_0 = arith.constant 0 : i32
    %c0_i32_1 = arith.constant 0 : i32
    return %c0_i32, %c0_i32_0 : i32, i32
  }
  func.func @transform_2(%arg0: i32) -> (i32, i32) {
    %c0_i32 = arith.constant 0 : i32
    %c0_i32_0 = arith.constant 0 : i32
    %c0_i32_1 = arith.constant 0 : i32
    return %c0_i32, %c0_i32_0 : i32, i32
  }
  func.func @transform_3(%arg0: i32) -> (i32, i32, i32, i32) {
    %c0_i32 = arith.constant 0 : i32
    %c0_i32_0 = arith.constant 0 : i32
    %c0_i32_1 = arith.constant 0 : i32
    %c0_i32_2 = arith.constant 0 : i32
    %c0_i32_3 = arith.constant 0 : i32
    return %c0_i32, %c0_i32_0, %c0_i32_1, %c0_i32_2 : i32, i32, i32, i32
  }
  func.func @transform_4(%arg0: i32) -> (i32, i32) {
    %c0_i32 = arith.constant 0 : i32
    %c0_i32_0 = arith.constant 0 : i32
    %c0_i32_1 = arith.constant 0 : i32
    return %c0_i32, %c0_i32_0 : i32, i32
  }
  func.func @transform_5(%arg0: i32) -> (i32, i32) {
    %c0_i32 = arith.constant 0 : i32
    %c0_i32_0 = arith.constant 0 : i32
    %c0_i32_1 = arith.constant 0 : i32
    return %c0_i32, %c0_i32_0 : i32, i32
  }
  func.func @transform_6(%arg0: i32) -> (i32, i32) {
    %c0_i32 = arith.constant 0 : i32
    %c0_i32_0 = arith.constant 0 : i32
    %c0_i32_1 = arith.constant 0 : i32
    return %c0_i32, %c0_i32_0 : i32, i32
  }
  func.func @transform_7(%arg0: i32) -> (i32, i32, i32, i32) {
    %c0_i32 = arith.constant 0 : i32
    %c0_i32_0 = arith.constant 0 : i32
    %c0_i32_1 = arith.constant 0 : i32
    %c0_i32_2 = arith.constant 0 : i32
    return %arg0, %c0_i32, %c0_i32_0, %c0_i32_1 : i32, i32, i32, i32
  }
}

module attributes {stable_mosaic.version = 11 : i64} {
  func.func @_dense1x1_kernel(%arg0: i32, %arg1: memref<2x480xbf16, #tpu.memory_space<vmem>>, %arg2: memref<480x256xbf16, #tpu.memory_space<vmem>>, %arg3: memref<1x256xf32, #tpu.memory_space<vmem>>, %arg4: memref<2x256xbf16, #tpu.memory_space<vmem>>) attributes {dimension_semantics = [#tpu.dimension_semantics<parallel>], iteration_bounds = array<i64: 1>, scalar_prefetch = 0 : i64, scratch_operands = 0 : i64, tpu.core_type = #tpu.core_type<tc>, window_params = [{transform_indices = @transform_0, window_bounds = array<i64: 2, 480>}, {pipeline_mode = #tpu.pipeline_mode<synchronous>, transform_indices = @transform_1, window_bounds = array<i64: 480, 256>}, {pipeline_mode = #tpu.pipeline_mode<synchronous>, transform_indices = @transform_2, window_bounds = array<i64: 1, 256>}, {transform_indices = @transform_3, window_bounds = array<i64: 2, 256>}]} {
    %c0 = arith.constant 0 : index
    %c0_0 = arith.constant 0 : index
    %0 = vector.load %arg1[%c0, %c0_0] : memref<2x480xbf16, #tpu.memory_space<vmem>>, vector<2x480xbf16>
    %c0_1 = arith.constant 0 : index
    %c0_2 = arith.constant 0 : index
    %1 = vector.load %arg2[%c0_1, %c0_2] : memref<480x256xbf16, #tpu.memory_space<vmem>>, vector<480x256xbf16>
    %cst = arith.constant dense<0.000000e+00> : vector<2x256xf32>
    %2 = tpu.matmul %0, %1, %cst {dimension_numbers = #tpu.dot_dimension_numbers<[1], [0], [0], [1], [0, 0, 1, 1], [], []>} : vector<2x480xbf16>, vector<480x256xbf16>, vector<2x256xf32> -> vector<2x256xf32>
    %c0_3 = arith.constant 0 : index
    %c0_4 = arith.constant 0 : index
    %3 = vector.load %arg3[%c0_3, %c0_4] : memref<1x256xf32, #tpu.memory_space<vmem>>, vector<1x256xf32>
    %4 = vector.broadcast %3 : vector<1x256xf32> to vector<2x256xf32>
    %5 = arith.addf %2, %4 : vector<2x256xf32>
    %cst_5 = arith.constant 0.000000e+00 : f32
    %6 = vector.broadcast %cst_5 : f32 to vector<2x256xf32>
    %7 = arith.maximumf %5, %6 : vector<2x256xf32>
    %8 = arith.truncf %7 : vector<2x256xf32> to vector<2x256xbf16>
    %c0_6 = arith.constant 0 : index
    %c0_7 = arith.constant 0 : index
    %9 = vector.load %arg4[%c0_6, %c0_7] : memref<2x256xbf16, #tpu.memory_space<vmem>>, vector<2x256xbf16>
    tpu.vector_store %arg4[%c0_6, %c0_7], %8 {strides = array<i32>} : memref<2x256xbf16, #tpu.memory_space<vmem>>, vector<2x256xbf16>,
    return
  }
  func.func @transform_0(%arg0: i32) -> (i32, i32) {
    %c0_i32 = arith.constant 0 : i32
    %c0_i32_0 = arith.constant 0 : i32
    return %arg0, %c0_i32 : i32, i32
  }
  func.func @transform_1(%arg0: i32) -> (i32, i32) {
    %c0_i32 = arith.constant 0 : i32
    %c0_i32_0 = arith.constant 0 : i32
    %c0_i32_1 = arith.constant 0 : i32
    return %c0_i32, %c0_i32_0 : i32, i32
  }
  func.func @transform_2(%arg0: i32) -> (i32, i32) {
    %c0_i32 = arith.constant 0 : i32
    %c0_i32_0 = arith.constant 0 : i32
    %c0_i32_1 = arith.constant 0 : i32
    return %c0_i32, %c0_i32_0 : i32, i32
  }
  func.func @transform_3(%arg0: i32) -> (i32, i32) {
    %c0_i32 = arith.constant 0 : i32
    %c0_i32_0 = arith.constant 0 : i32
    return %arg0, %c0_i32 : i32, i32
  }
}

module attributes {stable_mosaic.version = 11 : i64} {
  func.func @_concat_tail_kernel(%arg0: i32, %arg1: memref<4x2x2x256xbf16, #tpu.memory_space<vmem>>, %arg2: memref<4x2x2x480xbf16, #tpu.memory_space<vmem>>, %arg3: memref<9x1x1x256xf32, #tpu.memory_space<vmem>>, %arg4: memref<1x256xf32, #tpu.memory_space<vmem>>, %arg5: memref<256x480xbf16, #tpu.memory_space<vmem>>, %arg6: memref<1x480xf32, #tpu.memory_space<vmem>>, %arg7: memref<1x1x1x960xbf16, #tpu.memory_space<vmem>>) attributes {dimension_semantics = [#tpu.dimension_semantics<parallel>], iteration_bounds = array<i64: 2>, scalar_prefetch = 0 : i64, scratch_operands = 0 : i64, tpu.core_type = #tpu.core_type<tc>, window_params = [{transform_indices = @transform_0, window_bounds = array<i64: 4, 2, 2, 256>}, {transform_indices = @transform_1, window_bounds = array<i64: 4, 2, 2, 480>}, {pipeline_mode = #tpu.pipeline_mode<synchronous>, transform_indices = @transform_2, window_bounds = array<i64: 9, 1, 1, 256>}, {pipeline_mode = #tpu.pipeline_mode<synchronous>, transform_indices = @transform_3, window_bounds = array<i64: 1, 256>}, {pipeline_mode = #tpu.pipeline_mode<synchronous>, transform_indices = @transform_4, window_bounds = array<i64: 256, 480>}, {pipeline_mode = #tpu.pipeline_mode<synchronous>, transform_indices = @transform_5, window_bounds = array<i64: 1, 480>}, {transform_indices = @transform_6, window_bounds = array<i64: 1, 1, 1, 960>}]} {
    %c0 = arith.constant 0 : index
    %c0_0 = arith.constant 0 : index
    %c0_1 = arith.constant 0 : index
    %c0_2 = arith.constant 0 : index
    %0 = vector.load %arg1[%c0, %c0_0, %c0_1, %c0_2] : memref<4x2x2x256xbf16, #tpu.memory_space<vmem>>, vector<1x1x1x256xbf16>
    %1 = vector.shape_cast %0 : vector<1x1x1x256xbf16> to vector<1x1x256xbf16>
    %2 = arith.extf %1 : vector<1x1x256xbf16> to vector<1x1x256xf32>
    %c0_3 = arith.constant 0 : index
    %c0_4 = arith.constant 0 : index
    %c0_5 = arith.constant 0 : index
    %c0_6 = arith.constant 0 : index
    %3 = vector.load %arg3[%c0_3, %c0_4, %c0_5, %c0_6] : memref<9x1x1x256xf32, #tpu.memory_space<vmem>>, vector<1x1x1x256xf32>
    %4 = vector.shape_cast %3 : vector<1x1x1x256xf32> to vector<1x1x256xf32>
    %5 = arith.mulf %2, %4 : vector<1x1x256xf32>
    %c1 = arith.constant 1 : index
    %c0_7 = arith.constant 0 : index
    %c0_8 = arith.constant 0 : index
    %c0_9 = arith.constant 0 : index
    %6 = vector.load %arg1[%c1, %c0_7, %c0_8, %c0_9] : memref<4x2x2x256xbf16, #tpu.memory_space<vmem>>, vector<1x1x1x256xbf16>
    %7 = vector.shape_cast %6 : vector<1x1x1x256xbf16> to vector<1x1x256xbf16>
    %8 = arith.extf %7 : vector<1x1x256xbf16> to vector<1x1x256xf32>
    %c1_10 = arith.constant 1 : index
    %c0_11 = arith.constant 0 : index
    %c0_12 = arith.constant 0 : index
    %c0_13 = arith.constant 0 : index
    %9 = vector.load %arg3[%c1_10, %c0_11, %c0_12, %c0_13] : memref<9x1x1x256xf32, #tpu.memory_space<vmem>>, vector<1x1x1x256xf32>
    %10 = vector.shape_cast %9 : vector<1x1x1x256xf32> to vector<1x1x256xf32>
    %11 = arith.mulf %8, %10 : vector<1x1x256xf32>
    %12 = arith.addf %5, %11 : vector<1x1x256xf32>
    %c0_14 = arith.constant 0 : index
    %c0_15 = arith.constant 0 : index
    %c1_16 = arith.constant 1 : index
    %c0_17 = arith.constant 0 : index
    %13 = vector.load %arg1[%c0_14, %c0_15, %c1_16, %c0_17] : memref<4x2x2x256xbf16, #tpu.memory_space<vmem>>, vector<1x1x1x256xbf16>
    %14 = vector.shape_cast %13 : vector<1x1x1x256xbf16> to vector<1x1x256xbf16>
    %15 = arith.extf %14 : vector<1x1x256xbf16> to vector<1x1x256xf32>
    %c2 = arith.constant 2 : index
    %c0_18 = arith.constant 0 : index
    %c0_19 = arith.constant 0 : index
    %c0_20 = arith.constant 0 : index
    %16 = vector.load %arg3[%c2, %c0_18, %c0_19, %c0_20] : memref<9x1x1x256xf32, #tpu.memory_space<vmem>>, vector<1x1x1x256xf32>
    %17 = vector.shape_cast %16 : vector<1x1x1x256xf32> to vector<1x1x256xf32>
    %18 = arith.mulf %15, %17 : vector<1x1x256xf32>
    %19 = arith.addf %12, %18 : vector<1x1x256xf32>
    %c2_21 = arith.constant 2 : index
    %c0_22 = arith.constant 0 : index
    %c0_23 = arith.constant 0 : index
    %c0_24 = arith.constant 0 : index
    %20 = vector.load %arg1[%c2_21, %c0_22, %c0_23, %c0_24] : memref<4x2x2x256xbf16, #tpu.memory_space<vmem>>, vector<1x1x1x256xbf16>
    %21 = vector.shape_cast %20 : vector<1x1x1x256xbf16> to vector<1x1x256xbf16>
    %22 = arith.extf %21 : vector<1x1x256xbf16> to vector<1x1x256xf32>
    %c3 = arith.constant 3 : index
    %c0_25 = arith.constant 0 : index
    %c0_26 = arith.constant 0 : index
    %c0_27 = arith.constant 0 : index
    %23 = vector.load %arg3[%c3, %c0_25, %c0_26, %c0_27] : memref<9x1x1x256xf32, #tpu.memory_space<vmem>>, vector<1x1x1x256xf32>
    %24 = vector.shape_cast %23 : vector<1x1x1x256xf32> to vector<1x1x256xf32>
    %25 = arith.mulf %22, %24 : vector<1x1x256xf32>
    %26 = arith.addf %19, %25 : vector<1x1x256xf32>
    %c3_28 = arith.constant 3 : index
    %c0_29 = arith.constant 0 : index
    %c0_30 = arith.constant 0 : index
    %c0_31 = arith.constant 0 : index
    %27 = vector.load %arg1[%c3_28, %c0_29, %c0_30, %c0_31] : memref<4x2x2x256xbf16, #tpu.memory_space<vmem>>, vector<1x1x1x256xbf16>
    %28 = vector.shape_cast %27 : vector<1x1x1x256xbf16> to vector<1x1x256xbf16>
    %29 = arith.extf %28 : vector<1x1x256xbf16> to vector<1x1x256xf32>
    %c4 = arith.constant 4 : index
    %c0_32 = arith.constant 0 : index
    %c0_33 = arith.constant 0 : index
    %c0_34 = arith.constant 0 : index
    %30 = vector.load %arg3[%c4, %c0_32, %c0_33, %c0_34] : memref<9x1x1x256xf32, #tpu.memory_space<vmem>>, vector<1x1x1x256xf32>
    %31 = vector.shape_cast %30 : vector<1x1x1x256xf32> to vector<1x1x256xf32>
    %32 = arith.mulf %29, %31 : vector<1x1x256xf32>
    %33 = arith.addf %26, %32 : vector<1x1x256xf32>
    %c2_35 = arith.constant 2 : index
    %c0_36 = arith.constant 0 : index
    %c1_37 = arith.constant 1 : index
    %c0_38 = arith.constant 0 : index
    %34 = vector.load %arg1[%c2_35, %c0_36, %c1_37, %c0_38] : memref<4x2x2x256xbf16, #tpu.memory_space<vmem>>, vector<1x1x1x256xbf16>
    %35 = vector.shape_cast %34 : vector<1x1x1x256xbf16> to vector<1x1x256xbf16>
    %36 = arith.extf %35 : vector<1x1x256xbf16> to vector<1x1x256xf32>
    %c5 = arith.constant 5 : index
    %c0_39 = arith.constant 0 : index
    %c0_40 = arith.constant 0 : index
    %c0_41 = arith.constant 0 : index
    %37 = vector.load %arg3[%c5, %c0_39, %c0_40, %c0_41] : memref<9x1x1x256xf32, #tpu.memory_space<vmem>>, vector<1x1x1x256xf32>
    %38 = vector.shape_cast %37 : vector<1x1x1x256xf32> to vector<1x1x256xf32>
    %39 = arith.mulf %36, %38 : vector<1x1x256xf32>
    %40 = arith.addf %33, %39 : vector<1x1x256xf32>
    %c0_42 = arith.constant 0 : index
    %c1_43 = arith.constant 1 : index
    %c0_44 = arith.constant 0 : index
    %c0_45 = arith.constant 0 : index
    %41 = vector.load %arg1[%c0_42, %c1_43, %c0_44, %c0_45] : memref<4x2x2x256xbf16, #tpu.memory_space<vmem>>, vector<1x1x1x256xbf16>
    %42 = vector.shape_cast %41 : vector<1x1x1x256xbf16> to vector<1x1x256xbf16>
    %43 = arith.extf %42 : vector<1x1x256xbf16> to vector<1x1x256xf32>
    %c6 = arith.constant 6 : index
    %c0_46 = arith.constant 0 : index
    %c0_47 = arith.constant 0 : index
    %c0_48 = arith.constant 0 : index
    %44 = vector.load %arg3[%c6, %c0_46, %c0_47, %c0_48] : memref<9x1x1x256xf32, #tpu.memory_space<vmem>>, vector<1x1x1x256xf32>
    %45 = vector.shape_cast %44 : vector<1x1x1x256xf32> to vector<1x1x256xf32>
    %46 = arith.mulf %43, %45 : vector<1x1x256xf32>
    %47 = arith.addf %40, %46 : vector<1x1x256xf32>
    %c1_49 = arith.constant 1 : index
    %c1_50 = arith.constant 1 : index
    %c0_51 = arith.constant 0 : index
    %c0_52 = arith.constant 0 : index
    %48 = vector.load %arg1[%c1_49, %c1_50, %c0_51, %c0_52] : memref<4x2x2x256xbf16, #tpu.memory_space<vmem>>, vector<1x1x1x256xbf16>
    %49 = vector.shape_cast %48 : vector<1x1x1x256xbf16> to vector<1x1x256xbf16>
    %50 = arith.extf %49 : vector<1x1x256xbf16> to vector<1x1x256xf32>
    %c7 = arith.constant 7 : index
    %c0_53 = arith.constant 0 : index
    %c0_54 = arith.constant 0 : index
    %c0_55 = arith.constant 0 : index
    %51 = vector.load %arg3[%c7, %c0_53, %c0_54, %c0_55] : memref<9x1x1x256xf32, #tpu.memory_space<vmem>>, vector<1x1x1x256xf32>
    %52 = vector.shape_cast %51 : vector<1x1x1x256xf32> to vector<1x1x256xf32>
    %53 = arith.mulf %50, %52 : vector<1x1x256xf32>
    %54 = arith.addf %47, %53 : vector<1x1x256xf32>
    %c0_56 = arith.constant 0 : index
    %c1_57 = arith.constant 1 : index
    %c1_58 = arith.constant 1 : index
    %c0_59 = arith.constant 0 : index
    %55 = vector.load %arg1[%c0_56, %c1_57, %c1_58, %c0_59] : memref<4x2x2x256xbf16, #tpu.memory_space<vmem>>, vector<1x1x1x256xbf16>
    %56 = vector.shape_cast %55 : vector<1x1x1x256xbf16> to vector<1x1x256xbf16>
    %57 = arith.extf %56 : vector<1x1x256xbf16> to vector<1x1x256xf32>
    %c8 = arith.constant 8 : index
    %c0_60 = arith.constant 0 : index
    %c0_61 = arith.constant 0 : index
    %c0_62 = arith.constant 0 : index
    %58 = vector.load %arg3[%c8, %c0_60, %c0_61, %c0_62] : memref<9x1x1x256xf32, #tpu.memory_space<vmem>>, vector<1x1x1x256xf32>
    %59 = vector.shape_cast %58 : vector<1x1x1x256xf32> to vector<1x1x256xf32>
    %60 = arith.mulf %57, %59 : vector<1x1x256xf32>
    %61 = arith.addf %54, %60 : vector<1x1x256xf32>
    %c0_63 = arith.constant 0 : index
    %c0_64 = arith.constant 0 : index
    %62 = vector.load %arg4[%c0_63, %c0_64] : memref<1x256xf32, #tpu.memory_space<vmem>>, vector<1x256xf32>
    %63 = vector.shape_cast %62 : vector<1x256xf32> to vector<1x1x256xf32>
    %64 = arith.addf %61, %63 : vector<1x1x256xf32>
    %65 = vector.shape_cast %64 : vector<1x1x256xf32> to vector<1x256xf32>
    %66 = arith.truncf %65 : vector<1x256xf32> to vector<1x256xbf16>
    %c0_65 = arith.constant 0 : index
    %c0_66 = arith.constant 0 : index
    %67 = vector.load %arg5[%c0_65, %c0_66] : memref<256x480xbf16, #tpu.memory_space<vmem>>, vector<256x480xbf16>
    %cst = arith.constant dense<0.000000e+00> : vector<1x480xf32>
    %68 = tpu.matmul %66, %67, %cst {dimension_numbers = #tpu.dot_dimension_numbers<[1], [0], [0], [1], [0, 0, 1, 1], [], []>} : vector<1x256xbf16>, vector<256x480xbf16>, vector<1x480xf32> -> vector<1x480xf32>
    %c0_67 = arith.constant 0 : index
    %c0_68 = arith.constant 0 : index
    %69 = vector.load %arg6[%c0_67, %c0_68] : memref<1x480xf32, #tpu.memory_space<vmem>>, vector<1x480xf32>
    %70 = arith.addf %68, %69 : vector<1x480xf32>
    %cst_69 = arith.constant 0.000000e+00 : f32
    %71 = vector.broadcast %cst_69 : f32 to vector<1x480xf32>
    %72 = arith.maximumf %70, %71 : vector<1x480xf32>
    %c0_70 = arith.constant 0 : index
    %c0_71 = arith.constant 0 : index
    %c0_72 = arith.constant 0 : index
    %c0_73 = arith.constant 0 : index
    %73 = vector.load %arg2[%c0_70, %c0_71, %c0_72, %c0_73] : memref<4x2x2x480xbf16, #tpu.memory_space<vmem>>, vector<1x1x1x480xbf16>
    %74 = vector.shape_cast %73 : vector<1x1x1x480xbf16> to vector<1x1x480xbf16>
    %75 = arith.extf %74 : vector<1x1x480xbf16> to vector<1x1x480xf32>
    %c1_74 = arith.constant 1 : index
    %c0_75 = arith.constant 0 : index
    %c0_76 = arith.constant 0 : index
    %c0_77 = arith.constant 0 : index
    %76 = vector.load %arg2[%c1_74, %c0_75, %c0_76, %c0_77] : memref<4x2x2x480xbf16, #tpu.memory_space<vmem>>, vector<1x1x1x480xbf16>
    %77 = vector.shape_cast %76 : vector<1x1x1x480xbf16> to vector<1x1x480xbf16>
    %78 = arith.extf %77 : vector<1x1x480xbf16> to vector<1x1x480xf32>
    %79 = arith.addf %75, %78 : vector<1x1x480xf32>
    %c0_78 = arith.constant 0 : index
    %c0_79 = arith.constant 0 : index
    %c1_80 = arith.constant 1 : index
    %c0_81 = arith.constant 0 : index
    %80 = vector.load %arg2[%c0_78, %c0_79, %c1_80, %c0_81] : memref<4x2x2x480xbf16, #tpu.memory_space<vmem>>, vector<1x1x1x480xbf16>
    %81 = vector.shape_cast %80 : vector<1x1x1x480xbf16> to vector<1x1x480xbf16>
    %82 = arith.extf %81 : vector<1x1x480xbf16> to vector<1x1x480xf32>
    %83 = arith.addf %79, %82 : vector<1x1x480xf32>
    %c2_82 = arith.constant 2 : index
    %c0_83 = arith.constant 0 : index
    %c0_84 = arith.constant 0 : index
    %c0_85 = arith.constant 0 : index
    %84 = vector.load %arg2[%c2_82, %c0_83, %c0_84, %c0_85] : memref<4x2x2x480xbf16, #tpu.memory_space<vmem>>, vector<1x1x1x480xbf16>
    %85 = vector.shape_cast %84 : vector<1x1x1x480xbf16> to vector<1x1x480xbf16>
    %86 = arith.extf %85 : vector<1x1x480xbf16> to vector<1x1x480xf32>
    %87 = arith.addf %83, %86 : vector<1x1x480xf32>
    %c3_86 = arith.constant 3 : index
    %c0_87 = arith.constant 0 : index
    %c0_88 = arith.constant 0 : index
    %c0_89 = arith.constant 0 : index
    %88 = vector.load %arg2[%c3_86, %c0_87, %c0_88, %c0_89] : memref<4x2x2x480xbf16, #tpu.memory_space<vmem>>, vector<1x1x1x480xbf16>
    %89 = vector.shape_cast %88 : vector<1x1x1x480xbf16> to vector<1x1x480xbf16>
    %90 = arith.extf %89 : vector<1x1x480xbf16> to vector<1x1x480xf32>
    %91 = arith.addf %87, %90 : vector<1x1x480xf32>
    %c2_90 = arith.constant 2 : index
    %c0_91 = arith.constant 0 : index
    %c1_92 = arith.constant 1 : index
    %c0_93 = arith.constant 0 : index
    %92 = vector.load %arg2[%c2_90, %c0_91, %c1_92, %c0_93] : memref<4x2x2x480xbf16, #tpu.memory_space<vmem>>, vector<1x1x1x480xbf16>
    %93 = vector.shape_cast %92 : vector<1x1x1x480xbf16> to vector<1x1x480xbf16>
    %94 = arith.extf %93 : vector<1x1x480xbf16> to vector<1x1x480xf32>
    %95 = arith.addf %91, %94 : vector<1x1x480xf32>
    %c0_94 = arith.constant 0 : index
    %c1_95 = arith.constant 1 : index
    %c0_96 = arith.constant 0 : index
    %c0_97 = arith.constant 0 : index
    %96 = vector.load %arg2[%c0_94, %c1_95, %c0_96, %c0_97] : memref<4x2x2x480xbf16, #tpu.memory_space<vmem>>, vector<1x1x1x480xbf16>
    %97 = vector.shape_cast %96 : vector<1x1x1x480xbf16> to vector<1x1x480xbf16>
    %98 = arith.extf %97 : vector<1x1x480xbf16> to vector<1x1x480xf32>
    %99 = arith.addf %95, %98 : vector<1x1x480xf32>
    %c1_98 = arith.constant 1 : index
    %c1_99 = arith.constant 1 : index
    %c0_100 = arith.constant 0 : index
    %c0_101 = arith.constant 0 : index
    %100 = vector.load %arg2[%c1_98, %c1_99, %c0_100, %c0_101] : memref<4x2x2x480xbf16, #tpu.memory_space<vmem>>, vector<1x1x1x480xbf16>
    %101 = vector.shape_cast %100 : vector<1x1x1x480xbf16> to vector<1x1x480xbf16>
    %102 = arith.extf %101 : vector<1x1x480xbf16> to vector<1x1x480xf32>
    %103 = arith.addf %99, %102 : vector<1x1x480xf32>
    %c0_102 = arith.constant 0 : index
    %c1_103 = arith.constant 1 : index
    %c1_104 = arith.constant 1 : index
    %c0_105 = arith.constant 0 : index
    %104 = vector.load %arg2[%c0_102, %c1_103, %c1_104, %c0_105] : memref<4x2x2x480xbf16, #tpu.memory_space<vmem>>, vector<1x1x1x480xbf16>
    %105 = vector.shape_cast %104 : vector<1x1x1x480xbf16> to vector<1x1x480xbf16>
    %106 = arith.extf %105 : vector<1x1x480xbf16> to vector<1x1x480xf32>
    %107 = arith.addf %103, %106 : vector<1x1x480xf32>
    %cst_106 = arith.constant 0.111111112 : f32
    %108 = vector.broadcast %cst_106 : f32 to vector<1x1x480xf32>
    %109 = arith.mulf %107, %108 : vector<1x1x480xf32>
    %cst_107 = arith.constant 0.000000e+00 : f32
    %110 = vector.broadcast %cst_107 : f32 to vector<1x1x480xf32>
    %111 = arith.maximumf %109, %110 : vector<1x1x480xf32>
    %112 = arith.truncf %111 : vector<1x1x480xf32> to vector<1x1x480xbf16>
    %c0_108 = arith.constant 0 : index
    %c0_109 = arith.constant 0 : index
    %c0_110 = arith.constant 0 : index
    %c0_111 = arith.constant 0 : index
    %113 = vector.load %arg7[%c0_108, %c0_109, %c0_110, %c0_111] : memref<1x1x1x960xbf16, #tpu.memory_space<vmem>>, vector<1x1x1x480xbf16>
    %114 = vector.shape_cast %113 : vector<1x1x1x480xbf16> to vector<1x1x480xbf16>
    %115 = vector.shape_cast %112 : vector<1x1x480xbf16> to vector<1x1x1x480xbf16>
    tpu.vector_store %arg7[%c0_108, %c0_109, %c0_110, %c0_111], %115 {strides = array<i32>} : memref<1x1x1x960xbf16, #tpu.memory_space<vmem>>, vector<1x1x1x480xbf16>,
    %116 = vector.shape_cast %72 : vector<1x480xf32> to vector<1x1x480xf32>
    %117 = arith.truncf %116 : vector<1x1x480xf32> to vector<1x1x480xbf16>
    %c0_112 = arith.constant 0 : index
    %c0_113 = arith.constant 0 : index
    %c0_114 = arith.constant 0 : index
    %c480 = arith.constant 480 : index
    %118 = vector.load %arg7[%c0_112, %c0_113, %c0_114, %c480] : memref<1x1x1x960xbf16, #tpu.memory_space<vmem>>, vector<1x1x1x480xbf16>
    %119 = vector.shape_cast %118 : vector<1x1x1x480xbf16> to vector<1x1x480xbf16>
    %120 = vector.shape_cast %117 : vector<1x1x480xbf16> to vector<1x1x1x480xbf16>
    tpu.vector_store %arg7[%c0_112, %c0_113, %c0_114, %c480], %120 {strides = array<i32>} : memref<1x1x1x960xbf16, #tpu.memory_space<vmem>>, vector<1x1x1x480xbf16>,
    return
  }
  func.func @transform_0(%arg0: i32) -> (i32, i32, i32, i32) {
    %c0_i32 = arith.constant 0 : i32
    %c0_i32_0 = arith.constant 0 : i32
    %c0_i32_1 = arith.constant 0 : i32
    %c0_i32_2 = arith.constant 0 : i32
    return %arg0, %c0_i32, %c0_i32_0, %c0_i32_1 : i32, i32, i32, i32
  }
  func.func @transform_1(%arg0: i32) -> (i32, i32, i32, i32) {
    %c0_i32 = arith.constant 0 : i32
    %c0_i32_0 = arith.constant 0 : i32
    %c0_i32_1 = arith.constant 0 : i32
    %c0_i32_2 = arith.constant 0 : i32
    return %arg0, %c0_i32, %c0_i32_0, %c0_i32_1 : i32, i32, i32, i32
  }
  func.func @transform_2(%arg0: i32) -> (i32, i32, i32, i32) {
    %c0_i32 = arith.constant 0 : i32
    %c0_i32_0 = arith.constant 0 : i32
    %c0_i32_1 = arith.constant 0 : i32
    %c0_i32_2 = arith.constant 0 : i32
    %c0_i32_3 = arith.constant 0 : i32
    return %c0_i32, %c0_i32_0, %c0_i32_1, %c0_i32_2 : i32, i32, i32, i32
  }
  func.func @transform_3(%arg0: i32) -> (i32, i32) {
    %c0_i32 = arith.constant 0 : i32
    %c0_i32_0 = arith.constant 0 : i32
    %c0_i32_1 = arith.constant 0 : i32
    return %c0_i32, %c0_i32_0 : i32, i32
  }
  func.func @transform_4(%arg0: i32) -> (i32, i32) {
    %c0_i32 = arith.constant 0 : i32
    %c0_i32_0 = arith.constant 0 : i32
    %c0_i32_1 = arith.constant 0 : i32
    return %c0_i32, %c0_i32_0 : i32, i32
  }
  func.func @transform_5(%arg0: i32) -> (i32, i32) {
    %c0_i32 = arith.constant 0 : i32
    %c0_i32_0 = arith.constant 0 : i32
    %c0_i32_1 = arith.constant 0 : i32
    return %c0_i32, %c0_i32_0 : i32, i32
  }
  func.func @transform_6(%arg0: i32) -> (i32, i32, i32, i32) {
    %c0_i32 = arith.constant 0 : i32
    %c0_i32_0 = arith.constant 0 : i32
    %c0_i32_1 = arith.constant 0 : i32
    %c0_i32_2 = arith.constant 0 : i32
    return %arg0, %c0_i32, %c0_i32_0, %c0_i32_1 : i32, i32, i32, i32
  }
}

module attributes {stable_mosaic.version = 11 : i64} {
  func.func @_unit_add_kernel(%arg0: i32, %arg1: memref<1x1x1x960xbf16, #tpu.memory_space<vmem>>, %arg2: memref<960x256xbf16, #tpu.memory_space<vmem>>, %arg3: memref<1x256xf32, #tpu.memory_space<vmem>>, %arg4: memref<9x1x1x256xf32, #tpu.memory_space<vmem>>, %arg5: memref<1x256xf32, #tpu.memory_space<vmem>>, %arg6: memref<256x960xbf16, #tpu.memory_space<vmem>>, %arg7: memref<1x960xf32, #tpu.memory_space<vmem>>, %arg8: memref<1x1x1x960xbf16, #tpu.memory_space<vmem>>, %arg9: memref<3x3x256xf32, #tpu.memory_space<vmem>>) attributes {dimension_semantics = [#tpu.dimension_semantics<parallel>], iteration_bounds = array<i64: 2>, scalar_prefetch = 0 : i64, scratch_operands = 1 : i64, tpu.core_type = #tpu.core_type<tc>, window_params = [{transform_indices = @transform_0, window_bounds = array<i64: 1, 1, 1, 960>}, {pipeline_mode = #tpu.pipeline_mode<synchronous>, transform_indices = @transform_1, window_bounds = array<i64: 960, 256>}, {pipeline_mode = #tpu.pipeline_mode<synchronous>, transform_indices = @transform_2, window_bounds = array<i64: 1, 256>}, {pipeline_mode = #tpu.pipeline_mode<synchronous>, transform_indices = @transform_3, window_bounds = array<i64: 9, 1, 1, 256>}, {pipeline_mode = #tpu.pipeline_mode<synchronous>, transform_indices = @transform_4, window_bounds = array<i64: 1, 256>}, {pipeline_mode = #tpu.pipeline_mode<synchronous>, transform_indices = @transform_5, window_bounds = array<i64: 256, 960>}, {pipeline_mode = #tpu.pipeline_mode<synchronous>, transform_indices = @transform_6, window_bounds = array<i64: 1, 960>}, {transform_indices = @transform_7, window_bounds = array<i64: 1, 1, 1, 960>}]} {
    %c0 = arith.constant 0 : index
    %c0_0 = arith.constant 0 : index
    %c0_1 = arith.constant 0 : index
    %c0_2 = arith.constant 0 : index
    %0 = vector.load %arg1[%c0, %c0_0, %c0_1, %c0_2] : memref<1x1x1x960xbf16, #tpu.memory_space<vmem>>, vector<1x1x1x960xbf16>
    %1 = vector.shape_cast %0 : vector<1x1x1x960xbf16> to vector<1x1x960xbf16>
    %2 = vector.shape_cast %1 : vector<1x1x960xbf16> to vector<1x960xbf16>
    %c0_3 = arith.constant 0 : index
    %c0_4 = arith.constant 0 : index
    %3 = vector.load %arg2[%c0_3, %c0_4] : memref<960x256xbf16, #tpu.memory_space<vmem>>, vector<960x256xbf16>
    %cst = arith.constant dense<0.000000e+00> : vector<1x256xf32>
    %4 = tpu.matmul %2, %3, %cst {dimension_numbers = #tpu.dot_dimension_numbers<[1], [0], [0], [1], [0, 0, 1, 1], [], []>} : vector<1x960xbf16>, vector<960x256xbf16>, vector<1x256xf32> -> vector<1x256xf32>
    %c0_5 = arith.constant 0 : index
    %c0_6 = arith.constant 0 : index
    %5 = vector.load %arg3[%c0_5, %c0_6] : memref<1x256xf32, #tpu.memory_space<vmem>>, vector<1x256xf32>
    %6 = arith.addf %4, %5 : vector<1x256xf32>
    %cst_7 = arith.constant 0.000000e+00 : f32
    %7 = vector.broadcast %cst_7 : f32 to vector<1x256xf32>
    %8 = arith.maximumf %6, %7 : vector<1x256xf32>
    %cst_8 = arith.constant 0.000000e+00 : f32
    %9 = vector.broadcast %cst_8 : f32 to vector<3x3x256xf32>
    %c0_9 = arith.constant 0 : index
    %c0_10 = arith.constant 0 : index
    %c0_11 = arith.constant 0 : index
    %10 = vector.load %arg9[%c0_9, %c0_10, %c0_11] : memref<3x3x256xf32, #tpu.memory_space<vmem>>, vector<3x3x256xf32>
    tpu.vector_store %arg9[%c0_9, %c0_10, %c0_11], %9 {strides = array<i32>} : memref<3x3x256xf32, #tpu.memory_space<vmem>>, vector<3x3x256xf32>,
    %11 = vector.shape_cast %8 : vector<1x256xf32> to vector<1x1x256xf32>
    %c1 = arith.constant 1 : index
    %c1_12 = arith.constant 1 : index
    %c0_13 = arith.constant 0 : index
    %12 = vector.load %arg9[%c1, %c1_12, %c0_13] : memref<3x3x256xf32, #tpu.memory_space<vmem>>, vector<1x1x256xf32>
    tpu.vector_store %arg9[%c1, %c1_12, %c0_13], %11 {strides = array<i32>} : memref<3x3x256xf32, #tpu.memory_space<vmem>>, vector<1x1x256xf32>,
    %c0_14 = arith.constant 0 : index
    %c0_15 = arith.constant 0 : index
    %c0_16 = arith.constant 0 : index
    %13 = vector.load %arg9[%c0_14, %c0_15, %c0_16] : memref<3x3x256xf32, #tpu.memory_space<vmem>>, vector<1x1x256xf32>
    %c0_17 = arith.constant 0 : index
    %c0_18 = arith.constant 0 : index
    %c0_19 = arith.constant 0 : index
    %c0_20 = arith.constant 0 : index
    %14 = vector.load %arg4[%c0_17, %c0_18, %c0_19, %c0_20] : memref<9x1x1x256xf32, #tpu.memory_space<vmem>>, vector<1x1x1x256xf32>
    %15 = vector.shape_cast %14 : vector<1x1x1x256xf32> to vector<1x1x256xf32>
    %16 = arith.mulf %13, %15 : vector<1x1x256xf32>
    %c0_21 = arith.constant 0 : index
    %c1_22 = arith.constant 1 : index
    %c0_23 = arith.constant 0 : index
    %17 = vector.load %arg9[%c0_21, %c1_22, %c0_23] : memref<3x3x256xf32, #tpu.memory_space<vmem>>, vector<1x1x256xf32>
    %c1_24 = arith.constant 1 : index
    %c0_25 = arith.constant 0 : index
    %c0_26 = arith.constant 0 : index
    %c0_27 = arith.constant 0 : index
    %18 = vector.load %arg4[%c1_24, %c0_25, %c0_26, %c0_27] : memref<9x1x1x256xf32, #tpu.memory_space<vmem>>, vector<1x1x1x256xf32>
    %19 = vector.shape_cast %18 : vector<1x1x1x256xf32> to vector<1x1x256xf32>
    %20 = arith.mulf %17, %19 : vector<1x1x256xf32>
    %21 = arith.addf %16, %20 : vector<1x1x256xf32>
    %c0_28 = arith.constant 0 : index
    %c2 = arith.constant 2 : index
    %c0_29 = arith.constant 0 : index
    %22 = vector.load %arg9[%c0_28, %c2, %c0_29] : memref<3x3x256xf32, #tpu.memory_space<vmem>>, vector<1x1x256xf32>
    %c2_30 = arith.constant 2 : index
    %c0_31 = arith.constant 0 : index
    %c0_32 = arith.constant 0 : index
    %c0_33 = arith.constant 0 : index
    %23 = vector.load %arg4[%c2_30, %c0_31, %c0_32, %c0_33] : memref<9x1x1x256xf32, #tpu.memory_space<vmem>>, vector<1x1x1x256xf32>
    %24 = vector.shape_cast %23 : vector<1x1x1x256xf32> to vector<1x1x256xf32>
    %25 = arith.mulf %22, %24 : vector<1x1x256xf32>
    %26 = arith.addf %21, %25 : vector<1x1x256xf32>
    %c1_34 = arith.constant 1 : index
    %c0_35 = arith.constant 0 : index
    %c0_36 = arith.constant 0 : index
    %27 = vector.load %arg9[%c1_34, %c0_35, %c0_36] : memref<3x3x256xf32, #tpu.memory_space<vmem>>, vector<1x1x256xf32>
    %c3 = arith.constant 3 : index
    %c0_37 = arith.constant 0 : index
    %c0_38 = arith.constant 0 : index
    %c0_39 = arith.constant 0 : index
    %28 = vector.load %arg4[%c3, %c0_37, %c0_38, %c0_39] : memref<9x1x1x256xf32, #tpu.memory_space<vmem>>, vector<1x1x1x256xf32>
    %29 = vector.shape_cast %28 : vector<1x1x1x256xf32> to vector<1x1x256xf32>
    %30 = arith.mulf %27, %29 : vector<1x1x256xf32>
    %31 = arith.addf %26, %30 : vector<1x1x256xf32>
    %c1_40 = arith.constant 1 : index
    %c1_41 = arith.constant 1 : index
    %c0_42 = arith.constant 0 : index
    %32 = vector.load %arg9[%c1_40, %c1_41, %c0_42] : memref<3x3x256xf32, #tpu.memory_space<vmem>>, vector<1x1x256xf32>
    %c4 = arith.constant 4 : index
    %c0_43 = arith.constant 0 : index
    %c0_44 = arith.constant 0 : index
    %c0_45 = arith.constant 0 : index
    %33 = vector.load %arg4[%c4, %c0_43, %c0_44, %c0_45] : memref<9x1x1x256xf32, #tpu.memory_space<vmem>>, vector<1x1x1x256xf32>
    %34 = vector.shape_cast %33 : vector<1x1x1x256xf32> to vector<1x1x256xf32>
    %35 = arith.mulf %32, %34 : vector<1x1x256xf32>
    %36 = arith.addf %31, %35 : vector<1x1x256xf32>
    %c1_46 = arith.constant 1 : index
    %c2_47 = arith.constant 2 : index
    %c0_48 = arith.constant 0 : index
    %37 = vector.load %arg9[%c1_46, %c2_47, %c0_48] : memref<3x3x256xf32, #tpu.memory_space<vmem>>, vector<1x1x256xf32>
    %c5 = arith.constant 5 : index
    %c0_49 = arith.constant 0 : index
    %c0_50 = arith.constant 0 : index
    %c0_51 = arith.constant 0 : index
    %38 = vector.load %arg4[%c5, %c0_49, %c0_50, %c0_51] : memref<9x1x1x256xf32, #tpu.memory_space<vmem>>, vector<1x1x1x256xf32>
    %39 = vector.shape_cast %38 : vector<1x1x1x256xf32> to vector<1x1x256xf32>
    %40 = arith.mulf %37, %39 : vector<1x1x256xf32>
    %41 = arith.addf %36, %40 : vector<1x1x256xf32>
    %c2_52 = arith.constant 2 : index
    %c0_53 = arith.constant 0 : index
    %c0_54 = arith.constant 0 : index
    %42 = vector.load %arg9[%c2_52, %c0_53, %c0_54] : memref<3x3x256xf32, #tpu.memory_space<vmem>>, vector<1x1x256xf32>
    %c6 = arith.constant 6 : index
    %c0_55 = arith.constant 0 : index
    %c0_56 = arith.constant 0 : index
    %c0_57 = arith.constant 0 : index
    %43 = vector.load %arg4[%c6, %c0_55, %c0_56, %c0_57] : memref<9x1x1x256xf32, #tpu.memory_space<vmem>>, vector<1x1x1x256xf32>
    %44 = vector.shape_cast %43 : vector<1x1x1x256xf32> to vector<1x1x256xf32>
    %45 = arith.mulf %42, %44 : vector<1x1x256xf32>
    %46 = arith.addf %41, %45 : vector<1x1x256xf32>
    %c2_58 = arith.constant 2 : index
    %c1_59 = arith.constant 1 : index
    %c0_60 = arith.constant 0 : index
    %47 = vector.load %arg9[%c2_58, %c1_59, %c0_60] : memref<3x3x256xf32, #tpu.memory_space<vmem>>, vector<1x1x256xf32>
    %c7 = arith.constant 7 : index
    %c0_61 = arith.constant 0 : index
    %c0_62 = arith.constant 0 : index
    %c0_63 = arith.constant 0 : index
    %48 = vector.load %arg4[%c7, %c0_61, %c0_62, %c0_63] : memref<9x1x1x256xf32, #tpu.memory_space<vmem>>, vector<1x1x1x256xf32>
    %49 = vector.shape_cast %48 : vector<1x1x1x256xf32> to vector<1x1x256xf32>
    %50 = arith.mulf %47, %49 : vector<1x1x256xf32>
    %51 = arith.addf %46, %50 : vector<1x1x256xf32>
    %c2_64 = arith.constant 2 : index
    %c2_65 = arith.constant 2 : index
    %c0_66 = arith.constant 0 : index
    %52 = vector.load %arg9[%c2_64, %c2_65, %c0_66] : memref<3x3x256xf32, #tpu.memory_space<vmem>>, vector<1x1x256xf32>
    %c8 = arith.constant 8 : index
    %c0_67 = arith.constant 0 : index
    %c0_68 = arith.constant 0 : index
    %c0_69 = arith.constant 0 : index
    %53 = vector.load %arg4[%c8, %c0_67, %c0_68, %c0_69] : memref<9x1x1x256xf32, #tpu.memory_space<vmem>>, vector<1x1x1x256xf32>
    %54 = vector.shape_cast %53 : vector<1x1x1x256xf32> to vector<1x1x256xf32>
    %55 = arith.mulf %52, %54 : vector<1x1x256xf32>
    %56 = arith.addf %51, %55 : vector<1x1x256xf32>
    %c0_70 = arith.constant 0 : index
    %c0_71 = arith.constant 0 : index
    %57 = vector.load %arg5[%c0_70, %c0_71] : memref<1x256xf32, #tpu.memory_space<vmem>>, vector<1x256xf32>
    %58 = vector.shape_cast %57 : vector<1x256xf32> to vector<1x1x256xf32>
    %59 = arith.addf %56, %58 : vector<1x1x256xf32>
    %60 = vector.shape_cast %59 : vector<1x1x256xf32> to vector<1x256xf32>
    %61 = arith.truncf %60 : vector<1x256xf32> to vector<1x256xbf16>
    %c0_72 = arith.constant 0 : index
    %c0_73 = arith.constant 0 : index
    %62 = vector.load %arg6[%c0_72, %c0_73] : memref<256x960xbf16, #tpu.memory_space<vmem>>, vector<256x960xbf16>
    %cst_74 = arith.constant dense<0.000000e+00> : vector<1x960xf32>
    %63 = tpu.matmul %61, %62, %cst_74 {dimension_numbers = #tpu.dot_dimension_numbers<[1], [0], [0], [1], [0, 0, 1, 1], [], []>} : vector<1x256xbf16>, vector<256x960xbf16>, vector<1x960xf32> -> vector<1x960xf32>
    %c0_75 = arith.constant 0 : index
    %c0_76 = arith.constant 0 : index
    %64 = vector.load %arg7[%c0_75, %c0_76] : memref<1x960xf32, #tpu.memory_space<vmem>>, vector<1x960xf32>
    %65 = arith.addf %63, %64 : vector<1x960xf32>
    %66 = arith.extf %2 : vector<1x960xbf16> to vector<1x960xf32>
    %67 = arith.addf %65, %66 : vector<1x960xf32>
    %cst_77 = arith.constant 0.000000e+00 : f32
    %68 = vector.broadcast %cst_77 : f32 to vector<1x960xf32>
    %69 = arith.maximumf %67, %68 : vector<1x960xf32>
    %70 = vector.shape_cast %69 : vector<1x960xf32> to vector<1x1x960xf32>
    %71 = arith.truncf %70 : vector<1x1x960xf32> to vector<1x1x960xbf16>
    %c0_78 = arith.constant 0 : index
    %c0_79 = arith.constant 0 : index
    %c0_80 = arith.constant 0 : index
    %c0_81 = arith.constant 0 : index
    %72 = vector.load %arg8[%c0_78, %c0_79, %c0_80, %c0_81] : memref<1x1x1x960xbf16, #tpu.memory_space<vmem>>, vector<1x1x1x960xbf16>
    %73 = vector.shape_cast %72 : vector<1x1x1x960xbf16> to vector<1x1x960xbf16>
    %74 = vector.shape_cast %71 : vector<1x1x960xbf16> to vector<1x1x1x960xbf16>
    tpu.vector_store %arg8[%c0_78, %c0_79, %c0_80, %c0_81], %74 {strides = array<i32>} : memref<1x1x1x960xbf16, #tpu.memory_space<vmem>>, vector<1x1x1x960xbf16>,
    return
  }
  func.func @transform_0(%arg0: i32) -> (i32, i32, i32, i32) {
    %c0_i32 = arith.constant 0 : i32
    %c0_i32_0 = arith.constant 0 : i32
    %c0_i32_1 = arith.constant 0 : i32
    %c0_i32_2 = arith.constant 0 : i32
    return %arg0, %c0_i32, %c0_i32_0, %c0_i32_1 : i32, i32, i32, i32
  }
  func.func @transform_1(%arg0: i32) -> (i32, i32) {
    %c0_i32 = arith.constant 0 : i32
    %c0_i32_0 = arith.constant 0 : i32
    %c0_i32_1 = arith.constant 0 : i32
    return %c0_i32, %c0_i32_0 : i32, i32
  }
  func.func @transform_2(%arg0: i32) -> (i32, i32) {
    %c0_i32 = arith.constant 0 : i32
    %c0_i32_0 = arith.constant 0 : i32
    %c0_i32_1 = arith.constant 0 : i32
    return %c0_i32, %c0_i32_0 : i32, i32
  }
  func.func @transform_3(%arg0: i32) -> (i32, i32, i32, i32) {
    %c0_i32 = arith.constant 0 : i32
    %c0_i32_0 = arith.constant 0 : i32
    %c0_i32_1 = arith.constant 0 : i32
    %c0_i32_2 = arith.constant 0 : i32
    %c0_i32_3 = arith.constant 0 : i32
    return %c0_i32, %c0_i32_0, %c0_i32_1, %c0_i32_2 : i32, i32, i32, i32
  }
  func.func @transform_4(%arg0: i32) -> (i32, i32) {
    %c0_i32 = arith.constant 0 : i32
    %c0_i32_0 = arith.constant 0 : i32
    %c0_i32_1 = arith.constant 0 : i32
    return %c0_i32, %c0_i32_0 : i32, i32
  }
  func.func @transform_5(%arg0: i32) -> (i32, i32) {
    %c0_i32 = arith.constant 0 : i32
    %c0_i32_0 = arith.constant 0 : i32
    %c0_i32_1 = arith.constant 0 : i32
    return %c0_i32, %c0_i32_0 : i32, i32
  }
  func.func @transform_6(%arg0: i32) -> (i32, i32) {
    %c0_i32 = arith.constant 0 : i32
    %c0_i32_0 = arith.constant 0 : i32
    %c0_i32_1 = arith.constant 0 : i32
    return %c0_i32, %c0_i32_0 : i32, i32
  }
  func.func @transform_7(%arg0: i32) -> (i32, i32, i32, i32) {
    %c0_i32 = arith.constant 0 : i32
    %c0_i32_0 = arith.constant 0 : i32
    %c0_i32_1 = arith.constant 0 : i32
    %c0_i32_2 = arith.constant 0 : i32
    return %arg0, %c0_i32, %c0_i32_0, %c0_i32_1 : i32, i32, i32, i32
  }
}

module attributes {stable_mosaic.version = 11 : i64} {
  func.func @_head_kernel(%arg0: memref<2x1x960xbf16, #tpu.memory_space<vmem>>, %arg1: memref<960x10xbf16, #tpu.memory_space<vmem>>, %arg2: memref<1x10xf32, #tpu.memory_space<vmem>>, %arg3: memref<2x10xf32, #tpu.memory_space<vmem>>) attributes {dimension_semantics = [], scalar_prefetch = 0 : i64, scratch_operands = 0 : i64, tpu.core_type = #tpu.core_type<tc>} {
    %c0 = arith.constant 0 : index
    %c0_0 = arith.constant 0 : index
    %c0_1 = arith.constant 0 : index
    %0 = vector.load %arg0[%c0, %c0_0, %c0_1] : memref<2x1x960xbf16, #tpu.memory_space<vmem>>, vector<2x1x960xbf16>
    %1 = arith.extf %0 : vector<2x1x960xbf16> to vector<2x1x960xf32>
    %cst = arith.constant dense<0.000000e+00> : vector<2x960xf32>
    %2 = vector.multi_reduction <add>, %1, %cst [1] : vector<2x1x960xf32> to vector<2x960xf32>
    %cst_2 = arith.constant 1.000000e+00 : f32
    %3 = vector.broadcast %cst_2 : f32 to vector<2x960xf32>
    %4 = arith.divf %2, %3 : vector<2x960xf32>
    %5 = arith.truncf %4 : vector<2x960xf32> to vector<2x960xbf16>
    %c0_3 = arith.constant 0 : index
    %c0_4 = arith.constant 0 : index
    %6 = vector.load %arg1[%c0_3, %c0_4] : memref<960x10xbf16, #tpu.memory_space<vmem>>, vector<960x10xbf16>
    %cst_5 = arith.constant dense<0.000000e+00> : vector<2x10xf32>
    %7 = tpu.matmul %5, %6, %cst_5 {dimension_numbers = #tpu.dot_dimension_numbers<[1], [0], [0], [1], [0, 0, 1, 1], [], []>} : vector<2x960xbf16>, vector<960x10xbf16>, vector<2x10xf32> -> vector<2x10xf32>
    %c0_6 = arith.constant 0 : index
    %c0_7 = arith.constant 0 : index
    %8 = vector.load %arg2[%c0_6, %c0_7] : memref<1x10xf32, #tpu.memory_space<vmem>>, vector<1x10xf32>
    %9 = vector.broadcast %8 : vector<1x10xf32> to vector<2x10xf32>
    %10 = arith.addf %7, %9 : vector<2x10xf32>
    %cst_8 = arith.constant dense<0xFF800000> : vector<2xf32>
    %11 = vector.multi_reduction <maximumf>, %10, %cst_8 [1] : vector<2x10xf32> to vector<2xf32>
    %12 = vector.shape_cast %11 : vector<2xf32> to vector<2x1xf32>
    %13 = vector.broadcast %12 : vector<2x1xf32> to vector<2x10xf32>
    %14 = arith.subf %10, %13 : vector<2x10xf32>
    %15 = math.exp %14 : vector<2x10xf32>
    %cst_9 = arith.constant dense<0.000000e+00> : vector<2xf32>
    %16 = vector.multi_reduction <add>, %15, %cst_9 [1] : vector<2x10xf32> to vector<2xf32>
    %17 = vector.shape_cast %16 : vector<2xf32> to vector<2x1xf32>
    %18 = math.log %17 : vector<2x1xf32>
    %19 = arith.addf %18, %12 : vector<2x1xf32>
    %20 = vector.broadcast %19 : vector<2x1xf32> to vector<2x10xf32>
    %21 = arith.subf %10, %20 : vector<2x10xf32>
    %c0_10 = arith.constant 0 : index
    %c0_11 = arith.constant 0 : index
    %22 = vector.load %arg3[%c0_10, %c0_11] : memref<2x10xf32, #tpu.memory_space<vmem>>, vector<2x10xf32>
    tpu.vector_store %arg3[%c0_10, %c0_11], %21 {strides = array<i32>} : memref<2x10xf32, #tpu.memory_space<vmem>>, vector<2x10xf32>,
    return
  }
}

</mosaic_0001>

<bundles_post_ra>
// kernel: _lambda_.23
= control target key start
LH: loop header
LB: loop body
LE: loop exit
PB: predicated region body
PF: predicated region fallthrough
CT: control target
= control target key end

     0   :  { %s442_s6 = smov 0   ;;  %s517_s0 = inlined_call_operand.vmem [shape: bf16[8,5,5,24], index: 0, kind: input, shape index: {}]   ;;  %s518_s1 = inlined_call_operand.vmem [shape: bf16[2,4,4,24], index: 1, kind: output, shape index: {}]  }
   0x1 LB: > { %s448_s7 = sadd.s32 4294967295, %s430_s6   ;;  %p379_p0 = scmp.ge.s32.totalorder %s430_s6, 1  ;;  %s430_s6 = sphi %s442_s6, %s11_s6  }
   0x2   : > { %p89_p1 = scmp.lt.s32.totalorder %s430_s6, 3 }
   0x4   : > { %p90_p2 = pnand %p379_p0, %p89_p1 }
   0x5   : > { %s380_s8 = sshll.u32 (!%p90_p2), %s448_s7, 2  ;;  %p117_p4 = scmp.lt.s32.totalorder (!%p90_p2), %s448_s7, 1  ;;  %vm315_vm0 = vcmask (!%p90_p2), 189440  }
   0x6   : > { %93 = sbr.rel (%p90_p2) target bundleno = 57 (0x39), region = 24  ;;  %p111_p3 = scmp.lt.s32.totalorder (!%p90_p2), %s380_s8, 7 }
   0xd   : > { %s520_s8 = smov (!%p111_p3, %s380_s8), 7  ;;  %s522_s7 = smov (!%p117_p4, %s448_s7), 1 }
   0xe   : > { %s415_s9 = smul.u32 20, %s520_s8  ;;  %s414_s13 = sshll.u32 %s522_s7, 3 }
   0xf   : > { %s495_s16 = scalar_lea.vmem %s518_s1, %s414_s13 }
  0x10   : > { %s456_s12 = scalar_lea.vmem %s517_s0, %s415_s9 }
  0x11   : > { %v135_v0 = vld [vmem:[%s456_s12] sm:$0x7]  ;;  %v384_v4 = vld [vmem:[%s456_s12 + $0x14] sm:$0x3]  ;;  %v396_v5 = vld [vmem:[%s456_s12 + $0x28] sm:$0x7] }
  0x12   : > { %v140_v1 = vshrl.u32 %v135_v0, 16  ;;  %v143_v2 = vshll.u32 %v135_v0, 16  ;;  %v122_v3 = vld [vmem:[%s456_s12] sm:$0x3]  ;;  %v206_v8 = vshrl.u32 %v396_v5, 16  ;;  %v209_v9 = vshll.u32 %v396_v5, 16 }
  0x13   : > { %v408_v10 = vld [vmem:[%s456_s12 + $0x4] sm:$0x7]  ;;  %v131_v13 = vmax.bf16 %v384_v4, %v122_v3  ;;  %v385_v21 = vld [vmem:[%s456_s12 + $0x18] sm:$0x3]  ;;  %v397_v26 = vld [vmem:[%s456_s12 + $0x2c] sm:$0x7] }
  0x14   : > { %v142_v6 = vrot.slane %v140_v1, 4  ;;  %v145_v7 = vrot.slane %v143_v2, 5  ;;  %v272_v11 = vshrl.u32 %v408_v10, 16  ;;  %v275_v12 = vshll.u32 %v408_v10, 16  ;;  %v123_v17 = vld [vmem:[%s456_s12 + $0x4] sm:$0x3] }
  0x15   : > { %v208_v15 = vrot.slane %v206_v8, 4  ;;  %v211_v16 = vrot.slane %v209_v9, 5  ;;  %v136_v18 = vld [vmem:[%s456_s12 + $0x4] sm:$0x7]  ;;  %v388_v27 = vld [vmem:[%s456_s12 + $0x28] sm:$0x3]  ;;  %v132_v33 = vmax.bf16 %v385_v21, %v123_v17 }
  0x16   : > { %v146_v14 = vor.u32 %v145_v7, %v142_v6  ;;  %v274_v19 = vrot.slane %v272_v11, 4  ;;  %v277_v20 = vrot.slane %v275_v12, 5  ;;  %v149_v22 = vshrl.u32 %v136_v18, 16  ;;  %v409_v35 = vld [vmem:[%s456_s12 + $0x8] sm:$0x7] }
  0x17   : > { %v152_v23 = vshll.u32 %v136_v18, 16  ;;  %v212_v25 = vor.u32 %v211_v16, %v208_v15  ;;  %v215_v31 = vshrl.u32 %v397_v26, 16  ;;  %v218_v34 = vshll.u32 %v397_v26, 16  ;;  %v392_v36 = vld [vmem:[%s456_s12 + $0x3c] sm:$0x3] }
  0x18   : > { %v147_v24 = vrot.slane %v146_v14, 4  ;;  %v278_v28 = vor.u32 %v277_v20, %v274_v19  ;;  %v151_v29 = vrot.slane %v149_v22, 4  ;;  %v281_v40 = vshrl.u32 %v409_v35, 16  ;;  %v124_v44 = vld [vmem:[%s456_s12 + $0x8] sm:$0x3] }
  0x19   : > { %v154_v30 = vrot.slane %v152_v23, 5  ;;  %v213_v37 = vrot.slane %v212_v25, 4  ;;  %v217_v39 = vrot.slane %v215_v31, 4  ;;  %v220_v42 = vrot.slane %v218_v34, 5  ;;  %v137_v45 = vld [vmem:[%s456_s12 + $0x8] sm:$0x7] }
  0x1a   : > { %v179_v32 = vmax.bf16 %v147_v24, %v131_v13  ;;  %v284_v43 = vshll.u32 %v409_v35, 16  ;;  %v279_v46 = vrot.slane %v278_v28, 4  ;;  %v386_v48 = vld [vmem:[%s456_s12 + $0x1c] sm:$0x3]  ;;  %v158_v49 = vshrl.u32 %v137_v45, 16 }
  0x1b   : > { %v155_v38 = vor.u32 %v154_v30, %v151_v29  ;;  %v161_v50 = vshll.u32 %v137_v45, 16  ;;  %v389_v52 = vld [vmem:[%s456_s12 + $0x2c] sm:$0x3]  ;;  %v221_v53 = vor.u32 %v220_v42, %v217_v39  ;;  %v283_v54 = vrot.slane %v281_v40, 4  ;;  %v398_v56 = vld [vmem:[%s456_s12 + $0x30] sm:$0x7] }
  0x1c   : > { %v188_v41 = vmax.bf16 %v388_v27, %v179_v32  ;;  %v286_v55 = vrot.slane %v284_v43, 5  ;;  %v400_v57 = vld [vmem:[%s456_s12 + $0x4] sm:$0x3]  ;;  %v160_v59 = vrot.slane %v158_v49, 4  ;;  %v224_v61 = vshrl.u32 %v398_v56, 16 }
  0x1d   : > { %v156_v47 = vrot.slane %v155_v38, 4  ;;  %v163_v60 = vrot.slane %v161_v50, 5  ;;  %v393_v63 = vld [vmem:[%s456_s12 + $0x40] sm:$0x3]  ;;  %v222_v0 = vrot.slane %v221_v53, 4  ;;  %v133_v1 = vmax.bf16 %v386_v48, %v124_v44 }
  0x1e   : > { %v197_v51 = vmax.bf16 %v392_v36, %v188_v41  ;;  %v227_v2 = vshll.u32 %v398_v56, 16  ;;  %v410_v3 = vld [vmem:[%s456_s12 + $0xc] sm:$0x7]  ;;  %v404_v4 = vld [vmem:[%s456_s12 + $0x18] sm:$0x3]  ;;  %v226_v7 = vrot.slane %v224_v61, 4  ;;  %v287_v11 = vor.u32 %v286_v55, %v283_v54 }
  0x1f   : > { %v180_v58 = vmax.bf16 %v156_v47, %v132_v33  ;;  %v164_v6 = vor.u32 %v163_v60, %v160_v59  ;;  %v290_v8 = vshrl.u32 %v410_v3, 16  ;;  %v138_v9 = vld [vmem:[%s456_s12 + $0xc] sm:$0x7]  ;;  %v293_v13 = vshll.u32 %v410_v3, 16  ;;  %v387_v18 = vld [vmem:[%s456_s12 + $0x20] sm:$0x3] }
  0x20   : > { %v245_v62 = vmax.bf16 %v213_v37, %v197_v51  ;;  %v229_v12 = vrot.slane %v227_v2, 5  ;;  %v125_v14 = vld [vmem:[%s456_s12 + $0xc] sm:$0x3]  ;;  %v399_v19 = vld [vmem:[%s456_s12 + $0x34] sm:$0x7]  ;;  %v167_v25 = vshrl.u32 %v138_v9, 16 }
  0x21   : > { %v189_v5 = vmax.bf16 %v389_v52, %v180_v58  ;;  %v165_v16 = vrot.slane %v164_v6, 4  ;;  %v292_v17 = vrot.slane %v290_v8, 4  ;;  %v401_v21 = vld [vmem:[%s456_s12 + $0x8] sm:$0x3]  ;;  %v390_v22 = vld [vmem:[%s456_s12 + $0x30] sm:$0x3]  ;;  %v134_v35 = vmax.bf16 %v387_v18, %v125_v14 }
  0x22   : > { %v254_v10 = vmax.bf16 %v400_v57, %v245_v62  ;;  %v230_v23 = vor.u32 %v229_v12, %v226_v7  ;;  %v295_v24 = vrot.slane %v293_v13, 5  ;;  %v170_v28 = vshll.u32 %v138_v9, 16  ;;  %v411_v30 = vld [vmem:[%s456_s12 + $0x10] sm:$0x7]  ;;  %v405_v32 = vld [vmem:[%s456_s12 + $0x1c] sm:$0x3] }
  0x23   : > { %v198_v15 = vmax.bf16 %v393_v63, %v189_v5  ;;  %v181_v27 = vmax.bf16 %v165_v16, %v133_v1  ;;  %v233_v29 = vshrl.u32 %v399_v19, 16  ;;  %v288_v33 = vrot.slane %v287_v11, 4  ;;  %v394_v34 = vld [vmem:[%s456_s12 + $0x44] sm:$0x3]  ;;  %v402_v49 = vld [vmem:[%s456_s12 + $0xc] sm:$0x3] }
  0x24   : > { %v263_v20 = vmax.bf16 %v404_v4, %v254_v10  ;;  %v169_v36 = vrot.slane %v167_v25, 4  ;;  %v231_v39 = vrot.slane %v230_v23, 4  ;;  %v172_v40 = vrot.slane %v170_v28, 5  ;;  %v406_v54 = vld [vmem:[%s456_s12 + $0x20] sm:$0x3] }
  0x25   : > { %v246_v26 = vmax.bf16 %v222_v0, %v198_v15  ;;  %v190_v38 = vmax.bf16 %v390_v22, %v181_v27  ;;  %v296_v41 = vor.u32 %v295_v24, %v292_v17  ;;  %v235_v42 = vrot.slane %v233_v29, 4  ;;  %v391_v56 = vld [vmem:[%s456_s12 + $0x34] sm:$0x3]  ;;  %v395_v62 = vld [vmem:[%s456_s12 + $0x48] sm:$0x3] }
  0x26   : > { %v311_v31 = vmax.bf16 %v279_v46, %v263_v20  ;;  %v236_v43 = vshll.u32 %v399_v19, 16  ;;  %v299_v44 = vshrl.u32 %v411_v30, 16  ;;  %v173_v47 = vor.u32 %v172_v40, %v169_v36  ;;  %v403_v5 = vld [vmem:[%s456_s12 + $0x10] sm:$0x3]  ;;  %v407_v7 = vld [vmem:[%s456_s12 + $0x24] sm:$0x3] }
  0x27   : > { %v255_v37 = vmax.bf16 %v401_v21, %v246_v26  ;;  %v199_v46 = vmax.bf16 %v394_v34, %v190_v38  ;;  %v302_v48 = vshll.u32 %v411_v30, 16  ;;  %v297_v55 = vrot.slane %v296_v41, 4 }
  0x28   : > { %316 = vst.msk [vmem:[%s495_s16] sm:$0x3] %vm315_vm0, %v311_v31  ;;  %v238_v50 = vrot.slane %v236_v43, 5  ;;  %v174_v53 = vrot.slane %v173_v47, 4  ;;  %v301_v60 = vrot.slane %v299_v44, 4 }
  0x29   : > { %v264_v45 = vmax.bf16 %v405_v32, %v255_v37  ;;  %v247_v52 = vmax.bf16 %v231_v39, %v199_v46  ;;  %v304_v61 = vrot.slane %v302_v48, 5 }
  0x2a   : > { %v239_v57 = vor.u32 %v238_v50, %v235_v42  ;;  %v182_v59 = vmax.bf16 %v174_v53, %v134_v35 }
  0x2b   : > { %v312_v51 = vmax.bf16 %v288_v33, %v264_v45  ;;  %v256_v58 = vmax.bf16 %v402_v49, %v247_v52  ;;  %v305_v4 = vor.u32 %v304_v61, %v301_v60 }
  0x2c   : > { %v191_v0 = vmax.bf16 %v391_v56, %v182_v59  ;;  %v240_v1 = vrot.slane %v239_v57, 4 }
  0x2d   : > { %317 = vst.msk [vmem:[%s495_s16 + $0x2] sm:$0x3] %vm315_vm0, %v312_v51  ;;  %v265_v63 = vmax.bf16 %v406_v54, %v256_v58  ;;  %v306_v9 = vrot.slane %v305_v4, 4 }
  0x2e   : > { %v200_v3 = vmax.bf16 %v395_v62, %v191_v0 }
  0x2f   : > { %v313_v2 = vmax.bf16 %v297_v55, %v265_v63 }
  0x30   : > { %v248_v6 = vmax.bf16 %v240_v1, %v200_v3 }
  0x31   : > { %318 = vst.msk [vmem:[%s495_s16 + $0x4] sm:$0x3] %vm315_vm0, %v313_v2 }
  0x32   : > { %v257_v8 = vmax.bf16 %v403_v5, %v248_v6 }
  0x34   : > { %v266_v10 = vmax.bf16 %v407_v7, %v257_v8 }
  0x36   : > { %v314_v11 = vmax.bf16 %v306_v9, %v266_v10 }
  0x38   : > { %319 = vst.msk [vmem:[%s495_s16 + $0x6] sm:$0x3] %vm315_vm0, %v314_v11 }
  0x39 PF: > { %s11_s6 = sadd.s32 1, %s430_s6  }
  0x3a   : > { %p8_p5 = scmp.ge.s32.totalorder %s11_s6, 4  }
  0x3c   :  { %10 = sbr.rel (!%p8_p5) target bundleno = 1 (0x1), region = 59 }

// kernel: _lambda_.24
= control target key start
LH: loop header
LB: loop body
LE: loop exit
PB: predicated region body
PF: predicated region fallthrough
CT: control target
= control target key end

     0   :  { %vm48_vm0 = vcmask 195584   ;;  %vm55_vm1 = vcmask 1043456   ;;  %s220_s1 = inlined_call_operand.vmem [shape: bf16[24,128], index: 1, kind: input, shape index: {}]   ;;  %s221_s0 = inlined_call_operand.vmem [shape: bf16[32,24], index: 0, kind: input, shape index: {}]   ;;  %s222_s2 = inlined_call_operand.vmem [shape: f32[1,128], index: 2, kind: input, shape index: {}]   ;;  %s223_s3 = inlined_call_operand.vmem [shape: bf16[32,128], index: 3, kind: output, shape index: {}]  }
   0x1   :  { %v175_v0 = vld [vmem:[%s220_s1] sm:$0xff]   ;;  %v176_v1 = vld [vmem:[%s220_s1 + $0x8] ss:$0 sps:$4 sm:$0xff]  }
   0x2   :  { %v177_v2 = vld [vmem:[%s221_s0] sm:$0xff]   ;;  %166 = vmatprep.subr.bf16.mxu0 %v175_v0  ;;  %v57_v3 = vsel %vm55_vm1, %v176_v1, 0  ;;  %v178_v4 = vld [vmem:[%s221_s0 + $0x8] sm:$0xff]  }
   0x3   :  { %167 = vmatpush3.bf16.msra.mxu0 %v175_v0  ;;  %170 = vmatprep.mubr.msk.bf16.mxu0 %vm48_vm0, %v177_v2  ;;  %v136_v5 = vld [vmem:[%s222_s2] ss:$0 sm:$0xff] }
   0x4   :  { %174 = vmatprep.subr.msk.bf16.mxu0 %vm55_vm1, %v176_v1 }
   0x7   :  { %169 = vmatpush3.bf16.msra.mxu0 %v57_v3 }
   0xa   :  { %171 = vmatmul.mubr.msk.bf16.vlgmr.msra.gmra.mrb[0].mxu0 %vm48_vm0, %v178_v4 }
  0xdd   :  { %v172_v6 = vpop.f32.mrb[0].mxu0 }
  0xde   :  { %v102_v7 = vadd.f32 %v172_v6, %v136_v5  ;;  %v93_v8 = vpop.f32.mrb[1].mxu0 }
  0xdf   :  { %v94_v9 = vadd.f32 %v136_v5, %v93_v8  ;;  %v173_v10 = vpop.f32.mrb[2].mxu0 }
  0xe0   :  { %v105_v11 = vadd.f32 %v173_v10, %v136_v5  ;;  %v96_v12 = vpop.f32.mrb[3].mxu0  ;;  %v110_v14 = vmax.f32 %v102_v7, 0.0 }
  0xe1   :  { %v97_v13 = vadd.f32 %v136_v5, %v96_v12  ;;  %v108_v16 = vmax.f32 %v94_v9, 0.0 }
  0xe2   :  { %v111_v15 = vmax.f32 %v105_v11, 0.0 }
  0xe3   :  { %v109_v17 = vmax.f32 %v97_v13, 0.0 }
  0xe4   :  { %v159_v18 = vpack.c.bf16 %v111_v15, %v110_v14 }
  0xe5   :  { %v154_v19 = vpack.c.bf16 %v109_v17, %v108_v16 }
  0xe6   :  { %161 = vst [vmem:[%s223_s3 + $0x8] sm:$0xff] %v159_v18  }
  0xe7   :  { %155 = vst [vmem:[%s223_s3] sm:$0xff] %v154_v19  }

// kernel: _lambda_.22
= control target key start
LH: loop header
LB: loop body
LE: loop exit
PB: predicated region body
PF: predicated region fallthrough
CT: control target
= control target key end

     0   :  { %s2092_s12 = smov 0   ;;  %s2372_s0 = inlined_call_operand.vmem [shape: bf16[8,9,9,8], index: 0, kind: input, shape index: {}]   ;;  %s2373_s1 = inlined_call_operand.vmem [shape: bf16[9,8,24], index: 1, kind: input, shape index: {}]   ;;  %s2374_s2 = inlined_call_operand.vmem [shape: f32[1,24], index: 2, kind: input, shape index: {}]   ;;  %s2375_s3 = inlined_call_operand.vmem [shape: bf16[2,8,8,24], index: 3, kind: output, shape index: {}]  }
   0x1 LB: > { %s2098_s13 = sadd.s32 4294967295, %s2070_s12   ;;  %p1659_p0 = scmp.ge.s32.totalorder %s2070_s12, 1  ;;  %s2070_s12 = sphi %s2092_s12, %s13_s12  }
   0x2   : > { %p139_p1 = scmp.lt.s32.totalorder %s2070_s12, 3 }
   0x4   : > { %p140_p2 = pnand %p1659_p0, %p139_p1 }
   0x5   : > { %v1672_v0 = vld [vmem:[%s2373_s1 + $0x4] sm:$0xf] (!%p140_p2)  ;;  %vm230_vm0 = vcmask (!%p140_p2), 1043456   ;;  %v2108_v1 = vld [vmem:[%s2373_s1 + $0x10] sm:$0xf] (!%p140_p2)  ;;  %s1660_s18 = sshll.u32 (!%p140_p2), %s2098_s13, 2 }
   0x6   : > { %143 = sbr.rel (%p140_p2) target bundleno = 316 (0x13c), region = 32  ;;  %2021 = vmatprep.subr.msk.bf16.mxu1 (!%p140_p2), %vm230_vm0, %v1672_v0  ;;  %2025 = vmatprep.subr.msk.bf16.mxu0 (!%p140_p2), %vm230_vm0, %v2108_v1  ;;  %v232_v2 = vsel (!%p140_p2), %vm230_vm0, %v1672_v0, 0  ;;  %v2117_v3 = vsel (!%p140_p2), %vm230_vm0, %v2108_v1, 0  ;;  %p165_p3 = scmp.lt.s32.totalorder (!%p140_p2), %s1660_s18, 7  ;;  %v185_v4 = vld [vmem:[%s2373_s1] sm:$0xf] (!%p140_p2) }
   0x7   : > { %1866 = vmatpush3.bf16.msra.mxu1 (!%p140_p2), %v232_v2  ;;  %1906 = vmatpush3.bf16.msra.mxu0 (!%p140_p2), %v2117_v3  ;;  %v1748_v5 = vld [vmem:[%s2373_s1 + $0x14] sm:$0xf] (!%p140_p2)  ;;  %vm217_vm1 = vcmask (!%p140_p2), 64512   ;;  %v332_v6 = vsel (!%p140_p2), %vm230_vm0, %v185_v4, 0  ;;  %v1765_v9 = vld [vmem:[%s2373_s1 + $0x18] sm:$0xf] (!%p140_p2) }
   0x8   : > { %2022 = vmatprep.subr.msk.bf16.mxu1 (!%p140_p2), %vm230_vm0, %v185_v4  ;;  %2027 = vmatprep.subr.msk.bf16.mxu0 (!%p140_p2), %vm230_vm0, %v1748_v5  ;;  %v1025_v7 = vsel (!%p140_p2), %vm230_vm0, %v1748_v5, 0  ;;  %v1689_v10 = vld [vmem:[%s2373_s1 + $0x8] sm:$0xf] (!%p140_p2)  ;;  %vm415_vm2 = vsmask.f32 (!%p140_p2), 3328  ;;  %v2151_v15 = vsel (!%p140_p2), %vm230_vm0, %v1765_v9, 0 }
   0x9   : > { %vm416_vm3 = vsmask.f32 (!%p140_p2), 7440  ;;  %v2154_v16 = vsel (!%p140_p2), %vm230_vm0, %v1689_v10, 0  ;;  %p171_p4 = scmp.lt.s32.totalorder (!%p140_p2), %s2098_s13, 1  ;;  %vm1591_vm5 = vcmask (!%p140_p2), 191488  }
   0xa   : > { %vm2171_vm4 = vmor (!%p140_p2), %vm415_vm2, %vm416_vm3 }
   0xd   : > { %s2379_s18 = smov (!%p165_p3, %s1660_s18), 7  ;;  %s2381_s13 = smov (!%p171_p4, %s2098_s13), 1 }
   0xe   : > { %s2031_s23 = smul.u32 72, %s2379_s18  ;;  %s1819_s14 = sshll.u32 %s2381_s13, 5 }
   0xf   : > { %s2351_s17 = scalar_lea.vmem %s2375_s3, %s1819_s14 }
  0x10   : > { %s2131_s26 = scalar_lea.vmem %s2372_s0, %s2031_s23 }
  0x11   : > { %v2040_v8 = vld [vmem:[%s2131_s26 + $0x48] ss:$8 sps:$4 sm:$0xff]   ;;  %v2041_v11 = vld [vmem:[%s2131_s26 + $0xd8] ss:$8 sps:$4 sm:$0xff]   ;;  %v1733_v19 = vld [vmem:[%s2131_s26 + $0x94] sm:$0x1] }
  0x12   : > { %1867 = vmatprep.mubr.msk.bf16.mxu1 %vm217_vm1, %v2040_v8  ;;  %v2042_v12 = vld [vmem:[%s2131_s26 + $0x58] ss:$8 sps:$4 sm:$0xff]   ;;  %1907 = vmatprep.mubr.msk.bf16.mxu0 %vm217_vm1, %v2041_v11  ;;  %v2043_v13 = vld [vmem:[%s2131_s26 + $0xe8] ss:$8 sps:$4 sm:$0xff]   ;;  %v1735_v21 = vld [vmem:[%s2131_s26 + $0x9c] sm:$0x1] }
  0x13   : > { %1868 = vmatmul.mubr.msk.bf16.vlgmr.msra.gmra.mrb[0].mxu1 %vm217_vm1, %v2042_v12  ;;  %v2044_v14 = vld [vmem:[%s2131_s26 + $0x68] ss:$8 sps:$4 sm:$0xff]   ;;  %1908 = vmatmul.mubr.msk.bf16.vlgmr.msra.gmra.mrb[0].mxu0 %vm217_vm1, %v2043_v13  ;;  %v2045_v17 = vld [vmem:[%s2131_s26 + $0x78] ss:$8 sps:$4 sm:$0xff]   ;;  %v896_v24 = vshll.u32 %v1733_v19, 16  ;;  %v910_v27 = vshll.u32 %v1735_v21, 16 }
  0x14   : > { %1876 = vmatpush3.bf16.msra.mxu1 %v332_v6  ;;  %1916 = vmatpush3.bf16.msra.mxu0 %v1025_v7  ;;  %v1732_v18 = vld [vmem:[%s2131_s26 + $0x90] sm:$0xf]  ;;  %v1734_v20 = vld [vmem:[%s2131_s26 + $0x98] sm:$0xf]  ;;  %v1736_v28 = vld [vmem:[%s2131_s26 + $0xa0] sm:$0xf] }
  0x15   : > { %1871 = vmatprep.mubr.msk.bf16.mxu1 %vm217_vm1, %v2044_v14  ;;  %v887_v22 = vshrl.u32 %v1732_v18, 16  ;;  %v890_v23 = vshll.u32 %v1732_v18, 16  ;;  %v901_v25 = vshrl.u32 %v1734_v20, 16  ;;  %2028 = vmatprep.subr.msk.bf16.mxu0 %vm230_vm0, %v1765_v9  ;;  %v904_v26 = vshll.u32 %v1734_v20, 16  ;;  %v1737_v29 = vld [vmem:[%s2131_s26 + $0xa4] sm:$0x1] }
  0x16   : > { %2023 = vmatprep.subr.msk.bf16.mxu1 %vm230_vm0, %v1689_v10  ;;  %v898_v32 = vrot.slane %v896_v24, 5  ;;  %v1738_v34 = vld [vmem:[%s2131_s26 + $0xa8] sm:$0xf]  ;;  %v912_v36 = vrot.slane %v910_v27, 5  ;;  %v1739_v37 = vld [vmem:[%s2131_s26 + $0xac] sm:$0x1] }
  0x17   : > { %v889_v30 = vrot.slane %v887_v22, 4  ;;  %v892_v31 = vrot.slane %v890_v23, 5  ;;  %v903_v33 = vrot.slane %v901_v25, 4  ;;  %v906_v35 = vrot.slane %v904_v26, 5  ;;  %v2046_v53 = vld [vmem:[%s2131_s26] ss:$8 sps:$4 sm:$0xff]  }
  0x18   : > { %v915_v38 = vshrl.u32 %v1736_v28, 16  ;;  %v918_v39 = vshll.u32 %v1736_v28, 16  ;;  %v924_v41 = vshll.u32 %v1737_v29, 16  ;;  %v929_v42 = vshrl.u32 %v1738_v34, 16  ;;  %v2047_v59 = vld [vmem:[%s2131_s26 + $0x10] ss:$8 sps:$4 sm:$0xff]  }
  0x19   : > { %v893_v40 = vor.u32 %v892_v31, %v889_v30  ;;  %v932_v43 = vshll.u32 %v1738_v34, 16  ;;  %v907_v45 = vor.u32 %v906_v35, %v903_v33  ;;  %v938_v48 = vshll.u32 %v1739_v37, 16  ;;  %v1740_v60 = vld [vmem:[%s2131_s26 + $0xb0] sm:$0xf]  ;;  %v1741_v61 = vld [vmem:[%s2131_s26 + $0xb4] sm:$0x1] }
  0x1a   : > { %v917_v46 = vrot.slane %v915_v38, 4  ;;  %v920_v47 = vrot.slane %v918_v39, 5  ;;  %v926_v50 = vrot.slane %v924_v41, 5  ;;  %v931_v51 = vrot.slane %v929_v42, 4  ;;  %v1742_v0 = vld [vmem:[%s2131_s26 + $0xb8] sm:$0xf] }
  0x1b   : > { %1872 = vmatmul.mubr.msk.bf16.gmra.mrb[4].mxu1 %vm217_vm1, %v2045_v17  ;;  %v894_v49 = vrot.slane %v893_v40, 4  ;;  %v934_v52 = vrot.slane %v932_v43, 5  ;;  %v908_v54 = vrot.slane %v907_v45, 4  ;;  %v940_v56 = vrot.slane %v938_v48, 5  ;;  %v1743_v2 = vld [vmem:[%s2131_s26 + $0xbc] sm:$0x1] }
  0x1c   : > { %v921_v55 = vor.u32 %v920_v47, %v917_v46  ;;  %1877 = vmatprep.mubr.msk.bf16.mxu1 %vm217_vm1, %v2046_v53  ;;  %v943_v4 = vshrl.u32 %v1740_v60, 16  ;;  %v946_v7 = vshll.u32 %v1740_v60, 16  ;;  %v952_v8 = vshll.u32 %v1741_v61, 16  ;;  %v1744_v9 = vld [vmem:[%s2131_s26 + $0xc0] sm:$0xf] }
  0x1d   : > { %v899_v57 = vsel %vm2171_vm4, %v894_v49, %v898_v32  ;;  %v935_v58 = vor.u32 %v934_v52, %v931_v51  ;;  %v913_v62 = vsel %vm2171_vm4, %v908_v54, %v912_v36  ;;  %v2190_v10 = vld [vmem:[%s2373_s1 + $0xc] sm:$0xf]  ;;  %v957_v13 = vshrl.u32 %v1742_v0, 16  ;;  %v1745_v17 = vld [vmem:[%s2131_s26 + $0xc4] sm:$0x1] }
  0x1e   : > { %v922_v63 = vrot.slane %v921_v55, 4  ;;  %v1749_v5 = vcombine.low %v899_v57, %v913_v62  ;;  %v945_v12 = vrot.slane %v943_v4, 4  ;;  %v960_v14 = vshll.u32 %v1742_v0, 16  ;;  %v1746_v22 = vld [vmem:[%s2131_s26 + $0xc8] sm:$0xf] }
  0x1f   : > { %v936_v6 = vrot.slane %v935_v58, 4  ;;  %v948_v19 = vrot.slane %v946_v7, 5  ;;  %v954_v20 = vrot.slane %v952_v8, 5  ;;  %v966_v21 = vshll.u32 %v1743_v2, 16  ;;  %v2202_v23 = vld [vmem:[%s2373_s1 + $0x1c] sm:$0xf] }
  0x20   : > { %v927_v11 = vsel %vm2171_vm4, %v922_v63, %v926_v50  ;;  %1917 = vmatprep.mubr.msk.bf16.mxu0 %vm217_vm1, %v1749_v5  ;;  %v959_v25 = vrot.slane %v957_v13, 4  ;;  %v962_v26 = vrot.slane %v960_v14, 5  ;;  %v1747_v27 = vld [vmem:[%s2131_s26 + $0xcc] sm:$0x1]  ;;  %v971_v28 = vshrl.u32 %v1744_v9, 16 }
  0x21   : > { %v941_v18 = vsel %vm2171_vm4, %v936_v6, %v940_v56  ;;  %v949_v29 = vor.u32 %v948_v19, %v945_v12  ;;  %v968_v30 = vrot.slane %v966_v21, 5  ;;  %v974_v31 = vshll.u32 %v1744_v9, 16  ;;  %v2050_v53 = vld [vmem:[%s2131_s26 + $0x8] ss:$8 sps:$4 sm:$0xff]   ;;  %v399_v54 = vld [vmem:[%s2131_s26] sm:$0xf] }
  0x22   : > { %v1750_v24 = vcombine.low %v927_v11, %v941_v18  ;;  %v980_v32 = vshll.u32 %v1745_v17, 16  ;;  %v963_v33 = vor.u32 %v962_v26, %v959_v25  ;;  %v973_v34 = vrot.slane %v971_v28, 4  ;;  %v400_v56 = vld [vmem:[%s2131_s26 + $0x4] sm:$0x1]  ;;  %v401_v57 = vld [vmem:[%s2131_s26 + $0x8] sm:$0xf] }
  0x23   : > { %1878 = vmatmul.mubr.msk.bf16.vlgmr.msra.gmra.mrb[0].mxu1 %vm217_vm1, %v2047_v59  ;;  %v985_v35 = vshrl.u32 %v1746_v22, 16  ;;  %v988_v36 = vshll.u32 %v1746_v22, 16  ;;  %v950_v37 = vrot.slane %v949_v29, 4  ;;  %v976_v38 = vrot.slane %v974_v31, 5  ;;  %v402_v58 = vld [vmem:[%s2131_s26 + $0xc] sm:$0x1] }
  0x24   : > { %1886 = vmatpush3.bf16.msra.mxu1 %v2154_v16  ;;  %1918 = vmatmul.mubr.msk.bf16.vlgmr.msra.gmra.mrb[0].mxu0 %vm217_vm1, %v1750_v24  ;;  %v994_v39 = vshll.u32 %v1747_v27, 16  ;;  %v2048_v16 = vld [vmem:[%s2131_s26 + $0x20] ss:$8 sps:$4 sm:$0xff]   ;;  %v964_v40 = vrot.slane %v963_v33, 4  ;;  %v982_v46 = vrot.slane %v980_v32, 5  ;;  %v419_v60 = vshrl.u32 %v399_v54, 16 }
  0x25   : > { %2024 = vmatprep.subr.msk.bf16.mxu1 %vm230_vm0, %v2190_v10  ;;  %1926 = vmatpush3.bf16.msra.mxu0 %v2151_v15  ;;  %v987_v41 = vrot.slane %v985_v35, 4  ;;  %v990_v42 = vrot.slane %v988_v36, 5  ;;  %v955_v43 = vsel %vm2171_vm4, %v950_v37, %v954_v20  ;;  %v977_v45 = vor.u32 %v976_v38, %v973_v34  ;;  %v2049_v15 = vld [vmem:[%s2131_s26 + $0x30] ss:$8 sps:$4 sm:$0xff]   ;;  %v404_v6 = vld [vmem:[%s2131_s26 + $0x14] sm:$0x1] }
  0x26   : > { %2029 = vmatprep.subr.msk.bf16.mxu0 %vm230_vm0, %v2202_v23  ;;  %1881 = vmatprep.mubr.msk.bf16.mxu1 %vm217_vm1, %v2048_v16  ;;  %v969_v47 = vsel %vm2171_vm4, %v964_v40, %v968_v30  ;;  %v996_v49 = vrot.slane %v994_v39, 5  ;;  %v422_v61 = vshll.u32 %v399_v54, 16  ;;  %v428_v62 = vshll.u32 %v400_v56, 16  ;;  %v403_v63 = vld [vmem:[%s2131_s26 + $0x10] sm:$0xf] }
  0x27   : > { %v991_v48 = vor.u32 %v990_v42, %v987_v41  ;;  %v1751_v50 = vcombine.low %v955_v43, %v969_v47  ;;  %v978_v51 = vrot.slane %v977_v45, 4  ;;  %v433_v2 = vshrl.u32 %v401_v57, 16  ;;  %v405_v11 = vld [vmem:[%s2131_s26 + $0x18] sm:$0xf]  ;;  %v406_v18 = vld [vmem:[%s2131_s26 + $0x1c] sm:$0x1] }
  0x28   : > { %v436_v4 = vshll.u32 %v401_v57, 16  ;;  %v442_v5 = vshll.u32 %v402_v58, 16  ;;  %v421_v7 = vrot.slane %v419_v60, 4  ;;  %v424_v8 = vrot.slane %v422_v61, 5  ;;  %v2051_v29 = vld [vmem:[%s2131_s26 + $0x18] ss:$8 sps:$4 sm:$0xff]  }
  0x29   : > { %v992_v52 = vrot.slane %v991_v48, 4  ;;  %1921 = vmatprep.mubr.msk.bf16.mxu0 %vm217_vm1, %v1751_v50  ;;  %v983_v55 = vsel %vm2171_vm4, %v978_v51, %v982_v46  ;;  %v430_v9 = vrot.slane %v428_v62, 5  ;;  %v447_v12 = vshrl.u32 %v403_v63, 16  ;;  %v2052_v37 = vld [vmem:[%s2131_s26 + $0x28] ss:$8 sps:$4 sm:$0xff]  }
  0x2a   : > { %v435_v13 = vrot.slane %v433_v2, 4  ;;  %v438_v14 = vrot.slane %v436_v4, 5  ;;  %v444_v17 = vrot.slane %v442_v5, 5  ;;  %v450_v19 = vshll.u32 %v403_v63, 16  ;;  %v407_v40 = vld [vmem:[%s2131_s26 + $0x20] sm:$0xf] }
  0x2b   : > { %1882 = vmatmul.mubr.msk.bf16.gmra.mrb[4].mxu1 %vm217_vm1, %v2049_v15  ;;  %v997_v59 = vsel %vm2171_vm4, %v992_v52, %v996_v49  ;;  %v425_v20 = vor.u32 %v424_v8, %v421_v7  ;;  %v449_v21 = vrot.slane %v447_v12, 4  ;;  %v456_v22 = vshll.u32 %v404_v6, 16  ;;  %v408_v45 = vld [vmem:[%s2131_s26 + $0x24] sm:$0x1]  ;;  %v409_v46 = vld [vmem:[%s2131_s26 + $0x28] sm:$0xf] }
  0x2c   : > { %v1752_v0 = vcombine.low %v983_v55, %v997_v59  ;;  %v461_v24 = vshrl.u32 %v405_v11, 16  ;;  %v439_v25 = vor.u32 %v438_v14, %v435_v13  ;;  %v452_v26 = vrot.slane %v450_v19, 5  ;;  %v410_v48 = vld [vmem:[%s2131_s26 + $0x2c] sm:$0x1]  ;;  %v411_v55 = vld [vmem:[%s2131_s26 + $0x30] sm:$0xf] }
  0x2d   : > { %v464_v27 = vshll.u32 %v405_v11, 16  ;;  %v470_v28 = vshll.u32 %v406_v18, 16  ;;  %v1263_v30 = vsel %vm230_vm0, %v2202_v23, 0  ;;  %v426_v31 = vrot.slane %v425_v20, 4  ;;  %v2249_v23 = vld [vmem:[%s2373_s1 + $0x20] sm:$0xf] }
  0x2e   : > { %1922 = vmatmul.mubr.msk.bf16.gmra.mrb[4].mxu0 %vm217_vm1, %v1752_v0  ;;  %v458_v32 = vrot.slane %v456_v22, 5  ;;  %v463_v33 = vrot.slane %v461_v24, 4  ;;  %v440_v34 = vrot.slane %v439_v25, 4  ;;  %v453_v35 = vor.u32 %v452_v26, %v449_v21  ;;  %v412_v60 = vld [vmem:[%s2131_s26 + $0x34] sm:$0x1] }
  0x2f   : > { %1927 = vmatprep.mubr.msk.bf16.mxu0 %vm217_vm1, %v2050_v53  ;;  %v466_v36 = vrot.slane %v464_v27, 5  ;;  %v431_v38 = vsel %vm2171_vm4, %v426_v31, %v430_v9  ;;  %v472_v39 = vrot.slane %v470_v28, 5  ;;  %v676_v16 = vsel %vm230_vm0, %v2190_v10, 0  ;;  %v2053_v62 = vld [vmem:[%s2131_s26 + $0x38] ss:$8 sps:$4 sm:$0xff]  }
  0x30   : > { %v445_v41 = vsel %vm2171_vm4, %v440_v34, %v444_v17  ;;  %v454_v42 = vrot.slane %v453_v35, 4  ;;  %v475_v15 = vshrl.u32 %v407_v40, 16  ;;  %v478_v49 = vshll.u32 %v407_v40, 16  ;;  %v413_v0 = vld [vmem:[%s2131_s26 + $0x38] sm:$0xf] }
  0x31   : > { %v467_v43 = vor.u32 %v466_v36, %v463_v33  ;;  %v1690_v47 = vcombine.low %v431_v38, %v445_v41  ;;  %v484_v10 = vshll.u32 %v408_v45, 16  ;;  %v489_v50 = vshrl.u32 %v409_v46, 16  ;;  %v414_v2 = vld [vmem:[%s2131_s26 + $0x3c] sm:$0x1]  ;;  %v2054_v14 = vld [vmem:[%s2131_s26 + $0x50] ss:$8 sps:$4 sm:$0xff]  }
  0x32   : > { %v459_v51 = vsel %vm2171_vm4, %v454_v42, %v458_v32  ;;  %v477_v53 = vrot.slane %v475_v15, 4  ;;  %v492_v54 = vshll.u32 %v409_v46, 16  ;;  %v480_v56 = vrot.slane %v478_v49, 5  ;;  %v2055_v35 = vld [vmem:[%s2131_s26 + $0x60] ss:$8 sps:$4 sm:$0xff]  }
  0x33   : > { %v468_v52 = vrot.slane %v467_v43, 4  ;;  %1887 = vmatprep.mubr.msk.bf16.mxu1 %vm217_vm1, %v1690_v47  ;;  %v486_v57 = vrot.slane %v484_v10, 5  ;;  %v491_v58 = vrot.slane %v489_v50, 4  ;;  %v498_v59 = vshll.u32 %v410_v48, 16  ;;  %v1792_v40 = vld [vmem:[%s2131_s26 + $0xc] sm:$0x1] }
  0x34   : > { %v494_v63 = vrot.slane %v492_v54, 5  ;;  %v503_v4 = vshrl.u32 %v411_v55, 16  ;;  %v481_v6 = vor.u32 %v480_v56, %v477_v53  ;;  %v506_v8 = vshll.u32 %v411_v55, 16  ;;  %v1793_v41 = vld [vmem:[%s2131_s26 + $0x10] sm:$0xf] }
  0x35   : > { %v473_v61 = vsel %vm2171_vm4, %v468_v52, %v472_v39  ;;  %v500_v7 = vrot.slane %v498_v59, 5  ;;  %v512_v12 = vshll.u32 %v412_v60, 16  ;;  %v517_v13 = vshrl.u32 %v413_v0, 16  ;;  %v2058_v39 = vld [vmem:[%s2131_s26 + $0x70] ss:$8 sps:$4 sm:$0xff]  }
  0x36   : > { %1928 = vmatmul.mubr.msk.bf16.vlgmr.msra.gmra.mrb[0].mxu0 %vm217_vm1, %v2051_v29  ;;  %v1691_v5 = vcombine.low %v459_v51, %v473_v61  ;;  %v495_v9 = vor.u32 %v494_v63, %v491_v58  ;;  %v505_v11 = vrot.slane %v503_v4, 4  ;;  %v482_v17 = vrot.slane %v481_v6, 4  ;;  %v1794_v42 = vld [vmem:[%s2131_s26 + $0x14] sm:$0x1]  ;;  %v1795_v48 = vld [vmem:[%s2131_s26 + $0x18] sm:$0xf] }
  0x37   : > { %1936 = vmatpush3.bf16.msra.mxu0 %v1263_v30  ;;  %1931 = vmatprep.mubr.msk.bf16.mxu0 %vm217_vm1, %v2052_v37  ;;  %v508_v18 = vrot.slane %v506_v8, 5  ;;  %v520_v19 = vshll.u32 %v413_v0, 16  ;;  %v526_v20 = vshll.u32 %v414_v2, 16  ;;  %v519_v22 = vrot.slane %v517_v13, 4  ;;  %v2056_v37 = vld [vmem:[%s2131_s26 + $0x90] ss:$8 sps:$4 sm:$0xff]  }
  0x38   : > { %2030 = vmatprep.subr.msk.bf16.mxu0 %vm230_vm0, %v2249_v23  ;;  %1888 = vmatmul.mubr.msk.bf16.vlgmr.msra.gmra.mrb[0].mxu1 %vm217_vm1, %v1691_v5  ;;  %v496_v21 = vrot.slane %v495_v9, 4  ;;  %v487_v24 = vsel %vm2171_vm4, %v482_v17, %v486_v57  ;;  %v514_v26 = vrot.slane %v512_v12, 5  ;;  %v1493_v34 = vsel %vm230_vm0, %v2249_v23, 0  ;;  %v1796_v50 = vld [vmem:[%s2131_s26 + $0x1c] sm:$0x1] }
  0x39   : > { %1896 = vmatpush3.bf16.msra.mxu1 %v676_v16  ;;  %v509_v25 = vor.u32 %v508_v18, %v505_v11  ;;  %v522_v27 = vrot.slane %v520_v19, 5  ;;  %v528_v32 = vrot.slane %v526_v20, 5  ;;  %v1791_v16 = vld [vmem:[%s2131_s26 + $0x8] sm:$0xf]  ;;  %v1364_v23 = vshll.u32 %v1792_v40, 16 }
  0x3a   : > { %2026 = vmatprep.subr.msk.bf16.mxu1 %vm230_vm0, %v2108_v1  ;;  %v501_v28 = vsel %vm2171_vm4, %v496_v21, %v500_v7  ;;  %v1355_v43 = vshrl.u32 %v1791_v16, 16  ;;  %v1358_v45 = vshll.u32 %v1791_v16, 16  ;;  %v1369_v46 = vshrl.u32 %v1793_v41, 16  ;;  %v1797_v51 = vld [vmem:[%s2131_s26 + $0x20] sm:$0xf] }
  0x3b   : > { %v1692_v29 = vcombine.low %v487_v24, %v501_v28  ;;  %v510_v30 = vrot.slane %v509_v25, 4  ;;  %v523_v31 = vor.u32 %v522_v27, %v519_v22  ;;  %v1372_v15 = vshll.u32 %v1793_v41, 16  ;;  %v2057_v52 = vld [vmem:[%s2131_s26 + $0xa0] ss:$8 sps:$4 sm:$0xff]   ;;  %v1798_v58 = vld [vmem:[%s2131_s26 + $0x24] sm:$0x1] }
  0x3c   : > { %v1378_v47 = vshll.u32 %v1794_v42, 16  ;;  %v1357_v49 = vrot.slane %v1355_v43, 4  ;;  %v1360_v10 = vrot.slane %v1358_v45, 5  ;;  %v2059_v53 = vld [vmem:[%s2131_s26 + $0x80] ss:$8 sps:$4 sm:$0xff]   ;;  %v1366_v54 = vrot.slane %v1364_v23, 5 }
  0x3d   : > { %1891 = vmatprep.mubr.msk.bf16.mxu1 %vm217_vm1, %v1692_v29  ;;  %v515_v1 = vsel %vm2171_vm4, %v510_v30, %v514_v26  ;;  %v524_v33 = vrot.slane %v523_v31, 4  ;;  %v1371_v55 = vrot.slane %v1369_v46, 4  ;;  %v1374_v56 = vrot.slane %v1372_v15, 5  ;;  %v2060_v5 = vld [vmem:[%s2131_s26 + $0xb0] ss:$8 sps:$4 sm:$0xff]  }
  0x3e   : > { %1932 = vmatmul.mubr.msk.bf16.gmra.mrb[4].mxu0 %vm217_vm1, %v2053_v62  ;;  %v1380_v57 = vrot.slane %v1378_v47, 5  ;;  %v1361_v59 = vor.u32 %v1360_v10, %v1357_v49  ;;  %v1383_v60 = vshrl.u32 %v1795_v48, 16  ;;  %v1386_v61 = vshll.u32 %v1795_v48, 16  ;;  %v1799_v17 = vld [vmem:[%s2131_s26 + $0x28] sm:$0xf] }
  0x3f   : > { %1937 = vmatprep.mubr.msk.bf16.mxu0 %vm217_vm1, %v2054_v14  ;;  %v529_v36 = vsel %vm2171_vm4, %v524_v33, %v528_v32  ;;  %v1392_v62 = vshll.u32 %v1796_v50, 16  ;;  %v1375_v63 = vor.u32 %v1374_v56, %v1371_v55  ;;  %v1397_v0 = vshrl.u32 %v1797_v51, 16  ;;  %v1800_v20 = vld [vmem:[%s2131_s26 + $0x2c] sm:$0x1]  ;;  %v1801_v21 = vld [vmem:[%s2131_s26 + $0x30] sm:$0xf] }
  0x40   : > { %v1693_v38 = vcombine.low %v515_v1, %v529_v36  ;;  %v1400_v2 = vshll.u32 %v1797_v51, 16  ;;  %v1406_v4 = vshll.u32 %v1798_v58, 16  ;;  %v1362_v6 = vrot.slane %v1361_v59, 4  ;;  %v1802_v22 = vld [vmem:[%s2131_s26 + $0x34] sm:$0x1] }
  0x41   : > { %v1385_v7 = vrot.slane %v1383_v60, 4  ;;  %v1388_v8 = vrot.slane %v1386_v61, 5  ;;  %v1394_v9 = vrot.slane %v1392_v62, 5  ;;  %v1376_v11 = vrot.slane %v1375_v63, 4  ;;  %v2061_v32 = vld [vmem:[%s2131_s26 + $0xc0] ss:$8 sps:$4 sm:$0xff]  }
  0x42   : > { %1892 = vmatmul.mubr.msk.bf16.gmra.mrb[4].mxu1 %vm217_vm1, %v1693_v38  ;;  %v1399_v12 = vrot.slane %v1397_v0, 4  ;;  %v1402_v13 = vrot.slane %v1400_v2, 5  ;;  %v1408_v14 = vrot.slane %v1406_v4, 5  ;;  %v1367_v18 = vsel %vm2171_vm4, %v1362_v6, %v1366_v54  ;;  %v1803_v36 = vld [vmem:[%s2131_s26 + $0x38] sm:$0xf] }
  0x43   : > { %1897 = vmatprep.mubr.msk.bf16.mxu1 %vm217_vm1, %v2056_v37  ;;  %v1389_v19 = vor.u32 %v1388_v8, %v1385_v7  ;;  %v1381_v24 = vsel %vm2171_vm4, %v1376_v11, %v1380_v57  ;;  %v1411_v26 = vshrl.u32 %v1799_v17, 16  ;;  %v1414_v27 = vshll.u32 %v1799_v17, 16  ;;  %v1804_v16 = vld [vmem:[%s2131_s26 + $0x3c] sm:$0x1]  ;;  %v1805_v43 = vld [vmem:[%s2131_s26 + $0x40] sm:$0xf] }
  0x44   : > { %v1403_v25 = vor.u32 %v1402_v13, %v1399_v12  ;;  %v1808_v28 = vcombine.low %v1367_v18, %v1381_v24  ;;  %v1420_v30 = vshll.u32 %v1800_v20, 16  ;;  %v1425_v31 = vshrl.u32 %v1801_v21, 16  ;;  %v1806_v45 = vld [vmem:[%s2131_s26 + $0x44] sm:$0x1]  ;;  %v2062_v15 = vld [vmem:[%s2131_s26 + $0xf8] ss:$8 sps:$4 sm:$0xff]  }
  0x45   : > { %v1390_v29 = vrot.slane %v1389_v19, 4  ;;  %v1413_v33 = vrot.slane %v1411_v26, 4  ;;  %v1439_v23 = vshrl.u32 %v1803_v36, 16  ;;  %v1442_v48 = vshll.u32 %v1803_v36, 16  ;;  %v2063_v8 = vld [vmem:[%s2131_s26 + $0x108] ss:$8 sps:$4 sm:$0xff]  }
  0x46   : > { %1938 = vmatmul.mubr.msk.bf16.vlgmr.msra.gmra.mrb[0].mxu0 %vm217_vm1, %v2055_v35  ;;  %v1404_v1 = vrot.slane %v1403_v25, 4  ;;  %v1428_v35 = vshll.u32 %v1801_v21, 16  ;;  %v1422_v37 = vrot.slane %v1420_v30, 5  ;;  %v1427_v38 = vrot.slane %v1425_v31, 4  ;;  %v1816_v18 = vld [vmem:[%s2374_s2] ss:$0 sm:$0xff] }
  0x47   : > { %1946 = vmatpush3.bf16.msra.mxu0 %v1493_v34  ;;  %1941 = vmatprep.mubr.msk.bf16.mxu0 %vm217_vm1, %v2058_v39  ;;  %v1416_v34 = vrot.slane %v1414_v27, 5  ;;  %v1434_v39 = vshll.u32 %v1802_v22, 16  ;;  %v1448_v49 = vshll.u32 %v1804_v16, 16  ;;  %v1441_v51 = vrot.slane %v1439_v23, 4 }
  0x48   : > { %v1409_v40 = vsel %vm2171_vm4, %v1404_v1, %v1408_v14  ;;  %v1430_v42 = vrot.slane %v1428_v35, 5  ;;  %v1456_v54 = vshll.u32 %v1805_v43, 16  ;;  %v1462_v55 = vshll.u32 %v1806_v45, 16 }
  0x49   : > { %v1417_v41 = vor.u32 %v1416_v34, %v1413_v33  ;;  %v1436_v47 = vrot.slane %v1434_v39, 5  ;;  %v1450_v60 = vrot.slane %v1448_v49, 5 }
  0x4a   : > { %1898 = vmatmul.mubr.msk.bf16.vlgmr.msra.gmra.mrb[0].mxu1 %vm217_vm1, %v2057_v52  ;;  %v1431_v50 = vor.u32 %v1430_v42, %v1427_v38  ;;  %v1453_v52 = vshrl.u32 %v1805_v43, 16  ;;  %v1458_v61 = vrot.slane %v1456_v54, 5  ;;  %v1464_v4 = vrot.slane %v1462_v55, 5 }
  0x4b   : > { %1956 = vmatpush3.bf16.msra.mxu1 %v2117_v3  ;;  %1901 = vmatprep.mubr.msk.bf16.mxu1 %vm217_vm1, %v2060_v5  ;;  %v1395_v3 = vsel %vm2171_vm4, %v1390_v29, %v1394_v9  ;;  %v1418_v10 = vrot.slane %v1417_v41, 4 }
  0x4c   : > { %v1809_v46 = vcombine.low %v1395_v3, %v1409_v40  ;;  %v1432_v57 = vrot.slane %v1431_v50, 4  ;;  %v1455_v58 = vrot.slane %v1453_v52, 4 }
  0x4d   : > { %v1423_v56 = vsel %vm2171_vm4, %v1418_v10, %v1422_v37 }
  0x4e   : > { %1942 = vmatmul.mubr.msk.bf16.gmra.mrb[4].mxu0 %vm217_vm1, %v2059_v53  ;;  %v1444_v53 = vrot.slane %v1442_v48, 5  ;;  %v1437_v62 = vsel %vm2171_vm4, %v1432_v57, %v1436_v47  ;;  %v1459_v2 = vor.u32 %v1458_v61, %v1455_v58 }
  0x4f   : > { %1947 = vmatprep.mubr.msk.bf16.mxu0 %vm217_vm1, %v1808_v28  ;;  %v1810_v63 = vcombine.low %v1423_v56, %v1437_v62 }
  0x50   : > { %v1445_v59 = vor.u32 %v1444_v53, %v1441_v51  ;;  %v1460_v6 = vrot.slane %v1459_v2, 4 }
  0x52   : > { %1902 = vmatmul.mubr.msk.bf16.gmra.mrb[4].mxu1 %vm217_vm1, %v2061_v32  ;;  %v1446_v0 = vrot.slane %v1445_v59, 4  ;;  %v1465_v7 = vsel %vm2171_vm4, %v1460_v6, %v1464_v4 }
  0x53   : > { %1911 = vmatprep.mubr.msk.bf16.mxu1 %vm217_vm1, %v2062_v15 }
  0x54   : > { %v1451_v5 = vsel %vm2171_vm4, %v1446_v0, %v1450_v60 }
  0x55   : > { %v1811_v9 = vcombine.low %v1451_v5, %v1465_v7 }
  0x56   : > { %1948 = vmatmul.mubr.msk.bf16.vlgmr.msra.gmra.mrb[0].mxu0 %vm217_vm1, %v1809_v46 }
  0x57   : > { %1951 = vmatprep.mubr.msk.bf16.mxu0 %vm217_vm1, %v1810_v63 }
  0x5e   : > { %1952 = vmatmul.mubr.msk.bf16.gmra.mrb[4].mxu0 %vm217_vm1, %v1811_v9  ;;  %1912 = vmatmul.mubr.msk.bf16.vlgmr.msra.gmra.mrb[4].mxu1 %vm217_vm1, %v2063_v8 }
 0x11d   : > { %v1899_v11 = vpop.f32.mrb[0].mxu1 }
 0x11e   : > { %v712_v12 = vpop.f32.mrb[1].mxu1 }
 0x11f   : > { %v1900_v13 = vpop.f32.mrb[2].mxu1 }
 0x120   : > { %v715_v14 = vpop.f32.mrb[3].mxu1 }
 0x129   : > { %v1949_v17 = vpop.f32.mrb[0].mxu0 }
 0x12a   : > { %v1957_v44 = vadd.f32 %v1949_v17, %v1899_v11  ;;  %v1529_v19 = vpop.f32.mrb[1].mxu0 }
 0x12b   : > { %v1958_v20 = vadd.f32 %v1529_v19, %v712_v12  ;;  %v1950_v21 = vpop.f32.mrb[2].mxu0 }
 0x12c   : > { %v1577_v22 = vadd.f32 %v1957_v44, %v1816_v18  ;;  %v1959_v24 = vadd.f32 %v1950_v21, %v1900_v13  ;;  %v1532_v25 = vpop.f32.mrb[3].mxu0 }
 0x12d   : > { %v1575_v26 = vadd.f32 %v1958_v20, %v1816_v18  ;;  %v1960_v27 = vadd.f32 %v1532_v25, %v715_v14 }
 0x12e   : > { %v1585_v28 = vpack.c.bf16 %v1577_v22, %v1577_v22  ;;  %v1578_v29 = vadd.f32 %v1959_v24, %v1816_v18 }
 0x12f   : > { %v1583_v30 = vpack.c.bf16 %v1575_v26, %v1575_v26  ;;  %v1576_v31 = vadd.f32 %v1960_v27, %v1816_v18 }
 0x130   : > { %1594 = vst.msk [vmem:[%s2351_s17 + $0x8] sm:$0xf] %vm1591_vm5, %v1585_v28  ;;  %v1586_v32 = vpack.c.bf16 %v1578_v29, %v1578_v29 }
 0x131   : > { %1592 = vst.msk [vmem:[%s2351_s17] sm:$0xf] %vm1591_vm5, %v1583_v30  ;;  %v1584_v1 = vpack.c.bf16 %v1576_v31, %v1576_v31  ;;  %v1953_v33 = vpop.f32.mrb[4].mxu0  ;;  %v1913_v35 = vpop.f32.mrb[4].mxu1 }
 0x132   : > { %1595 = vst.msk [vmem:[%s2351_s17 + $0xc] sm:$0xf] %vm1591_vm5, %v1586_v32  ;;  %v1545_v34 = vpop.f32.mrb[5].mxu0  ;;  %v1961_v3 = vadd.f32 %v1953_v33, %v1913_v35  ;;  %v847_v37 = vpop.f32.mrb[5].mxu1 }
 0x133   : > { %1593 = vst.msk [vmem:[%s2351_s17 + $0x4] sm:$0xf] %vm1591_vm5, %v1584_v1  ;;  %v1954_v36 = vpop.f32.mrb[6].mxu0  ;;  %v1962_v39 = vadd.f32 %v1545_v34, %v847_v37  ;;  %v1914_v16 = vpop.f32.mrb[6].mxu1 }
 0x134   : > { %v1548_v38 = vpop.f32.mrb[7].mxu0  ;;  %v1581_v40 = vadd.f32 %v1961_v3, %v1816_v18  ;;  %v1963_v41 = vadd.f32 %v1954_v36, %v1914_v16  ;;  %v850_v42 = vpop.f32.mrb[7].mxu1 }
 0x135   : > { %v1579_v43 = vadd.f32 %v1962_v39, %v1816_v18  ;;  %v1964_v45 = vadd.f32 %v1548_v38, %v850_v42 }
 0x136   : > { %v1589_v23 = vpack.c.bf16 %v1581_v40, %v1581_v40  ;;  %v1582_v46 = vadd.f32 %v1963_v41, %v1816_v18 }
 0x137   : > { %v1587_v15 = vpack.c.bf16 %v1579_v43, %v1579_v43  ;;  %v1580_v47 = vadd.f32 %v1964_v45, %v1816_v18 }
 0x138   : > { %1598 = vst.msk [vmem:[%s2351_s17 + $0x18] sm:$0xf] %vm1591_vm5, %v1589_v23  ;;  %v1590_v48 = vpack.c.bf16 %v1582_v46, %v1582_v46 }
 0x139   : > { %1596 = vst.msk [vmem:[%s2351_s17 + $0x10] sm:$0xf] %vm1591_vm5, %v1587_v15  ;;  %v1588_v49 = vpack.c.bf16 %v1580_v47, %v1580_v47 }
 0x13a   : > { %1599 = vst.msk [vmem:[%s2351_s17 + $0x1c] sm:$0xf] %vm1591_vm5, %v1590_v48 }
 0x13b   : > { %1597 = vst.msk [vmem:[%s2351_s17 + $0x14] sm:$0xf] %vm1591_vm5, %v1588_v49 }
 0x13c PF: > { %s13_s12 = sadd.s32 1, %s2070_s12  }
 0x13d   : > { %p10_p5 = scmp.ge.s32.totalorder %s13_s12, 4  }
 0x13f   :  { %12 = sbr.rel (!%p10_p5) target bundleno = 1 (0x1), region = 75 }

// kernel: _lambda_.29
= control target key start
LH: loop header
LB: loop body
LE: loop exit
PB: predicated region body
PF: predicated region fallthrough
CT: control target
= control target key end

     0   :  { %v237_v0 = vmov 0   ;;  %vm149_vm0 = vcmask 916480   ;;  %s312_s1 = inlined_call_operand.vmem [shape: bf16[240,128], index: 1, kind: input, shape index: {}]   ;;  %s313_s0 = inlined_call_operand.vmem [shape: bf16[8,240], index: 0, kind: input, shape index: {}]   ;;  %s314_s2 = inlined_call_operand.vmem [shape: f32[1,128], index: 2, kind: input, shape index: {}]   ;;  %s315_s3 = inlined_call_operand.vmem [shape: bf16[8,128], index: 3, kind: output, shape index: {}]  }
   0x1   :  { %153 = vmatprep.subr.bf16.mxu0 %v237_v0  ;;  %v220_v1 = vld [vmem:[%s312_s1] sm:$0xff]   ;;  %v221_v2 = vld [vmem:[%s312_s1 + $0x8] sm:$0xff]   ;;  %v222_v3 = vld [vmem:[%s312_s1 + $0x10] sm:$0xff]  }
   0x2   :  { %154 = vmatpush1.bf16.msra.mxu0 %v220_v1  ;;  %v223_v4 = vld [vmem:[%s312_s1 + $0x18] sm:$0xff]   ;;  %v224_v5 = vld [vmem:[%s312_s1 + $0x20] sm:$0xff]   ;;  %v225_v8 = vld [vmem:[%s312_s1 + $0x28] sm:$0xff]  }
   0x3   :  { %155 = vmatprep.subr.bf16.mxu0 %v237_v0  ;;  %v15_v6 = vld [vmem:[%s313_s0] sm:$0xff]  ;;  %v226_v9 = vld [vmem:[%s312_s1 + $0x30] sm:$0xff]   ;;  %v227_v10 = vld [vmem:[%s312_s1 + $0x38] sm:$0xff]  }
   0x4   :  { %v202_v7 = vcombine.high %v15_v6, %v15_v6  ;;  %v228_v11 = vld [vmem:[%s312_s1 + $0x40] sm:$0xff]   ;;  %v229_v12 = vld [vmem:[%s312_s1 + $0x48] sm:$0xff]   ;;  %v230_v13 = vld [vmem:[%s312_s1 + $0x50] sm:$0xff]   ;;  %v201_v18 = vcombine.low %v15_v6, %v15_v6 }
   0x5   :  { %v231_v14 = vld [vmem:[%s312_s1 + $0x58] sm:$0xff]   ;;  %v232_v15 = vld [vmem:[%s312_s1 + $0x60] sm:$0xff]   ;;  %v233_v16 = vld [vmem:[%s312_s1 + $0x68] sm:$0xff]  }
   0x6   :  { %156 = vmatpush1.bf16.msra.mxu0 %v221_v2  ;;  %218 = vmatprep.mubr.msk.bf16.mxu0 %vm149_vm0, %v202_v7  ;;  %v234_v17 = vld [vmem:[%s312_s1 + $0x70] sm:$0xff]   ;;  %v200_v19 = vld [vmem:[%s314_s2] ss:$0 sm:$0xff] }
   0x7   :  { %157 = vmatprep.subr.bf16.mxu0 %v237_v0 }
   0xa   :  { %158 = vmatpush1.bf16.msra.mxu0 %v222_v3 }
   0xb   :  { %159 = vmatprep.subr.bf16.mxu0 %v237_v0 }
   0xe   :  { %160 = vmatpush1.bf16.msra.mxu0 %v223_v4 }
   0xf   :  { %161 = vmatprep.subr.bf16.mxu0 %v237_v0 }
  0x12   :  { %162 = vmatpush1.bf16.msra.mxu0 %v224_v5 }
  0x13   :  { %163 = vmatprep.subr.bf16.mxu0 %v237_v0 }
  0x16   :  { %164 = vmatpush1.bf16.msra.mxu0 %v225_v8 }
  0x17   :  { %165 = vmatprep.subr.bf16.mxu0 %v237_v0 }
  0x1a   :  { %166 = vmatpush1.bf16.msra.mxu0 %v226_v9 }
  0x1b   :  { %167 = vmatprep.subr.bf16.mxu0 %v237_v0 }
  0x1e   :  { %168 = vmatpush1.bf16.msra.mxu0 %v227_v10 }
  0x1f   :  { %169 = vmatprep.subr.bf16.mxu0 %v237_v0 }
  0x22   :  { %170 = vmatpush1.bf16.msra.mxu0 %v228_v11 }
  0x23   :  { %171 = vmatprep.subr.bf16.mxu0 %v237_v0 }
  0x26   :  { %172 = vmatpush1.bf16.msra.mxu0 %v229_v12 }
  0x27   :  { %173 = vmatprep.subr.bf16.mxu0 %v237_v0 }
  0x2a   :  { %174 = vmatpush1.bf16.msra.mxu0 %v230_v13 }
  0x2b   :  { %175 = vmatprep.subr.bf16.mxu0 %v237_v0 }
  0x2e   :  { %176 = vmatpush1.bf16.msra.mxu0 %v231_v14 }
  0x2f   :  { %177 = vmatprep.subr.bf16.mxu0 %v237_v0 }
  0x32   :  { %178 = vmatpush1.bf16.msra.mxu0 %v232_v15 }
  0x33   :  { %179 = vmatprep.subr.bf16.mxu0 %v237_v0 }
  0x36   :  { %180 = vmatpush1.bf16.msra.mxu0 %v233_v16 }
  0x37   :  { %181 = vmatprep.subr.bf16.mxu0 %v237_v0 }
  0x3a   :  { %182 = vmatpush1.bf16.msra.mxu0 %v234_v17 }
  0x3d   :  { %186 = vmatmul.mubr.bf16.vlgmr.msra.gmra.mrb[0].mxu0 %v201_v18 }
 0x110   :  { %v187_v20 = vpop.f32.mrb[0].mxu0 }
 0x111   :  { %v188_v21 = vadd.f32 %v200_v19, %v187_v20  ;;  %v189_v22 = vpop.f32.mrb[1].mxu0 }
 0x112   :  { %v190_v23 = vpop.f32.mrb[2].mxu0 }
 0x113   :  { %v193_v24 = vmax.f32 %v188_v21, 0.0  ;;  %v191_v25 = vpop.f32.mrb[3].mxu0 }
 0x115   :  { %v194_v26 = vpack.c.bf16 %v193_v24, %v193_v24 }
 0x117   :  { %195 = vst [vmem:[%s315_s3] sm:$0xf] %v194_v26 }

// kernel: _lambda_.26
= control target key start
LH: loop header
LB: loop body
LE: loop exit
PB: predicated region body
PF: predicated region fallthrough
CT: control target
= control target key end

     0   :  { %s1101_s24 = smov 0   ;;  %s1285_s0 = inlined_call_operand.vmem [shape: bf16[2,2,2,240], index: 0, kind: input, shape index: {}]   ;;  %s1286_s1 = inlined_call_operand.vmem [shape: bf16[240,128], index: 1, kind: input, shape index: {}]   ;;  %s1287_s2 = inlined_call_operand.vmem [shape: f32[1,128], index: 2, kind: input, shape index: {}, may-alias: {2,4}]   ;;  %s1288_s3 = inlined_call_operand.vmem [shape: f32[9,1,1,128], index: 3, kind: input, shape index: {}]   ;;  %s1289_s4 = inlined_call_operand.vmem [shape: f32[1,128], index: 4, kind: input, shape index: {}, may-alias: {2,4}]   ;;  %s1290_s5 = inlined_call_operand.vmem [shape: bf16[128,240], index: 5, kind: input, shape index: {}]   ;;  %s1291_s6 = inlined_call_operand.vmem [shape: f32[1,240], index: 6, kind: input, shape index: {}]   ;;  %s1292_s7 = inlined_call_operand.vmem [shape: bf16[2,2,2,240], index: 7, kind: output, shape index: {}]  }
   0x1 LB: > { %s935_s25 = sadd.s32 4294967295, %s1055_s24   ;;  %p939_p0 = scmp.ge.s32.totalorder %s1055_s24, 1  ;;  %s1055_s24 = sphi %s1101_s24, %s17_s24  }
   0x2   : > { %p236_p1 = scmp.lt.s32.totalorder %s1055_s24, 3 }
   0x4   : > { %p237_p2 = pnand %p939_p0, %p236_p1 }
   0x5   : > { %v1010_v0 = vld [vmem:[%s1286_s1] sm:$0xff] (!%p237_p2)   ;;  %v1057_v1 = vmov (!%p237_p2), 0   ;;  %p266_p3 = scmp.lt.s32.totalorder (!%p237_p2), %s935_s25, 1  ;;  %v1011_v2 = vld [vmem:[%s1286_s1 + $0x8] sm:$0xff] (!%p237_p2)   ;;  %v1012_v3 = vld [vmem:[%s1286_s1 + $0x10] sm:$0xff] (!%p237_p2)   ;;  %v320_v5 = vlaneseq (!%p237_p2)  ;;  %vm430_vm0 = vcmask (!%p237_p2), 916480  }
   0x6   : > { %240 = sbr.rel (%p237_p2) target bundleno = 553 (0x229), region = 48  ;;  %434 = vmatprep.subr.bf16.mxu0 (!%p237_p2), %v1057_v1  ;;  %778 = vmatprep.mubr.bf16.mxu1 (!%p237_p2), %v1057_v1  ;;  %v1013_v4 = vld [vmem:[%s1286_s1 + $0x18] sm:$0xff] (!%p237_p2)   ;;  %v1014_v6 = vld [vmem:[%s1286_s1 + $0x20] sm:$0xff] (!%p237_p2)   ;;  %v1015_v9 = vld [vmem:[%s1286_s1 + $0x28] sm:$0xff] (!%p237_p2)   ;;  %v1058_v10 = vmov (!%p237_p2), 1966171168  }
   0x7   : > { %435 = vmatpush1.bf16.msra.mxu0 (!%p237_p2), %v1010_v0  ;;  %v318_v11 = vunpack.c.l.s4 (!%p237_p2), %v1058_v10  ;;  %v1139_v12 = vshrl.u32 (!%p237_p2), %v320_v5, 7  ;;  %v1016_v16 = vld [vmem:[%s1286_s1 + $0x30] sm:$0xff] (!%p237_p2)   ;;  %v1017_v19 = vld [vmem:[%s1286_s1 + $0x38] sm:$0xff] (!%p237_p2)   ;;  %v1018_v21 = vld [vmem:[%s1286_s1 + $0x40] sm:$0xff] (!%p237_p2)   ;;  %v1059_v29 = vmov (!%p237_p2), 0.0   ;;  %vm877_vm1 = vcmask (!%p237_p2), 1040384  }
   0x8   : > { %436 = vmatprep.subr.bf16.mxu0 (!%p237_p2), %v1057_v1  ;;  %v1019_v22 = vld [vmem:[%s1286_s1 + $0x48] sm:$0xff] (!%p237_p2)   ;;  %v1020_v23 = vld [vmem:[%s1286_s1 + $0x50] sm:$0xff] (!%p237_p2)   ;;  %v1021_v24 = vld [vmem:[%s1286_s1 + $0x58] sm:$0xff] (!%p237_p2)   ;;  %475 = vst [vmem:[#allocation2] sm:$0xf] (!%p237_p2), %v1059_v29  ;;  %vm878_vm2 = vcmask (!%p237_p2), 910337  }
   0x9   : > { %v319_v14 = vunpack.c.0.s8 (!%p237_p2), %v318_v11  ;;  %v1022_v25 = vld [vmem:[%s1286_s1 + $0x60] sm:$0xff] (!%p237_p2)   ;;  %v1023_v26 = vld [vmem:[%s1286_s1 + $0x68] sm:$0xff] (!%p237_p2)   ;;  %v1024_v27 = vld [vmem:[%s1286_s1 + $0x70] sm:$0xff] (!%p237_p2)   ;;  %476 = vst [vmem:[#allocation2 + $0x4] sm:$0xf] (!%p237_p2), %v1059_v29 }
   0xa   : > { %477 = vst [vmem:[#allocation2 + $0x8] sm:$0xf] (!%p237_p2), %v1059_v29  ;;  %478 = vst [vmem:[#allocation2 + $0xc] sm:$0xf] (!%p237_p2), %v1059_v29  ;;  %v1025_v30 = vld [vmem:[%s1290_s5 + $0x4] ss:$8 sps:$4 sm:$0xff] (!%p237_p2)  }
   0xb   : > { %437 = vmatpush1.bf16.msra.mxu0 (!%p237_p2), %v1011_v2  ;;  %v1144_v15 = vsub.s32 (!%p237_p2), %v319_v14, %v1139_v12  ;;  %v1027_v31 = vld [vmem:[%s1290_s5] ss:$8 sps:$4 sm:$0xff] (!%p237_p2)   ;;  %746 = vmatprep.subr.bf16.mxu1 (!%p237_p2), %v1025_v30  ;;  %v1028_v32 = vld [vmem:[%s1290_s5 + $0x14] ss:$8 sps:$4 sm:$0xff] (!%p237_p2)   ;;  %v1030_v33 = vld [vmem:[%s1290_s5 + $0x10] ss:$8 sps:$4 sm:$0xff] (!%p237_p2)  }
   0xc   : > { %438 = vmatprep.subr.bf16.mxu0 (!%p237_p2), %v1057_v1  ;;  %747 = vmatpush1.bf16.msra.mxu1 (!%p237_p2), %v1027_v31  ;;  %v1031_v34 = vld [vmem:[%s1290_s5 + $0x24] ss:$8 sps:$4 sm:$0xff] (!%p237_p2)   ;;  %v1033_v35 = vld [vmem:[%s1290_s5 + $0x20] ss:$8 sps:$4 sm:$0xff] (!%p237_p2)   ;;  %v1034_v36 = vld [vmem:[%s1290_s5 + $0x34] ss:$8 sps:$4 sm:$0xff] (!%p237_p2)  }
   0xd   : > { %s1294_s25 = smov (!%p266_p3, %s935_s25), 1  ;;  %748 = vmatprep.subr.bf16.mxu1 %v1028_v32  ;;  %v1036_v37 = vld [vmem:[%s1290_s5 + $0x30] ss:$8 sps:$4 sm:$0xff]   ;;  %v1037_v38 = vld [vmem:[%s1290_s5 + $0x44] ss:$8 sps:$4 sm:$0xff]   ;;  %vm879_vm3 = vmor %vm878_vm2, %vm877_vm1 }
   0xe   : > { %s940_s9 = sshll.u32 %s1294_s25, 2  ;;  %v1039_v39 = vld [vmem:[%s1290_s5 + $0x40] ss:$8 sps:$4 sm:$0xff]   ;;  %v1040_v40 = vld [vmem:[%s1290_s5 + $0x54] ss:$8 sps:$4 sm:$0xff]  }
   0xf   : > { %439 = vmatpush1.bf16.msra.mxu0 %v1012_v3  ;;  %s269_s14 = scalar_lea.vmem %s1285_s0, %s940_s9  ;;  %v1042_v41 = vld [vmem:[%s1290_s5 + $0x50] ss:$8 sps:$4 sm:$0xff]   ;;  %v1043_v42 = vld [vmem:[%s1290_s5 + $0x64] ss:$8 sps:$4 sm:$0xff]   ;;  %v1045_v43 = vld [vmem:[%s1290_s5 + $0x60] ss:$8 sps:$4 sm:$0xff]   ;;  %s273_s15 = scalar_lea.vmem %s1292_s7, %s940_s9 }
  0x10   : > { %440 = vmatprep.subr.bf16.mxu0 %v1057_v1  ;;  %v1132_v7 = vld [vmem:[%s269_s14] sm:$0x3]  ;;  %v1134_v8 = vld [vmem:[%s269_s14 + $0x2] sm:$0x3]  ;;  %749 = vmatpush1.bf16.msra.mxu1 %v1030_v33  ;;  %v1046_v44 = vld [vmem:[%s1290_s5 + $0x74] ss:$8 sps:$4 sm:$0xff]  }
  0x11   : > { %v316_v13 = vcombine.low %v1132_v7, %v1134_v8  ;;  %750 = vmatprep.subr.bf16.mxu1 %v1031_v34  ;;  %v1048_v45 = vld [vmem:[%s1290_s5 + $0x70] ss:$8 sps:$4 sm:$0xff]   ;;  %v1060_v46 = vmov 1983009808   ;;  %v942_v49 = vld [vmem:[%s1287_s2] ss:$0 sm:$0xff] }
  0x12   : > { %v481_v47 = vunpack.c.l.s4 %v1060_v46  ;;  %v493_v51 = vld [vmem:[#allocation2] sm:$0x3]  ;;  %v518_v0 = vld [vmem:[#allocation2 + $0x2] sm:$0x3]  ;;  %v972_v31 = vld [vmem:[%s1288_s3 + $0x6] ss:$0 sm:$0xff] }
  0x13   : > { %441 = vmatpush1.bf16.msra.mxu0 %v1013_v4  ;;  %v323_v17 = vrot.slane %v316_v13, %v1144_v15  ;;  %v960_v52 = vld [vmem:[%s1288_s3] ss:$0 sm:$0xff]  ;;  %v504_v56 = vld [vmem:[#allocation2 + $0x1] sm:$0x3]  ;;  %v966_v5 = vld [vmem:[%s1288_s3 + $0x3] ss:$0 sm:$0xff] }
  0x14   : > { %442 = vmatprep.subr.bf16.mxu0 %v1057_v1  ;;  %751 = vmatpush1.bf16.msra.mxu1 %v1033_v35  ;;  %v482_v48 = vunpack.c.0.s8 %v481_v47  ;;  %v962_v57 = vld [vmem:[%s1288_s3 + $0x1] ss:$0 sm:$0xff]  ;;  %v502_v61 = vmul.f32 %v960_v52, %v493_v51  ;;  %v576_v35 = vld [vmem:[#allocation2 + $0xc] sm:$0x3] }
  0x15   : > { %v324_v18 = vcombine.high %v323_v17, %v323_v17  ;;  %v331_v28 = vrot.slane %v323_v17, %v1144_v15  ;;  %752 = vmatprep.subr.bf16.mxu1 %v1034_v36  ;;  %v514_v62 = vmul.f32 %v962_v57, %v504_v56 }
  0x16   : > { %v1231_v54 = vsub.s32 %v482_v48, %v1139_v12 }
  0x17   : > { %443 = vmatpush1.bf16.msra.mxu0 %v1014_v6  ;;  %v338_v20 = vrot.slane %v324_v18, %v1144_v15  ;;  %v516_v3 = vadd.f32 %v514_v62, %v502_v61  ;;  %v968_v18 = vld [vmem:[%s1288_s3 + $0x4] ss:$0 sm:$0xff] }
  0x18   : > { %444 = vmatprep.subr.bf16.mxu0 %v1057_v1  ;;  %753 = vmatpush1.bf16.msra.mxu1 %v1036_v37 }
  0x19   : > { %958 = vmatprep.mubr.msk.bf16.mxu0 %vm430_vm0, %v338_v20  ;;  %754 = vmatprep.subr.bf16.mxu1 %v1037_v38 }
  0x1b   : > { %445 = vmatpush1.bf16.msra.mxu0 %v1015_v9 }
  0x1c   : > { %446 = vmatprep.subr.bf16.mxu0 %v1057_v1  ;;  %755 = vmatpush1.bf16.msra.mxu1 %v1039_v39  ;;  %v974_v39 = vld [vmem:[%s1288_s3 + $0x7] ss:$0 sm:$0xff] }
  0x1d   : > { %756 = vmatprep.subr.bf16.mxu1 %v1040_v40 }
  0x1f   : > { %447 = vmatpush1.bf16.msra.mxu0 %v1016_v16 }
  0x20   : > { %448 = vmatprep.subr.bf16.mxu0 %v1057_v1  ;;  %757 = vmatpush1.bf16.msra.mxu1 %v1042_v41 }
  0x21   : > { %758 = vmatprep.subr.bf16.mxu1 %v1043_v42  ;;  %v590_v42 = vld [vmem:[#allocation2 + $0xd] sm:$0x3] }
  0x23   : > { %449 = vmatpush1.bf16.msra.mxu0 %v1017_v19 }
  0x24   : > { %450 = vmatprep.subr.bf16.mxu0 %v1057_v1  ;;  %759 = vmatpush1.bf16.msra.mxu1 %v1045_v43 }
  0x25   : > { %760 = vmatprep.subr.bf16.mxu1 %v1046_v44 }
  0x27   : > { %451 = vmatpush1.bf16.msra.mxu0 %v1018_v21 }
  0x28   : > { %452 = vmatprep.subr.bf16.mxu0 %v1057_v1  ;;  %761 = vmatpush1.bf16.msra.mxu1 %v1048_v45  ;;  %v586_v45 = vmul.f32 %v972_v31, %v576_v35 }
  0x2b   : > { %453 = vmatpush1.bf16.msra.mxu0 %v1019_v22 }
  0x2c   : > { %454 = vmatprep.subr.bf16.mxu0 %v1057_v1 }
  0x2f   : > { %455 = vmatpush1.bf16.msra.mxu0 %v1020_v23  ;;  %v970_v23 = vld [vmem:[%s1288_s3 + $0x5] ss:$0 sm:$0xff] }
  0x30   : > { %456 = vmatprep.subr.bf16.mxu0 %v1057_v1 }
  0x33   : > { %457 = vmatpush1.bf16.msra.mxu0 %v1021_v24 }
  0x34   : > { %458 = vmatprep.subr.bf16.mxu0 %v1057_v1 }
  0x37   : > { %459 = vmatpush1.bf16.msra.mxu0 %v1022_v25 }
  0x38   : > { %460 = vmatprep.subr.bf16.mxu0 %v1057_v1 }
  0x3b   : > { %461 = vmatpush1.bf16.msra.mxu0 %v1023_v26 }
  0x3c   : > { %462 = vmatprep.subr.bf16.mxu0 %v1057_v1  ;;  %v964_v1 = vld [vmem:[%s1288_s3 + $0x2] ss:$0 sm:$0xff] }
  0x3d   : > { %v528_v4 = vmul.f32 %v964_v1, %v518_v0 }
  0x3f   : > { %463 = vmatpush1.bf16.msra.mxu0 %v1024_v27  ;;  %v530_v11 = vadd.f32 %v528_v4, %v516_v3  ;;  %v787_v3 = vunpack.c.l.bf16 %v1132_v7  ;;  %v788_v4 = vunpack.c.l.bf16 %v1134_v8 }
  0x42   : > { %467 = vmatmul.mubr.bf16.vlgmr.msra.gmra.mrb[0].mxu0 %v331_v28 }
 0x115   : > { %v468_v50 = vpop.f32.mrb[0].mxu0 }
 0x116   : > { %v469_v53 = vadd.f32 %v942_v49, %v468_v50  ;;  %v470_v55 = vpop.f32.mrb[1].mxu0  ;;  %v604_v49 = vld [vmem:[#allocation2 + $0xe] sm:$0x3]  ;;  %v976_v50 = vld [vmem:[%s1288_s3 + $0x8] ss:$0 sm:$0xff] }
 0x117   : > { %v471_v58 = vpop.f32.mrb[2].mxu0 }
 0x118   : > { %v474_v59 = vmax.f32 %v469_v53, 0.0  ;;  %v472_v60 = vpop.f32.mrb[3].mxu0 }
 0x119   : > { %v977_v60 = vld [vmem:[%s1289_s4] ss:$0 sm:$0xff] }
 0x11a   : > { %v486_v63 = vrot.slane %v474_v59, %v1231_v54  ;;  %959 = vst.sshfl [vmem:[#allocation2 + $0x5] sm:$0x3 pattern:$0x76325410] %v474_v59 }
 0x11c   : > { %v487_v2 = vcombine.high %v486_v63, %v486_v63 }
 0x11e   : > { %492 = vst [vmem:[#allocation2 + $0x9] sm:$0x3] %v487_v2 }
 0x121   : > { %v494_v6 = vld [vmem:[#allocation2 + $0x4] sm:$0x3]  ;;  %v519_v10 = vld [vmem:[#allocation2 + $0x6] sm:$0x3] }
 0x122   : > { %v505_v9 = vld [vmem:[#allocation2 + $0x5] sm:$0x3]  ;;  %v503_v13 = vmul.f32 %v960_v52, %v494_v6  ;;  %v529_v21 = vmul.f32 %v964_v1, %v519_v10  ;;  %v600_v52 = vmul.f32 %v974_v39, %v590_v42  ;;  %v658_v6 = vsub.s32 0, %v1139_v12 }
 0x123   : > { %v515_v14 = vmul.f32 %v962_v57, %v505_v9  ;;  %v532_v16 = vld [vmem:[#allocation2 + $0x4] sm:$0x3]  ;;  %v560_v22 = vld [vmem:[#allocation2 + $0x6] sm:$0x3]  ;;  %v614_v57 = vmul.f32 %v976_v50, %v604_v49  ;;  %v654_v9 = vld [vmem:[%s1291_s6] sm:$0x3] }
 0x124   : > { %v546_v17 = vld [vmem:[#allocation2 + $0x5] sm:$0x3]  ;;  %v542_v19 = vmul.f32 %v966_v5, %v532_v16  ;;  %v570_v34 = vmul.f32 %v970_v23, %v560_v22  ;;  %v662_v10 = vsub.s32 1, %v1139_v12 }
 0x125   : > { %v517_v20 = vadd.f32 %v515_v14, %v503_v13  ;;  %v533_v24 = vld [vmem:[#allocation2 + $0x8] sm:$0x3]  ;;  %v556_v27 = vmul.f32 %v968_v18, %v546_v17  ;;  %v561_v33 = vld [vmem:[#allocation2 + $0xa] sm:$0x3]  ;;  %v659_v13 = vrot.slane %v654_v9, %v658_v6 }
 0x126   : > { %v544_v25 = vadd.f32 %v542_v19, %v530_v11  ;;  %v547_v26 = vld [vmem:[#allocation2 + $0x9] sm:$0x3]  ;;  %v543_v29 = vmul.f32 %v966_v5, %v533_v24  ;;  %v571_v44 = vmul.f32 %v970_v23, %v561_v33  ;;  %v791_v5 = vcombine.low %v787_v3, %v788_v4 }
 0x127   : > { %v531_v28 = vadd.f32 %v529_v21, %v517_v20  ;;  %v575_v30 = vld [vmem:[#allocation2 + $0x8] sm:$0x3]  ;;  %v557_v37 = vmul.f32 %v968_v18, %v547_v26  ;;  %v603_v48 = vld [vmem:[#allocation2 + $0xa] sm:$0x3]  ;;  %v663_v14 = vrot.slane %v654_v9, %v662_v10 }
 0x128   : > { %v558_v32 = vadd.f32 %v556_v27, %v544_v25  ;;  %v589_v38 = vld [vmem:[#allocation2 + $0x9] sm:$0x3]  ;;  %v585_v41 = vmul.f32 %v972_v31, %v575_v30  ;;  %v613_v56 = vmul.f32 %v976_v50, %v603_v48  ;;  %v798_v11 = vrot.slane %v791_v5, %v1231_v54 }
 0x129   : > { %v545_v36 = vadd.f32 %v543_v29, %v531_v28  ;;  %v599_v47 = vmul.f32 %v974_v39, %v589_v38 }
 0x12a   : > { %v572_v40 = vadd.f32 %v570_v34, %v558_v32  ;;  %v799_v17 = vcombine.high %v798_v11, %v798_v11 }
 0x12b   : > { %v559_v43 = vadd.f32 %v557_v37, %v545_v36 }
 0x12c   : > { %v587_v46 = vadd.f32 %v585_v41, %v572_v40 }
 0x12d   : > { %v573_v51 = vadd.f32 %v571_v44, %v559_v43 }
 0x12e   : > { %v601_v53 = vadd.f32 %v599_v47, %v587_v46 }
 0x12f   : > { %v588_v55 = vadd.f32 %v586_v45, %v573_v51 }
 0x130   : > { %v615_v59 = vadd.f32 %v613_v56, %v601_v53 }
 0x131   : > { %v602_v58 = vadd.f32 %v600_v52, %v588_v55 }
 0x132   : > { %v624_v62 = vadd.f32 %v977_v60, %v615_v59 }
 0x133   : > { %v616_v61 = vadd.f32 %v614_v57, %v602_v58 }
 0x135   : > { %v625_v63 = vadd.f32 %v977_v60, %v616_v61 }
 0x137   : > { %v628_v0 = vcombine.low %v624_v62, %v625_v63 }
 0x139   : > { %v635_v1 = vrot.slane %v628_v0, %v1231_v54 }
 0x13b   : > { %v637_v2 = vpack.c.bf16 %v635_v1, %v635_v1 }
 0x13d   : > { %779 = vmatmul.mubr.bf16.vlgmr.msra.gmra.mrb[0].mxu1 %v637_v2 }
 0x210   : > { %v780_v16 = vpop.f32.mrb[0].mxu1 }
 0x211   : > { %v781_v18 = vadd.f32 %v780_v16, %v659_v13  ;;  %v782_v19 = vpop.f32.mrb[1].mxu1 }
 0x212   : > { %v783_v7 = vadd.f32 %v782_v19, %v663_v14  ;;  %v784_v20 = vpop.f32.mrb[2].mxu1 }
 0x213   : > { %v802_v8 = vadd.f32 %v798_v11, %v781_v18  ;;  %v785_v21 = vpop.f32.mrb[3].mxu1 }
 0x214   : > { %v803_v22 = vadd.f32 %v799_v17, %v783_v7 }
 0x215   : > { %v804_v23 = vmax.f32 %v802_v8, 0.0 }
 0x216   : > { %v805_v24 = vmax.f32 %v803_v22, 0.0 }
 0x218   : > { %v808_v25 = vcombine.low %v804_v23, %v805_v24 }
 0x21a   : > { %v815_v26 = vrot.slane %v808_v25, %v1231_v54 }
 0x21c   : > { %v816_v12 = vcombine.high %v815_v26, %v815_v26  ;;  %v823_v27 = vrot.slane %v815_v26, %v1231_v54 }
 0x21e   : > { %v824_v28 = vcombine.high %v823_v27, %v823_v27  ;;  %v831_v29 = vrot.slane %v816_v12, %v1231_v54 }
 0x220   : > { %v832_v30 = vcombine.high %v831_v29, %v831_v29  ;;  %v994_v31 = vpack.c.bf16 %v824_v28, %v823_v27 }
 0x222   : > { %v852_v32 = vrot.slane %v994_v31, %v1144_v15  ;;  %v995_v33 = vpack.c.bf16 %v832_v30, %v831_v29 }
 0x224   : > { %v859_v34 = vrot.slane %v852_v32, %v1144_v15  ;;  %v867_v35 = vrot.slane %v995_v33, %v1144_v15 }
 0x226   : > { %v874_v36 = vrot.slane %v867_v35, %v1144_v15  ;;  %880 = vst.msk [vmem:[%s273_s15] sm:$0x3] %vm879_vm3, %v859_v34 }
 0x228   : > { %881 = vst.msk [vmem:[%s273_s15 + $0x2] sm:$0x3] %vm879_vm3, %v874_v36 }
 0x229 PF: > { %s17_s24 = sadd.s32 1, %s1055_s24  }
 0x22a   : > { %p14_p4 = scmp.ge.s32.totalorder %s17_s24, 4  }
 0x22c   :  { %16 = sbr.rel (!%p14_p4) target bundleno = 1 (0x1), region = 88 }

// kernel: _lambda_.25
= control target key start
LH: loop header
LB: loop body
LE: loop exit
PB: predicated region body
PF: predicated region fallthrough
CT: control target
= control target key end

     0   :  { %s1035_s21 = smov 0   ;;  %s1208_s0 = inlined_call_operand.vmem [shape: bf16[8,3,3,128], index: 0, kind: input, shape index: {}]   ;;  %s1209_s1 = inlined_call_operand.vmem [shape: bf16[8,3,3,24], index: 1, kind: input, shape index: {}]   ;;  %s1210_s2 = inlined_call_operand.vmem [shape: f32[9,1,1,128], index: 2, kind: input, shape index: {}]   ;;  %s1211_s3 = inlined_call_operand.vmem [shape: f32[1,128], index: 3, kind: input, shape index: {}]   ;;  %s1212_s4 = inlined_call_operand.vmem [shape: bf16[128,216], index: 4, kind: input, shape index: {}]   ;;  %s1213_s5 = inlined_call_operand.vmem [shape: f32[1,216], index: 5, kind: input, shape index: {}]   ;;  %s1214_s6 = inlined_call_operand.vmem [shape: bf16[2,2,2,240], index: 6, kind: output, shape index: {}]  }
   0x1 LB: > { %s1041_s22 = sadd.s32 4294967295, %s994_s21   ;;  %p867_p0 = scmp.ge.s32.totalorder %s994_s21, 1  ;;  %s994_s21 = sphi %s1035_s21, %s16_s21  }
   0x2   : > { %p226_p1 = scmp.lt.s32.totalorder %s994_s21, 3 }
   0x4   : > { %p227_p2 = pnand %p867_p0, %p226_p1 }
   0x5   : > { %v964_v0 = vld [vmem:[%s1212_s4 + $0x4] ss:$8 sps:$4 sm:$0xff] (!%p227_p2)   ;;  %s868_s25 = sshll.u32 (!%p227_p2), %s1041_s22, 2  ;;  %v966_v1 = vld [vmem:[%s1212_s4] ss:$8 sps:$4 sm:$0xff] (!%p227_p2)   ;;  %v996_v2 = vmov (!%p227_p2), 0  }
   0x6   : > { %230 = sbr.rel (%p227_p2) target bundleno = 402 (0x192), region = 44  ;;  %612 = vmatprep.mubr.bf16.mxu0 (!%p227_p2), %v996_v2  ;;  %p263_p3 = scmp.lt.s32.totalorder (!%p227_p2), %s868_s25, 7  ;;  %580 = vmatprep.subr.bf16.mxu0 (!%p227_p2), %v964_v0  ;;  %v967_v3 = vld [vmem:[%s1212_s4 + $0x14] ss:$8 sps:$4 sm:$0xff] (!%p227_p2)   ;;  %v969_v4 = vld [vmem:[%s1212_s4 + $0x10] ss:$8 sps:$4 sm:$0xff] (!%p227_p2)  }
   0x7   : > { %581 = vmatpush1.bf16.msra.mxu0 (!%p227_p2), %v966_v1  ;;  %v970_v5 = vld [vmem:[%s1212_s4 + $0x24] ss:$8 sps:$4 sm:$0xff] (!%p227_p2)   ;;  %v972_v6 = vld [vmem:[%s1212_s4 + $0x20] ss:$8 sps:$4 sm:$0xff] (!%p227_p2)   ;;  %v973_v7 = vld [vmem:[%s1212_s4 + $0x34] ss:$8 sps:$4 sm:$0xff] (!%p227_p2)  }
   0x8   : > { %582 = vmatprep.subr.bf16.mxu0 (!%p227_p2), %v967_v3  ;;  %v975_v8 = vld [vmem:[%s1212_s4 + $0x30] ss:$8 sps:$4 sm:$0xff] (!%p227_p2)   ;;  %v976_v9 = vld [vmem:[%s1212_s4 + $0x44] ss:$8 sps:$4 sm:$0xff] (!%p227_p2)   ;;  %v873_v13 = vld [vmem:[%s1210_s2] ss:$0 sm:$0xff] (!%p227_p2) }
   0x9   : > { %v877_v18 = vld [vmem:[%s1210_s2 + $0x1] ss:$0 sm:$0xff] (!%p227_p2)  ;;  %v879_v25 = vld [vmem:[%s1210_s2 + $0x2] ss:$0 sm:$0xff] (!%p227_p2)  ;;  %v885_v32 = vld [vmem:[%s1210_s2 + $0x3] ss:$0 sm:$0xff] (!%p227_p2) }
   0xa   : > { %v978_v20 = vld [vmem:[%s1212_s4 + $0x40] ss:$8 sps:$4 sm:$0xff] (!%p227_p2)   ;;  %v979_v34 = vld [vmem:[%s1212_s4 + $0x54] ss:$8 sps:$4 sm:$0xff] (!%p227_p2)   ;;  %v889_v44 = vld [vmem:[%s1210_s2 + $0x4] ss:$0 sm:$0xff] (!%p227_p2) }
   0xb   : > { %583 = vmatpush1.bf16.msra.mxu0 (!%p227_p2), %v969_v4  ;;  %v893_v50 = vld [vmem:[%s1210_s2 + $0x5] ss:$0 sm:$0xff] (!%p227_p2)  ;;  %v981_v57 = vld [vmem:[%s1212_s4 + $0x50] ss:$8 sps:$4 sm:$0xff] (!%p227_p2)   ;;  %v899_v4 = vld [vmem:[%s1210_s2 + $0x6] ss:$0 sm:$0xff] (!%p227_p2) }
   0xc   : > { %584 = vmatprep.subr.bf16.mxu0 (!%p227_p2), %v970_v5  ;;  %v982_v58 = vld [vmem:[%s1212_s4 + $0x64] ss:$8 sps:$4 sm:$0xff] (!%p227_p2)   ;;  %p276_p4 = scmp.lt.s32.totalorder (!%p227_p2), %s1041_s22, 1  ;;  %vm710_vm0 = vcmask (!%p227_p2), 188416   ;;  %s999_s26 = smov (!%p227_p2), 24   ;;  %vm793_vm1 = vcmask (!%p227_p2), 1040576  }
   0xd   : > { %s1216_s25 = smov (!%p263_p3, %s868_s25), 7  ;;  %vm794_vm2 = vcmask 910337   ;;  %vm788_vm3 = vcmask 195584  }
   0xe   : > { %s951_s10 = smul.u32 6, %s1216_s25  ;;  %s1218_s22 = smov (!%p276_p4, %s1041_s22), 1  ;;  %vm795_vm4 = vmor %vm794_vm2, %vm793_vm1 }
   0xf   : > { %585 = vmatpush1.bf16.msra.mxu0 %v972_v6  ;;  %s872_s25 = sshll.u32 %s1218_s22, 2 }
  0x10   : > { %s1072_s15 = scalar_lea.vmem %s1208_s0, %s951_s10  ;;  %586 = vmatprep.subr.bf16.mxu0 %v973_v7  ;;  %s1163_s19 = scalar_lea.vmem %s1209_s1, %s951_s10 }
  0x11   : > { %v281_v10 = vld [vmem:[%s1072_s15] sm:$0x1]  ;;  %v282_v11 = vld [vmem:[%s1072_s15 + $0x2] sm:$0x1]  ;;  %v874_v14 = vld [vmem:[%s1072_s15 + $0x6] sm:$0x1]  ;;  %s1179_s23 = scalar_lea.vmem %s1214_s6, %s872_s25 }
  0x12   : > { %v283_v12 = vunpack.c.l.bf16 %v281_v10  ;;  %v284_v15 = vunpack.c.l.bf16 %v282_v11  ;;  %v875_v16 = vld [vmem:[%s1072_s15 + $0x8] sm:$0x1]  ;;  %v297_v17 = vunpack.c.l.bf16 %v874_v14  ;;  %v311_v19 = vld [vmem:[%s1072_s15] sm:$0x3]  ;;  %v312_v23 = vld [vmem:[%s1072_s15 + $0x2] sm:$0x3] }
  0x13   : > { %v298_v22 = vunpack.c.l.bf16 %v875_v16  ;;  %v313_v24 = vunpack.c.l.bf16 %v311_v19  ;;  %v882_v26 = vld [vmem:[%s1072_s15 + $0xc] sm:$0x1]  ;;  %v314_v29 = vunpack.c.l.bf16 %v312_v23  ;;  %v883_v30 = vld [vmem:[%s1072_s15 + $0xe] sm:$0x1]  ;;  %v886_v33 = vld [vmem:[%s1072_s15 + $0x12] sm:$0x1]  ;;  %587 = vmatpush1.bf16.msra.mxu0 %v975_v8 }
  0x14   : > { %v292_v21 = vmul.f32 %v873_v13, %v283_v12  ;;  %v293_v27 = vmul.f32 %v873_v13, %v284_v15  ;;  %v307_v28 = vmul.f32 %v877_v18, %v297_v17  ;;  %v338_v31 = vunpack.c.l.bf16 %v882_v26  ;;  %v887_v38 = vld [vmem:[%s1072_s15 + $0x14] sm:$0x1]  ;;  %v890_v40 = vld [vmem:[%s1072_s15 + $0xc] sm:$0x3]  ;;  %588 = vmatprep.subr.bf16.mxu0 %v976_v9  ;;  %v891_v45 = vld [vmem:[%s1072_s15 + $0xe] sm:$0x3] }
  0x15   : > { %v308_v35 = vmul.f32 %v877_v18, %v298_v22  ;;  %v323_v36 = vmul.f32 %v879_v25, %v313_v24  ;;  %v339_v37 = vunpack.c.l.bf16 %v883_v30  ;;  %v355_v39 = vunpack.c.l.bf16 %v886_v33  ;;  %v896_v46 = vld [vmem:[%s1072_s15 + $0x2] sm:$0x1]  ;;  %v897_v51 = vld [vmem:[%s1072_s15 + $0x4] sm:$0x1]  ;;  %v900_v56 = vld [vmem:[%s1072_s15 + $0x8] sm:$0x1] }
  0x16   : > { %v309_v41 = vadd.f32 %v307_v28, %v292_v21  ;;  %v324_v42 = vmul.f32 %v879_v25, %v314_v29  ;;  %v356_v43 = vunpack.c.l.bf16 %v887_v38  ;;  %v348_v49 = vmul.f32 %v885_v32, %v338_v31  ;;  %v901_v63 = vld [vmem:[%s1072_s15 + $0xa] sm:$0x1]  ;;  %v904_v5 = vld [vmem:[%s1072_s15 + $0x2] sm:$0x3]  ;;  %v905_v6 = vld [vmem:[%s1072_s15 + $0x4] sm:$0x3] }
  0x17   : > { %v310_v47 = vadd.f32 %v308_v35, %v293_v27  ;;  %v880_v48 = vrot.slane %v323_v36, 9  ;;  %v349_v53 = vmul.f32 %v885_v32, %v339_v37  ;;  %v371_v54 = vunpack.c.l.bf16 %v890_v40  ;;  %589 = vmatpush1.bf16.msra.mxu0 %v978_v20  ;;  %v903_v13 = vld [vmem:[%s1210_s2 + $0x7] ss:$0 sm:$0xff]  ;;  %v907_v14 = vld [vmem:[%s1210_s2 + $0x8] ss:$0 sm:$0xff] }
  0x18   : > { %v881_v52 = vrot.slane %v324_v42, 9  ;;  %v372_v55 = vunpack.c.l.bf16 %v891_v45  ;;  %v365_v60 = vmul.f32 %v889_v44, %v355_v39  ;;  %v366_v61 = vmul.f32 %v889_v44, %v356_v43  ;;  %590 = vmatprep.subr.bf16.mxu0 %v979_v34  ;;  %v984_v15 = vld [vmem:[%s1212_s4 + $0x60] ss:$8 sps:$4 sm:$0xff]   ;;  %v985_v20 = vld [vmem:[%s1212_s4 + $0x74] ss:$8 sps:$4 sm:$0xff]  }
  0x19   : > { %v333_v59 = vadd.f32 %v880_v48, %v309_v41  ;;  %v396_v62 = vunpack.c.l.bf16 %v896_v46  ;;  %v381_v1 = vmul.f32 %v893_v50, %v371_v54  ;;  %v397_v3 = vunpack.c.l.bf16 %v897_v51  ;;  %v987_v32 = vld [vmem:[%s1212_s4 + $0x70] ss:$8 sps:$4 sm:$0xff]   ;;  %v910_v39 = vld [vmem:[%s1211_s3] ss:$0 sm:$0xff]  ;;  %v927_v51 = vld [vmem:[%s1163_s19 + $0x6] sm:$0x1] }
  0x1a   : > { %v334_v0 = vadd.f32 %v881_v52, %v310_v47  ;;  %v382_v2 = vmul.f32 %v893_v50, %v372_v55  ;;  %v413_v8 = vunpack.c.l.bf16 %v900_v56  ;;  %v414_v12 = vunpack.c.l.bf16 %v901_v63  ;;  %v623_v50 = vld [vmem:[%s1163_s19] sm:$0x1]  ;;  %v931_v56 = vld [vmem:[%s1163_s19 + $0xc] sm:$0x1] }
  0x1b   : > { %v350_v7 = vadd.f32 %v348_v49, %v333_v59  ;;  %v894_v10 = vrot.slane %v381_v1, 9  ;;  %591 = vmatpush1.bf16.msra.mxu0 %v981_v57  ;;  %v406_v17 = vmul.f32 %v899_v4, %v396_v62  ;;  %v429_v18 = vunpack.c.l.bf16 %v904_v5  ;;  %v634_v52 = vld [vmem:[%s1163_s19] sm:$0x3]  ;;  %v933_v57 = vld [vmem:[%s1163_s19 + $0x12] sm:$0x1] }
  0x1c   : > { %v351_v9 = vadd.f32 %v349_v53, %v334_v0  ;;  %v895_v11 = vrot.slane %v382_v2, 9  ;;  %v430_v19 = vunpack.c.l.bf16 %v905_v6  ;;  %592 = vmatprep.subr.bf16.mxu0 %v982_v58  ;;  %v407_v22 = vmul.f32 %v899_v4, %v397_v3  ;;  %v935_v58 = vld [vmem:[%s1163_s19 + $0xc] sm:$0x3]  ;;  %v939_v1 = vld [vmem:[%s1163_s19 + $0x2] sm:$0x1] }
  0x1d   : > { %v367_v16 = vadd.f32 %v365_v60, %v350_v7  ;;  %v423_v24 = vmul.f32 %v903_v13, %v413_v8  ;;  %v439_v25 = vmul.f32 %v907_v14, %v429_v18  ;;  %v424_v28 = vmul.f32 %v903_v13, %v414_v12  ;;  %v943_v2 = vld [vmem:[%s1163_s19 + $0x2] sm:$0x3]  ;;  %v941_v5 = vld [vmem:[%s1163_s19 + $0x8] sm:$0x1] }
  0x1e   : > { %v368_v21 = vadd.f32 %v366_v61, %v351_v9  ;;  %v440_v26 = vmul.f32 %v907_v14, %v430_v19  ;;  %v997_v29 = vmov 1983009808   ;;  %v466_v31 = vlaneseq  ;;  %v624_v18 = vld [vmem:[%s1163_s19 + $0x2] sm:$0x1]  ;;  %v928_v19 = vld [vmem:[%s1163_s19 + $0x8] sm:$0x1] }
  0x1f   : > { %v391_v23 = vadd.f32 %v894_v10, %v367_v16  ;;  %v464_v30 = vunpack.c.l.s4 %v997_v29  ;;  %593 = vmatpush1.bf16.msra.mxu0 %v984_v15  ;;  %v908_v34 = vrot.slane %v439_v25, 9  ;;  %v625_v53 = vunpack.c.l.bf16 %v623_v50 }
  0x20   : > { %v392_v27 = vadd.f32 %v895_v11, %v368_v21  ;;  %594 = vmatprep.subr.bf16.mxu0 %v985_v20  ;;  %v909_v36 = vrot.slane %v440_v26, 9  ;;  %v1152_v41 = vshrl.u32 %v466_v31, 7  ;;  %v630_v54 = vunpack.c.l.bf16 %v927_v51  ;;  %v635_v20 = vld [vmem:[%s1163_s19 + $0x2] sm:$0x3]  ;;  %v932_v26 = vld [vmem:[%s1163_s19 + $0xe] sm:$0x1] }
  0x21   : > { %v408_v33 = vadd.f32 %v406_v17, %v391_v23  ;;  %v465_v40 = vunpack.c.0.s8 %v464_v30  ;;  %v636_v55 = vunpack.c.l.bf16 %v634_v52  ;;  %v651_v61 = vunpack.c.l.bf16 %v931_v56 }
  0x22   : > { %v409_v35 = vadd.f32 %v407_v22, %v392_v27  ;;  %v632_v59 = vadd.f32 %v630_v54, %v625_v53  ;;  %v664_v62 = vunpack.c.l.bf16 %v935_v58  ;;  %v658_v0 = vunpack.c.l.bf16 %v933_v57  ;;  %v488_v27 = vld [vmem:[%s1213_s5] sm:$0x3] }
  0x23   : > { %v425_v37 = vadd.f32 %v423_v24, %v408_v33  ;;  %595 = vmatpush1.bf16.msra.mxu0 %v987_v32  ;;  %v1155_v46 = vsub.s32 %v465_v40, %v1152_v41  ;;  %v929_v60 = vrot.slane %v636_v55, 9  ;;  %v679_v7 = vunpack.c.l.bf16 %v939_v1  ;;  %v934_v32 = vld [vmem:[%s1163_s19 + $0x14] sm:$0x1]  ;;  %v936_v33 = vld [vmem:[%s1163_s19 + $0xe] sm:$0x3] }
  0x24   : > { %v426_v38 = vadd.f32 %v424_v28, %v409_v35  ;;  %v937_v4 = vrot.slane %v664_v62, 9  ;;  %v692_v8 = vunpack.c.l.bf16 %v943_v2  ;;  %v686_v10 = vunpack.c.l.bf16 %v941_v5 }
  0x25   : > { %v449_v42 = vadd.f32 %v908_v34, %v425_v37  ;;  %v646_v63 = vadd.f32 %v929_v60, %v632_v59  ;;  %v626_v21 = vunpack.c.l.bf16 %v624_v18  ;;  %v631_v22 = vunpack.c.l.bf16 %v928_v19 }
  0x26   : > { %v450_v43 = vadd.f32 %v909_v36, %v426_v38  ;;  %v945_v12 = vrot.slane %v692_v8, 9  ;;  %v637_v23 = vunpack.c.l.bf16 %v635_v20  ;;  %v492_v28 = vsub.s32 0, %v1152_v41 }
  0x27   : > { %v458_v44 = vadd.f32 %v910_v39, %v449_v42  ;;  %v653_v3 = vadd.f32 %v651_v61, %v646_v63  ;;  %v633_v24 = vadd.f32 %v631_v22, %v626_v21  ;;  %v652_v30 = vunpack.c.l.bf16 %v932_v26  ;;  %v940_v42 = vld [vmem:[%s1163_s19 + $0x4] sm:$0x1] }
  0x28   : > { %v459_v45 = vadd.f32 %v910_v39, %v450_v43  ;;  %v930_v25 = vrot.slane %v637_v23, 9  ;;  %v496_v31 = vsub.s32 1, %v1152_v41  ;;  %v659_v35 = vunpack.c.l.bf16 %v934_v32 }
  0x29   : > { %v660_v6 = vadd.f32 %v658_v0, %v653_v3  ;;  %v665_v36 = vunpack.c.l.bf16 %v936_v33  ;;  %v493_v37 = vrot.slane %v488_v27, %v492_v28  ;;  %v998_v61 = vmov 1966171168  }
  0x2a   : > { %v462_v47 = vcombine.low %v458_v44, %v459_v45  ;;  %v647_v29 = vadd.f32 %v930_v25, %v633_v24  ;;  %v497_v40 = vrot.slane %v488_v27, %v496_v31  ;;  %v680_v44 = vunpack.c.l.bf16 %v940_v42 }
  0x2b   : > { %v674_v9 = vadd.f32 %v937_v4, %v660_v6  ;;  %v938_v39 = vrot.slane %v665_v36, 9  ;;  %v754_v62 = vunpack.c.l.s4 %v998_v61 }
  0x2c   : > { %v469_v48 = vrot.slane %v462_v47, %v1155_v46  ;;  %v654_v34 = vadd.f32 %v652_v30, %v647_v29  ;;  %v942_v47 = vld [vmem:[%s1163_s19 + $0xa] sm:$0x1] }
  0x2d   : > { %v681_v11 = vadd.f32 %v679_v7, %v674_v9  ;;  %v687_v52 = vunpack.c.l.bf16 %v942_v47  ;;  %v755_v3 = vunpack.c.0.s8 %v754_v62 }
  0x2e   : > { %v471_v49 = vpack.c.bf16 %v469_v48, %v469_v48  ;;  %v661_v38 = vadd.f32 %v659_v35, %v654_v34  ;;  %v944_v48 = vld [vmem:[%s1163_s19 + $0x4] sm:$0x3] }
  0x2f   : > { %v688_v13 = vadd.f32 %v686_v10, %v681_v11  ;;  %v693_v53 = vunpack.c.l.bf16 %v944_v48  ;;  %v758_v10 = vsub.s32 %v755_v3, %v1152_v41 }
  0x30   : > { %613 = vmatmul.mubr.bf16.vlgmr.msra.gmra.mrb[0].mxu0 %v471_v49  ;;  %v675_v43 = vadd.f32 %v938_v39, %v661_v38 }
  0x31   : > { %v702_v14 = vadd.f32 %v945_v12, %v688_v13  ;;  %v946_v59 = vrot.slane %v693_v53, 9 }
  0x32   : > { %v682_v51 = vadd.f32 %v680_v44, %v675_v43 }
  0x33   : > { %v704_v15 = vmul.f32 0.11111111, %v702_v14 }
  0x34   : > { %v689_v58 = vadd.f32 %v687_v52, %v682_v51 }
  0x35   : > { %v706_v16 = vmax.f32 %v704_v15, 0.0 }
  0x36   : > { %v703_v63 = vadd.f32 %v946_v59, %v689_v58 }
  0x37   : > { %v708_v17 = vpack.c.bf16 %v706_v16, %v706_v16 }
  0x38   : > { %v705_v1 = vmul.f32 0.11111111, %v703_v63 }
  0x39   : > { %711 = vst.msk [vmem:[%s1179_s23] sm:$0x1] %vm710_vm0, %v708_v17 }
  0x3a   : > { %v707_v4 = vmax.f32 %v705_v1, 0.0 }
  0x3c   : > { %v709_v7 = vpack.c.bf16 %v707_v4, %v707_v4 }
  0x3e   : > { %712 = vst.msk [vmem:[%s1179_s23 + $0x2] sm:$0x1] %vm710_vm0, %v709_v7 }
 0x103   : > { %v614_v45 = vpop.f32.mrb[0].mxu0 }
 0x104   : > { %v615_v49 = vadd.f32 %v614_v45, %v493_v37  ;;  %v616_v50 = vpop.f32.mrb[1].mxu0 }
 0x105   : > { %v617_v54 = vadd.f32 %v616_v50, %v497_v40  ;;  %v618_v55 = vpop.f32.mrb[2].mxu0 }
 0x106   : > { %v621_v56 = vmax.f32 %v615_v49, 0.0  ;;  %v619_v57 = vpop.f32.mrb[3].mxu0 }
 0x107   : > { %v622_v60 = vmax.f32 %v617_v54, 0.0 }
 0x109   : > { %v715_v0 = vcombine.low %v621_v56, %v622_v60 }
 0x10b   : > { %v722_v2 = vrot.slane %v715_v0, %v1155_v46 }
 0x10d   : > { %v723_v5 = vcombine.high %v722_v2, %v722_v2  ;;  %v730_v6 = vrot.slane %v722_v2, %v1155_v46 }
 0x10f   : > { %v738_v8 = vrot.slane %v723_v5, %v1155_v46  ;;  %v731_v9 = vcombine.high %v730_v6, %v730_v6 }
 0x111   : > { %v947_v11 = vpack.c.bf16 %v731_v9, %v730_v6  ;;  %v739_v12 = vcombine.high %v738_v8, %v738_v8 }
 0x113   : > { %v759_v13 = vrot.slane %v947_v11, %v758_v10  ;;  %v948_v14 = vpack.c.bf16 %v739_v12, %v738_v8 }
 0x115   : > { %v766_v15 = vrot.slane %v759_v13, %v758_v10  ;;  %v774_v16 = vrot.slane %v948_v14, %v758_v10 }
 0x117   : > { %782 = vrot.lane.b32.xlu0 %v766_v15, %s999_s26  ;;  %v781_v17 = vrot.slane %v774_v16, %v758_v10 }
 0x11b   : > { %784 = vrot.lane.b32.xlu0 %v781_v17, %s999_s26 }
 0x189   : > { %v783_v46 = vpop.permute.xlu0 %782 }
 0x18a   : > { %v786_v41 = vrot.slane %v783_v46, 7 }
 0x18c   : > { %v789_v18 = vsel %vm788_vm3, %v786_v41, %v783_v46 }
 0x18d   : > { %796 = vst.msk [vmem:[%s1179_s23] sm:$0x3] %vm795_vm4, %v789_v18  ;;  %v785_v19 = vpop.permute.xlu0 %784 }
 0x18e   : > { %v787_v20 = vrot.slane %v785_v19, 7 }
 0x190   : > { %v790_v21 = vsel %vm788_vm3, %v787_v20, %v785_v19 }
 0x191   : > { %797 = vst.msk [vmem:[%s1179_s23 + $0x2] sm:$0x3] %vm795_vm4, %v790_v21 }
 0x192 PF: > { %s16_s21 = sadd.s32 1, %s994_s21  }
 0x193   : > { %p13_p5 = scmp.ge.s32.totalorder %s16_s21, 4  }
 0x195   :  { %15 = sbr.rel (!%p13_p5) target bundleno = 1 (0x1), region = 95 }

// kernel: _lambda_.30
= control target key start
LH: loop header
LB: loop body
LE: loop exit
PB: predicated region body
PF: predicated region fallthrough
CT: control target
= control target key end

     0   :  { %s838_s21 = smov 0   ;;  %s973_s0 = inlined_call_operand.vmem [shape: bf16[8,2,2,128], index: 0, kind: input, shape index: {}]   ;;  %s974_s1 = inlined_call_operand.vmem [shape: bf16[8,2,2,240], index: 1, kind: input, shape index: {}]   ;;  %s975_s2 = inlined_call_operand.vmem [shape: f32[9,1,1,128], index: 2, kind: input, shape index: {}]   ;;  %s976_s3 = inlined_call_operand.vmem [shape: f32[1,128], index: 3, kind: input, shape index: {}]   ;;  %s977_s4 = inlined_call_operand.vmem [shape: bf16[128,240], index: 4, kind: input, shape index: {}]   ;;  %s978_s5 = inlined_call_operand.vmem [shape: f32[1,240], index: 5, kind: input, shape index: {}]   ;;  %s979_s6 = inlined_call_operand.vmem [shape: bf16[2,1,1,480], index: 6, kind: output, shape index: {}]  }
   0x1 LB: > { %s844_s22 = sadd.s32 4294967295, %s797_s21   ;;  %p705_p0 = scmp.ge.s32.totalorder %s797_s21, 1  ;;  %s797_s21 = sphi %s838_s21, %s16_s21  }
   0x2   : > { %p224_p1 = scmp.lt.s32.totalorder %s797_s21, 3 }
   0x4   : > { %p225_p2 = pnand %p705_p0, %p224_p1 }
   0x5   : > { %v767_v0 = vld [vmem:[%s977_s4 + $0x4] ss:$8 sps:$4 sm:$0xff] (!%p225_p2)   ;;  %s706_s25 = sshll.u32 (!%p225_p2), %s844_s22, 2  ;;  %v769_v1 = vld [vmem:[%s977_s4] ss:$8 sps:$4 sm:$0xff] (!%p225_p2)   ;;  %v799_v2 = vmov (!%p225_p2), 0   ;;  %v292_v3 = vlaneseq (!%p225_p2) }
   0x6   : > { %228 = sbr.rel (%p225_p2) target bundleno = 384 (0x180), region = 44  ;;  %508 = vmatprep.mubr.bf16.mxu0 (!%p225_p2), %v799_v2  ;;  %p259_p3 = scmp.lt.s32.totalorder (!%p225_p2), %s706_s25, 7  ;;  %476 = vmatprep.subr.bf16.mxu0 (!%p225_p2), %v767_v0  ;;  %v770_v4 = vld [vmem:[%s977_s4 + $0x14] ss:$8 sps:$4 sm:$0xff] (!%p225_p2)   ;;  %v772_v5 = vld [vmem:[%s977_s4 + $0x10] ss:$8 sps:$4 sm:$0xff] (!%p225_p2)  }
   0x7   : > { %477 = vmatpush1.bf16.msra.mxu0 (!%p225_p2), %v769_v1  ;;  %v773_v6 = vld [vmem:[%s977_s4 + $0x24] ss:$8 sps:$4 sm:$0xff] (!%p225_p2)   ;;  %v800_v7 = vmov (!%p225_p2), 857870592   ;;  %v867_v9 = vshrl.u32 (!%p225_p2), %v292_v3, 7  ;;  %p270_p4 = scmp.lt.s32.totalorder (!%p225_p2), %s844_s22, 1 }
   0x8   : > { %478 = vmatprep.subr.bf16.mxu0 (!%p225_p2), %v770_v4  ;;  %v290_v8 = vunpack.c.l.s4 (!%p225_p2), %v800_v7  ;;  %v775_v10 = vld [vmem:[%s977_s4 + $0x20] ss:$8 sps:$4 sm:$0xff] (!%p225_p2)   ;;  %v776_v12 = vld [vmem:[%s977_s4 + $0x34] ss:$8 sps:$4 sm:$0xff] (!%p225_p2)   ;;  %v778_v14 = vld [vmem:[%s977_s4 + $0x30] ss:$8 sps:$4 sm:$0xff] (!%p225_p2)  }
   0x9   : > { %v277_v17 = vld [vmem:[%s975_s2] sm:$0x1] (!%p225_p2)  ;;  %v712_v19 = vld [vmem:[%s975_s2 + $0x1] sm:$0x1] (!%p225_p2)  ;;  %v779_v20 = vld [vmem:[%s977_s4 + $0x44] ss:$8 sps:$4 sm:$0xff] (!%p225_p2)  }
   0xa   : > { %v291_v11 = vunpack.c.0.s8 (!%p225_p2), %v290_v8  ;;  %v713_v22 = vld [vmem:[%s975_s2 + $0x2] sm:$0x1] (!%p225_p2)  ;;  %v719_v28 = vld [vmem:[%s975_s2 + $0x5] sm:$0x1] (!%p225_p2)  ;;  %v716_v30 = vld [vmem:[%s975_s2 + $0x3] sm:$0x1] (!%p225_p2) }
   0xb   : > { %479 = vmatpush1.bf16.msra.mxu0 (!%p225_p2), %v772_v5  ;;  %v781_v32 = vld [vmem:[%s977_s4 + $0x40] ss:$8 sps:$4 sm:$0xff] (!%p225_p2)   ;;  %v782_v33 = vld [vmem:[%s977_s4 + $0x54] ss:$8 sps:$4 sm:$0xff] (!%p225_p2)   ;;  %v718_v37 = vld [vmem:[%s975_s2 + $0x4] sm:$0x1] (!%p225_p2) }
   0xc   : > { %480 = vmatprep.subr.bf16.mxu0 (!%p225_p2), %v773_v6  ;;  %v294_v13 = vsub.s32 (!%p225_p2), %v291_v11, %v867_v9  ;;  %v725_v39 = vld [vmem:[%s975_s2 + $0x8] sm:$0x1] (!%p225_p2)  ;;  %v784_v44 = vld [vmem:[%s977_s4 + $0x50] ss:$8 sps:$4 sm:$0xff] (!%p225_p2)   ;;  %v785_v49 = vld [vmem:[%s977_s4 + $0x64] ss:$8 sps:$4 sm:$0xff] (!%p225_p2)  }
   0xd   : > { %s981_s25 = smov (!%p259_p3, %s706_s25), 7  ;;  %v722_v50 = vld [vmem:[%s975_s2 + $0x6] sm:$0x1]  ;;  %v724_v54 = vld [vmem:[%s975_s2 + $0x7] sm:$0x1]  ;;  %s983_s22 = smov (!%p270_p4, %s844_s22), 1 }
   0xe   : > { %s707_s10 = sshll.u32 %s981_s25, 1  ;;  %v295_v25 = vrot.slane %v713_v22, %v294_v13  ;;  %v326_v31 = vrot.slane %v719_v28, %v294_v13  ;;  %v357_v48 = vrot.slane %v725_v39, %v294_v13  ;;  %v787_v55 = vld [vmem:[%s977_s4 + $0x60] ss:$8 sps:$4 sm:$0xff]   ;;  %v788_v59 = vld [vmem:[%s977_s4 + $0x74] ss:$8 sps:$4 sm:$0xff]   ;;  %s709_s14 = sshll.u32 %s981_s25, 2 }
   0xf   : > { %s875_s15 = scalar_lea.vmem %s973_s0, %s707_s10  ;;  %481 = vmatpush1.bf16.msra.mxu0 %v775_v10  ;;  %v790_v62 = vld [vmem:[%s977_s4 + $0x70] ss:$8 sps:$4 sm:$0xff]   ;;  %v365_v2 = vld [vmem:[%s976_s3] sm:$0x1]  ;;  %s268_s18 = scalar_lea.vmem %s974_s1, %s709_s14  ;;  %vm589_vm0 = vcmask 1040384   ;;  %vm592_vm2 = vcmask 910337  }
  0x10   : > { %v275_v15 = vld [vmem:[%s875_s15] sm:$0x1]  ;;  %v711_v18 = vld [vmem:[%s875_s15 + $0x2] sm:$0x1]  ;;  %482 = vmatprep.subr.bf16.mxu0 %v776_v12  ;;  %v715_v23 = vld [vmem:[%s875_s15 + $0x4] sm:$0x1] }
  0x11   : > { %v276_v16 = vunpack.c.l.bf16 %v275_v15  ;;  %v281_v21 = vunpack.c.l.bf16 %v711_v18  ;;  %v305_v26 = vunpack.c.l.bf16 %v715_v23  ;;  %v717_v27 = vld [vmem:[%s875_s15 + $0x6] sm:$0x1]  ;;  %v721_v38 = vld [vmem:[%s875_s15 + $0x1] sm:$0x1]  ;;  %v723_v43 = vld [vmem:[%s875_s15 + $0x3] sm:$0x1] }
  0x12   : > { %v312_v35 = vunpack.c.l.bf16 %v717_v27  ;;  %v336_v47 = vunpack.c.l.bf16 %v721_v38  ;;  %v343_v53 = vunpack.c.l.bf16 %v723_v43  ;;  %v519_v6 = vld [vmem:[%s268_s18] sm:$0x3]  ;;  %v743_v7 = vld [vmem:[%s268_s18 + $0x4] sm:$0x3]  ;;  %v745_v8 = vld [vmem:[%s268_s18 + $0x8] sm:$0x3] }
  0x13   : > { %v278_v24 = vmul.f32 %v277_v17, %v276_v16  ;;  %v284_v29 = vmul.f32 %v712_v19, %v281_v21  ;;  %483 = vmatpush1.bf16.msra.mxu0 %v778_v14  ;;  %v297_v34 = vmul.f32 %v295_v25, %v276_v16  ;;  %v308_v41 = vmul.f32 %v716_v30, %v305_v26  ;;  %v746_v12 = vld [vmem:[%s268_s18 + $0xc] sm:$0x3]  ;;  %v748_v18 = vld [vmem:[%s268_s18 + $0x2] sm:$0x3]  ;;  %v749_v21 = vld [vmem:[%s268_s18 + $0x6] sm:$0x3] }
  0x14   : > { %484 = vmatprep.subr.bf16.mxu0 %v779_v20  ;;  %v328_v42 = vmul.f32 %v326_v31, %v305_v26  ;;  %v315_v46 = vmul.f32 %v718_v37, %v312_v35  ;;  %v339_v57 = vmul.f32 %v722_v50, %v336_v47  ;;  %v359_v58 = vmul.f32 %v357_v48, %v336_v47  ;;  %s710_s25 = sshll.u32 %s983_s22, 2  ;;  %s802_s26 = smov 112  }
  0x15   : > { %v285_v36 = vadd.f32 %v284_v29, %v278_v24  ;;  %v714_v40 = vrot.slane %v297_v34, 9  ;;  %v346_v61 = vmul.f32 %v724_v54, %v343_v53  ;;  %v520_v10 = vunpack.c.l.bf16 %v519_v6  ;;  %s957_s23 = scalar_lea.vmem %s979_s6, %s710_s25 }
  0x16   : > { %v720_v52 = vrot.slane %v328_v42, 9  ;;  %v726_v0 = vrot.slane %v359_v58, 9  ;;  %v523_v11 = vunpack.c.l.bf16 %v743_v7  ;;  %v532_v15 = vunpack.c.l.bf16 %v745_v8  ;;  %v596_v42 = vld [vmem:[%s957_s23] sm:$0x3] }
  0x17   : > { %485 = vmatpush1.bf16.msra.mxu0 %v781_v32  ;;  %v302_v45 = vadd.f32 %v714_v40, %v285_v36  ;;  %v744_v14 = vrot.slane %v520_v10, 9  ;;  %v536_v17 = vunpack.c.l.bf16 %v746_v12  ;;  %v545_v23 = vunpack.c.l.bf16 %v748_v18 }
  0x18   : > { %486 = vmatprep.subr.bf16.mxu0 %v782_v33  ;;  %v524_v13 = vadd.f32 %v523_v11, %v520_v10  ;;  %v747_v20 = vrot.slane %v532_v15, 9  ;;  %v549_v25 = vunpack.c.l.bf16 %v749_v21  ;;  %v801_v30 = vmov 1966171168  }
  0x19   : > { %v309_v51 = vadd.f32 %v308_v41, %v302_v45  ;;  %v750_v27 = vrot.slane %v545_v23, 9  ;;  %v575_v31 = vunpack.c.l.s4 %v801_v30  ;;  %v565_v33 = vsub.s32 2, %v867_v9  ;;  %v384_v45 = vld [vmem:[%s978_s5] sm:$0x3] }
  0x1a   : > { %v529_v16 = vadd.f32 %v744_v14, %v524_v13  ;;  %v468_v34 = vsub.s32 0, %v867_v9  ;;  %vm590_vm1 = vsmask.f32 256  ;;  %vm593_vm3 = vsmask.f32 1280 }
  0x1b   : > { %487 = vmatpush1.bf16.msra.mxu0 %v784_v44  ;;  %v316_v56 = vadd.f32 %v315_v46, %v309_v51  ;;  %v576_v36 = vunpack.c.0.s8 %v575_v31  ;;  %vm591_vm4 = vmand %vm589_vm0, %vm590_vm1  ;;  %v472_v46 = vsub.s32 1, %v867_v9  ;;  %vm624_vm7 = vcmask 1041280  }
  0x1c   : > { %488 = vmatprep.subr.bf16.mxu0 %v785_v49  ;;  %v533_v19 = vadd.f32 %v532_v15, %v529_v16  ;;  %vm594_vm5 = vmand %vm592_vm2, %vm593_vm3  ;;  %v469_v47 = vrot.slane %v384_v45, %v468_v34  ;;  %vm626_vm8 = vcmask 1041409   ;;  %vm629_vm11 = vcmask 780290  }
  0x1d   : > { %v333_v60 = vadd.f32 %v720_v52, %v316_v56  ;;  %v579_v40 = vsub.s32 %v576_v36, %v867_v9  ;;  %vm595_vm6 = vmor %vm594_vm5, %vm591_vm4  ;;  %v473_v48 = vrot.slane %v384_v45, %v472_v46  ;;  %vm630_vm12 = vsmask.f32 2304 }
  0x1e   : > { %v537_v22 = vadd.f32 %v536_v17, %v533_v19  ;;  %vm625_vm9 = vmand %vm624_vm7, %vm590_vm1  ;;  %vm621_vm15 = vcmask 916480  }
  0x1f   : > { %489 = vmatpush1.bf16.msra.mxu0 %v787_v55  ;;  %v340_v63 = vadd.f32 %v339_v57, %v333_v60  ;;  %vm627_vm10 = vmand %vm626_vm8, %vm593_vm3 }
  0x20   : > { %490 = vmatprep.subr.bf16.mxu0 %v788_v59  ;;  %v542_v24 = vadd.f32 %v747_v20, %v537_v22  ;;  %vm628_vm13 = vmor %vm627_vm10, %vm625_vm9 }
  0x21   : > { %v347_v1 = vadd.f32 %v346_v61, %v340_v63  ;;  %vm631_vm14 = vmand %vm629_vm11, %vm630_vm12 }
  0x22   : > { %v546_v26 = vadd.f32 %v545_v23, %v542_v24  ;;  %vm632_vm0 = vmor %vm631_vm14, %vm628_vm13 }
  0x23   : > { %491 = vmatpush1.bf16.msra.mxu0 %v790_v62  ;;  %v364_v3 = vadd.f32 %v726_v0, %v347_v1 }
  0x24   : > { %v550_v28 = vadd.f32 %v549_v25, %v546_v26 }
  0x25   : > { %v366_v4 = vadd.f32 %v365_v2, %v364_v3 }
  0x26   : > { %v555_v29 = vadd.f32 %v750_v27, %v550_v28 }
  0x27   : > { %v367_v5 = vpack.c.bf16 %v366_v4, %v366_v4 }
  0x28   : > { %v556_v32 = vmul.f32 0.11111111, %v555_v29 }
  0x29   : > { %509 = vmatmul.mubr.bf16.vlgmr.msra.gmra.mrb[0].mxu0 %v367_v5 }
  0x2a   : > { %v557_v35 = vmax.f32 %v556_v32, 0.0 }
  0x2c   : > { %v562_v37 = vrot.slane %v557_v35, %v468_v34  ;;  %v566_v38 = vrot.slane %v557_v35, %v565_v33 }
  0x2e   : > { %v751_v39 = vpack.c.bf16 %v566_v38, %v562_v37 }
  0x30   : > { %v580_v41 = vrot.slane %v751_v39, %v579_v40 }
  0x32   : > { %v587_v43 = vrot.slane %v580_v41, %v579_v40 }
  0x34   : > { %v597_v44 = vsel %vm595_vm6, %v587_v43, %v596_v42 }
  0x35   : > { %598 = vst [vmem:[%s957_s23] sm:$0x3] %v597_v44 }
  0x3c   : > { %v633_v61 = vld [vmem:[%s957_s23 + $0x1] sm:$0x7] }
  0xfc   : > { %v510_v49 = vpop.f32.mrb[0].mxu0 }
  0xfd   : > { %v511_v50 = vadd.f32 %v510_v49, %v469_v47  ;;  %v512_v51 = vpop.f32.mrb[1].mxu0 }
  0xfe   : > { %v513_v52 = vadd.f32 %v512_v51, %v473_v48  ;;  %v514_v53 = vpop.f32.mrb[2].mxu0 }
  0xff   : > { %v517_v54 = vmax.f32 %v511_v50, 0.0  ;;  %v515_v55 = vpop.f32.mrb[3].mxu0 }
 0x100   : > { %v518_v56 = vmax.f32 %v513_v52, 0.0 }
 0x102   : > { %v752_v57 = vpack.c.bf16 %v518_v56, %v517_v54 }
 0x104   : > { %v610_v58 = vrot.slane %v752_v57, %v579_v40 }
 0x106   : > { %v617_v59 = vrot.slane %v610_v58, %v579_v40 }
 0x108   : > { %618 = vrot.lane.b32.xlu0 %v617_v59, %s802_s26 }
 0x17a   : > { %v619_v9 = vpop.permute.xlu0 %618 }
 0x17b   : > { %v620_v60 = vrot.slane %v619_v9, 7 }
 0x17d   : > { %v622_v62 = vsel %vm621_vm15, %v620_v60, %v619_v9 }
 0x17e   : > { %v634_v63 = vsel %vm632_vm0, %v622_v62, %v633_v61 }
 0x17f   : > { %635 = vst [vmem:[%s957_s23 + $0x1] sm:$0x7] %v634_v63 }
 0x180 PF: > { %s16_s21 = sadd.s32 1, %s797_s21  }
 0x181   : > { %p13_p5 = scmp.ge.s32.totalorder %s16_s21, 4  }
 0x183   :  { %15 = sbr.rel (!%p13_p5) target bundleno = 1 (0x1), region = 95 }

// kernel: _lambda_.38
= control target key start
LH: loop header
LB: loop body
LE: loop exit
PB: predicated region body
PF: predicated region fallthrough
CT: control target
= control target key end

     0   :  { %v78_v35 = vlaneseq  ;;  %v688_v36 = vmov 1966171168   ;;  %vm416_vm0 = vcmask 785408   ;;  %s908_s1 = inlined_call_operand.vmem [shape: bf16[480,256], index: 1, kind: input, shape index: {}]   ;;  %s909_s0 = inlined_call_operand.vmem [shape: bf16[2,480], index: 0, kind: input, shape index: {}]   ;;  %s910_s2 = inlined_call_operand.vmem [shape: f32[1,256], index: 2, kind: input, shape index: {}]   ;;  %s911_s3 = inlined_call_operand.vmem [shape: bf16[2,256], index: 3, kind: output, shape index: {}]  }
   0x1   :  { %v598_v0 = vld [vmem:[%s908_s1 + $0x4] ss:$8 sps:$4 sm:$0xff]   ;;  %v600_v1 = vld [vmem:[%s908_s1] ss:$8 sps:$4 sm:$0xff]   ;;  %v601_v2 = vld [vmem:[%s908_s1 + $0x14] ss:$8 sps:$4 sm:$0xff]   ;;  %v98_v37 = vunpack.c.l.s4 %v688_v36 }
   0x2   :  { %420 = vmatprep.subr.bf16.mxu1 %v598_v0  ;;  %v603_v3 = vld [vmem:[%s908_s1 + $0x10] ss:$8 sps:$4 sm:$0xff]   ;;  %v604_v4 = vld [vmem:[%s908_s1 + $0x104] ss:$8 sps:$4 sm:$0xff]   ;;  %v608_v6 = vld [vmem:[%s908_s1 + $0x100] ss:$8 sps:$4 sm:$0xff]  }
   0x3   :  { %421 = vmatpush1.bf16.msra.mxu1 %v600_v1  ;;  %v606_v5 = vld [vmem:[%s908_s1 + $0x24] ss:$8 sps:$4 sm:$0xff]   ;;  %461 = vmatprep.subr.bf16.mxu0 %v604_v4  ;;  %v610_v7 = vld [vmem:[%s908_s1 + $0x114] ss:$8 sps:$4 sm:$0xff]   ;;  %v609_v8 = vld [vmem:[%s908_s1 + $0x20] ss:$8 sps:$4 sm:$0xff]   ;;  %v99_v43 = vunpack.c.0.s8 %v98_v37 }
   0x4   :  { %422 = vmatprep.subr.bf16.mxu1 %v601_v2  ;;  %462 = vmatpush1.bf16.msra.mxu0 %v608_v6  ;;  %v612_v9 = vld [vmem:[%s908_s1 + $0x34] ss:$8 sps:$4 sm:$0xff]   ;;  %v614_v10 = vld [vmem:[%s908_s1 + $0x110] ss:$8 sps:$4 sm:$0xff]   ;;  %v616_v11 = vld [vmem:[%s908_s1 + $0x124] ss:$8 sps:$4 sm:$0xff]  }
   0x5   :  { %463 = vmatprep.subr.bf16.mxu0 %v610_v7  ;;  %v615_v12 = vld [vmem:[%s908_s1 + $0x30] ss:$8 sps:$4 sm:$0xff]   ;;  %v620_v13 = vld [vmem:[%s908_s1 + $0x120] ss:$8 sps:$4 sm:$0xff]   ;;  %v622_v14 = vld [vmem:[%s908_s1 + $0x134] ss:$8 sps:$4 sm:$0xff]  }
   0x6   :  { %v618_v15 = vld [vmem:[%s908_s1 + $0x44] ss:$8 sps:$4 sm:$0xff]   ;;  %v626_v16 = vld [vmem:[%s908_s1 + $0x130] ss:$8 sps:$4 sm:$0xff]   ;;  %v621_v17 = vld [vmem:[%s908_s1 + $0x40] ss:$8 sps:$4 sm:$0xff]  }
   0x7   :  { %423 = vmatpush1.bf16.msra.mxu1 %v603_v3  ;;  %v628_v18 = vld [vmem:[%s908_s1 + $0x144] ss:$8 sps:$4 sm:$0xff]   ;;  %v624_v19 = vld [vmem:[%s908_s1 + $0x54] ss:$8 sps:$4 sm:$0xff]   ;;  %v627_v20 = vld [vmem:[%s908_s1 + $0x50] ss:$8 sps:$4 sm:$0xff]  }
   0x8   :  { %424 = vmatprep.subr.bf16.mxu1 %v606_v5  ;;  %464 = vmatpush1.bf16.msra.mxu0 %v614_v10  ;;  %v632_v21 = vld [vmem:[%s908_s1 + $0x140] ss:$8 sps:$4 sm:$0xff]   ;;  %v634_v22 = vld [vmem:[%s908_s1 + $0x154] ss:$8 sps:$4 sm:$0xff]   ;;  %v630_v23 = vld [vmem:[%s908_s1 + $0x64] ss:$8 sps:$4 sm:$0xff]  }
   0x9   :  { %465 = vmatprep.subr.bf16.mxu0 %v616_v11  ;;  %v638_v24 = vld [vmem:[%s908_s1 + $0x150] ss:$8 sps:$4 sm:$0xff]   ;;  %v633_v25 = vld [vmem:[%s908_s1 + $0x60] ss:$8 sps:$4 sm:$0xff]   ;;  %v640_v26 = vld [vmem:[%s908_s1 + $0x164] ss:$8 sps:$4 sm:$0xff]  }
   0xa   :  { %v636_v27 = vld [vmem:[%s908_s1 + $0x74] ss:$8 sps:$4 sm:$0xff]   ;;  %v639_v28 = vld [vmem:[%s908_s1 + $0x70] ss:$8 sps:$4 sm:$0xff]   ;;  %v644_v29 = vld [vmem:[%s908_s1 + $0x160] ss:$8 sps:$4 sm:$0xff]  }
   0xb   :  { %425 = vmatpush1.bf16.msra.mxu1 %v609_v8  ;;  %v646_v30 = vld [vmem:[%s908_s1 + $0x174] ss:$8 sps:$4 sm:$0xff]   ;;  %v642_v31 = vld [vmem:[%s908_s1 + $0x84] ss:$8 sps:$4 sm:$0xff]   ;;  %v650_v32 = vld [vmem:[%s908_s1 + $0x170] ss:$8 sps:$4 sm:$0xff]  }
   0xc   :  { %426 = vmatprep.subr.bf16.mxu1 %v612_v9  ;;  %466 = vmatpush1.bf16.msra.mxu0 %v620_v13  ;;  %v645_v33 = vld [vmem:[%s908_s1 + $0x80] ss:$8 sps:$4 sm:$0xff]   ;;  %v652_v34 = vld [vmem:[%s908_s1 + $0x184] ss:$8 sps:$4 sm:$0xff]   ;;  %v648_v38 = vld [vmem:[%s908_s1 + $0x94] ss:$8 sps:$4 sm:$0xff]  }
   0xd   :  { %467 = vmatprep.subr.bf16.mxu0 %v622_v14  ;;  %v651_v39 = vld [vmem:[%s908_s1 + $0x90] ss:$8 sps:$4 sm:$0xff]   ;;  %v656_v40 = vld [vmem:[%s908_s1 + $0x180] ss:$8 sps:$4 sm:$0xff]   ;;  %v658_v41 = vld [vmem:[%s908_s1 + $0x194] ss:$8 sps:$4 sm:$0xff]  }
   0xe   :  { %v826_v42 = vshrl.u32 %v78_v35, 7  ;;  %v654_v44 = vld [vmem:[%s908_s1 + $0xa4] ss:$8 sps:$4 sm:$0xff]   ;;  %v662_v45 = vld [vmem:[%s908_s1 + $0x190] ss:$8 sps:$4 sm:$0xff]  }
   0xf   :  { %427 = vmatpush1.bf16.msra.mxu1 %v615_v12  ;;  %v657_v46 = vld [vmem:[%s908_s1 + $0xa0] ss:$8 sps:$4 sm:$0xff]   ;;  %v664_v47 = vld [vmem:[%s908_s1 + $0x1a4] ss:$8 sps:$4 sm:$0xff]   ;;  %v660_v49 = vld [vmem:[%s908_s1 + $0xb4] ss:$8 sps:$4 sm:$0xff]  }
  0x10   :  { %428 = vmatprep.subr.bf16.mxu1 %v618_v15  ;;  %468 = vmatpush1.bf16.msra.mxu0 %v626_v16  ;;  %v841_v48 = vsub.s32 %v99_v43, %v826_v42  ;;  %v529_v50 = vld.sshfl [vmem:[%s909_s0] sm:$0x33 pattern:$0x75316420]  ;;  %v663_v53 = vld [vmem:[%s908_s1 + $0xb0] ss:$8 sps:$4 sm:$0xff]  }
  0x11   :  { %469 = vmatprep.subr.bf16.mxu0 %v628_v18  ;;  %v96_v51 = vcombine.high %v529_v50, %v529_v50  ;;  %v668_v52 = vld [vmem:[%s908_s1 + $0x1a0] ss:$8 sps:$4 sm:$0xff]   ;;  %v670_v54 = vld [vmem:[%s908_s1 + $0x1b4] ss:$8 sps:$4 sm:$0xff]   ;;  %v666_v56 = vld [vmem:[%s908_s1 + $0xc4] ss:$8 sps:$4 sm:$0xff]  }
  0x12   :  { %v674_v58 = vld [vmem:[%s908_s1 + $0x1b0] ss:$8 sps:$4 sm:$0xff]   ;;  %v669_v59 = vld [vmem:[%s908_s1 + $0xc0] ss:$8 sps:$4 sm:$0xff]   ;;  %v676_v60 = vld [vmem:[%s908_s1 + $0x1c4] ss:$8 sps:$4 sm:$0xff]   ;;  %v103_v2 = vrot.slane %v529_v50, %v841_v48 }
  0x13   :  { %429 = vmatpush1.bf16.msra.mxu1 %v621_v17  ;;  %v110_v55 = vrot.slane %v96_v51, %v841_v48  ;;  %v672_v61 = vld [vmem:[%s908_s1 + $0xd4] ss:$8 sps:$4 sm:$0xff]   ;;  %v680_v62 = vld [vmem:[%s908_s1 + $0x1c0] ss:$8 sps:$4 sm:$0xff]   ;;  %v675_v63 = vld [vmem:[%s908_s1 + $0xd0] ss:$8 sps:$4 sm:$0xff]  }
  0x14   :  { %430 = vmatprep.subr.bf16.mxu1 %v624_v19  ;;  %470 = vmatpush1.bf16.msra.mxu0 %v632_v21  ;;  %v682_v0 = vld [vmem:[%s908_s1 + $0x1d4] ss:$8 sps:$4 sm:$0xff]   ;;  %v678_v1 = vld [vmem:[%s908_s1 + $0xe4] ss:$8 sps:$4 sm:$0xff]   ;;  %v686_v3 = vld [vmem:[%s908_s1 + $0x1d0] ss:$8 sps:$4 sm:$0xff]   ;;  %v111_v6 = vcombine.high %v103_v2, %v103_v2 }
  0x15   :  { %471 = vmatprep.subr.bf16.mxu0 %v634_v22  ;;  %v112_v57 = vcombine.high %v110_v55, %v110_v55  ;;  %452 = vmatprep.mubr.bf16.mxu1 %v110_v55  ;;  %v681_v4 = vld [vmem:[%s908_s1 + $0xe0] ss:$8 sps:$4 sm:$0xff]   ;;  %v684_v5 = vld [vmem:[%s908_s1 + $0xf4] ss:$8 sps:$4 sm:$0xff]   ;;  %v687_v7 = vld [vmem:[%s908_s1 + $0xf0] ss:$8 sps:$4 sm:$0xff]  }
  0x16   :  { %v80_v8 = vsub.s32 0, %v826_v42  ;;  %v76_v9 = vld [vmem:[%s910_s2] sm:$0x3]  ;;  %v84_v10 = vsub.s32 1, %v826_v42 }
  0x17   :  { %431 = vmatpush1.bf16.msra.mxu1 %v627_v20  ;;  %590 = vmatprep.mubr.msk.bf16.mxu0 %vm416_vm0, %v112_v57 }
  0x18   :  { %432 = vmatprep.subr.bf16.mxu1 %v630_v23  ;;  %472 = vmatpush1.bf16.msra.mxu0 %v638_v24  ;;  %v81_v13 = vrot.slane %v76_v9, %v80_v8  ;;  %v85_v15 = vrot.slane %v76_v9, %v84_v10 }
  0x19   :  { %473 = vmatprep.subr.bf16.mxu0 %v640_v26 }
  0x1b   :  { %433 = vmatpush1.bf16.msra.mxu1 %v633_v25 }
  0x1c   :  { %434 = vmatprep.subr.bf16.mxu1 %v636_v27  ;;  %474 = vmatpush1.bf16.msra.mxu0 %v644_v29 }
  0x1d   :  { %475 = vmatprep.subr.bf16.mxu0 %v646_v30 }
  0x1f   :  { %435 = vmatpush1.bf16.msra.mxu1 %v639_v28 }
  0x20   :  { %436 = vmatprep.subr.bf16.mxu1 %v642_v31  ;;  %476 = vmatpush1.bf16.msra.mxu0 %v650_v32 }
  0x21   :  { %477 = vmatprep.subr.bf16.mxu0 %v652_v34 }
  0x23   :  { %437 = vmatpush1.bf16.msra.mxu1 %v645_v33 }
  0x24   :  { %438 = vmatprep.subr.bf16.mxu1 %v648_v38  ;;  %478 = vmatpush1.bf16.msra.mxu0 %v656_v40 }
  0x25   :  { %479 = vmatprep.subr.bf16.mxu0 %v658_v41 }
  0x27   :  { %439 = vmatpush1.bf16.msra.mxu1 %v651_v39 }
  0x28   :  { %440 = vmatprep.subr.bf16.mxu1 %v654_v44  ;;  %480 = vmatpush1.bf16.msra.mxu0 %v662_v45 }
  0x29   :  { %481 = vmatprep.subr.bf16.mxu0 %v664_v47 }
  0x2b   :  { %441 = vmatpush1.bf16.msra.mxu1 %v657_v46 }
  0x2c   :  { %442 = vmatprep.subr.bf16.mxu1 %v660_v49  ;;  %482 = vmatpush1.bf16.msra.mxu0 %v668_v52 }
  0x2d   :  { %483 = vmatprep.subr.bf16.mxu0 %v670_v54 }
  0x2f   :  { %443 = vmatpush1.bf16.msra.mxu1 %v663_v53 }
  0x30   :  { %444 = vmatprep.subr.bf16.mxu1 %v666_v56  ;;  %484 = vmatpush1.bf16.msra.mxu0 %v674_v58 }
  0x31   :  { %485 = vmatprep.subr.bf16.mxu0 %v676_v60 }
  0x33   :  { %445 = vmatpush1.bf16.msra.mxu1 %v669_v59 }
  0x34   :  { %446 = vmatprep.subr.bf16.mxu1 %v672_v61  ;;  %486 = vmatpush1.bf16.msra.mxu0 %v680_v62 }
  0x35   :  { %487 = vmatprep.subr.bf16.mxu0 %v682_v0 }
  0x37   :  { %447 = vmatpush1.bf16.msra.mxu1 %v675_v63 }
  0x38   :  { %448 = vmatprep.subr.bf16.mxu1 %v678_v1  ;;  %488 = vmatpush1.bf16.msra.mxu0 %v686_v3 }
  0x3b   :  { %449 = vmatpush1.bf16.msra.mxu1 %v681_v4  ;;  %494 = vmatmul.mubr.bf16.vlgmr.msra.gmra.mrb[0].mxu0 %v111_v6 }
  0x3c   :  { %450 = vmatprep.subr.bf16.mxu1 %v684_v5 }
  0x3f   :  { %451 = vmatpush1.bf16.msra.mxu1 %v687_v7 }
  0x42   :  { %453 = vmatmul.mubr.bf16.vlgmr.msra.gmra.mrb[0].mxu1 %v103_v2 }
 0x10e   :  { %v495_v11 = vpop.f32.mrb[0].mxu0 }
 0x10f   :  { %v497_v12 = vpop.f32.mrb[1].mxu0 }
 0x110   :  { %v499_v14 = vpop.f32.mrb[2].mxu0 }
 0x111   :  { %v500_v16 = vpop.f32.mrb[3].mxu0 }
 0x115   :  { %v454_v17 = vpop.f32.mrb[0].mxu1 }
 0x116   :  { %v455_v18 = vadd.f32 %v454_v17, %v81_v13  ;;  %v456_v19 = vpop.f32.mrb[1].mxu1 }
 0x117   :  { %v457_v20 = vadd.f32 %v456_v19, %v85_v15  ;;  %v458_v21 = vpop.f32.mrb[2].mxu1 }
 0x118   :  { %v496_v22 = vadd.f32 %v495_v11, %v455_v18  ;;  %v459_v23 = vpop.f32.mrb[3].mxu1 }
 0x119   :  { %v498_v24 = vadd.f32 %v497_v12, %v457_v20 }
 0x11a   :  { %v502_v25 = vmax.f32 %v496_v22, 0.0 }
 0x11b   :  { %v503_v26 = vmax.f32 %v498_v24, 0.0 }
 0x11d   :  { %v591_v27 = vpack.c.bf16 %v503_v26, %v502_v25 }
 0x11f   :  { %v515_v28 = vrot.slane %v591_v27, %v841_v48 }
 0x121   :  { %592 = vst.sshfl [vmem:[%s911_s3] sm:$0x5 pattern:$0x73625140] %v515_v28 }

// kernel: _lambda_.31
= control target key start
LH: loop header
LB: loop body
LE: loop exit
PB: predicated region body
PF: predicated region fallthrough
CT: control target
= control target key end

     0   :  { %s1356_s24 = smov 0   ;;  %s1655_s0 = inlined_call_operand.vmem [shape: bf16[2,1,1,480], index: 0, kind: input, shape index: {}]   ;;  %s1656_s1 = inlined_call_operand.vmem [shape: bf16[480,128], index: 1, kind: input, shape index: {}]   ;;  %s1657_s2 = inlined_call_operand.vmem [shape: f32[1,128], index: 2, kind: input, shape index: {}, may-alias: {2,4}]   ;;  %s1658_s3 = inlined_call_operand.vmem [shape: f32[9,1,1,128], index: 3, kind: input, shape index: {}]   ;;  %s1659_s4 = inlined_call_operand.vmem [shape: f32[1,128], index: 4, kind: input, shape index: {}, may-alias: {2,4}]   ;;  %s1660_s5 = inlined_call_operand.vmem [shape: bf16[128,480], index: 5, kind: input, shape index: {}]   ;;  %s1661_s6 = inlined_call_operand.vmem [shape: f32[1,480], index: 6, kind: input, shape index: {}]   ;;  %s1662_s7 = inlined_call_operand.vmem [shape: bf16[2,1,1,480], index: 7, kind: output, shape index: {}]  }
   0x1 LB: > { %s1112_s25 = sadd.s32 4294967295, %s1311_s24   ;;  %p1116_p0 = scmp.ge.s32.totalorder %s1311_s24, 1  ;;  %s1311_s24 = sphi %s1356_s24, %s17_s24  }
   0x2   : > { %p236_p1 = scmp.lt.s32.totalorder %s1311_s24, 3 }
   0x4   : > { %p237_p2 = pnand %p1116_p0, %p236_p1 }
   0x5   : > { %v1227_v0 = vld [vmem:[%s1656_s1 + $0x80] sm:$0xff] (!%p237_p2)   ;;  %v1313_v1 = vmov (!%p237_p2), 0   ;;  %v1228_v2 = vld [vmem:[%s1656_s1 + $0x88] sm:$0xff] (!%p237_p2)   ;;  %v1229_v5 = vld [vmem:[%s1656_s1 + $0x90] sm:$0xff] (!%p237_p2)   ;;  %p266_p3 = scmp.lt.s32.totalorder (!%p237_p2), %s1112_s25, 1  ;;  %v341_v21 = vlaneseq (!%p237_p2)  ;;  %vm545_vm0 = vcmask (!%p237_p2), 785408  }
   0x6   : > { %240 = sbr.rel (%p237_p2) target bundleno = 531 (0x213), region = 48  ;;  %589 = vmatprep.subr.bf16.mxu1 (!%p237_p2), %v1313_v1  ;;  %v1231_v3 = vld [vmem:[%s1656_s1 + $0x40] sm:$0xff] (!%p237_p2)   ;;  %v1234_v6 = vld [vmem:[%s1656_s1 + $0x48] sm:$0xff] (!%p237_p2)   ;;  %v1230_v8 = vld [vmem:[%s1656_s1 + $0x98] sm:$0xff] (!%p237_p2)   ;;  %v1314_v27 = vmov (!%p237_p2), 1966171168  }
   0x7   : > { %590 = vmatpush1.bf16.msra.mxu1 (!%p237_p2), %v1227_v0  ;;  %v1232_v4 = vld [vmem:[%s1656_s1] sm:$0xff] (!%p237_p2)   ;;  %1194 = vmatprep.subr.bf16.mxu0 (!%p237_p2), %v1231_v3  ;;  %v1235_v7 = vld [vmem:[%s1656_s1 + $0x8] sm:$0xff] (!%p237_p2)   ;;  %v1237_v9 = vld [vmem:[%s1656_s1 + $0x50] sm:$0xff] (!%p237_p2)   ;;  %v339_v28 = vunpack.c.l.s4 (!%p237_p2), %v1314_v27  ;;  %v1459_v29 = vshrl.u32 (!%p237_p2), %v341_v21, 7  ;;  %v1315_v48 = vmov (!%p237_p2), 0.0   ;;  %vm1041_vm1 = vcmask (!%p237_p2), 1040384  }
   0x8   : > { %591 = vmatprep.subr.bf16.mxu1 (!%p237_p2), %v1313_v1  ;;  %1195 = vmatpush3.bf16.msra.mxu0 (!%p237_p2), %v1232_v4  ;;  %v1238_v10 = vld [vmem:[%s1656_s1 + $0x10] sm:$0xff] (!%p237_p2)   ;;  %v1240_v11 = vld [vmem:[%s1656_s1 + $0x58] sm:$0xff] (!%p237_p2)   ;;  %v1233_v12 = vld [vmem:[%s1656_s1 + $0xa0] sm:$0xff] (!%p237_p2)   ;;  %630 = vst [vmem:[#allocation2] sm:$0x7] (!%p237_p2), %v1315_v48  ;;  %vm1044_vm3 = vcmask (!%p237_p2), 1041409  }
   0x9   : > { %1196 = vmatprep.subr.bf16.mxu0 (!%p237_p2), %v1234_v6  ;;  %v1241_v13 = vld [vmem:[%s1656_s1 + $0x18] sm:$0xff] (!%p237_p2)   ;;  %v1243_v14 = vld [vmem:[%s1656_s1 + $0x60] sm:$0xff] (!%p237_p2)   ;;  %v1236_v15 = vld [vmem:[%s1656_s1 + $0xa8] sm:$0xff] (!%p237_p2)   ;;  %v340_v31 = vunpack.c.0.s8 (!%p237_p2), %v339_v28  ;;  %631 = vst [vmem:[#allocation2 + $0x4] sm:$0x7] (!%p237_p2), %v1315_v48  ;;  %vm1048_vm7 = vcmask (!%p237_p2), 1042434  }
   0xa   : > { %v1244_v16 = vld [vmem:[%s1656_s1 + $0x20] sm:$0xff] (!%p237_p2)   ;;  %v1246_v17 = vld [vmem:[%s1656_s1 + $0x68] sm:$0xff] (!%p237_p2)   ;;  %v1239_v18 = vld [vmem:[%s1656_s1 + $0xb0] sm:$0xff] (!%p237_p2)   ;;  %632 = vst [vmem:[#allocation2 + $0x8] sm:$0x7] (!%p237_p2), %v1315_v48  ;;  %vm1052_vm11 = vcmask (!%p237_p2), 781315  }
   0xb   : > { %592 = vmatpush1.bf16.msra.mxu1 (!%p237_p2), %v1228_v2  ;;  %v1247_v19 = vld [vmem:[%s1656_s1 + $0x28] sm:$0xff] (!%p237_p2)   ;;  %v1249_v20 = vld [vmem:[%s1656_s1 + $0x70] sm:$0xff] (!%p237_p2)   ;;  %v1242_v22 = vld [vmem:[%s1656_s1 + $0xb8] sm:$0xff] (!%p237_p2)   ;;  %v1468_v33 = vsub.s32 (!%p237_p2), %v340_v31, %v1459_v29  ;;  %vm1042_vm2 = vsmask.f32 (!%p237_p2), 256 }
   0xc   : > { %593 = vmatprep.subr.bf16.mxu1 (!%p237_p2), %v1313_v1  ;;  %1197 = vmatpush3.bf16.msra.mxu0 (!%p237_p2), %v1235_v7  ;;  %v1250_v23 = vld [vmem:[%s1656_s1 + $0x30] sm:$0xff] (!%p237_p2)   ;;  %v1245_v24 = vld [vmem:[%s1656_s1 + $0xc0] sm:$0xff] (!%p237_p2)   ;;  %v1252_v25 = vld [vmem:[%s1656_s1 + $0x78] sm:$0xff] (!%p237_p2)   ;;  %vm1045_vm4 = vsmask.f32 (!%p237_p2), 1280 }
   0xd   : > { %1198 = vmatprep.subr.bf16.mxu0 %v1237_v9  ;;  %s1668_s25 = smov (!%p266_p3, %s1112_s25), 1  ;;  %v1253_v26 = vld [vmem:[%s1656_s1 + $0x38] sm:$0xff]   ;;  %v1248_v32 = vld [vmem:[%s1656_s1 + $0xc8] sm:$0xff]   ;;  %v1251_v35 = vld [vmem:[%s1656_s1 + $0xd0] sm:$0xff]   ;;  %vm1049_vm8 = vsmask.f32 2304 }
   0xe   : > { %s1117_s22 = sshll.u32 %s1668_s25, 2  ;;  %v1254_v40 = vld [vmem:[%s1656_s1 + $0xd8] sm:$0xff]   ;;  %v1255_v41 = vld [vmem:[%s1656_s1 + $0xe0] sm:$0xff]   ;;  %v1256_v42 = vld [vmem:[%s1656_s1 + $0xe8] sm:$0xff]   ;;  %vm1053_vm12 = vsmask.f32 3328 }
   0xf   : > { %594 = vmatpush1.bf16.msra.mxu1 %v1229_v5  ;;  %s269_s8 = scalar_lea.vmem %s1655_s0, %s1117_s22  ;;  %v1257_v44 = vld [vmem:[%s1660_s5] ss:$16 sps:$4 sm:$0xff]   ;;  %v1259_v45 = vld [vmem:[%s1660_s5 + $0x4] ss:$16 sps:$4 sm:$0xff]   ;;  %v1260_v46 = vld [vmem:[%s1660_s5 + $0x8] ss:$16 sps:$4 sm:$0xff]   ;;  %s273_s15 = scalar_lea.vmem %s1662_s7, %s1117_s22 }
  0x10   : > { %595 = vmatprep.subr.bf16.mxu1 %v1313_v1  ;;  %1199 = vmatpush3.bf16.msra.mxu0 %v1238_v10  ;;  %v1461_v30 = vld [vmem:[%s269_s8] sm:$0xf]  ;;  %v1262_v47 = vld [vmem:[%s1660_s5 + $0xc] ss:$16 sps:$4 sm:$0xff]   ;;  %v1265_v49 = vld [vmem:[%s1660_s5 + $0x24] ss:$16 sps:$4 sm:$0xff]  }
  0x11   : > { %1200 = vmatprep.subr.bf16.mxu0 %v1240_v11  ;;  %v344_v34 = vrot.slane %v1461_v30, %v1468_v33  ;;  %v1268_v50 = vld [vmem:[%s1660_s5 + $0x2c] ss:$16 sps:$4 sm:$0xff]   ;;  %v1263_v51 = vld [vmem:[%s1660_s5 + $0x20] ss:$16 sps:$4 sm:$0xff]   ;;  %v1266_v52 = vld [vmem:[%s1660_s5 + $0x28] ss:$16 sps:$4 sm:$0xff]  }
  0x12   : > { %v1271_v53 = vld [vmem:[%s1660_s5 + $0x44] ss:$16 sps:$4 sm:$0xff]   ;;  %v1274_v54 = vld [vmem:[%s1660_s5 + $0x4c] ss:$16 sps:$4 sm:$0xff]   ;;  %v1269_v55 = vld [vmem:[%s1660_s5 + $0x40] ss:$16 sps:$4 sm:$0xff]  }
  0x13   : > { %596 = vmatpush1.bf16.msra.mxu1 %v1230_v8  ;;  %v345_v36 = vcombine.high %v344_v34, %v344_v34  ;;  %v352_v37 = vrot.slane %v344_v34, %v1468_v33  ;;  %v1272_v56 = vld [vmem:[%s1660_s5 + $0x48] ss:$16 sps:$4 sm:$0xff]   ;;  %v1277_v57 = vld [vmem:[%s1660_s5 + $0x64] ss:$16 sps:$4 sm:$0xff]   ;;  %v1275_v58 = vld [vmem:[%s1660_s5 + $0x60] ss:$16 sps:$4 sm:$0xff]  }
  0x14   : > { %597 = vmatprep.subr.bf16.mxu1 %v1313_v1  ;;  %1201 = vmatpush3.bf16.msra.mxu0 %v1241_v13  ;;  %v1278_v59 = vld [vmem:[%s1660_s5 + $0x68] ss:$16 sps:$4 sm:$0xff]   ;;  %v1280_v60 = vld [vmem:[%s1660_s5 + $0x6c] ss:$16 sps:$4 sm:$0xff]   ;;  %v1283_v61 = vld [vmem:[%s1660_s5 + $0x84] ss:$16 sps:$4 sm:$0xff]  }
  0x15   : > { %1202 = vmatprep.subr.bf16.mxu0 %v1243_v14  ;;  %v359_v38 = vrot.slane %v345_v36, %v1468_v33  ;;  %v360_v43 = vcombine.high %v352_v37, %v352_v37  ;;  %v1286_v62 = vld [vmem:[%s1660_s5 + $0x8c] ss:$16 sps:$4 sm:$0xff]   ;;  %v1281_v63 = vld [vmem:[%s1660_s5 + $0x80] ss:$16 sps:$4 sm:$0xff]   ;;  %v1284_v0 = vld [vmem:[%s1660_s5 + $0x88] ss:$16 sps:$4 sm:$0xff]  }
  0x16   : > { %v1292_v2 = vld [vmem:[%s1660_s5 + $0xac] ss:$16 sps:$4 sm:$0xff]   ;;  %v1287_v3 = vld [vmem:[%s1660_s5 + $0xa0] ss:$16 sps:$4 sm:$0xff]   ;;  %v1290_v4 = vld [vmem:[%s1660_s5 + $0xa8] ss:$16 sps:$4 sm:$0xff]  }
  0x17   : > { %598 = vmatpush1.bf16.msra.mxu1 %v1233_v12  ;;  %581 = vmatprep.mubr.bf16.mxu0 %v359_v38  ;;  %v361_v39 = vcombine.high %v359_v38, %v359_v38  ;;  %v1295_v5 = vld [vmem:[%s1660_s5 + $0xc4] ss:$16 sps:$4 sm:$0xff]   ;;  %v1298_v6 = vld [vmem:[%s1660_s5 + $0xcc] ss:$16 sps:$4 sm:$0xff]   ;;  %v1293_v7 = vld [vmem:[%s1660_s5 + $0xc0] ss:$16 sps:$4 sm:$0xff]  }
  0x18   : > { %599 = vmatprep.subr.bf16.mxu1 %v1313_v1  ;;  %1203 = vmatpush3.bf16.msra.mxu0 %v1244_v16  ;;  %v1296_v8 = vld [vmem:[%s1660_s5 + $0xc8] ss:$16 sps:$4 sm:$0xff]   ;;  %v1301_v9 = vld [vmem:[%s1660_s5 + $0xe4] ss:$16 sps:$4 sm:$0xff]   ;;  %v1304_v10 = vld [vmem:[%s1660_s5 + $0xec] ss:$16 sps:$4 sm:$0xff]  }
  0x19   : > { %1204 = vmatprep.subr.bf16.mxu0 %v1246_v17  ;;  %1149 = vmatprep.mubr.msk.bf16.mxu1 %vm545_vm0, %v361_v39  ;;  %v1299_v11 = vld [vmem:[%s1660_s5 + $0xe0] ss:$16 sps:$4 sm:$0xff]   ;;  %v1302_v12 = vld [vmem:[%s1660_s5 + $0xe8] ss:$16 sps:$4 sm:$0xff]   ;;  %v648_v39 = vld [vmem:[#allocation2 + $0x4] sm:$0x1] }
  0x1a   : > { %v638_v21 = vld [vmem:[#allocation2 + $0x1] sm:$0x1]  ;;  %v643_v27 = vld [vmem:[#allocation2 + $0x2] sm:$0x1]  ;;  %v664_v48 = vld [vmem:[#allocation2 + $0x8] sm:$0x1] }
  0x1b   : > { %600 = vmatpush1.bf16.msra.mxu1 %v1236_v15  ;;  %v1151_v28 = vld [vmem:[%s1658_s3 + $0x2] sm:$0x1]  ;;  %vm1632_vm5 = vmand %vm1041_vm1, %vm1042_vm2 }
  0x1c   : > { %601 = vmatprep.subr.bf16.mxu1 %v1313_v1  ;;  %1205 = vmatpush3.bf16.msra.mxu0 %v1247_v19  ;;  %v635_v19 = vld [vmem:[#allocation2] sm:$0x1]  ;;  %v646_v38 = vmul.f32 %v1151_v28, %v643_v27  ;;  %vm1636_vm6 = vmand %vm1044_vm3, %vm1045_vm4 }
  0x1d   : > { %1206 = vmatprep.subr.bf16.mxu0 %v1249_v20  ;;  %v636_v20 = vld [vmem:[%s1658_s3] sm:$0x1]  ;;  %vm1047_vm9 = vmor %vm1636_vm6, %vm1632_vm5 }
  0x1e   : > { %vm1050_vm10 = vmand %vm1048_vm7, %vm1049_vm8 }
  0x1f   : > { %602 = vmatpush1.bf16.msra.mxu1 %v1239_v18  ;;  %v336_v18 = vld [vmem:[%s1657_s2] sm:$0x1]  ;;  %vm1051_vm13 = vmor %vm1050_vm10, %vm1047_vm9 }
  0x20   : > { %603 = vmatprep.subr.bf16.mxu1 %v1313_v1  ;;  %1207 = vmatpush3.bf16.msra.mxu0 %v1250_v23  ;;  %vm1054_vm14 = vmand %vm1052_vm11, %vm1053_vm12 }
  0x21   : > { %1208 = vmatprep.subr.bf16.mxu0 %v1252_v25  ;;  %vm1055_vm15 = vmor %vm1054_vm14, %vm1051_vm13 }
  0x23   : > { %604 = vmatpush1.bf16.msra.mxu1 %v1242_v22  ;;  %v1150_v22 = vld [vmem:[%s1658_s3 + $0x1] sm:$0x1] }
  0x24   : > { %605 = vmatprep.subr.bf16.mxu1 %v1313_v1  ;;  %1209 = vmatpush3.bf16.msra.mxu0 %v1253_v26  ;;  %v641_v25 = vmul.f32 %v1150_v22, %v638_v21 }
  0x25   : > { %896 = vmatprep.subr.bf16.mxu0 %v1259_v45  ;;  %v1154_v45 = vld [vmem:[%s1658_s3 + $0x5] sm:$0x1] }
  0x27   : > { %606 = vmatpush1.bf16.msra.mxu1 %v1245_v24  ;;  %582 = vmatmul.mubr.bf16.vlgmr.msra.gmra.mrb[0].mxu0 %v352_v37  ;;  %v637_v24 = vmul.f32 %v636_v20, %v635_v19 }
  0x28   : > { %607 = vmatprep.subr.bf16.mxu1 %v1313_v1  ;;  %928 = vmatprep.mubr.bf16.mxu0 %v1313_v1 }
  0x29   : > { %897 = vmatpush1.bf16.msra.mxu0 %v1257_v44  ;;  %v642_v37 = vadd.f32 %v641_v25, %v637_v24  ;;  %v658_v44 = vld [vmem:[#allocation2 + $0x6] sm:$0x1] }
  0x2a   : > { %898 = vmatprep.subr.bf16.mxu0 %v1265_v49  ;;  %v1155_v49 = vld [vmem:[%s1658_s3 + $0x6] sm:$0x1] }
  0x2b   : > { %608 = vmatpush1.bf16.msra.mxu1 %v1248_v32 }
  0x2c   : > { %609 = vmatprep.subr.bf16.mxu1 %v1313_v1 }
  0x2d   : > { %899 = vmatpush1.bf16.msra.mxu0 %v1263_v51  ;;  %v661_v51 = vmul.f32 %v1154_v45, %v658_v44 }
  0x2e   : > { %900 = vmatprep.subr.bf16.mxu0 %v1271_v53  ;;  %v1156_v53 = vld [vmem:[%s1658_s3 + $0x7] sm:$0x1] }
  0x2f   : > { %610 = vmatpush1.bf16.msra.mxu1 %v1251_v35 }
  0x30   : > { %611 = vmatprep.subr.bf16.mxu1 %v1313_v1 }
  0x31   : > { %901 = vmatpush1.bf16.msra.mxu0 %v1269_v55  ;;  %v667_v55 = vmul.f32 %v1155_v49, %v664_v48 }
  0x32   : > { %902 = vmatprep.subr.bf16.mxu0 %v1277_v57  ;;  %v1157_v57 = vld [vmem:[%s1658_s3 + $0x8] sm:$0x1] }
  0x33   : > { %612 = vmatpush1.bf16.msra.mxu1 %v1254_v40  ;;  %v1152_v40 = vld [vmem:[%s1658_s3 + $0x3] sm:$0x1] }
  0x34   : > { %613 = vmatprep.subr.bf16.mxu1 %v1313_v1 }
  0x35   : > { %903 = vmatpush1.bf16.msra.mxu0 %v1275_v58 }
  0x36   : > { %904 = vmatprep.subr.bf16.mxu0 %v1283_v61 }
  0x37   : > { %614 = vmatpush1.bf16.msra.mxu1 %v1255_v41  ;;  %v647_v41 = vadd.f32 %v646_v38, %v642_v37 }
  0x38   : > { %615 = vmatprep.subr.bf16.mxu1 %v1313_v1 }
  0x39   : > { %905 = vmatpush1.bf16.msra.mxu0 %v1281_v63  ;;  %v679_v63 = vld [vmem:[%s1659_s4] sm:$0x1] }
  0x3b   : > { %616 = vmatpush1.bf16.msra.mxu1 %v1256_v42  ;;  %v651_v42 = vmul.f32 %v1152_v40, %v648_v39 }
  0x3c   : > { %937 = vmatprep.subr.bf16.mxu1 %v1262_v47 }
  0x3e   : > { %622 = vmatmul.mubr.bf16.vlgmr.msra.gmra.mrb[0].mxu1 %v360_v43  ;;  %v1153_v43 = vld [vmem:[%s1658_s3 + $0x4] sm:$0x1] }
  0x3f   : > { %969 = vmatprep.mubr.bf16.mxu1 %v1313_v1  ;;  %938 = vmatpush1.bf16.msra.mxu1 %v1260_v46  ;;  %v1289_v1 = vld [vmem:[%s1660_s5 + $0xa4] ss:$16 sps:$4 sm:$0xff]   ;;  %v652_v46 = vadd.f32 %v651_v42, %v647_v41 }
  0x40   : > { %939 = vmatprep.subr.bf16.mxu1 %v1268_v50  ;;  %906 = vmatprep.subr.bf16.mxu0 %v1289_v1 }
  0x41   : > { %907 = vmatpush1.bf16.msra.mxu0 %v1287_v3  ;;  %v878_v3 = vsub.s32 0, %v1459_v29 }
  0x42   : > { %908 = vmatprep.subr.bf16.mxu0 %v1295_v5  ;;  %v714_v5 = vld [vmem:[%s1661_s6] sm:$0xf] }
  0x43   : > { %940 = vmatpush1.bf16.msra.mxu1 %v1266_v52  ;;  %v669_v52 = vld [vmem:[#allocation2 + $0x9] sm:$0x1] }
  0x44   : > { %941 = vmatprep.subr.bf16.mxu1 %v1274_v54 }
  0x45   : > { %909 = vmatpush1.bf16.msra.mxu0 %v1293_v7  ;;  %v890_v7 = vsub.s32 3, %v1459_v29 }
  0x46   : > { %910 = vmatprep.subr.bf16.mxu0 %v1301_v9  ;;  %v990_v9 = vsub.s32 4, %v1459_v29 }
  0x47   : > { %942 = vmatpush1.bf16.msra.mxu1 %v1272_v56  ;;  %v674_v56 = vld [vmem:[#allocation2 + $0xa] sm:$0x1] }
  0x48   : > { %943 = vmatprep.subr.bf16.mxu1 %v1280_v60  ;;  %v677_v61 = vmul.f32 %v1157_v57, %v674_v56 }
  0x49   : > { %911 = vmatpush1.bf16.msra.mxu0 %v1299_v11  ;;  %v879_v11 = vrot.slane %v714_v5, %v878_v3 }
  0x4b   : > { %944 = vmatpush1.bf16.msra.mxu1 %v1278_v59  ;;  %v672_v59 = vmul.f32 %v1156_v53, %v669_v52 }
  0x4c   : > { %945 = vmatprep.subr.bf16.mxu1 %v1286_v62 }
  0x4f   : > { %946 = vmatpush1.bf16.msra.mxu1 %v1284_v0 }
  0x50   : > { %947 = vmatprep.subr.bf16.mxu1 %v1292_v2 }
  0x53   : > { %948 = vmatpush1.bf16.msra.mxu1 %v1290_v4  ;;  %v886_v4 = vsub.s32 2, %v1459_v29 }
  0x54   : > { %949 = vmatprep.subr.bf16.mxu1 %v1298_v6  ;;  %v882_v6 = vsub.s32 1, %v1459_v29 }
  0x57   : > { %950 = vmatpush1.bf16.msra.mxu1 %v1296_v8  ;;  %v978_v8 = vunpack.c.l.bf16 %v1461_v30 }
  0x58   : > { %951 = vmatprep.subr.bf16.mxu1 %v1304_v10  ;;  %v994_v10 = vsub.s32 6, %v1459_v29 }
  0x59   : > { %v987_v19 = vrot.slane %v978_v8, %v886_v4 }
  0x5a   : > { %v995_v20 = vrot.slane %v978_v8, %v994_v10 }
  0x5b   : > { %952 = vmatpush1.bf16.msra.mxu1 %v1302_v12  ;;  %v887_v12 = vrot.slane %v714_v5, %v886_v4 }
  0xfa   : > { %v1210_v13 = vpop.f32.mrb[0].mxu0 }
  0xfb   : > { %v1211_v14 = vpop.f32.mrb[1].mxu0 }
  0xfc   : > { %v1212_v15 = vadd.f32 %v1211_v14, %v1210_v13  ;;  %v1213_v16 = vpop.f32.mrb[2].mxu0  ;;  %v883_v13 = vrot.slane %v714_v5, %v882_v6  ;;  %v891_v14 = vrot.slane %v714_v5, %v890_v7 }
  0xfd   : > { %v1214_v17 = vpop.f32.mrb[3].mxu0  ;;  %v991_v16 = vrot.slane %v978_v8, %v990_v9 }
  0xfe   : > { %v584_v23 = vadd.f32 %v1212_v15, %v336_v18  ;;  %v983_v15 = vrot.slane %v978_v8, %v878_v3 }
 0x111   : > { %v623_v26 = vpop.f32.mrb[0].mxu1 }
 0x112   : > { %v624_v31 = vadd.f32 %v623_v26, %v584_v23  ;;  %v625_v32 = vpop.f32.mrb[1].mxu1 }
 0x113   : > { %v626_v34 = vpop.f32.mrb[2].mxu1 }
 0x114   : > { %v629_v35 = vmax.f32 %v624_v31, 0.0  ;;  %v627_v36 = vpop.f32.mrb[3].mxu1 }
 0x116   : > { %634 = vst [vmem:[#allocation2 + $0x5] sm:$0x1] %v629_v35 }
 0x11d   : > { %v653_v47 = vld [vmem:[#allocation2 + $0x5] sm:$0x1] }
 0x11e   : > { %v656_v50 = vmul.f32 %v1153_v43, %v653_v47  ;;  %v1056_v47 = vld [vmem:[%s273_s15] sm:$0xf] }
 0x120   : > { %v657_v54 = vadd.f32 %v656_v50, %v652_v46 }
 0x122   : > { %v662_v58 = vadd.f32 %v661_v51, %v657_v54 }
 0x124   : > { %v668_v60 = vadd.f32 %v667_v55, %v662_v58 }
 0x126   : > { %v673_v62 = vadd.f32 %v672_v59, %v668_v60 }
 0x128   : > { %v678_v0 = vadd.f32 %v677_v61, %v673_v62 }
 0x12a   : > { %v680_v1 = vadd.f32 %v679_v63, %v678_v0 }
 0x12c   : > { %v681_v2 = vpack.c.bf16 %v680_v1, %v680_v1 }
 0x12e   : > { %929 = vmatmul.mubr.bf16.vlgmr.msra.gmra.mrb[4].mxu0 %v681_v2  ;;  %970 = vmatmul.mubr.bf16.vlgmr.msra.gmra.mrb[4].mxu1 %v681_v2 }
 0x201   : > { %v930_v17 = vpop.f32.mrb[4].mxu0  ;;  %v971_v18 = vpop.f32.mrb[4].mxu1 }
 0x202   : > { %v931_v21 = vadd.f32 %v930_v17, %v879_v11  ;;  %v972_v30 = vadd.f32 %v971_v18, %v887_v12  ;;  %v932_v22 = vpop.f32.mrb[5].mxu0  ;;  %v973_v23 = vpop.f32.mrb[5].mxu1 }
 0x203   : > { %v933_v24 = vadd.f32 %v932_v22, %v883_v13  ;;  %v974_v25 = vadd.f32 %v973_v23, %v891_v14  ;;  %v934_v27 = vpop.f32.mrb[6].mxu0  ;;  %v975_v28 = vpop.f32.mrb[6].mxu1 }
 0x204   : > { %v1000_v31 = vadd.f32 %v983_v15, %v931_v21  ;;  %v1002_v32 = vadd.f32 %v991_v16, %v972_v30  ;;  %v935_v34 = vpop.f32.mrb[7].mxu0  ;;  %v976_v35 = vpop.f32.mrb[7].mxu1 }
 0x205   : > { %v1001_v36 = vadd.f32 %v987_v19, %v933_v24  ;;  %v1003_v37 = vadd.f32 %v995_v20, %v974_v25 }
 0x206   : > { %v1004_v38 = vmax.f32 %v1000_v31, 0.0  ;;  %v1006_v39 = vmax.f32 %v1002_v32, 0.0 }
 0x207   : > { %v1005_v40 = vmax.f32 %v1001_v36, 0.0  ;;  %v1007_v41 = vmax.f32 %v1003_v37, 0.0 }
 0x209   : > { %v1190_v42 = vpack.c.bf16 %v1005_v40, %v1004_v38  ;;  %v1191_v43 = vpack.c.bf16 %v1007_v41, %v1006_v39 }
 0x20b   : > { %v1024_v44 = vrot.slane %v1190_v42, %v1468_v33  ;;  %v1031_v45 = vrot.slane %v1191_v43, %v1468_v33 }
 0x20d   : > { %v1032_v46 = vcombine.low %v1024_v44, %v1031_v45 }
 0x20f   : > { %v1039_v48 = vrot.slane %v1032_v46, %v1468_v33 }
 0x211   : > { %v1057_v49 = vsel %vm1055_vm15, %v1039_v48, %v1056_v47 }
 0x212   : > { %1058 = vst [vmem:[%s273_s15] sm:$0xf] %v1057_v49 }
 0x213 PF: > { %s17_s24 = sadd.s32 1, %s1311_s24  }
 0x214   : > { %p14_p4 = scmp.ge.s32.totalorder %s17_s24, 4  }
 0x216   :  { %16 = sbr.rel (!%p14_p4) target bundleno = 1 (0x1), region = 88 }

// kernel: _lambda_.39
= control target key start
LH: loop header
LB: loop body
LE: loop exit
PB: predicated region body
PF: predicated region fallthrough
CT: control target
= control target key end

     0   :  { %s1419_s21 = smov 0   ;;  %s1747_s0 = inlined_call_operand.vmem [shape: bf16[8,2,2,256], index: 0, kind: input, shape index: {}]   ;;  %s1748_s1 = inlined_call_operand.vmem [shape: bf16[8,2,2,480], index: 1, kind: input, shape index: {}]   ;;  %s1749_s2 = inlined_call_operand.vmem [shape: f32[9,1,1,256], index: 2, kind: input, shape index: {}]   ;;  %s1750_s3 = inlined_call_operand.vmem [shape: f32[1,256], index: 3, kind: input, shape index: {}]   ;;  %s1751_s4 = inlined_call_operand.vmem [shape: bf16[256,480], index: 4, kind: input, shape index: {}]   ;;  %s1752_s5 = inlined_call_operand.vmem [shape: f32[1,480], index: 5, kind: input, shape index: {}]   ;;  %s1753_s6 = inlined_call_operand.vmem [shape: bf16[2,1,1,960], index: 6, kind: output, shape index: {}]  }
   0x1 LB: > { %s1425_s22 = sadd.s32 4294967295, %s1379_s21   ;;  %p1166_p0 = scmp.ge.s32.totalorder %s1379_s21, 1  ;;  %s1379_s21 = sphi %s1419_s21, %s16_s21  }
   0x2   : > { %p224_p1 = scmp.lt.s32.totalorder %s1379_s21, 3 }
   0x4   : > { %p225_p2 = pnand %p1166_p0, %p224_p1 }
   0x5   : > { %v1277_v0 = vld [vmem:[%s1751_s4 + $0x4] ss:$16 sps:$4 sm:$0xff] (!%p225_p2)   ;;  %v1279_v1 = vld [vmem:[%s1751_s4 + $0xc] ss:$16 sps:$4 sm:$0xff] (!%p225_p2)   ;;  %v1281_v2 = vld [vmem:[%s1751_s4] ss:$16 sps:$4 sm:$0xff] (!%p225_p2)   ;;  %v281_v36 = vlaneseq (!%p225_p2) }
   0x6   : > { %228 = sbr.rel (%p225_p2) target bundleno = 415 (0x19f), region = 44  ;;  %848 = vmatprep.subr.bf16.mxu0 (!%p225_p2), %v1277_v0  ;;  %v1282_v3 = vld [vmem:[%s1751_s4 + $0x8] ss:$16 sps:$4 sm:$0xff] (!%p225_p2)   ;;  %889 = vmatprep.subr.bf16.mxu1 (!%p225_p2), %v1279_v1  ;;  %v1283_v4 = vld [vmem:[%s1751_s4 + $0x24] ss:$16 sps:$4 sm:$0xff] (!%p225_p2)   ;;  %s1167_s15 = sshll.u32 (!%p225_p2), %s1425_s22, 2 }
   0x7   : > { %849 = vmatpush1.bf16.msra.mxu0 (!%p225_p2), %v1281_v2  ;;  %890 = vmatpush1.bf16.msra.mxu1 (!%p225_p2), %v1282_v3  ;;  %v1285_v5 = vld [vmem:[%s1751_s4 + $0x2c] ss:$16 sps:$4 sm:$0xff] (!%p225_p2)   ;;  %v1287_v6 = vld [vmem:[%s1751_s4 + $0x20] ss:$16 sps:$4 sm:$0xff] (!%p225_p2)   ;;  %v1288_v7 = vld [vmem:[%s1751_s4 + $0x28] ss:$16 sps:$4 sm:$0xff] (!%p225_p2)  }
   0x8   : > { %850 = vmatprep.subr.bf16.mxu0 (!%p225_p2), %v1283_v4  ;;  %891 = vmatprep.subr.bf16.mxu1 (!%p225_p2), %v1285_v5  ;;  %v1289_v8 = vld [vmem:[%s1751_s4 + $0x44] ss:$16 sps:$4 sm:$0xff] (!%p225_p2)   ;;  %v1291_v9 = vld [vmem:[%s1751_s4 + $0x4c] ss:$16 sps:$4 sm:$0xff] (!%p225_p2)   ;;  %v1293_v10 = vld [vmem:[%s1751_s4 + $0x40] ss:$16 sps:$4 sm:$0xff] (!%p225_p2)  }
   0x9   : > { %v1294_v11 = vld [vmem:[%s1751_s4 + $0x48] ss:$16 sps:$4 sm:$0xff] (!%p225_p2)   ;;  %v1295_v12 = vld [vmem:[%s1751_s4 + $0x64] ss:$16 sps:$4 sm:$0xff] (!%p225_p2)   ;;  %v1297_v13 = vld [vmem:[%s1751_s4 + $0x6c] ss:$16 sps:$4 sm:$0xff] (!%p225_p2)  }
   0xa   : > { %v1299_v14 = vld [vmem:[%s1751_s4 + $0x60] ss:$16 sps:$4 sm:$0xff] (!%p225_p2)   ;;  %v1300_v15 = vld [vmem:[%s1751_s4 + $0x68] ss:$16 sps:$4 sm:$0xff] (!%p225_p2)   ;;  %v1301_v16 = vld [vmem:[%s1751_s4 + $0x84] ss:$16 sps:$4 sm:$0xff] (!%p225_p2)  }
   0xb   : > { %851 = vmatpush1.bf16.msra.mxu0 (!%p225_p2), %v1287_v6  ;;  %892 = vmatpush1.bf16.msra.mxu1 (!%p225_p2), %v1288_v7  ;;  %v1303_v17 = vld [vmem:[%s1751_s4 + $0x8c] ss:$16 sps:$4 sm:$0xff] (!%p225_p2)   ;;  %v1305_v18 = vld [vmem:[%s1751_s4 + $0x80] ss:$16 sps:$4 sm:$0xff] (!%p225_p2)   ;;  %v1306_v19 = vld [vmem:[%s1751_s4 + $0x88] ss:$16 sps:$4 sm:$0xff] (!%p225_p2)  }
   0xc   : > { %852 = vmatprep.subr.bf16.mxu0 (!%p225_p2), %v1289_v8  ;;  %893 = vmatprep.subr.bf16.mxu1 (!%p225_p2), %v1291_v9  ;;  %v1307_v20 = vld [vmem:[%s1751_s4 + $0xa4] ss:$16 sps:$4 sm:$0xff] (!%p225_p2)   ;;  %v1309_v21 = vld [vmem:[%s1751_s4 + $0xac] ss:$16 sps:$4 sm:$0xff] (!%p225_p2)   ;;  %v1311_v22 = vld [vmem:[%s1751_s4 + $0xa0] ss:$16 sps:$4 sm:$0xff] (!%p225_p2)  }
   0xd   : > { %v1312_v23 = vld [vmem:[%s1751_s4 + $0xa8] ss:$16 sps:$4 sm:$0xff]   ;;  %v1313_v24 = vld [vmem:[%s1751_s4 + $0xc4] ss:$16 sps:$4 sm:$0xff]   ;;  %v1315_v25 = vld [vmem:[%s1751_s4 + $0xcc] ss:$16 sps:$4 sm:$0xff]  }
   0xe   : > { %v1317_v26 = vld [vmem:[%s1751_s4 + $0xc0] ss:$16 sps:$4 sm:$0xff]   ;;  %v1318_v27 = vld [vmem:[%s1751_s4 + $0xc8] ss:$16 sps:$4 sm:$0xff]   ;;  %v1319_v28 = vld [vmem:[%s1751_s4 + $0xe4] ss:$16 sps:$4 sm:$0xff]  }
   0xf   : > { %853 = vmatpush1.bf16.msra.mxu0 %v1293_v10  ;;  %894 = vmatpush1.bf16.msra.mxu1 %v1294_v11  ;;  %v1321_v29 = vld [vmem:[%s1751_s4 + $0xec] ss:$16 sps:$4 sm:$0xff]   ;;  %v1323_v30 = vld [vmem:[%s1751_s4 + $0xe0] ss:$16 sps:$4 sm:$0xff]   ;;  %v1324_v31 = vld [vmem:[%s1751_s4 + $0xe8] ss:$16 sps:$4 sm:$0xff]  }
  0x10   : > { %854 = vmatprep.subr.bf16.mxu0 %v1295_v12  ;;  %895 = vmatprep.subr.bf16.mxu1 %v1297_v13  ;;  %v1325_v32 = vld [vmem:[%s1751_s4 + $0x104] ss:$16 sps:$4 sm:$0xff]   ;;  %p259_p3 = scmp.lt.s32.totalorder %s1167_s15, 7  ;;  %v1327_v33 = vld [vmem:[%s1751_s4 + $0x10c] ss:$16 sps:$4 sm:$0xff]   ;;  %v1549_v42 = vshrl.u32 %v281_v36, 7 }
  0x11   : > { %v1329_v34 = vld [vmem:[%s1751_s4 + $0x100] ss:$16 sps:$4 sm:$0xff]   ;;  %v1330_v35 = vld [vmem:[%s1751_s4 + $0x108] ss:$16 sps:$4 sm:$0xff]   ;;  %v1331_v37 = vld [vmem:[%s1751_s4 + $0x124] ss:$16 sps:$4 sm:$0xff]  }
  0x12   : > { %s1759_s15 = smov (!%p259_p3, %s1167_s15), 7  ;;  %v1381_v38 = vmov 857870592   ;;  %v1333_v40 = vld [vmem:[%s1751_s4 + $0x12c] ss:$16 sps:$4 sm:$0xff]   ;;  %p270_p4 = scmp.lt.s32.totalorder %s1425_s22, 1 }
  0x13   : > { %855 = vmatpush1.bf16.msra.mxu0 %v1299_v14  ;;  %896 = vmatpush1.bf16.msra.mxu1 %v1300_v15  ;;  %v279_v39 = vunpack.c.l.s4 %v1381_v38  ;;  %v1335_v41 = vld [vmem:[%s1751_s4 + $0x120] ss:$16 sps:$4 sm:$0xff]   ;;  %v1336_v43 = vld [vmem:[%s1751_s4 + $0x128] ss:$16 sps:$4 sm:$0xff]   ;;  %v1337_v44 = vld [vmem:[%s1751_s4 + $0x144] ss:$16 sps:$4 sm:$0xff]  }
  0x14   : > { %856 = vmatprep.subr.bf16.mxu0 %v1301_v16  ;;  %897 = vmatprep.subr.bf16.mxu1 %v1303_v17  ;;  %s1168_s17 = sshll.u32 %s1759_s15, 2  ;;  %v1339_v46 = vld [vmem:[%s1751_s4 + $0x14c] ss:$16 sps:$4 sm:$0xff]   ;;  %v1341_v47 = vld [vmem:[%s1751_s4 + $0x140] ss:$16 sps:$4 sm:$0xff]   ;;  %s1170_s9 = sshll.u32 %s1759_s15, 3 }
  0x15   : > { %v280_v45 = vunpack.c.0.s8 %v279_v39  ;;  %v1342_v48 = vld [vmem:[%s1751_s4 + $0x148] ss:$16 sps:$4 sm:$0xff]   ;;  %s1570_s28 = scalar_lea.vmem %s1747_s0, %s1168_s17  ;;  %v1343_v49 = vld [vmem:[%s1751_s4 + $0x164] ss:$16 sps:$4 sm:$0xff]   ;;  %v1345_v51 = vld [vmem:[%s1751_s4 + $0x16c] ss:$16 sps:$4 sm:$0xff]   ;;  %s268_s7 = scalar_lea.vmem %s1748_s1, %s1170_s9 }
  0x16   : > { %v1347_v52 = vld [vmem:[%s1751_s4 + $0x160] ss:$16 sps:$4 sm:$0xff]   ;;  %v1348_v53 = vld [vmem:[%s1751_s4 + $0x168] ss:$16 sps:$4 sm:$0xff]   ;;  %v1349_v55 = vld [vmem:[%s1751_s4 + $0x184] ss:$16 sps:$4 sm:$0xff]  }
  0x17   : > { %857 = vmatpush1.bf16.msra.mxu0 %v1305_v18  ;;  %898 = vmatpush1.bf16.msra.mxu1 %v1306_v19  ;;  %v1576_v50 = vsub.s32 %v280_v45, %v1549_v42  ;;  %v274_v54 = vld [vmem:[%s1570_s28] sm:$0x3]  ;;  %v1351_v56 = vld [vmem:[%s1751_s4 + $0x18c] ss:$16 sps:$4 sm:$0xff]   ;;  %v1172_v59 = vld [vmem:[%s1570_s28 + $0x4] sm:$0x3] }
  0x18   : > { %858 = vmatprep.subr.bf16.mxu0 %v1307_v20  ;;  %899 = vmatprep.subr.bf16.mxu1 %v1309_v21  ;;  %v275_v57 = vunpack.c.l.bf16 %v274_v54  ;;  %v276_v58 = vld [vmem:[%s1749_s2] sm:$0x3]  ;;  %v1173_v60 = vld [vmem:[%s1749_s2 + $0x2] sm:$0x3]  ;;  %v289_v62 = vunpack.c.l.bf16 %v1172_v59  ;;  %v1174_v0 = vld [vmem:[%s1749_s2 + $0x4] sm:$0x3] }
  0x19   : > { %v284_v61 = vrot.slane %v276_v58, %v1576_v50  ;;  %v299_v63 = vrot.slane %v1173_v60, %v1576_v50  ;;  %v1176_v1 = vld [vmem:[%s1570_s28 + $0x8] sm:$0x3]  ;;  %v1177_v2 = vld [vmem:[%s1749_s2 + $0x6] sm:$0x3]  ;;  %v312_v3 = vrot.slane %v1174_v0, %v1576_v50  ;;  %v1178_v6 = vld [vmem:[%s1570_s28 + $0xc] sm:$0x3] }
  0x1a   : > { %v322_v4 = vunpack.c.l.bf16 %v1176_v1  ;;  %v332_v5 = vrot.slane %v1177_v2, %v1576_v50  ;;  %v1179_v7 = vld [vmem:[%s1749_s2 + $0x8] sm:$0x3]  ;;  %v1180_v8 = vld [vmem:[%s1749_s2 + $0xa] sm:$0x3]  ;;  %v1353_v9 = vld [vmem:[%s1751_s4 + $0x180] ss:$16 sps:$4 sm:$0xff]   ;;  %v338_v15 = vunpack.c.l.bf16 %v1178_v6 }
  0x1b   : > { %859 = vmatpush1.bf16.msra.mxu0 %v1311_v22  ;;  %900 = vmatpush1.bf16.msra.mxu1 %v1312_v23  ;;  %v1354_v10 = vld [vmem:[%s1751_s4 + $0x188] ss:$16 sps:$4 sm:$0xff]   ;;  %v286_v11 = vmul.f32 %v284_v61, %v275_v57  ;;  %v301_v12 = vmul.f32 %v299_v63, %v289_v62  ;;  %v1355_v13 = vld [vmem:[%s1751_s4 + $0x1a4] ss:$16 sps:$4 sm:$0xff]   ;;  %v314_v14 = vmul.f32 %v312_v3, %v275_v57  ;;  %v1182_v18 = vld [vmem:[%s1570_s28 + $0x2] sm:$0x3] }
  0x1c   : > { %860 = vmatprep.subr.bf16.mxu0 %v1313_v24  ;;  %901 = vmatprep.subr.bf16.mxu1 %v1315_v25  ;;  %v348_v16 = vrot.slane %v1179_v7, %v1576_v50  ;;  %v361_v17 = vrot.slane %v1180_v8, %v1576_v50  ;;  %v1183_v19 = vld [vmem:[%s1749_s2 + $0xc] sm:$0x3]  ;;  %v1186_v21 = vld [vmem:[%s1749_s2 + $0x10] sm:$0x3]  ;;  %v1641_v22 = vld [vmem:[%s268_s7] sm:$0xff]   ;;  %vm1027_vm0 = vcmask 1040384  }
  0x1d   : > { %v302_v20 = vadd.f32 %v301_v12, %v286_v11  ;;  %v1643_v23 = vld [vmem:[%s268_s7 + $0x8] sm:$0xff]   ;;  %v1175_v25 = vrot.slane %v314_v14, 9  ;;  %v381_v36 = vrot.slane %v1183_v19, %v1576_v50  ;;  %v1359_v38 = vld [vmem:[%s1751_s4 + $0x1a0] ss:$16 sps:$4 sm:$0xff]   ;;  %v1367_v60 = vld [vmem:[%s1751_s4 + $0x1e4] ss:$16 sps:$4 sm:$0xff]   ;;  %v960_v2 = vunpack.c.h.bf16 %v1641_v22 }
  0x1e   : > { %v1357_v24 = vld [vmem:[%s1751_s4 + $0x1ac] ss:$16 sps:$4 sm:$0xff]   ;;  %v1360_v39 = vld [vmem:[%s1751_s4 + $0x1a8] ss:$16 sps:$4 sm:$0xff]   ;;  %v418_v0 = vld [vmem:[%s1750_s3] sm:$0x3]  ;;  %v964_v8 = vunpack.c.h.bf16 %v1643_v23 }
  0x1f   : > { %861 = vmatpush1.bf16.msra.mxu0 %v1317_v26  ;;  %902 = vmatpush1.bf16.msra.mxu1 %v1318_v27  ;;  %v334_v26 = vmul.f32 %v332_v5, %v322_v4  ;;  %v363_v27 = vmul.f32 %v361_v17, %v322_v4  ;;  %v1363_v45 = vld [vmem:[%s1751_s4 + $0x1cc] ss:$16 sps:$4 sm:$0xff]   ;;  %v1366_v57 = vld [vmem:[%s1751_s4 + $0x1c8] ss:$16 sps:$4 sm:$0xff]   ;;  %v1371_v5 = vld [vmem:[%s1751_s4 + $0x1e0] ss:$16 sps:$4 sm:$0xff]  }
  0x20   : > { %862 = vmatprep.subr.bf16.mxu0 %v1319_v28  ;;  %903 = vmatprep.subr.bf16.mxu1 %v1321_v29  ;;  %v1254_v28 = vld [vmem:[%s268_s7 + $0x10] ss:$8 sps:$4 sm:$0xff]   ;;  %v371_v29 = vunpack.c.l.bf16 %v1182_v18  ;;  %v1369_v61 = vld [vmem:[%s1751_s4 + $0x1ec] ss:$16 sps:$4 sm:$0xff]   ;;  %v1259_v12 = vrot.slane %v960_v2, 9  ;;  %v1694_v14 = vsub.s32 2, %v1549_v42 }
  0x21   : > { %v1372_v6 = vld [vmem:[%s1751_s4 + $0x1e8] ss:$16 sps:$4 sm:$0xff]   ;;  %v1382_v19 = vmov 1966171168   ;;  %vm1028_vm1 = vsmask.f32 256 }
  0x22   : > { %v383_v54 = vmul.f32 %v381_v36, %v371_v29  ;;  %vm1030_vm2 = vcmask 1041409   ;;  %vm1029_vm3 = vmand %vm1027_vm0, %vm1028_vm1  ;;  %vm1031_vm4 = vsmask.f32 1280  ;;  %vm1034_vm5 = vcmask 1042434   ;;  %s1761_s22 = smov (!%p270_p4, %s1425_s22), 1  ;;  %s1383_s10 = smov 96  }
  0x23   : > { %863 = vmatpush1.bf16.msra.mxu0 %v1323_v30  ;;  %904 = vmatpush1.bf16.msra.mxu1 %v1324_v31  ;;  %v1184_v30 = vld [vmem:[%s1570_s28 + $0x6] sm:$0x3]  ;;  %v1185_v31 = vld [vmem:[%s1749_s2 + $0xe] sm:$0x3]  ;;  %vm1035_vm6 = vsmask.f32 2304  ;;  %vm1709_vm7 = vmand %vm1030_vm2, %vm1031_vm4 }
  0x24   : > { %864 = vmatprep.subr.bf16.mxu0 %v1325_v32  ;;  %905 = vmatprep.subr.bf16.mxu1 %v1327_v33  ;;  %v935_v32 = vunpack.c.l.bf16 %v1641_v22  ;;  %v938_v33 = vunpack.c.l.bf16 %v1643_v23  ;;  %v984_v23 = vsub.s32 4, %v1549_v42  ;;  %vm1033_vm8 = vmor %vm1709_vm7, %vm1029_vm3  ;;  %vm1038_vm9 = vcmask 781315   ;;  %s1171_s29 = sshll.u32 %s1761_s22, 3 }
  0x25   : > { %vm1039_vm10 = vsmask.f32 3328  ;;  %vm1715_vm11 = vmand %vm1034_vm5, %vm1035_vm6  ;;  %s1722_s7 = scalar_lea.vmem %s1753_s6, %s1171_s29  ;;  %vm1083_vm15 = vcmask 1041152   ;;  %vm1087_vm3 = vcmask 1043459   ;;  %vm1090_vm6 = vcmask 520196  }
  0x26   : > { %vm1037_vm12 = vmor %vm1715_vm11, %vm1033_vm8  ;;  %vm1091_vm8 = vsmask.f32 4352 }
  0x27   : > { %865 = vmatpush1.bf16.msra.mxu0 %v1329_v34  ;;  %906 = vmatpush1.bf16.msra.mxu1 %v1330_v35  ;;  %v319_v34 = vadd.f32 %v1175_v25, %v302_v20  ;;  %v350_v35 = vmul.f32 %v348_v16, %v338_v15  ;;  %v1697_v15 = vsub.s32 0, %v1549_v42  ;;  %v1005_v20 = vunpack.c.l.s4 %v1382_v19  ;;  %vm1040_vm13 = vmand %vm1038_vm9, %vm1039_vm10 }
  0x28   : > { %866 = vmatprep.subr.bf16.mxu0 %v1331_v37  ;;  %907 = vmatprep.subr.bf16.mxu1 %v1333_v40  ;;  %v410_v37 = vrot.slane %v1186_v21, %v1576_v50  ;;  %v939_v40 = vadd.f32 %v938_v33, %v935_v32  ;;  %vm1041_vm14 = vmor %vm1040_vm13, %vm1037_vm12  ;;  %vm1080_vm13 = vcmask 785408  }
  0x29   : > { %vm1084_vm0 = vmand %vm1083_vm15, %vm1028_vm1 }
  0x2a   : > { %vm1085_vm2 = vmor %vm1709_vm7, %vm1084_vm0 }
  0x2b   : > { %867 = vmatpush1.bf16.msra.mxu0 %v1335_v41  ;;  %908 = vmatpush1.bf16.msra.mxu1 %v1336_v43  ;;  %v1253_v41 = vrot.slane %v935_v32, 9  ;;  %v947_v43 = vunpack.c.l.bf16 %v1254_v28  ;;  %vm1086_vm4 = vmor %vm1715_vm11, %vm1085_vm2 }
  0x2c   : > { %868 = vmatprep.subr.bf16.mxu0 %v1337_v44  ;;  %909 = vmatprep.subr.bf16.mxu1 %v1339_v46  ;;  %v1361_v44 = vld [vmem:[%s1751_s4 + $0x1c4] ss:$16 sps:$4 sm:$0xff]   ;;  %v335_v46 = vadd.f32 %v334_v26, %v319_v34  ;;  %vm1088_vm5 = vmand %vm1087_vm3, %vm1039_vm10 }
  0x2d   : > { %v1256_v59 = vrot.slane %v947_v43, 9  ;;  %vm1089_vm9 = vmor %vm1088_vm5, %vm1086_vm4 }
  0x2e   : > { %vm1092_vm12 = vmand %vm1090_vm6, %vm1091_vm8 }
  0x2f   : > { %869 = vmatpush1.bf16.msra.mxu0 %v1341_v47  ;;  %910 = vmatpush1.bf16.msra.mxu1 %v1342_v48  ;;  %v1181_v47 = vrot.slane %v363_v27, 9  ;;  %v387_v48 = vunpack.c.l.bf16 %v1184_v30 }
  0x30   : > { %870 = vmatprep.subr.bf16.mxu0 %v1343_v49  ;;  %911 = vmatprep.subr.bf16.mxu1 %v1345_v51  ;;  %v397_v49 = vrot.slane %v1185_v31, %v1576_v50  ;;  %v944_v51 = vadd.f32 %v1253_v41, %v939_v40 }
  0x32   : > { %v948_v58 = vadd.f32 %v947_v43, %v944_v51  ;;  %v399_v63 = vmul.f32 %v397_v49, %v387_v48  ;;  %v1042_v43 = vld [vmem:[%s1722_s7] sm:$0xf] }
  0x33   : > { %871 = vmatpush1.bf16.msra.mxu0 %v1347_v52  ;;  %912 = vmatpush1.bf16.msra.mxu1 %v1348_v53  ;;  %v951_v52 = vunpack.c.h.bf16 %v1254_v28  ;;  %v351_v53 = vadd.f32 %v350_v35, %v335_v46  ;;  %v1006_v28 = vunpack.c.0.s8 %v1005_v20  ;;  %v834_v46 = vsub.s32 1, %v1549_v42 }
  0x34   : > { %872 = vmatprep.subr.bf16.mxu0 %v1349_v55  ;;  %913 = vmatprep.subr.bf16.mxu1 %v1351_v56  ;;  %v412_v55 = vmul.f32 %v410_v37, %v371_v29  ;;  %v1365_v56 = vld [vmem:[%s1751_s4 + $0x1c0] ss:$16 sps:$4 sm:$0xff]  }
  0x35   : > { %v368_v62 = vadd.f32 %v1181_v47, %v351_v53  ;;  %v952_v1 = vadd.f32 %v951_v52, %v948_v58  ;;  %v1009_v35 = vsub.s32 %v1006_v28, %v1549_v42  ;;  %v842_v47 = vsub.s32 3, %v1549_v42 }
  0x36   : > { %v1187_v4 = vrot.slane %v412_v55, 9 }
  0x37   : > { %873 = vmatpush1.bf16.msra.mxu0 %v1353_v9  ;;  %914 = vmatpush1.bf16.msra.mxu1 %v1354_v10  ;;  %v384_v3 = vadd.f32 %v383_v54, %v368_v62  ;;  %v957_v7 = vadd.f32 %v1256_v59, %v952_v1  ;;  %v426_v10 = vrot.slane %v418_v0, %v1576_v50 }
  0x38   : > { %874 = vmatprep.subr.bf16.mxu0 %v1355_v13  ;;  %915 = vmatprep.subr.bf16.mxu1 %v1357_v24  ;;  %v988_v24 = vsub.s32 6, %v1549_v42 }
  0x39   : > { %v400_v9 = vadd.f32 %v399_v63, %v384_v3  ;;  %v961_v11 = vadd.f32 %v960_v2, %v957_v7 }
  0x3b   : > { %875 = vmatpush1.bf16.msra.mxu0 %v1359_v38  ;;  %916 = vmatpush1.bf16.msra.mxu1 %v1360_v39  ;;  %v417_v13 = vadd.f32 %v1187_v4, %v400_v9  ;;  %v965_v16 = vadd.f32 %v964_v8, %v961_v11 }
  0x3c   : > { %876 = vmatprep.subr.bf16.mxu0 %v1361_v44  ;;  %917 = vmatprep.subr.bf16.mxu1 %v1363_v45  ;;  %v506_v45 = vld [vmem:[%s1752_s5] sm:$0xf] }
  0x3d   : > { %v428_v17 = vadd.f32 %v426_v10, %v417_v13  ;;  %v970_v18 = vadd.f32 %v1259_v12, %v965_v16  ;;  %v831_v48 = vrot.slane %v506_v45, %v1697_v15  ;;  %v839_v49 = vrot.slane %v506_v45, %v1694_v14 }
  0x3e   : > { %v835_v51 = vrot.slane %v506_v45, %v834_v46  ;;  %v843_v52 = vrot.slane %v506_v45, %v842_v47 }
  0x3f   : > { %877 = vmatpush1.bf16.msra.mxu0 %v1365_v56  ;;  %918 = vmatpush1.bf16.msra.mxu1 %v1366_v57  ;;  %v437_v21 = vrot.slane %v428_v17, %v1694_v14  ;;  %v433_v50 = vrot.slane %v428_v17, %v1697_v15  ;;  %v971_v22 = vmul.f32 0.11111111, %v970_v18 }
  0x40   : > { %878 = vmatprep.subr.bf16.mxu0 %v1367_v60  ;;  %919 = vmatprep.subr.bf16.mxu1 %v1369_v61 }
  0x41   : > { %v441_v25 = vpack.c.bf16 %v437_v21, %v437_v21  ;;  %v440_v26 = vpack.c.bf16 %v433_v50, %v433_v50  ;;  %v972_v27 = vmax.f32 %v971_v22, 0.0 }
  0x43   : > { %879 = vmatpush1.bf16.msra.mxu0 %v1371_v5  ;;  %920 = vmatpush1.bf16.msra.mxu1 %v1372_v6  ;;  %v981_v29 = vrot.slane %v972_v27, %v1694_v14  ;;  %v977_v30 = vrot.slane %v972_v27, %v1697_v15  ;;  %v985_v31 = vrot.slane %v972_v27, %v984_v23 }
  0x44   : > { %880 = vmatprep.mubr.bf16.mxu0 %v441_v25  ;;  %921 = vmatprep.mubr.bf16.mxu1 %v441_v25  ;;  %v989_v32 = vrot.slane %v972_v27, %v988_v24 }
  0x45   : > { %v1260_v33 = vpack.c.bf16 %v981_v29, %v977_v30 }
  0x46   : > { %881 = vmatmul.mubr.bf16.vlgmr.msra.gmra.mrb[0].mxu0 %v440_v26  ;;  %922 = vmatmul.mubr.bf16.vlgmr.msra.gmra.mrb[0].mxu1 %v440_v26  ;;  %v1261_v34 = vpack.c.bf16 %v989_v32, %v985_v31 }
  0x47   : > { %v1010_v36 = vrot.slane %v1260_v33, %v1009_v35 }
  0x48   : > { %v1017_v37 = vrot.slane %v1261_v34, %v1009_v35 }
  0x4a   : > { %v1018_v38 = vcombine.low %v1010_v36, %v1017_v37 }
  0x4c   : > { %v1025_v40 = vrot.slane %v1018_v38, %v1009_v35 }
  0x4e   : > { %v1043_v44 = vsel %vm1041_vm14, %v1025_v40, %v1042_v43  ;;  %vm1093_vm14 = vmor %vm1092_vm12, %vm1089_vm9 }
  0x4f   : > { %1044 = vst [vmem:[%s1722_s7] sm:$0xf] %v1043_v44 }
  0x56   : > { %v1094_v12 = vld [vmem:[%s1722_s7 + $0x3] sm:$0x1f] }
 0x119   : > { %v882_v53 = vpop.f32.mrb[0].mxu0  ;;  %v923_v55 = vpop.f32.mrb[0].mxu1 }
 0x11a   : > { %v883_v54 = vadd.f32 %v882_v53, %v831_v48  ;;  %v884_v56 = vpop.f32.mrb[1].mxu0  ;;  %v924_v57 = vadd.f32 %v923_v55, %v839_v49  ;;  %v925_v59 = vpop.f32.mrb[1].mxu1 }
 0x11b   : > { %v885_v58 = vadd.f32 %v884_v56, %v835_v51  ;;  %v886_v60 = vpop.f32.mrb[2].mxu0  ;;  %v926_v62 = vadd.f32 %v925_v59, %v843_v52  ;;  %v927_v63 = vpop.f32.mrb[2].mxu1 }
 0x11c   : > { %v930_v61 = vmax.f32 %v883_v54, 0.0  ;;  %v887_v0 = vpop.f32.mrb[3].mxu0  ;;  %v932_v1 = vmax.f32 %v924_v57, 0.0  ;;  %v928_v2 = vpop.f32.mrb[3].mxu1 }
 0x11d   : > { %v931_v42 = vmax.f32 %v885_v58, 0.0  ;;  %v933_v3 = vmax.f32 %v926_v62, 0.0 }
 0x11f   : > { %v1262_v4 = vpack.c.bf16 %v931_v42, %v930_v61  ;;  %v1263_v5 = vpack.c.bf16 %v933_v3, %v932_v1 }
 0x121   : > { %v1061_v6 = vrot.slane %v1262_v4, %v1009_v35  ;;  %v1068_v7 = vrot.slane %v1263_v5, %v1009_v35 }
 0x123   : > { %v1069_v8 = vcombine.low %v1061_v6, %v1068_v7 }
 0x125   : > { %v1076_v9 = vrot.slane %v1069_v8, %v1009_v35 }
 0x127   : > { %1077 = vrot.lane.b32.xlu0 %v1076_v9, %s1383_s10 }
 0x199   : > { %v1078_v10 = vpop.permute.xlu0 %1077 }
 0x19a   : > { %v1079_v11 = vrot.slane %v1078_v10, 7 }
 0x19c   : > { %v1081_v13 = vsel %vm1080_vm13, %v1079_v11, %v1078_v10 }
 0x19d   : > { %v1095_v14 = vsel %vm1093_vm14, %v1081_v13, %v1094_v12 }
 0x19e   : > { %1096 = vst [vmem:[%s1722_s7 + $0x3] sm:$0x1f] %v1095_v14 }
 0x19f PF: > { %s16_s21 = sadd.s32 1, %s1379_s21  }
 0x1a0   : > { %p13_p5 = scmp.ge.s32.totalorder %s16_s21, 4  }
 0x1a2   :  { %15 = sbr.rel (!%p13_p5) target bundleno = 1 (0x1), region = 95 }

// kernel: _lambda_.43
= control target key start
LH: loop header
LB: loop body
LE: loop exit
PB: predicated region body
PF: predicated region fallthrough
CT: control target
= control target key end

     0   :  { %v30_v23 = vlaneseq  ;;  %vm286_vm0 = vcmask 1041409   ;;  %v1088_v45 = vmov 0   ;;  %vm677_vm1 = vcmask 523264   ;;  %s1364_s0 = inlined_call_operand.vmem [shape: bf16[2,1,960], index: 0, kind: input, shape index: {}]   ;;  %s1365_s1 = inlined_call_operand.vmem [shape: bf16[960,10], index: 1, kind: input, shape index: {}]   ;;  %s1366_s2 = inlined_call_operand.vmem [shape: f32[1,10], index: 2, kind: input, shape index: {}]   ;;  %s1367_s3 = inlined_call_operand.hbm [shape: f32[2,10], index: 3, kind: output, shape index: {}]  }
   0x1   :  { %v1000_v0 = vld [vmem:[%s1365_s1 + $0x40] sm:$0xff]   ;;  %v1004_v4 = vld [vmem:[%s1365_s1 + $0x48] sm:$0xff]   ;;  %v1008_v8 = vld [vmem:[%s1365_s1 + $0x50] sm:$0xff]  }
   0x2   :  { %v1001_v1 = vld [vmem:[%s1365_s1 + $0xc0] sm:$0xff]   ;;  %932 = vmatprep.subr.bf16.mxu0 %v1000_v0  ;;  %v1005_v5 = vld [vmem:[%s1365_s1 + $0xc8] sm:$0xff]   ;;  %v1009_v9 = vld [vmem:[%s1365_s1 + $0xd0] sm:$0xff]   ;;  %v31_v28 = vshrl.u32 %v30_v23, 7 }
   0x3   :  { %v1002_v2 = vld [vmem:[%s1365_s1] sm:$0xff]   ;;  %954 = vmatprep.subr.bf16.mxu1 %v1001_v1  ;;  %v1006_v6 = vld [vmem:[%s1365_s1 + $0x8] sm:$0xff]   ;;  %v1010_v10 = vld [vmem:[%s1365_s1 + $0x10] sm:$0xff]  }
   0x4   :  { %v1003_v3 = vld [vmem:[%s1365_s1 + $0x80] sm:$0xff]   ;;  %933 = vmatpush3.bf16.msra.mxu0 %v1002_v2  ;;  %v1007_v7 = vld [vmem:[%s1365_s1 + $0x88] sm:$0xff]   ;;  %v1011_v11 = vld [vmem:[%s1365_s1 + $0x90] sm:$0xff]   ;;  %v36_v33 = vsub.s32 2, %v31_v28  ;;  %v1206_v35 = vsub.s32 6, %v31_v28  ;;  %v1214_v38 = vsub.s32 0, %v31_v28 }
   0x5   :  { %955 = vmatpush3.bf16.msra.mxu1 %v1003_v3  ;;  %934 = vmatprep.subr.bf16.mxu0 %v1004_v4  ;;  %v1012_v12 = vld [vmem:[%s1365_s1 + $0x58] sm:$0xff]   ;;  %v1016_v16 = vld [vmem:[%s1365_s1 + $0x60] sm:$0xff]   ;;  %v1020_v20 = vld [vmem:[%s1365_s1 + $0x68] sm:$0xff]   ;;  %v1216_v39 = vsub.s32 4, %v31_v28 }
   0x6   :  { %956 = vmatprep.subr.bf16.mxu1 %v1005_v5  ;;  %v1013_v13 = vld [vmem:[%s1365_s1 + $0xd8] sm:$0xff]   ;;  %v1017_v17 = vld [vmem:[%s1365_s1 + $0xe0] sm:$0xff]   ;;  %v1021_v21 = vld [vmem:[%s1365_s1 + $0xe8] sm:$0xff]  }
   0x7   :  { %v1014_v14 = vld [vmem:[%s1365_s1 + $0x18] sm:$0xff]   ;;  %v1018_v18 = vld [vmem:[%s1365_s1 + $0x20] sm:$0xff]   ;;  %v1022_v22 = vld [vmem:[%s1365_s1 + $0x28] sm:$0xff]  }
   0x8   :  { %935 = vmatpush3.bf16.msra.mxu0 %v1006_v6  ;;  %v1015_v15 = vld [vmem:[%s1365_s1 + $0x98] sm:$0xff]   ;;  %v1019_v19 = vld [vmem:[%s1365_s1 + $0xa0] sm:$0xff]   ;;  %v1023_v24 = vld [vmem:[%s1365_s1 + $0xa8] sm:$0xff]  }
   0x9   :  { %957 = vmatpush3.bf16.msra.mxu1 %v1007_v7  ;;  %936 = vmatprep.subr.bf16.mxu0 %v1008_v8  ;;  %v1024_v25 = vld [vmem:[%s1365_s1 + $0x70] sm:$0xff]   ;;  %v1028_v30 = vld [vmem:[%s1365_s1 + $0x78] sm:$0xff]   ;;  %v16_v36 = vld [vmem:[%s1364_s0] sm:$0xff] }
   0xa   :  { %958 = vmatprep.subr.bf16.mxu1 %v1009_v9  ;;  %v1025_v26 = vld [vmem:[%s1365_s1 + $0xf0] sm:$0xff]   ;;  %v1029_v31 = vld [vmem:[%s1365_s1 + $0xf8] sm:$0xff]   ;;  %v17_v37 = vld [vmem:[%s1364_s0 + $0x8] sm:$0xff]  ;;  %v18_v40 = vunpack.c.l.bf16 %v16_v36  ;;  %v1221_v43 = vunpack.c.h.bf16 %v16_v36 }
   0xb   :  { %v1026_v27 = vld [vmem:[%s1365_s1 + $0x30] sm:$0xff]   ;;  %v1030_v32 = vld [vmem:[%s1365_s1 + $0x38] sm:$0xff]   ;;  %v20_v41 = vunpack.c.l.bf16 %v17_v37  ;;  %v1032_v42 = vld [vmem:[%s1365_s1 + $0x140] sm:$0xff]   ;;  %v1223_v44 = vunpack.c.h.bf16 %v17_v37 }
   0xc   :  { %937 = vmatpush3.bf16.msra.mxu0 %v1010_v10  ;;  %v1027_v29 = vld [vmem:[%s1365_s1 + $0xb0] sm:$0xff]   ;;  %v1031_v34 = vld [vmem:[%s1365_s1 + $0xb8] sm:$0xff]   ;;  %v37_v46 = vrot.slane %v18_v40, %v36_v33  ;;  %v45_v48 = vrot.slane %v18_v40, %v1206_v35  ;;  %v33_v50 = vrot.slane %v18_v40, %v1214_v38  ;;  %v41_v52 = vrot.slane %v18_v40, %v1216_v39  ;;  %v1036_v28 = vld [vmem:[%s1365_s1 + $0x108] sm:$0xff]  }
   0xd   :  { %959 = vmatpush3.bf16.msra.mxu1 %v1011_v11  ;;  %938 = vmatprep.subr.bf16.mxu0 %v1012_v12  ;;  %v69_v47 = vrot.slane %v20_v41, %v36_v33  ;;  %v77_v49 = vrot.slane %v20_v41, %v1206_v35  ;;  %v65_v51 = vrot.slane %v20_v41, %v1214_v38 }
   0xe   :  { %960 = vmatprep.subr.bf16.mxu1 %v1013_v13  ;;  %v73_v53 = vrot.slane %v20_v41, %v1216_v39  ;;  %v111_v54 = vpack.c.bf16 %v37_v46, %v37_v46  ;;  %v113_v56 = vpack.c.bf16 %v45_v48, %v45_v48  ;;  %v110_v58 = vpack.c.bf16 %v33_v50, %v33_v50  ;;  %v1041_v46 = vld [vmem:[%s1365_s1 + $0x158] sm:$0xff]  }
   0xf   :  { %v119_v55 = vpack.c.bf16 %v69_v47, %v69_v47  ;;  %v121_v57 = vpack.c.bf16 %v77_v49, %v77_v49  ;;  %v118_v59 = vpack.c.bf16 %v65_v51, %v65_v51  ;;  %v112_v60 = vpack.c.bf16 %v41_v52, %v41_v52  ;;  %v1042_v48 = vld [vmem:[%s1365_s1 + $0x118] sm:$0xff]  }
  0x10   :  { %939 = vmatpush3.bf16.msra.mxu0 %v1014_v14  ;;  %v120_v61 = vpack.c.bf16 %v73_v53, %v73_v53  ;;  %v270_v62 = vunpack.c.l.b16 %v111_v54  ;;  %v272_v0 = vunpack.c.l.b16 %v113_v56  ;;  %v269_v2 = vunpack.c.l.b16 %v110_v58  ;;  %v1033_v14 = vld [vmem:[%s1365_s1 + $0x100] sm:$0xff]   ;;  %v1043_v50 = vld [vmem:[%s1365_s1 + $0x198] sm:$0xff]   ;;  %v1047_v58 = vld [vmem:[%s1365_s1 + $0x168] sm:$0xff]  }
  0x11   :  { %961 = vmatpush3.bf16.msra.mxu1 %v1015_v15  ;;  %940 = vmatprep.subr.bf16.mxu0 %v1016_v16  ;;  %v278_v63 = vunpack.c.l.b16 %v119_v55  ;;  %v280_v1 = vunpack.c.l.b16 %v121_v57  ;;  %v277_v3 = vunpack.c.l.b16 %v118_v59  ;;  %v271_v4 = vunpack.c.l.b16 %v112_v60  ;;  %v1044_v53 = vld [vmem:[%s1365_s1 + $0x160] sm:$0xff]  }
  0x12   :  { %962 = vmatprep.subr.bf16.mxu1 %v1017_v17  ;;  %v279_v5 = vunpack.c.l.b16 %v120_v61  ;;  %v53_v8 = vrot.slane %v1221_v43, %v36_v33  ;;  %v85_v9 = vrot.slane %v1223_v44, %v36_v33  ;;  %v1038_v33 = vld [vmem:[%s1365_s1 + $0x150] sm:$0xff]   ;;  %v81_v51 = vrot.slane %v1223_v44, %v1214_v38  ;;  %v1045_v54 = vld [vmem:[%s1365_s1 + $0x120] sm:$0xff]  }
  0x13   :  { %v288_v6 = vrot.slane %v278_v63, 7  ;;  %v292_v7 = vrot.slane %v280_v1, 7  ;;  %v285_v10 = vrot.slane %v277_v3, 7  ;;  %v1046_v55 = vld [vmem:[%s1365_s1 + $0x1a0] sm:$0xff]   ;;  %v49_v56 = vrot.slane %v1221_v43, %v1214_v38 }
  0x14   :  { %941 = vmatpush3.bf16.msra.mxu0 %v1018_v18  ;;  %v290_v11 = vrot.slane %v279_v5, 7  ;;  %v115_v15 = vpack.c.bf16 %v53_v8, %v53_v8  ;;  %v123_v16 = vpack.c.bf16 %v85_v9, %v85_v9  ;;  %v122_v57 = vpack.c.bf16 %v81_v51, %v81_v51 }
  0x15   :  { %963 = vmatpush3.bf16.msra.mxu1 %v1019_v19  ;;  %942 = vmatprep.subr.bf16.mxu0 %v1020_v20  ;;  %v289_v12 = vsel %vm286_vm0, %v288_v6, %v270_v62  ;;  %v293_v13 = vsel %vm286_vm0, %v292_v7, %v272_v0  ;;  %v287_v19 = vsel %vm286_vm0, %v285_v10, %v269_v2 }
  0x16   :  { %964 = vmatprep.subr.bf16.mxu1 %v1021_v21  ;;  %v303_v17 = vpack.c.b16 %v289_v12, %v289_v12  ;;  %v305_v18 = vpack.c.b16 %v293_v13, %v293_v13  ;;  %v291_v20 = vsel %vm286_vm0, %v290_v11, %v271_v4  ;;  %v1034_v21 = vld [vmem:[%s1365_s1 + $0x180] sm:$0xff]  }
  0x17   :  { %v304_v23 = vpack.c.b16 %v291_v20, %v291_v20 }
  0x18   :  { %943 = vmatpush3.bf16.msra.mxu0 %v1022_v22  ;;  %v302_v22 = vpack.c.b16 %v287_v19, %v287_v19  ;;  %713 = vmatprep.mubr.bf16.mxu0 %v303_v17 }
  0x19   :  { %965 = vmatpush3.bf16.msra.mxu1 %v1023_v24  ;;  %944 = vmatprep.subr.bf16.mxu0 %v1024_v25  ;;  %v1035_v24 = vld [vmem:[%s1365_s1 + $0x148] sm:$0xff]   ;;  %v274_v25 = vunpack.c.l.b16 %v115_v15 }
  0x1a   :  { %966 = vmatprep.subr.bf16.mxu1 %v1025_v26  ;;  %v282_v26 = vunpack.c.l.b16 %v123_v16  ;;  %753 = vmatprep.mubr.bf16.mxu1 %v305_v18 }
  0x1c   :  { %945 = vmatpush3.bf16.msra.mxu0 %v1026_v27  ;;  %v61_v27 = vrot.slane %v1221_v43, %v1206_v35 }
  0x1d   :  { %967 = vmatpush3.bf16.msra.mxu1 %v1027_v29  ;;  %946 = vmatprep.subr.bf16.mxu0 %v1028_v30  ;;  %v296_v29 = vrot.slane %v282_v26, 7  ;;  %v93_v30 = vrot.slane %v1223_v44, %v1206_v35  ;;  %v1039_v35 = vld [vmem:[%s1365_s1 + $0x110] sm:$0xff]  }
  0x1e   :  { %968 = vmatprep.subr.bf16.mxu1 %v1029_v31  ;;  %v1037_v31 = vld [vmem:[%s1365_s1 + $0x188] sm:$0xff]  }
  0x1f   :  { %v125_v36 = vpack.c.bf16 %v93_v30, %v93_v30 }
  0x20   :  { %947 = vmatpush3.bf16.msra.mxu0 %v1030_v32  ;;  %v117_v32 = vpack.c.bf16 %v61_v27, %v61_v27 }
  0x21   :  { %969 = vmatpush3.bf16.msra.mxu1 %v1031_v34  ;;  %976 = vmatprep.subr.bf16.mxu0 %v1032_v42  ;;  %v297_v34 = vsel %vm286_vm0, %v296_v29, %v274_v25  ;;  %v284_v41 = vunpack.c.l.b16 %v125_v36  ;;  %v1040_v42 = vld [vmem:[%s1365_s1 + $0x190] sm:$0xff]  }
  0x22   :  { %801 = vmatprep.subr.bf16.mxu1 %v1088_v45  ;;  %v307_v37 = vpack.c.b16 %v297_v34, %v297_v34  ;;  %v276_v40 = vunpack.c.l.b16 %v117_v32 }
  0x23   :  { %714 = vmatmul.mubr.bf16.vlgmr.msra.gmra.mrb[0].mxu0 %v302_v22  ;;  %v300_v47 = vrot.slane %v284_v41, 7 }
  0x24   :  { %754 = vmatmul.mubr.bf16.vlgmr.msra.gmra.mrb[0].mxu1 %v304_v23  ;;  %977 = vmatpush3.bf16.msra.mxu0 %v1033_v14 }
  0x25   :  { %802 = vmatpush1.bf16.msra.mxu1 %v1034_v21  ;;  %978 = vmatprep.subr.bf16.mxu0 %v1035_v24  ;;  %v301_v49 = vsel %vm286_vm0, %v300_v47, %v276_v40 }
  0x26   :  { %803 = vmatprep.subr.bf16.mxu1 %v1088_v45  ;;  %793 = vmatprep.mubr.bf16.mxu0 %v307_v37  ;;  %v309_v52 = vpack.c.b16 %v301_v49, %v301_v49 }
  0x28   :  { %979 = vmatpush3.bf16.msra.mxu0 %v1036_v28  ;;  %931 = vmatprep.mubr.msk.bf16.mxu1 %vm677_vm1, %v309_v52 }
  0x29   :  { %804 = vmatpush1.bf16.msra.mxu1 %v1037_v31  ;;  %980 = vmatprep.subr.bf16.mxu0 %v1038_v33 }
  0x2a   :  { %805 = vmatprep.subr.bf16.mxu1 %v1088_v45 }
  0x2c   :  { %981 = vmatpush3.bf16.msra.mxu0 %v1039_v35 }
  0x2d   :  { %806 = vmatpush1.bf16.msra.mxu1 %v1040_v42  ;;  %982 = vmatprep.subr.bf16.mxu0 %v1041_v46 }
  0x2e   :  { %807 = vmatprep.subr.bf16.mxu1 %v1088_v45 }
  0x30   :  { %983 = vmatpush3.bf16.msra.mxu0 %v1042_v48 }
  0x31   :  { %808 = vmatpush1.bf16.msra.mxu1 %v1043_v50  ;;  %984 = vmatprep.subr.bf16.mxu0 %v1044_v53 }
  0x32   :  { %809 = vmatprep.subr.bf16.mxu1 %v1088_v45 }
  0x33   :  { %8 = vsyncpa [#allocation3], 0  ;;  %v1048_v59 = vld [vmem:[%s1365_s1 + $0x128] sm:$0xff]   ;;  %v114_v38 = vpack.c.bf16 %v49_v56, %v49_v56  ;;  %v281_v61 = vunpack.c.l.b16 %v122_v57  ;;  %v1050_v62 = vld [vmem:[%s1365_s1 + $0x170] sm:$0xff]   ;;  %v89_v7 = vrot.slane %v1223_v44, %v1216_v39  ;;  %v57_v10 = vrot.slane %v1221_v43, %v1216_v39 }
  0x34   :  { %985 = vmatpush3.bf16.msra.mxu0 %v1045_v54  ;;  %v1049_v60 = vld [vmem:[%s1365_s1 + $0x1a8] sm:$0xff]   ;;  %v1051_v63 = vld [vmem:[%s1365_s1 + $0x130] sm:$0xff]   ;;  %v1053_v3 = vld [vmem:[%s1365_s1 + $0x178] sm:$0xff]   ;;  %vm841_vm2 = vcmask 74752  }
  0x35   :  { %810 = vmatpush1.bf16.msra.mxu1 %v1046_v55  ;;  %986 = vmatprep.subr.bf16.mxu0 %v1047_v58  ;;  %v1052_v0 = vld [vmem:[%s1365_s1 + $0x1b0] sm:$0xff]   ;;  %v273_v1 = vunpack.c.l.b16 %v114_v38  ;;  %v294_v2 = vrot.slane %v281_v61, 7  ;;  %v1054_v4 = vld [vmem:[%s1365_s1 + $0x138] sm:$0xff]   ;;  %v1056_v9 = vld [vmem:[%s1365_s1 + $0x1c0] sm:$0xff]   ;;  %v124_v11 = vpack.c.bf16 %v89_v7, %v89_v7  ;;  %v116_v12 = vpack.c.bf16 %v57_v10, %v57_v10 }
  0x36   :  { %811 = vmatprep.subr.bf16.mxu1 %v1088_v45  ;;  %v1055_v5 = vld [vmem:[%s1365_s1 + $0x1b8] sm:$0xff]   ;;  %v1057_v44 = vld [vmem:[%s1365_s1 + $0x1c8] sm:$0xff]   ;;  %v1058_v14 = vld [vmem:[%s1365_s1 + $0x1d0] sm:$0xff]  }
  0x37   :  { %v295_v6 = vsel %vm286_vm0, %v294_v2, %v273_v1  ;;  %v283_v13 = vunpack.c.l.b16 %v124_v11  ;;  %v275_v15 = vunpack.c.l.b16 %v116_v12  ;;  %v1059_v43 = vld [vmem:[%s1365_s1 + $0x1d8] sm:$0xff]   ;;  %v870_v20 = vld [vmem:[%s1366_s2] ss:$0 sm:$0xff]  ;;  %s1089_s1 = smov [#allocation2]  }
  0x38   :  { %987 = vmatpush3.bf16.msra.mxu0 %v1048_v59  ;;  %v306_v8 = vpack.c.b16 %v295_v6, %v295_v6  ;;  %s862_s2 = sshll.u32 %s1089_s1, 4  ;;  %s863_s2 = int_to_ptr.vmem [resolvable:$true] %s862_s2 }
  0x39   :  { %812 = vmatpush1.bf16.msra.mxu1 %v1049_v60  ;;  %988 = vmatprep.subr.bf16.mxu0 %v1050_v62  ;;  %v298_v39 = vrot.slane %v283_v13, 7  ;;  %s1064_s0 = scalar_lea.vmem %s863_s2, 32  ;;  %p1069_p1 = scmp.lt.s32.totalorder %s863_s2, %s863_s2 }
  0x3a   :  { %813 = vmatprep.subr.bf16.mxu1 %v1088_v45  ;;  %p1065_p0 = scmp.ne.s32.totalorder %s863_s2, %s1064_s0  ;;  %p1070_p2 = scmp.lt.s32.totalorder %s1064_s0, %s1064_s0 }
  0x3b   :  { %v299_v16 = vsel %vm286_vm0, %v298_v39, %v275_v15 }
  0x3c   :  { %989 = vmatpush3.bf16.msra.mxu0 %v1051_v63  ;;  %v308_v17 = vpack.c.b16 %v299_v16, %v299_v16  ;;  %p1071_p3 = por %p1070_p2, %p1069_p1 }
  0x3d   :  { %814 = vmatpush1.bf16.msra.mxu1 %v1052_v0  ;;  %990 = vmatprep.subr.bf16.mxu0 %v1053_v3 }
  0x3e   :  { %815 = vmatprep.subr.bf16.mxu1 %v1088_v45  ;;  %p1072_p4 = pnand %p1071_p3, %p1065_p0 }
  0x40   :  { %991 = vmatpush3.bf16.msra.mxu0 %v1054_v4 }
  0x41   :  { %816 = vmatpush1.bf16.msra.mxu1 %v1055_v5 }
  0x42   :  { %817 = vmatprep.subr.bf16.mxu1 %v1088_v45 }
  0x43   :  { %794 = vmatmul.mubr.bf16.vlgmr.msra.gmra.mrb[4].mxu0 %v306_v8 }
  0x45   :  { %818 = vmatpush1.bf16.msra.mxu1 %v1056_v9 }
  0x46   :  { %819 = vmatprep.subr.bf16.mxu1 %v1088_v45 }
  0x49   :  { %820 = vmatpush1.bf16.msra.mxu1 %v1057_v44 }
  0x4a   :  { %821 = vmatprep.subr.bf16.mxu1 %v1088_v45 }
  0x4d   :  { %822 = vmatpush1.bf16.msra.mxu1 %v1058_v14 }
  0x4e   :  { %823 = vmatprep.subr.bf16.mxu1 %v1088_v45 }
  0x51   :  { %824 = vmatpush1.bf16.msra.mxu1 %v1059_v43 }
  0x54   :  { %834 = vmatmul.mubr.bf16.vlgmr.msra.gmra.mrb[4].mxu1 %v308_v17 }
  0xf6   :  { %v948_v18 = vpop.f32.mrb[0].mxu0 }
  0xf7   :  { %v970_v19 = vpop.f32.mrb[0].mxu1  ;;  %v949_v21 = vpop.f32.mrb[1].mxu0 }
  0xf8   :  { %v971_v22 = vpop.f32.mrb[1].mxu1  ;;  %v950_v23 = vadd.f32 %v949_v21, %v948_v18  ;;  %v951_v26 = vpop.f32.mrb[2].mxu0 }
  0xf9   :  { %v972_v24 = vadd.f32 %v971_v22, %v970_v19  ;;  %v973_v25 = vpop.f32.mrb[2].mxu1  ;;  %v952_v28 = vpop.f32.mrb[3].mxu0 }
  0xfa   :  { %v974_v27 = vpop.f32.mrb[3].mxu1  ;;  %v716_v29 = vadd.f32 %v950_v23, %v870_v20 }
  0xfc   :  { %v756_v30 = vadd.f32 %v972_v24, %v716_v29 }
 0x116   :  { %v992_v45 = vpop.f32.mrb[4].mxu0 }
 0x117   :  { %v993_v31 = vpop.f32.mrb[5].mxu0 }
 0x118   :  { %v994_v32 = vadd.f32 %v993_v31, %v992_v45  ;;  %v995_v33 = vpop.f32.mrb[6].mxu0 }
 0x119   :  { %v996_v34 = vpop.f32.mrb[7].mxu0 }
 0x11a   :  { %v796_v36 = vadd.f32 %v994_v32, %v756_v30 }
 0x127   :  { %v835_v37 = vpop.f32.mrb[4].mxu1 }
 0x128   :  { %v836_v35 = vadd.f32 %v835_v37, %v796_v36  ;;  %v837_v40 = vpop.f32.mrb[5].mxu1 }
 0x129   :  { %v838_v41 = vpop.f32.mrb[6].mxu1 }
 0x12a   :  { %v839_v42 = vpop.f32.mrb[7].mxu1  ;;  %v842_v46 = vsel %vm841_vm2, %v836_v35, -inf }
 0x12b   :  { %843 = vmax.xlane.f32.xlu0 %v842_v46 }
 0x1b8   :  { %v844_v47 = vpop.xlane.xlu0 %843 }
 0x1b9   :  { %v845_v48 = vsub.f32 %v836_v35, %v844_v47 }
 0x1bb   :  { %v846_v49 = vmul.f32 1.442695, %v845_v48 }
 0x1bd   :  { %1060 = vpow2.f32 %v846_v49 }
 0x1c7   :  { %v1061_v50 = vpop.eup %1060 }
 0x1c8   :  { %v848_v51 = vsel %vm841_vm2, %v1061_v50, 0.0 }
 0x1c9   :  { %849 = vadd.xlane.f32.xlu0 %v848_v51 }
 0x256   :  { %v850_v52 = vpop.xlane.xlu0 %849 }
 0x257   :  { %1062 = vlog2.f32 %v850_v52 }
 0x261   :  { %v1063_v53 = vpop.eup %1062 }
 0x262   :  { %v852_v54 = vmul.f32 0.6931472, %v1063_v53 }
 0x264   :  { %v853_v55 = vadd.f32 %v852_v54, %v844_v47 }
 0x266   :  { %v854_v56 = vsub.f32 %v836_v35, %v853_v55 }
 0x268   :  { %855 = vst.msk [vmem:[#allocation2] sm:$0x3] %vm841_vm2, %v854_v56 }
 0x269   :  { %1075 = shalt.err (!%p1072_p4)
}
 0x26a   :  { %s1076_s30 = scalar_lea.hbm %s1367_s3, 32 }
 0x26b   :  { %p1077_p5 = scmp.ne.s32.totalorder %s1367_s3, %s1076_s30  ;;  %p1080_p6 = scmp.lt.u32.totalorder %s1076_s30, %s1367_s3 }
 0x26d   :  { %p1082_p7 = pnand %p1080_p6, %p1077_p5 }
 0x26f   :  { %1085 = shalt.err (!%p1082_p7)
}
 0x270   :  { %865 = dma.vmem_to_hbm [thread:$0]  %s863_s2, 32, %s1367_s3, [#allocation3]  }
 0x271   :  { %1086 = dma.done.wait [#allocation3], 32  }
 0x272   :  { %1087 = vsyncadd [#allocation3], 4294967264 }
 0x273   :  { %869 = vsyncpa [#allocation3], 1 }

// kernel: _lambda_.40
= control target key start
LH: loop header
LB: loop body
LE: loop exit
PB: predicated region body
PF: predicated region fallthrough
CT: control target
= control target key end

     0   :  { %s3044_s24 = smov 0   ;;  %s3977_s0 = inlined_call_operand.vmem [shape: bf16[2,1,1,960], index: 0, kind: input, shape index: {}]   ;;  %s3978_s1 = inlined_call_operand.vmem [shape: bf16[960,256], index: 1, kind: input, shape index: {}]   ;;  %s3979_s2 = inlined_call_operand.vmem [shape: f32[1,256], index: 2, kind: input, shape index: {}, may-alias: {2,4}]   ;;  %s3980_s3 = inlined_call_operand.vmem [shape: f32[9,1,1,256], index: 3, kind: input, shape index: {}]   ;;  %s3981_s4 = inlined_call_operand.vmem [shape: f32[1,256], index: 4, kind: input, shape index: {}, may-alias: {2,4}]   ;;  %s3982_s5 = inlined_call_operand.vmem [shape: bf16[256,960], index: 5, kind: input, shape index: {}]   ;;  %s3983_s6 = inlined_call_operand.vmem [shape: f32[1,960], index: 6, kind: input, shape index: {}]   ;;  %s3984_s7 = inlined_call_operand.vmem [shape: bf16[2,1,1,960], index: 7, kind: output, shape index: {}]  }
   0x1 LB: > { %s2518_s25 = sadd.s32 4294967295, %s3000_s24   ;;  %p2522_p0 = scmp.ge.s32.totalorder %s3000_s24, 1  ;;  %s3000_s24 = sphi %s3044_s24, %s17_s24  }
   0x2   : > { %p236_p1 = scmp.lt.s32.totalorder %s3000_s24, 3 }
   0x4   : > { %p237_p2 = pnand %p2522_p0, %p236_p1 }
   0x5   : > { %v2812_v0 = vld [vmem:[%s3978_s1 + $0x4] ss:$8 sps:$4 sm:$0xff] (!%p237_p2)   ;;  %v2814_v1 = vld [vmem:[%s3978_s1] ss:$8 sps:$4 sm:$0xff] (!%p237_p2)   ;;  %v2815_v2 = vld [vmem:[%s3978_s1 + $0x14] ss:$8 sps:$4 sm:$0xff] (!%p237_p2)   ;;  %v402_v9 = vlaneseq (!%p237_p2) }
   0x6   : > { %240 = sbr.rel (%p237_p2) target bundleno = 919 (0x397), region = 48  ;;  %1069 = vmatprep.subr.bf16.mxu0 (!%p237_p2), %v2812_v0  ;;  %v2817_v3 = vld [vmem:[%s3978_s1 + $0x10] ss:$8 sps:$4 sm:$0xff] (!%p237_p2)   ;;  %v2818_v4 = vld [vmem:[%s3978_s1 + $0x24] ss:$8 sps:$4 sm:$0xff] (!%p237_p2)   ;;  %p266_p3 = scmp.lt.s32.totalorder (!%p237_p2), %s2518_s25, 1 }
   0x7   : > { %1070 = vmatpush1.bf16.msra.mxu0 (!%p237_p2), %v2814_v1  ;;  %v2820_v5 = vld [vmem:[%s3978_s1 + $0x20] ss:$8 sps:$4 sm:$0xff] (!%p237_p2)   ;;  %v2821_v6 = vld [vmem:[%s3978_s1 + $0x34] ss:$8 sps:$4 sm:$0xff] (!%p237_p2)   ;;  %v3002_v7 = vmov (!%p237_p2), 1966171168  }
   0x8   : > { %1071 = vmatprep.subr.bf16.mxu0 (!%p237_p2), %v2815_v2  ;;  %v400_v8 = vunpack.c.l.s4 (!%p237_p2), %v3002_v7  ;;  %v2823_v10 = vld [vmem:[%s3978_s1 + $0x30] ss:$8 sps:$4 sm:$0xff] (!%p237_p2)   ;;  %v2824_v11 = vld [vmem:[%s3978_s1 + $0x44] ss:$8 sps:$4 sm:$0xff] (!%p237_p2)   ;;  %v3082_v13 = vshrl.u32 (!%p237_p2), %v402_v9, 7  ;;  %vm1065_vm0 = vcmask (!%p237_p2), 523264  }
   0x9   : > { %v2826_v14 = vld [vmem:[%s3978_s1 + $0x40] ss:$8 sps:$4 sm:$0xff] (!%p237_p2)   ;;  %v2827_v15 = vld [vmem:[%s3978_s1 + $0x54] ss:$8 sps:$4 sm:$0xff] (!%p237_p2)   ;;  %v2829_v17 = vld [vmem:[%s3978_s1 + $0x50] ss:$8 sps:$4 sm:$0xff] (!%p237_p2)  }
   0xa   : > { %v401_v12 = vunpack.c.0.s8 (!%p237_p2), %v400_v8  ;;  %v2830_v18 = vld [vmem:[%s3978_s1 + $0x64] ss:$8 sps:$4 sm:$0xff] (!%p237_p2)   ;;  %v2832_v21 = vld [vmem:[%s3978_s1 + $0x60] ss:$8 sps:$4 sm:$0xff] (!%p237_p2)   ;;  %v2833_v22 = vld [vmem:[%s3978_s1 + $0x74] ss:$8 sps:$4 sm:$0xff] (!%p237_p2)  }
   0xb   : > { %1072 = vmatpush1.bf16.msra.mxu0 (!%p237_p2), %v2817_v3  ;;  %v2835_v25 = vld [vmem:[%s3978_s1 + $0x70] ss:$8 sps:$4 sm:$0xff] (!%p237_p2)   ;;  %v2836_v26 = vld [vmem:[%s3978_s1 + $0x84] ss:$8 sps:$4 sm:$0xff] (!%p237_p2)   ;;  %v2838_v27 = vld [vmem:[%s3978_s1 + $0x80] ss:$8 sps:$4 sm:$0xff] (!%p237_p2)  }
   0xc   : > { %1073 = vmatprep.subr.bf16.mxu0 (!%p237_p2), %v2818_v4  ;;  %v3099_v16 = vsub.s32 (!%p237_p2), %v401_v12, %v3082_v13  ;;  %v2839_v28 = vld [vmem:[%s3978_s1 + $0x94] ss:$8 sps:$4 sm:$0xff] (!%p237_p2)   ;;  %v2841_v29 = vld [vmem:[%s3978_s1 + $0x90] ss:$8 sps:$4 sm:$0xff] (!%p237_p2)   ;;  %v2842_v30 = vld [vmem:[%s3978_s1 + $0xa4] ss:$8 sps:$4 sm:$0xff] (!%p237_p2)  }
   0xd   : > { %s3992_s25 = smov (!%p266_p3, %s2518_s25), 1  ;;  %v2844_v31 = vld [vmem:[%s3978_s1 + $0xa0] ss:$8 sps:$4 sm:$0xff]   ;;  %v2845_v32 = vld [vmem:[%s3978_s1 + $0xb4] ss:$8 sps:$4 sm:$0xff]   ;;  %vm1259_vm1 = vcmp.lt.s32.totalorder %v402_v9, 256 }
   0xe   : > { %s2523_s23 = sshll.u32 %s3992_s25, 3  ;;  %v2847_v33 = vld [vmem:[%s3978_s1 + $0xb0] ss:$8 sps:$4 sm:$0xff]   ;;  %v2848_v34 = vld [vmem:[%s3978_s1 + $0xc4] ss:$8 sps:$4 sm:$0xff]   ;;  %vm2427_vm2 = vcmask 1040384  }
   0xf   : > { %1074 = vmatpush1.bf16.msra.mxu0 %v2820_v5  ;;  %s3096_s30 = scalar_lea.vmem %s3977_s0, %s2523_s23  ;;  %v2850_v35 = vld [vmem:[%s3978_s1 + $0xc0] ss:$8 sps:$4 sm:$0xff]   ;;  %v2851_v36 = vld [vmem:[%s3978_s1 + $0xd4] ss:$8 sps:$4 sm:$0xff]   ;;  %v2853_v37 = vld [vmem:[%s3978_s1 + $0xd0] ss:$8 sps:$4 sm:$0xff]   ;;  %s273_s13 = scalar_lea.vmem %s3984_s7, %s2523_s23 }
  0x10   : > { %1075 = vmatprep.subr.bf16.mxu0 %v2821_v6  ;;  %v3108_v19 = vld [vmem:[%s3096_s30] sm:$0xff]  ;;  %v2857_v40 = vld [vmem:[%s3978_s1 + $0xf4] ss:$8 sps:$4 sm:$0xff]   ;;  %v2859_v41 = vld [vmem:[%s3978_s1 + $0xf0] ss:$8 sps:$4 sm:$0xff]   ;;  %vm2430_vm4 = vcmask 1041409  }
  0x11   : > { %v405_v20 = vrot.slane %v3108_v19, %v3099_v16  ;;  %v2854_v38 = vld [vmem:[%s3978_s1 + $0xe4] ss:$8 sps:$4 sm:$0xff]   ;;  %v2856_v39 = vld [vmem:[%s3978_s1 + $0xe0] ss:$8 sps:$4 sm:$0xff]   ;;  %v2865_v46 = vld [vmem:[%s3978_s1 + $0x114] ss:$8 sps:$4 sm:$0xff]   ;;  %v398_v12 = vcombine.high %v3108_v19, %v3108_v19 }
  0x12   : > { %v2862_v42 = vld [vmem:[%s3978_s1 + $0x104] ss:$8 sps:$4 sm:$0xff]   ;;  %v2860_v45 = vld [vmem:[%s3978_s1 + $0x100] ss:$8 sps:$4 sm:$0xff]   ;;  %v2863_v47 = vld [vmem:[%s3978_s1 + $0x110] ss:$8 sps:$4 sm:$0xff]  }
  0x13   : > { %1076 = vmatpush1.bf16.msra.mxu0 %v2823_v10  ;;  %v413_v23 = vcombine.high %v405_v20, %v405_v20  ;;  %v3174_v43 = vrot.slane %v405_v20, %v3099_v16  ;;  %v2868_v48 = vld [vmem:[%s3978_s1 + $0x124] ss:$8 sps:$4 sm:$0xff]   ;;  %v2866_v49 = vld [vmem:[%s3978_s1 + $0x120] ss:$8 sps:$4 sm:$0xff]   ;;  %v2871_v50 = vld [vmem:[%s3978_s1 + $0x134] ss:$8 sps:$4 sm:$0xff]  }
  0x14   : > { %1077 = vmatprep.subr.bf16.mxu0 %v2824_v11  ;;  %v2869_v51 = vld [vmem:[%s3978_s1 + $0x130] ss:$8 sps:$4 sm:$0xff]   ;;  %v2874_v52 = vld [vmem:[%s3978_s1 + $0x144] ss:$8 sps:$4 sm:$0xff]   ;;  %v2872_v53 = vld [vmem:[%s3978_s1 + $0x140] ss:$8 sps:$4 sm:$0xff]  }
  0x15   : > { %v435_v24 = vrot.slane %v413_v23, %v3099_v16  ;;  %v2877_v54 = vld [vmem:[%s3978_s1 + $0x154] ss:$8 sps:$4 sm:$0xff]   ;;  %v2875_v55 = vld [vmem:[%s3978_s1 + $0x150] ss:$8 sps:$4 sm:$0xff]   ;;  %v2880_v56 = vld [vmem:[%s3978_s1 + $0x164] ss:$8 sps:$4 sm:$0xff]  }
  0x16   : > { %v2878_v57 = vld [vmem:[%s3978_s1 + $0x160] ss:$8 sps:$4 sm:$0xff]   ;;  %v2883_v58 = vld [vmem:[%s3978_s1 + $0x174] ss:$8 sps:$4 sm:$0xff]   ;;  %v2881_v59 = vld [vmem:[%s3978_s1 + $0x170] ss:$8 sps:$4 sm:$0xff]  }
  0x17   : > { %1078 = vmatpush1.bf16.msra.mxu0 %v2826_v14  ;;  %1101 = vmatprep.mubr.bf16.mxu0 %v435_v24  ;;  %v445_v44 = vcombine.high %v435_v24, %v435_v24  ;;  %v2886_v60 = vld [vmem:[%s3978_s1 + $0x184] ss:$8 sps:$4 sm:$0xff]   ;;  %v2884_v61 = vld [vmem:[%s3978_s1 + $0x180] ss:$8 sps:$4 sm:$0xff]   ;;  %v2889_v62 = vld [vmem:[%s3978_s1 + $0x194] ss:$8 sps:$4 sm:$0xff]   ;;  %v3285_v24 = vrot.slane %v398_v12, %v3099_v16 }
  0x18   : > { %1079 = vmatprep.subr.bf16.mxu0 %v2827_v15  ;;  %v2887_v63 = vld [vmem:[%s3978_s1 + $0x190] ss:$8 sps:$4 sm:$0xff]   ;;  %v2892_v0 = vld [vmem:[%s3978_s1 + $0x1a4] ss:$8 sps:$4 sm:$0xff]   ;;  %v2890_v1 = vld [vmem:[%s3978_s1 + $0x1a0] ss:$8 sps:$4 sm:$0xff]  }
  0x19   : > { %v2895_v2 = vld [vmem:[%s3978_s1 + $0x1b4] ss:$8 sps:$4 sm:$0xff]   ;;  %v2893_v3 = vld [vmem:[%s3978_s1 + $0x1b0] ss:$8 sps:$4 sm:$0xff]   ;;  %v2898_v4 = vld [vmem:[%s3978_s1 + $0x1c4] ss:$8 sps:$4 sm:$0xff]  }
  0x1a   : > { %v2896_v5 = vld [vmem:[%s3978_s1 + $0x1c0] ss:$8 sps:$4 sm:$0xff]   ;;  %v2901_v6 = vld [vmem:[%s3978_s1 + $0x1d4] ss:$8 sps:$4 sm:$0xff]   ;;  %v2899_v11 = vld [vmem:[%s3978_s1 + $0x1d0] ss:$8 sps:$4 sm:$0xff]  }
  0x1b   : > { %1080 = vmatpush1.bf16.msra.mxu0 %v2829_v17  ;;  %v1327_v7 = vld [vmem:[%s3982_s5] sm:$0xff]  ;;  %v2947_v12 = vld [vmem:[%s3978_s1 + $0x2d0] ss:$8 sps:$4 sm:$0xff]   ;;  %v2650_v9 = vld [vmem:[%s3980_s3 + $0xa] sm:$0x3]  ;;  %vm2434_vm8 = vcmask 1042434  }
  0x1c   : > { %1081 = vmatprep.subr.bf16.mxu0 %v2830_v18  ;;  %v1331_v8 = vld [vmem:[%s3982_s5 + $0x20] sm:$0xff]  ;;  %vm2428_vm3 = vsmask.f32 256  ;;  %vm2431_vm5 = vsmask.f32 1280  ;;  %vm2438_vm12 = vcmask 1043459  }
  0x1d   : > { %v1335_v10 = vld [vmem:[%s3982_s5 + $0x40] sm:$0xff]  ;;  %v2655_v14 = vcombine.high %v1327_v7, %v1331_v8  ;;  %v2654_v15 = vcombine.low %v1327_v7, %v1331_v8  ;;  %v2941_v7 = vld [vmem:[%s3978_s1 + $0x2b0] ss:$8 sps:$4 sm:$0xff]   ;;  %vm2429_vm6 = vmand %vm2427_vm2, %vm2428_vm3  ;;  %vm2435_vm9 = vsmask.f32 2304 }
  0x1e   : > { %v1339_v17 = vld [vmem:[%s3982_s5 + $0x60] sm:$0xff]  ;;  %vm2432_vm7 = vmand %vm2430_vm4, %vm2431_vm5  ;;  %vm2439_vm13 = vsmask.f32 3328  ;;  %vm2446_vm4 = vcmask 1045509   ;;  %vm2447_vm5 = vsmask.f32 5376 }
  0x1f   : > { %1082 = vmatpush1.bf16.msra.mxu0 %v2832_v21  ;;  %v2904_v18 = vld [vmem:[%s3978_s1 + $0x1e4] ss:$8 sps:$4 sm:$0xff]   ;;  %v2663_v20 = vcombine.high %v1335_v10, %v1339_v17  ;;  %2137 = vmatprep.subr.bf16.mxu1 %v2655_v14  ;;  %v2902_v23 = vld [vmem:[%s3978_s1 + $0x1e0] ss:$8 sps:$4 sm:$0xff]   ;;  %vm2433_vm10 = vmor %vm2432_vm7, %vm2429_vm6 }
  0x20   : > { %1083 = vmatprep.subr.bf16.mxu0 %v2833_v22  ;;  %v1343_v21 = vld [vmem:[%s3982_s5 + $0x80] sm:$0xff]  ;;  %2138 = vmatpush1.bf16.msra.mxu1 %v2654_v15  ;;  %v2662_v22 = vcombine.low %v1335_v10, %v1339_v17  ;;  %v2955_v17 = vld [vmem:[%s3978_s1 + $0x2f4] ss:$8 sps:$4 sm:$0xff]   ;;  %vm2436_vm11 = vmand %vm2434_vm8, %vm2435_vm9  ;;  %vm2450_vm8 = vcmask 1046534   ;;  %vm2451_vm9 = vsmask.f32 6400 }
  0x21   : > { %v1347_v19 = vld [vmem:[%s3982_s5 + $0xa0] sm:$0xff]  ;;  %2139 = vmatprep.subr.bf16.mxu1 %v2663_v20  ;;  %vm3941_vm14 = vmor %vm2436_vm11, %vm2433_vm10 }
  0x22   : > { %v2946_v8 = vld [vmem:[%s3978_s1 + $0x2c4] ss:$8 sps:$4 sm:$0xff]   ;;  %v2944_v10 = vld [vmem:[%s3978_s1 + $0x2c0] ss:$8 sps:$4 sm:$0xff]   ;;  %vm3945_vm15 = vmand %vm2438_vm12, %vm2439_vm13  ;;  %vm2454_vm12 = vcmask 523271  }
  0x23   : > { %1084 = vmatpush1.bf16.msra.mxu0 %v2835_v25  ;;  %v2671_v25 = vcombine.high %v1343_v21, %v1347_v19  ;;  %v2952_v14 = vld [vmem:[%s3978_s1 + $0x2e4] ss:$8 sps:$4 sm:$0xff]   ;;  %v2950_v15 = vld [vmem:[%s3978_s1 + $0x2e0] ss:$8 sps:$4 sm:$0xff]   ;;  %vm2441_vm2 = vmor %vm3945_vm15, %vm3941_vm14  ;;  %vm2455_vm13 = vsmask.f32 7424 }
  0x24   : > { %1085 = vmatprep.subr.bf16.mxu0 %v2836_v26  ;;  %v2907_v26 = vld [vmem:[%s3978_s1 + $0x1f4] ss:$8 sps:$4 sm:$0xff]   ;;  %2140 = vmatpush1.bf16.msra.mxu1 %v2662_v22  ;;  %v2959_v20 = vld [vmem:[%s3978_s1 + $0x304] ss:$8 sps:$4 sm:$0xff]   ;;  %v2957_v22 = vld [vmem:[%s3978_s1 + $0x300] ss:$8 sps:$4 sm:$0xff]  }
  0x25   : > { %2141 = vmatprep.subr.bf16.mxu1 %v2671_v25  ;;  %v2965_v25 = vld [vmem:[%s3978_s1 + $0x324] ss:$8 sps:$4 sm:$0xff]   ;;  %vm2448_vm7 = vmand %vm2446_vm4, %vm2447_vm5 }
  0x26   : > { %vm2452_vm11 = vmand %vm2450_vm8, %vm2451_vm9 }
  0x27   : > { %1086 = vmatpush1.bf16.msra.mxu0 %v2838_v27  ;;  %v1351_v27 = vld [vmem:[%s3982_s5 + $0xc0] sm:$0xff]  ;;  %vm2456_vm15 = vmand %vm2454_vm12, %vm2455_vm13 }
  0x28   : > { %1087 = vmatprep.subr.bf16.mxu0 %v2839_v28  ;;  %v1355_v28 = vld [vmem:[%s3982_s5 + $0xe0] sm:$0xff] }
  0x2b   : > { %1088 = vmatpush1.bf16.msra.mxu0 %v2841_v29  ;;  %v2670_v29 = vcombine.low %v1343_v21, %v1347_v19  ;;  %v428_v21 = vrot.slane %v3285_v24, %v3099_v16 }
  0x2c   : > { %1089 = vmatprep.subr.bf16.mxu0 %v2842_v30  ;;  %v2905_v30 = vld [vmem:[%s3978_s1 + $0x1f0] ss:$8 sps:$4 sm:$0xff]  }
  0x2d   : > { %2142 = vmatpush1.bf16.msra.mxu1 %v2670_v29  ;;  %v2971_v29 = vld [vmem:[%s3978_s1 + $0x344] ss:$8 sps:$4 sm:$0xff]  }
  0x2f   : > { %1090 = vmatpush1.bf16.msra.mxu0 %v2844_v31  ;;  %v414_v31 = vcombine.high %v3285_v24, %v3285_v24  ;;  %v2960_v24 = vld [vmem:[%s3978_s1 + $0x310] ss:$8 sps:$4 sm:$0xff]  }
  0x30   : > { %1091 = vmatprep.subr.bf16.mxu0 %v2845_v32  ;;  %v2679_v32 = vcombine.high %v1351_v27, %v1355_v28 }
  0x32   : > { %2143 = vmatprep.subr.bf16.mxu1 %v2679_v32  ;;  %v2972_v32 = vld [vmem:[%s3978_s1 + $0x350] ss:$8 sps:$4 sm:$0xff]  }
  0x33   : > { %1092 = vmatpush1.bf16.msra.mxu0 %v2847_v33  ;;  %v2910_v33 = vld [vmem:[%s3978_s1 + $0x204] ss:$8 sps:$4 sm:$0xff]  }
  0x34   : > { %1093 = vmatprep.subr.bf16.mxu0 %v2848_v34  ;;  %v1359_v34 = vld [vmem:[%s3982_s5 + $0x100] sm:$0xff] }
  0x37   : > { %1094 = vmatpush1.bf16.msra.mxu0 %v2850_v35  ;;  %v1363_v35 = vld [vmem:[%s3982_s5 + $0x120] sm:$0xff] }
  0x38   : > { %1095 = vmatprep.subr.bf16.mxu0 %v2851_v36  ;;  %v443_v36 = vcombine.high %v3174_v43, %v3174_v43 }
  0x3b   : > { %1096 = vmatpush1.bf16.msra.mxu0 %v2853_v37  ;;  %v2678_v37 = vcombine.low %v1351_v27, %v1355_v28  ;;  %v2968_v27 = vld [vmem:[%s3978_s1 + $0x334] ss:$8 sps:$4 sm:$0xff]   ;;  %v2966_v28 = vld [vmem:[%s3978_s1 + $0x330] ss:$8 sps:$4 sm:$0xff]  }
  0x3c   : > { %1097 = vmatprep.subr.bf16.mxu0 %v2854_v38  ;;  %v2908_v38 = vld [vmem:[%s3978_s1 + $0x200] ss:$8 sps:$4 sm:$0xff]  }
  0x3d   : > { %2144 = vmatpush1.bf16.msra.mxu1 %v2678_v37  ;;  %v2983_v37 = vld [vmem:[%s3978_s1 + $0x384] ss:$8 sps:$4 sm:$0xff]  }
  0x3f   : > { %1098 = vmatpush1.bf16.msra.mxu0 %v2856_v39  ;;  %v3316_v39 = vrot.slane %v414_v31, %v3099_v16  ;;  %v2974_v31 = vld [vmem:[%s3978_s1 + $0x354] ss:$8 sps:$4 sm:$0xff]  }
  0x40   : > { %1099 = vmatprep.subr.bf16.mxu0 %v2857_v40  ;;  %v2913_v40 = vld [vmem:[%s3978_s1 + $0x214] ss:$8 sps:$4 sm:$0xff]  }
  0x41   : > { %v446_v19 = vcombine.high %v3316_v39, %v3316_v39 }
  0x43   : > { %1100 = vmatpush1.bf16.msra.mxu0 %v2859_v41  ;;  %v2687_v41 = vcombine.high %v1359_v34, %v1363_v35 }
  0x44   : > { %1110 = vmatprep.subr.bf16.mxu0 %v2862_v42  ;;  %v1367_v42 = vld [vmem:[%s3982_s5 + $0x140] sm:$0xff] }
  0x45   : > { %2145 = vmatprep.subr.bf16.mxu1 %v2687_v41  ;;  %v2989_v41 = vld [vmem:[%s3978_s1 + $0x3a4] ss:$8 sps:$4 sm:$0xff]  }
  0x46   : > { %1102 = vmatmul.mubr.bf16.vlgmr.msra.gmra.mrb[0].mxu0 %v3174_v43  ;;  %v1371_v43 = vld [vmem:[%s3982_s5 + $0x160] sm:$0xff] }
  0x47   : > { %1111 = vmatpush1.bf16.msra.mxu0 %v2860_v45  ;;  %1142 = vmatprep.mubr.bf16.mxu0 %v445_v44  ;;  %v2686_v44 = vcombine.low %v1359_v34, %v1363_v35  ;;  %v2911_v45 = vld [vmem:[%s3978_s1 + $0x210] ss:$8 sps:$4 sm:$0xff]   ;;  %v2975_v34 = vld [vmem:[%s3978_s1 + $0x360] ss:$8 sps:$4 sm:$0xff]   ;;  %v2980_v35 = vld [vmem:[%s3978_s1 + $0x374] ss:$8 sps:$4 sm:$0xff]  }
  0x48   : > { %1112 = vmatprep.subr.bf16.mxu0 %v2865_v46  ;;  %v2695_v46 = vcombine.high %v1367_v42, %v1371_v43 }
  0x49   : > { %2146 = vmatpush1.bf16.msra.mxu1 %v2686_v44  ;;  %v2990_v44 = vld [vmem:[%s3978_s1 + $0x3b0] ss:$8 sps:$4 sm:$0xff]  }
  0x4a   : > { %2147 = vmatprep.subr.bf16.mxu1 %v2695_v46  ;;  %v1383_v46 = vld [vmem:[%s3982_s5 + $0x1c0] sm:$0xff] }
  0x4b   : > { %1113 = vmatpush1.bf16.msra.mxu0 %v2863_v47  ;;  %v2916_v47 = vld [vmem:[%s3978_s1 + $0x224] ss:$8 sps:$4 sm:$0xff]  }
  0x4c   : > { %1114 = vmatprep.subr.bf16.mxu0 %v2868_v48  ;;  %v1375_v48 = vld [vmem:[%s3982_s5 + $0x180] sm:$0xff] }
  0x4f   : > { %1115 = vmatpush1.bf16.msra.mxu0 %v2866_v49  ;;  %v1379_v49 = vld [vmem:[%s3982_s5 + $0x1a0] sm:$0xff] }
  0x50   : > { %1116 = vmatprep.subr.bf16.mxu0 %v2871_v50  ;;  %v2694_v50 = vcombine.low %v1367_v42, %v1371_v43  ;;  %v2987_v42 = vld [vmem:[%s3978_s1 + $0x3a0] ss:$8 sps:$4 sm:$0xff]   ;;  %v2992_v43 = vld [vmem:[%s3978_s1 + $0x3b4] ss:$8 sps:$4 sm:$0xff]  }
  0x52   : > { %2148 = vmatpush1.bf16.msra.mxu1 %v2694_v50  ;;  %v1391_v50 = vld [vmem:[%s3982_s5 + $0x200] sm:$0xff] }
  0x53   : > { %1117 = vmatpush1.bf16.msra.mxu0 %v2869_v51  ;;  %v2914_v51 = vld [vmem:[%s3978_s1 + $0x220] ss:$8 sps:$4 sm:$0xff]  }
  0x54   : > { %1118 = vmatprep.subr.bf16.mxu0 %v2874_v52  ;;  %v2703_v52 = vcombine.high %v1375_v48, %v1379_v49 }
  0x56   : > { %2149 = vmatprep.subr.bf16.mxu1 %v2703_v52 }
  0x57   : > { %1119 = vmatpush1.bf16.msra.mxu0 %v2872_v53  ;;  %v2919_v53 = vld [vmem:[%s3978_s1 + $0x234] ss:$8 sps:$4 sm:$0xff]  }
  0x58   : > { %1120 = vmatprep.subr.bf16.mxu0 %v2877_v54  ;;  %v2702_v54 = vcombine.low %v1375_v48, %v1379_v49 }
  0x5a   : > { %2150 = vmatpush1.bf16.msra.mxu1 %v2702_v54 }
  0x5b   : > { %1121 = vmatpush1.bf16.msra.mxu0 %v2875_v55  ;;  %v2917_v55 = vld [vmem:[%s3978_s1 + $0x230] ss:$8 sps:$4 sm:$0xff]  }
  0x5c   : > { %1122 = vmatprep.subr.bf16.mxu0 %v2880_v56  ;;  %v2922_v56 = vld [vmem:[%s3978_s1 + $0x244] ss:$8 sps:$4 sm:$0xff]  }
  0x5f   : > { %1123 = vmatpush1.bf16.msra.mxu0 %v2878_v57  ;;  %v2920_v57 = vld [vmem:[%s3978_s1 + $0x240] ss:$8 sps:$4 sm:$0xff]  }
  0x60   : > { %1124 = vmatprep.subr.bf16.mxu0 %v2883_v58  ;;  %v2925_v58 = vld [vmem:[%s3978_s1 + $0x254] ss:$8 sps:$4 sm:$0xff]  }
  0x63   : > { %1125 = vmatpush1.bf16.msra.mxu0 %v2881_v59  ;;  %v2923_v59 = vld [vmem:[%s3978_s1 + $0x250] ss:$8 sps:$4 sm:$0xff]  }
  0x64   : > { %1126 = vmatprep.subr.bf16.mxu0 %v2886_v60  ;;  %v2928_v60 = vld [vmem:[%s3978_s1 + $0x264] ss:$8 sps:$4 sm:$0xff]  }
  0x67   : > { %1127 = vmatpush1.bf16.msra.mxu0 %v2884_v61  ;;  %v2926_v61 = vld [vmem:[%s3978_s1 + $0x260] ss:$8 sps:$4 sm:$0xff]  }
  0x68   : > { %1128 = vmatprep.subr.bf16.mxu0 %v2889_v62  ;;  %v2931_v62 = vld [vmem:[%s3978_s1 + $0x274] ss:$8 sps:$4 sm:$0xff]  }
  0x6b   : > { %1129 = vmatpush1.bf16.msra.mxu0 %v2887_v63  ;;  %v2929_v63 = vld [vmem:[%s3978_s1 + $0x270] ss:$8 sps:$4 sm:$0xff]  }
  0x6c   : > { %1130 = vmatprep.subr.bf16.mxu0 %v2892_v0  ;;  %v2934_v0 = vld [vmem:[%s3978_s1 + $0x284] ss:$8 sps:$4 sm:$0xff]  }
  0x6f   : > { %1131 = vmatpush1.bf16.msra.mxu0 %v2890_v1  ;;  %v2932_v1 = vld [vmem:[%s3978_s1 + $0x280] ss:$8 sps:$4 sm:$0xff]  }
  0x70   : > { %1132 = vmatprep.subr.bf16.mxu0 %v2895_v2  ;;  %v2937_v2 = vld [vmem:[%s3978_s1 + $0x294] ss:$8 sps:$4 sm:$0xff]  }
  0x73   : > { %1133 = vmatpush1.bf16.msra.mxu0 %v2893_v3  ;;  %v2935_v3 = vld [vmem:[%s3978_s1 + $0x290] ss:$8 sps:$4 sm:$0xff]  }
  0x74   : > { %1134 = vmatprep.subr.bf16.mxu0 %v2898_v4  ;;  %v2940_v4 = vld [vmem:[%s3978_s1 + $0x2a4] ss:$8 sps:$4 sm:$0xff]  }
  0x77   : > { %1135 = vmatpush1.bf16.msra.mxu0 %v2896_v5  ;;  %v2938_v5 = vld [vmem:[%s3978_s1 + $0x2a0] ss:$8 sps:$4 sm:$0xff]  }
  0x78   : > { %1136 = vmatprep.subr.bf16.mxu0 %v2901_v6  ;;  %v2943_v6 = vld [vmem:[%s3978_s1 + $0x2b4] ss:$8 sps:$4 sm:$0xff]  }
  0x7b   : > { %1137 = vmatpush1.bf16.msra.mxu0 %v2899_v11  ;;  %v2949_v11 = vld [vmem:[%s3978_s1 + $0x2d4] ss:$8 sps:$4 sm:$0xff]  }
  0x7c   : > { %1138 = vmatprep.subr.bf16.mxu0 %v2904_v18  ;;  %v2953_v18 = vld [vmem:[%s3978_s1 + $0x2f0] ss:$8 sps:$4 sm:$0xff]  }
  0x7f   : > { %1139 = vmatpush1.bf16.msra.mxu0 %v2902_v23  ;;  %v2962_v23 = vld [vmem:[%s3978_s1 + $0x314] ss:$8 sps:$4 sm:$0xff]  }
  0x80   : > { %1140 = vmatprep.subr.bf16.mxu0 %v2907_v26  ;;  %v2963_v26 = vld [vmem:[%s3978_s1 + $0x320] ss:$8 sps:$4 sm:$0xff]  }
  0x83   : > { %1141 = vmatpush1.bf16.msra.mxu0 %v2905_v30  ;;  %v2969_v30 = vld [vmem:[%s3978_s1 + $0x340] ss:$8 sps:$4 sm:$0xff]  }
  0x84   : > { %1151 = vmatprep.subr.bf16.mxu0 %v2910_v33  ;;  %v2977_v33 = vld [vmem:[%s3978_s1 + $0x364] ss:$8 sps:$4 sm:$0xff]  }
  0x86   : > { %1143 = vmatmul.mubr.bf16.vlgmr.msra.gmra.mrb[0].mxu0 %v443_v36  ;;  %v2978_v36 = vld [vmem:[%s3978_s1 + $0x370] ss:$8 sps:$4 sm:$0xff]  }
  0x87   : > { %1152 = vmatpush1.bf16.msra.mxu0 %v2908_v38  ;;  %1183 = vmatprep.mubr.bf16.mxu0 %v3316_v39  ;;  %v2981_v38 = vld [vmem:[%s3978_s1 + $0x380] ss:$8 sps:$4 sm:$0xff]   ;;  %v2986_v39 = vld [vmem:[%s3978_s1 + $0x394] ss:$8 sps:$4 sm:$0xff]  }
  0x88   : > { %1153 = vmatprep.subr.bf16.mxu0 %v2913_v40  ;;  %v2984_v40 = vld [vmem:[%s3978_s1 + $0x390] ss:$8 sps:$4 sm:$0xff]  }
  0x8b   : > { %1154 = vmatpush1.bf16.msra.mxu0 %v2911_v45  ;;  %v444_v45 = vcombine.high %v428_v21, %v428_v21 }
  0x8c   : > { %1155 = vmatprep.subr.bf16.mxu0 %v2916_v47  ;;  %v1387_v47 = vld [vmem:[%s3982_s5 + $0x1e0] sm:$0xff] }
  0x8d   : > { %v2711_v48 = vcombine.high %v1383_v46, %v1387_v47  ;;  %v2710_v49 = vcombine.low %v1383_v46, %v1387_v47  ;;  %v2647_v47 = vld [vmem:[%s3980_s3 + $0x4] sm:$0x3] }
  0x8f   : > { %1156 = vmatpush1.bf16.msra.mxu0 %v2914_v51  ;;  %2151 = vmatprep.subr.bf16.mxu1 %v2711_v48  ;;  %v1395_v51 = vld [vmem:[%s3982_s5 + $0x220] sm:$0xff] }
  0x90   : > { %1157 = vmatprep.subr.bf16.mxu0 %v2919_v53  ;;  %2152 = vmatpush1.bf16.msra.mxu1 %v2710_v49  ;;  %v2719_v52 = vcombine.high %v1391_v50, %v1395_v51  ;;  %v3003_v53 = vmov 0.0   ;;  %v2718_v54 = vcombine.low %v1391_v50, %v1395_v51 }
  0x91   : > { %1235 = vst [vmem:[#allocation2] sm:$0x77] %v3003_v53  ;;  %1236 = vst [vmem:[#allocation2 + $0x8] sm:$0x77] %v3003_v53 }
  0x92   : > { %1237 = vst [vmem:[#allocation2 + $0x10] sm:$0x77] %v3003_v53  ;;  %2153 = vmatprep.subr.bf16.mxu1 %v2719_v52  ;;  %v2648_v53 = vld [vmem:[%s3980_s3 + $0x6] sm:$0x3] }
  0x93   : > { %1158 = vmatpush1.bf16.msra.mxu0 %v2917_v55  ;;  %v1399_v55 = vld [vmem:[%s3982_s5 + $0x240] sm:$0xff] }
  0x94   : > { %1159 = vmatprep.subr.bf16.mxu0 %v2922_v56  ;;  %2154 = vmatpush1.bf16.msra.mxu1 %v2718_v54  ;;  %v1403_v56 = vld [vmem:[%s3982_s5 + $0x260] sm:$0xff] }
  0x97   : > { %1160 = vmatpush1.bf16.msra.mxu0 %v2920_v57  ;;  %v2727_v57 = vcombine.high %v1399_v55, %v1403_v56 }
  0x98   : > { %1161 = vmatprep.subr.bf16.mxu0 %v2925_v58  ;;  %v2726_v58 = vcombine.low %v1399_v55, %v1403_v56  ;;  %v1273_v46 = vld [vmem:[#allocation2 + $0x2] ss:$4 sm:$0x3]  ;;  %v1278_v52 = vld [vmem:[#allocation2 + $0x8] ss:$4 sm:$0x3] }
  0x99   : > { %2155 = vmatprep.subr.bf16.mxu1 %v2727_v57  ;;  %v1276_v51 = vmul.f32 %v2647_v47, %v1273_v46  ;;  %v1281_v55 = vmul.f32 %v2648_v53, %v1278_v52  ;;  %v2649_v56 = vld [vmem:[%s3980_s3 + $0x8] sm:$0x3]  ;;  %v1289_v57 = vld [vmem:[#allocation2 + $0xa] ss:$4 sm:$0x3] }
  0x9a   : > { %2156 = vmatpush1.bf16.msra.mxu1 %v2726_v58  ;;  %v1384_v46 = vld [vmem:[%s3982_s5 + $0x1c8] sm:$0xff] }
  0x9b   : > { %1162 = vmatpush1.bf16.msra.mxu0 %v2923_v59  ;;  %v1407_v59 = vld [vmem:[%s3982_s5 + $0x280] sm:$0xff]  ;;  %v1388_v47 = vld [vmem:[%s3982_s5 + $0x1e8] sm:$0xff] }
  0x9c   : > { %1163 = vmatprep.subr.bf16.mxu0 %v2928_v60  ;;  %v1411_v60 = vld [vmem:[%s3982_s5 + $0x2a0] sm:$0xff]  ;;  %v2712_v52 = vcombine.low %v1384_v46, %v1388_v47 }
  0x9f   : > { %1164 = vmatpush1.bf16.msra.mxu0 %v2926_v61  ;;  %v2735_v61 = vcombine.high %v1407_v59, %v1411_v60 }
  0xa0   : > { %1165 = vmatprep.subr.bf16.mxu0 %v2931_v62  ;;  %v2734_v62 = vcombine.low %v1407_v59, %v1411_v60  ;;  %v1295_v59 = vld [vmem:[#allocation2 + $0x10] ss:$4 sm:$0x3] }
  0xa1   : > { %2157 = vmatprep.subr.bf16.mxu1 %v2735_v61  ;;  %v2651_v61 = vld [vmem:[%s3980_s3 + $0xc] sm:$0x3] }
  0xa2   : > { %2158 = vmatpush1.bf16.msra.mxu1 %v2734_v62 }
  0xa3   : > { %1166 = vmatpush1.bf16.msra.mxu0 %v2929_v63  ;;  %v1415_v63 = vld [vmem:[%s3982_s5 + $0x2c0] sm:$0xff] }
  0xa4   : > { %1167 = vmatprep.subr.bf16.mxu0 %v2934_v0  ;;  %v1419_v0 = vld [vmem:[%s3982_s5 + $0x2e0] sm:$0xff] }
  0xa7   : > { %1168 = vmatpush1.bf16.msra.mxu0 %v2932_v1  ;;  %v2743_v1 = vcombine.high %v1415_v63, %v1419_v0 }
  0xa8   : > { %1169 = vmatprep.subr.bf16.mxu0 %v2937_v2  ;;  %v1423_v2 = vld [vmem:[%s3982_s5 + $0x300] sm:$0xff] }
  0xa9   : > { %2159 = vmatprep.subr.bf16.mxu1 %v2743_v1  ;;  %v2652_v1 = vld [vmem:[%s3980_s3 + $0xe] sm:$0x3] }
  0xab   : > { %1170 = vmatpush1.bf16.msra.mxu0 %v2935_v3  ;;  %v1427_v3 = vld [vmem:[%s3982_s5 + $0x320] sm:$0xff] }
  0xac   : > { %1171 = vmatprep.subr.bf16.mxu0 %v2940_v4  ;;  %v2742_v4 = vcombine.low %v1415_v63, %v1419_v0  ;;  %v1292_v63 = vmul.f32 %v2650_v9, %v1289_v57  ;;  %v1301_v0 = vld [vmem:[#allocation2 + $0x11] ss:$4 sm:$0x3]  ;;  %v1408_v9 = vld [vmem:[%s3982_s5 + $0x288] sm:$0xff] }
  0xae   : > { %2160 = vmatpush1.bf16.msra.mxu1 %v2742_v4  ;;  %v1307_v4 = vld [vmem:[#allocation2 + $0x12] ss:$4 sm:$0x3] }
  0xaf   : > { %1172 = vmatpush1.bf16.msra.mxu0 %v2938_v5  ;;  %v2751_v5 = vcombine.high %v1423_v2, %v1427_v3 }
  0xb0   : > { %1173 = vmatprep.subr.bf16.mxu0 %v2943_v6  ;;  %v1431_v6 = vld [vmem:[%s3982_s5 + $0x340] sm:$0xff] }
  0xb1   : > { %2161 = vmatprep.subr.bf16.mxu1 %v2751_v5  ;;  %v2653_v5 = vld [vmem:[%s3980_s3 + $0x10] sm:$0x3] }
  0xb3   : > { %1174 = vmatpush1.bf16.msra.mxu0 %v2941_v7  ;;  %v1435_v7 = vld [vmem:[%s3982_s5 + $0x360] sm:$0xff] }
  0xb4   : > { %1175 = vmatprep.subr.bf16.mxu0 %v2946_v8  ;;  %v2750_v8 = vcombine.low %v1423_v2, %v1427_v3  ;;  %v1298_v3 = vmul.f32 %v2651_v61, %v1295_v59  ;;  %v1416_v61 = vld [vmem:[%s3982_s5 + $0x2c8] sm:$0xff] }
  0xb6   : > { %2162 = vmatpush1.bf16.msra.mxu1 %v2750_v8 }
  0xb7   : > { %1176 = vmatpush1.bf16.msra.mxu0 %v2944_v10  ;;  %v2759_v10 = vcombine.high %v1431_v6, %v1435_v7 }
  0xb8   : > { %1177 = vmatprep.subr.bf16.mxu0 %v2949_v11  ;;  %v1439_v11 = vld [vmem:[%s3982_s5 + $0x380] sm:$0xff] }
  0xb9   : > { %2163 = vmatprep.subr.bf16.mxu1 %v2759_v10  ;;  %v1310_v10 = vmul.f32 %v2653_v5, %v1307_v4  ;;  %v1432_v5 = vld [vmem:[%s3982_s5 + $0x348] sm:$0xff] }
  0xbb   : > { %1178 = vmatpush1.bf16.msra.mxu0 %v2947_v12  ;;  %v1443_v12 = vld [vmem:[%s3982_s5 + $0x3a0] sm:$0xff] }
  0xbc   : > { %1179 = vmatprep.subr.bf16.mxu0 %v2952_v14  ;;  %v2758_v14 = vcombine.low %v1431_v6, %v1435_v7  ;;  %v1304_v7 = vmul.f32 %v2652_v1, %v1301_v0  ;;  %v1424_v1 = vld [vmem:[%s3982_s5 + $0x308] sm:$0xff] }
  0xbe   : > { %2164 = vmatpush1.bf16.msra.mxu1 %v2758_v14 }
  0xbf   : > { %1180 = vmatpush1.bf16.msra.mxu0 %v2950_v15  ;;  %v2767_v15 = vcombine.high %v1439_v11, %v1443_v12 }
  0xc0   : > { %1181 = vmatprep.subr.bf16.mxu0 %v2955_v17  ;;  %v1447_v17 = vld [vmem:[%s3982_s5 + $0x3c0] sm:$0xff] }
  0xc1   : > { %2165 = vmatprep.subr.bf16.mxu1 %v2767_v15 }
  0xc3   : > { %1182 = vmatpush1.bf16.msra.mxu0 %v2953_v18  ;;  %v1451_v18 = vld [vmem:[%s3982_s5 + $0x3e0] sm:$0xff] }
  0xc4   : > { %1192 = vmatprep.subr.bf16.mxu0 %v2959_v20  ;;  %v2766_v20 = vcombine.low %v1439_v11, %v1443_v12  ;;  %v1312_v12 = vld [vmem:[%s3981_s4] sm:$0x3] }
  0xc6   : > { %1184 = vmatmul.mubr.bf16.vlgmr.msra.gmra.mrb[0].mxu0 %v428_v21  ;;  %v2775_v21 = vcombine.high %v1447_v17, %v1451_v18  ;;  %2166 = vmatpush1.bf16.msra.mxu1 %v2766_v20  ;;  %v1336_v20 = vld [vmem:[%s3982_s5 + $0x48] sm:$0xff] }
  0xc7   : > { %1193 = vmatpush1.bf16.msra.mxu0 %v2957_v22  ;;  %2645 = vmatprep.mubr.msk.bf16.mxu0 %vm1065_vm0, %v446_v19  ;;  %v2774_v19 = vcombine.low %v1447_v17, %v1451_v18  ;;  %v3554_v22 = vld [vmem:[%s3982_s5 + $0x8] sm:$0xff]  ;;  %vm2442_vm0 = vcmask 1044484  }
  0xc8   : > { %1194 = vmatprep.subr.bf16.mxu0 %v2962_v23  ;;  %2167 = vmatprep.subr.bf16.mxu1 %v2775_v21  ;;  %v3559_v23 = vld [vmem:[%s3982_s5 + $0x28] sm:$0xff] }
  0xc9   : > { %v1340_v21 = vld [vmem:[%s3982_s5 + $0x68] sm:$0xff] }
  0xca   : > { %2168 = vmatpush1.bf16.msra.mxu1 %v2774_v19 }
  0xcb   : > { %1195 = vmatpush1.bf16.msra.mxu0 %v2960_v24  ;;  %v2657_v24 = vcombine.high %v3554_v22, %v3559_v23 }
  0xcc   : > { %1196 = vmatprep.subr.bf16.mxu0 %v2965_v25  ;;  %v2656_v25 = vcombine.low %v3554_v22, %v3559_v23  ;;  %v1360_v22 = vld [vmem:[%s3982_s5 + $0x108] sm:$0xff] }
  0xcd   : > { %2178 = vmatprep.subr.bf16.mxu1 %v2657_v24  ;;  %v1364_v23 = vld [vmem:[%s3982_s5 + $0x128] sm:$0xff] }
  0xcf   : > { %1197 = vmatpush1.bf16.msra.mxu0 %v2963_v26  ;;  %v3566_v26 = vsub.s32 0, %v3082_v13 }
  0xd0   : > { %1198 = vmatprep.subr.bf16.mxu0 %v2968_v27  ;;  %v396_v27 = vld [vmem:[%s3979_s2] sm:$0x3] }
  0xd3   : > { %1199 = vmatpush1.bf16.msra.mxu0 %v2966_v28  ;;  %v3572_v28 = vsub.s32 1, %v3082_v13 }
  0xd4   : > { %1200 = vmatprep.subr.bf16.mxu0 %v2971_v29  ;;  %v1058_v29 = vrot.slane %v396_v27, %v3566_v26 }
  0xd7   : > { %1201 = vmatpush1.bf16.msra.mxu0 %v2969_v30  ;;  %v1062_v30 = vrot.slane %v396_v27, %v3572_v28  ;;  %v2665_v27 = vcombine.high %v1336_v20, %v1340_v21 }
  0xd8   : > { %1202 = vmatprep.subr.bf16.mxu0 %v2974_v31 }
  0xdb   : > { %1203 = vmatpush1.bf16.msra.mxu0 %v2972_v32 }
  0xdc   : > { %1204 = vmatprep.subr.bf16.mxu0 %v2977_v33 }
  0xdf   : > { %1205 = vmatpush1.bf16.msra.mxu0 %v2975_v34  ;;  %v1263_v34 = vld [vmem:[#allocation2] ss:$4 sm:$0x3] }
  0xe0   : > { %1206 = vmatprep.subr.bf16.mxu0 %v2980_v35 }
  0xe3   : > { %1207 = vmatpush1.bf16.msra.mxu0 %v2978_v36 }
  0xe4   : > { %1208 = vmatprep.subr.bf16.mxu0 %v2983_v37  ;;  %v1267_v37 = vld [vmem:[#allocation2 + $0x1] ss:$4 sm:$0x3] }
  0xe7   : > { %1209 = vmatpush1.bf16.msra.mxu0 %v2981_v38 }
  0xe8   : > { %1210 = vmatprep.subr.bf16.mxu0 %v2986_v39 }
  0xeb   : > { %1211 = vmatpush1.bf16.msra.mxu0 %v2984_v40  ;;  %v1264_v40 = vld [vmem:[%s3980_s3] sm:$0x3] }
  0xec   : > { %1212 = vmatprep.subr.bf16.mxu0 %v2989_v41  ;;  %v2646_v41 = vld [vmem:[%s3980_s3 + $0x2] sm:$0x3] }
  0xef   : > { %1213 = vmatpush1.bf16.msra.mxu0 %v2987_v42 }
  0xf0   : > { %1214 = vmatprep.subr.bf16.mxu0 %v2992_v43 }
  0xf3   : > { %1215 = vmatpush1.bf16.msra.mxu0 %v2990_v44  ;;  %v1265_v44 = vmul.f32 %v1264_v40, %v1263_v34  ;;  %v1356_v34 = vld [vmem:[%s3982_s5 + $0xe8] sm:$0xff]  ;;  %v2688_v40 = vcombine.low %v1360_v22, %v1364_v23 }
  0xf6   : > { %1225 = vmatmul.mubr.bf16.vlgmr.msra.gmra.mrb[0].mxu0 %v444_v45  ;;  %v1270_v45 = vmul.f32 %v2646_v41, %v1267_v37  ;;  %v2689_v37 = vcombine.high %v1360_v22, %v1364_v23 }
  0xf8   : > { %v1271_v50 = vadd.f32 %v1270_v45, %v1265_v44 }
  0xfa   : > { %v1277_v54 = vadd.f32 %v1276_v51, %v1271_v50  ;;  %v1392_v50 = vld [vmem:[%s3982_s5 + $0x208] sm:$0xff] }
  0xfb   : > { %v1396_v51 = vld [vmem:[%s3982_s5 + $0x228] sm:$0xff] }
  0xfc   : > { %v1282_v58 = vadd.f32 %v1281_v55, %v1277_v54  ;;  %v2721_v53 = vcombine.high %v1392_v50, %v1396_v51  ;;  %v1400_v54 = vld [vmem:[%s3982_s5 + $0x248] sm:$0xff] }
  0xfd   : > { %v1404_v55 = vld [vmem:[%s3982_s5 + $0x268] sm:$0xff] }
  0xfe   : > { %v2729_v57 = vcombine.high %v1400_v54, %v1404_v55  ;;  %v2728_v59 = vcombine.low %v1400_v54, %v1404_v55 }
 0x1c9   : > { %v1226_v31 = vpop.f32.mrb[0].mxu0 }
 0x1ca   : > { %v2788_v32 = vadd.f32 %v1226_v31, %v1058_v29  ;;  %v1228_v33 = vpop.f32.mrb[1].mxu0  ;;  %v1344_v29 = vld [vmem:[%s3982_s5 + $0x88] sm:$0xff]  ;;  %v2664_v31 = vcombine.low %v1336_v20, %v1340_v21  ;;  %v1329_v21 = vld [vmem:[%s3982_s5 + $0x10] sm:$0xff] }
 0x1cb   : > { %v2789_v35 = vadd.f32 %v1228_v33, %v1062_v30  ;;  %v1230_v36 = vpop.f32.mrb[2].mxu0  ;;  %v1348_v30 = vld [vmem:[%s3982_s5 + $0xa8] sm:$0xff] }
 0x1cc   : > { %v1233_v38 = vmax.f32 %v2788_v32, 0.0  ;;  %v1231_v39 = vpop.f32.mrb[3].mxu0  ;;  %v2673_v32 = vcombine.high %v1344_v29, %v1348_v30  ;;  %v1352_v33 = vld [vmem:[%s3982_s5 + $0xc8] sm:$0xff] }
 0x1cd   : > { %v1234_v42 = vmax.f32 %v2789_v35, 0.0  ;;  %v2672_v35 = vcombine.low %v1344_v29, %v1348_v30  ;;  %v2681_v36 = vcombine.high %v1352_v33, %v1356_v34  ;;  %v1372_v39 = vld [vmem:[%s3982_s5 + $0x168] sm:$0xff] }
 0x1cf   : > { %v1240_v43 = vcombine.low %v1233_v38, %v1234_v42  ;;  %v1368_v38 = vld [vmem:[%s3982_s5 + $0x148] sm:$0xff] }
 0x1d0   : > { %v2697_v41 = vcombine.high %v1368_v38, %v1372_v39  ;;  %v1376_v42 = vld [vmem:[%s3982_s5 + $0x188] sm:$0xff]  ;;  %v2696_v44 = vcombine.low %v1368_v38, %v1372_v39 }
 0x1d1   : > { %v1247_v48 = vrot.slane %v1240_v43, %v3099_v16  ;;  %v1380_v43 = vld [vmem:[%s3982_s5 + $0x1a8] sm:$0xff] }
 0x1d2   : > { %v2705_v45 = vcombine.high %v1376_v42, %v1380_v43 }
 0x1d3   : > { %v1254_v49 = vrot.slane %v1247_v48, %v3099_v16  ;;  %v2704_v48 = vcombine.low %v1376_v42, %v1380_v43 }
 0x1d5   : > { %1262 = vst.msk [vmem:[#allocation2 + $0x9] ss:$4 sm:$0x3] %vm1259_vm1, %v1254_v49  ;;  %v2713_v49 = vcombine.high %v1384_v46, %v1388_v47  ;;  %vm2443_vm1 = vsmask.f32 4352 }
 0x1d6   : > { %vm2444_vm3 = vmand %vm2442_vm0, %vm2443_vm1 }
 0x1d7   : > { %vm3958_vm6 = vmor %vm2444_vm3, %vm2441_vm2 }
 0x1d8   : > { %vm2449_vm10 = vmor %vm2448_vm7, %vm3958_vm6 }
 0x1d9   : > { %vm2453_vm14 = vmor %vm2452_vm11, %vm2449_vm10 }
 0x1da   : > { %vm2457_vm0 = vmor %vm2456_vm15, %vm2453_vm14 }
 0x1dc   : > { %v1283_v60 = vld [vmem:[#allocation2 + $0x9] ss:$4 sm:$0x3] }
 0x1dd   : > { %v1286_v62 = vmul.f32 %v2649_v56, %v1283_v60  ;;  %v2720_v56 = vcombine.low %v1392_v50, %v1396_v51 }
 0x1df   : > { %v1287_v2 = vadd.f32 %v1286_v62, %v1282_v58  ;;  %v1412_v58 = vld [vmem:[%s3982_s5 + $0x2a8] sm:$0xff] }
 0x1e0   : > { %v2737_v60 = vcombine.high %v1408_v9, %v1412_v58  ;;  %v1420_v62 = vld [vmem:[%s3982_s5 + $0x2e8] sm:$0xff] }
 0x1e1   : > { %v1293_v6 = vadd.f32 %v1292_v63, %v1287_v2  ;;  %v2736_v63 = vcombine.low %v1408_v9, %v1412_v58  ;;  %v2745_v0 = vcombine.high %v1416_v61, %v1420_v62  ;;  %v1428_v2 = vld [vmem:[%s3982_s5 + $0x328] sm:$0xff] }
 0x1e2   : > { %v2753_v4 = vcombine.high %v1424_v1, %v1428_v2 }
 0x1e3   : > { %v1299_v8 = vadd.f32 %v1298_v3, %v1293_v6  ;;  %v2744_v3 = vcombine.low %v1416_v61, %v1420_v62  ;;  %v1436_v6 = vld [vmem:[%s3982_s5 + $0x368] sm:$0xff] }
 0x1e5   : > { %v1305_v11 = vadd.f32 %v1304_v7, %v1299_v8  ;;  %v2752_v7 = vcombine.low %v1424_v1, %v1428_v2  ;;  %v2761_v8 = vcombine.high %v1432_v5, %v1436_v6 }
 0x1e7   : > { %v1311_v14 = vadd.f32 %v1310_v10, %v1305_v11  ;;  %v1440_v10 = vld [vmem:[%s3982_s5 + $0x388] sm:$0xff] }
 0x1e8   : > { %v1444_v11 = vld [vmem:[%s3982_s5 + $0x3a8] sm:$0xff] }
 0x1e9   : > { %v1313_v15 = vadd.f32 %v1312_v12, %v1311_v14  ;;  %v2760_v12 = vcombine.low %v1432_v5, %v1436_v6  ;;  %v2769_v14 = vcombine.high %v1440_v10, %v1444_v11 }
 0x1eb   : > { %v1322_v17 = vrot.slane %v1313_v15, %v3572_v28  ;;  %v1318_v18 = vrot.slane %v1313_v15, %v3566_v26  ;;  %v1448_v15 = vld [vmem:[%s3982_s5 + $0x3c8] sm:$0xff] }
 0x1ed   : > { %v3617_v19 = vpack.c.bf16 %v1322_v17, %v1322_v17  ;;  %v3619_v24 = vpack.c.bf16 %v1318_v18, %v1318_v18  ;;  %v1452_v17 = vld [vmem:[%s3982_s5 + $0x3e8] sm:$0xff]  ;;  %v2768_v18 = vcombine.low %v1440_v10, %v1444_v11 }
 0x1ee   : > { %v2777_v20 = vcombine.high %v1448_v15, %v1452_v17  ;;  %v2776_v29 = vcombine.low %v1448_v15, %v1452_v17 }
 0x1ef   : > { %2169 = vmatprep.mubr.bf16.mxu1 %v3617_v19 }
 0x1f0   : > { %2170 = vmatmul.mubr.bf16.vlgmr.msra.gmra.mrb[0].mxu1 %v3619_v24 }
 0x1f1   : > { %2179 = vmatpush1.bf16.msra.mxu1 %v2656_v25  ;;  %2210 = vmatprep.mubr.bf16.mxu1 %v3617_v19  ;;  %v2680_v25 = vcombine.low %v1352_v33, %v1356_v34 }
 0x1f2   : > { %2180 = vmatprep.subr.bf16.mxu1 %v2665_v27  ;;  %v1333_v27 = vld [vmem:[%s3982_s5 + $0x30] sm:$0xff] }
 0x1f3   : > { %v2659_v30 = vcombine.high %v1329_v21, %v1333_v27  ;;  %v2658_v33 = vcombine.low %v1329_v21, %v1333_v27 }
 0x1f5   : > { %2181 = vmatpush1.bf16.msra.mxu1 %v2664_v31  ;;  %v1337_v31 = vld [vmem:[%s3982_s5 + $0x50] sm:$0xff] }
 0x1f6   : > { %2182 = vmatprep.subr.bf16.mxu1 %v2673_v32  ;;  %v1341_v32 = vld [vmem:[%s3982_s5 + $0x70] sm:$0xff] }
 0x1f7   : > { %v2667_v34 = vcombine.high %v1337_v31, %v1341_v32  ;;  %v2666_v22 = vcombine.low %v1337_v31, %v1341_v32 }
 0x1f9   : > { %2183 = vmatpush1.bf16.msra.mxu1 %v2672_v35  ;;  %v1345_v35 = vld [vmem:[%s3982_s5 + $0x90] sm:$0xff] }
 0x1fa   : > { %2184 = vmatprep.subr.bf16.mxu1 %v2681_v36  ;;  %v1349_v36 = vld [vmem:[%s3982_s5 + $0xb0] sm:$0xff] }
 0x1fb   : > { %v2675_v23 = vcombine.high %v1345_v35, %v1349_v36  ;;  %v2674_v38 = vcombine.low %v1345_v35, %v1349_v36 }
 0x1fd   : > { %2185 = vmatpush1.bf16.msra.mxu1 %v2680_v25  ;;  %v1353_v25 = vld [vmem:[%s3982_s5 + $0xd0] sm:$0xff] }
 0x1fe   : > { %2186 = vmatprep.subr.bf16.mxu1 %v2689_v37  ;;  %v1357_v37 = vld [vmem:[%s3982_s5 + $0xf0] sm:$0xff] }
 0x1ff   : > { %v2683_v39 = vcombine.high %v1353_v25, %v1357_v37  ;;  %v2682_v42 = vcombine.low %v1353_v25, %v1357_v37 }
 0x201   : > { %2187 = vmatpush1.bf16.msra.mxu1 %v2688_v40  ;;  %v1361_v40 = vld [vmem:[%s3982_s5 + $0x110] sm:$0xff] }
 0x202   : > { %2188 = vmatprep.subr.bf16.mxu1 %v2697_v41  ;;  %v1365_v41 = vld [vmem:[%s3982_s5 + $0x130] sm:$0xff] }
 0x203   : > { %v2691_v43 = vcombine.high %v1361_v40, %v1365_v41  ;;  %v2690_v46 = vcombine.low %v1361_v40, %v1365_v41 }
 0x205   : > { %2189 = vmatpush1.bf16.msra.mxu1 %v2696_v44  ;;  %v1369_v44 = vld [vmem:[%s3982_s5 + $0x150] sm:$0xff] }
 0x206   : > { %2190 = vmatprep.subr.bf16.mxu1 %v2705_v45  ;;  %v1373_v45 = vld [vmem:[%s3982_s5 + $0x170] sm:$0xff] }
 0x207   : > { %v2699_v47 = vcombine.high %v1369_v44, %v1373_v45  ;;  %v2698_v50 = vcombine.low %v1369_v44, %v1373_v45 }
 0x209   : > { %2191 = vmatpush1.bf16.msra.mxu1 %v2704_v48  ;;  %v1377_v48 = vld [vmem:[%s3982_s5 + $0x190] sm:$0xff] }
 0x20a   : > { %2192 = vmatprep.subr.bf16.mxu1 %v2713_v49  ;;  %v1381_v49 = vld [vmem:[%s3982_s5 + $0x1b0] sm:$0xff] }
 0x20b   : > { %v2707_v51 = vcombine.high %v1377_v48, %v1381_v49  ;;  %v2706_v54 = vcombine.low %v1377_v48, %v1381_v49  ;;  %v1370_v49 = vld [vmem:[%s3982_s5 + $0x158] sm:$0xff] }
 0x20d   : > { %2193 = vmatpush1.bf16.msra.mxu1 %v2712_v52  ;;  %v1385_v52 = vld [vmem:[%s3982_s5 + $0x1d0] sm:$0xff] }
 0x20e   : > { %2194 = vmatprep.subr.bf16.mxu1 %v2721_v53  ;;  %v1389_v53 = vld [vmem:[%s3982_s5 + $0x1f0] sm:$0xff] }
 0x20f   : > { %v2715_v55 = vcombine.high %v1385_v52, %v1389_v53  ;;  %v2714_v9 = vcombine.low %v1385_v52, %v1389_v53  ;;  %v1378_v53 = vld [vmem:[%s3982_s5 + $0x198] sm:$0xff] }
 0x211   : > { %2195 = vmatpush1.bf16.msra.mxu1 %v2720_v56  ;;  %v1393_v56 = vld [vmem:[%s3982_s5 + $0x210] sm:$0xff] }
 0x212   : > { %2196 = vmatprep.subr.bf16.mxu1 %v2729_v57  ;;  %v1397_v57 = vld [vmem:[%s3982_s5 + $0x230] sm:$0xff] }
 0x213   : > { %v2723_v58 = vcombine.high %v1393_v56, %v1397_v57  ;;  %v2722_v61 = vcombine.low %v1393_v56, %v1397_v57  ;;  %v1386_v57 = vld [vmem:[%s3982_s5 + $0x1d8] sm:$0xff] }
 0x215   : > { %2197 = vmatpush1.bf16.msra.mxu1 %v2728_v59  ;;  %v1401_v59 = vld [vmem:[%s3982_s5 + $0x250] sm:$0xff] }
 0x216   : > { %2198 = vmatprep.subr.bf16.mxu1 %v2737_v60  ;;  %v1405_v60 = vld [vmem:[%s3982_s5 + $0x270] sm:$0xff] }
 0x217   : > { %v2731_v62 = vcombine.high %v1401_v59, %v1405_v60  ;;  %v2730_v1 = vcombine.low %v1401_v59, %v1405_v60  ;;  %v1394_v60 = vld [vmem:[%s3982_s5 + $0x218] sm:$0xff] }
 0x219   : > { %2199 = vmatpush1.bf16.msra.mxu1 %v2736_v63  ;;  %v1409_v63 = vld [vmem:[%s3982_s5 + $0x290] sm:$0xff] }
 0x21a   : > { %2200 = vmatprep.subr.bf16.mxu1 %v2745_v0  ;;  %v1413_v0 = vld [vmem:[%s3982_s5 + $0x2b0] sm:$0xff] }
 0x21b   : > { %v2739_v2 = vcombine.high %v1409_v63, %v1413_v0  ;;  %v2738_v5 = vcombine.low %v1409_v63, %v1413_v0  ;;  %v1402_v0 = vld [vmem:[%s3982_s5 + $0x258] sm:$0xff] }
 0x21d   : > { %2201 = vmatpush1.bf16.msra.mxu1 %v2744_v3  ;;  %v1417_v3 = vld [vmem:[%s3982_s5 + $0x2d0] sm:$0xff] }
 0x21e   : > { %2202 = vmatprep.subr.bf16.mxu1 %v2753_v4  ;;  %v1421_v4 = vld [vmem:[%s3982_s5 + $0x2f0] sm:$0xff] }
 0x21f   : > { %v2747_v6 = vcombine.high %v1417_v3, %v1421_v4  ;;  %v2746_v10 = vcombine.low %v1417_v3, %v1421_v4  ;;  %v1410_v4 = vld [vmem:[%s3982_s5 + $0x298] sm:$0xff] }
 0x221   : > { %2203 = vmatpush1.bf16.msra.mxu1 %v2752_v7  ;;  %v1425_v7 = vld [vmem:[%s3982_s5 + $0x310] sm:$0xff] }
 0x222   : > { %2204 = vmatprep.subr.bf16.mxu1 %v2761_v8  ;;  %v1429_v8 = vld [vmem:[%s3982_s5 + $0x330] sm:$0xff] }
 0x223   : > { %v2755_v11 = vcombine.high %v1425_v7, %v1429_v8  ;;  %v2754_v15 = vcombine.low %v1425_v7, %v1429_v8  ;;  %v1418_v8 = vld [vmem:[%s3982_s5 + $0x2d8] sm:$0xff] }
 0x225   : > { %2205 = vmatpush1.bf16.msra.mxu1 %v2760_v12  ;;  %v1433_v12 = vld [vmem:[%s3982_s5 + $0x350] sm:$0xff] }
 0x226   : > { %2206 = vmatprep.subr.bf16.mxu1 %v2769_v14  ;;  %v1437_v14 = vld [vmem:[%s3982_s5 + $0x370] sm:$0xff] }
 0x227   : > { %v2763_v17 = vcombine.high %v1433_v12, %v1437_v14  ;;  %v2762_v21 = vcombine.low %v1433_v12, %v1437_v14  ;;  %v1426_v14 = vld [vmem:[%s3982_s5 + $0x318] sm:$0xff] }
 0x229   : > { %2207 = vmatpush1.bf16.msra.mxu1 %v2768_v18  ;;  %v1441_v18 = vld [vmem:[%s3982_s5 + $0x390] sm:$0xff] }
 0x22a   : > { %2208 = vmatprep.subr.bf16.mxu1 %v2777_v20  ;;  %v1445_v20 = vld [vmem:[%s3982_s5 + $0x3b0] sm:$0xff] }
 0x22b   : > { %v2771_v27 = vcombine.high %v1441_v18, %v1445_v20  ;;  %v2770_v31 = vcombine.low %v1441_v18, %v1445_v20  ;;  %v1434_v20 = vld [vmem:[%s3982_s5 + $0x358] sm:$0xff] }
 0x22d   : > { %2209 = vmatpush1.bf16.msra.mxu1 %v2776_v29  ;;  %v1449_v29 = vld [vmem:[%s3982_s5 + $0x3d0] sm:$0xff] }
 0x22e   : > { %2219 = vmatprep.subr.bf16.mxu1 %v2659_v30  ;;  %v1453_v30 = vld [vmem:[%s3982_s5 + $0x3f0] sm:$0xff] }
 0x22f   : > { %v2779_v32 = vcombine.high %v1449_v29, %v1453_v30  ;;  %v2778_v35 = vcombine.low %v1449_v29, %v1453_v30  ;;  %v1442_v30 = vld [vmem:[%s3982_s5 + $0x398] sm:$0xff] }
 0x230   : > { %2211 = vmatmul.mubr.bf16.vlgmr.msra.gmra.mrb[4].mxu1 %v3619_v24 }
 0x231   : > { %2220 = vmatpush1.bf16.msra.mxu1 %v2658_v33  ;;  %2251 = vmatprep.mubr.bf16.mxu1 %v3617_v19  ;;  %v1330_v33 = vld [vmem:[%s3982_s5 + $0x18] sm:$0xff] }
 0x232   : > { %2221 = vmatprep.subr.bf16.mxu1 %v2667_v34  ;;  %v1334_v34 = vld [vmem:[%s3982_s5 + $0x38] sm:$0xff] }
 0x233   : > { %v2661_v36 = vcombine.high %v1330_v33, %v1334_v34  ;;  %v2660_v25 = vcombine.low %v1330_v33, %v1334_v34  ;;  %v1450_v34 = vld [vmem:[%s3982_s5 + $0x3d8] sm:$0xff] }
 0x235   : > { %2222 = vmatpush1.bf16.msra.mxu1 %v2666_v22  ;;  %v1338_v22 = vld [vmem:[%s3982_s5 + $0x58] sm:$0xff] }
 0x236   : > { %2223 = vmatprep.subr.bf16.mxu1 %v2675_v23  ;;  %v1342_v23 = vld [vmem:[%s3982_s5 + $0x78] sm:$0xff] }
 0x237   : > { %v2669_v37 = vcombine.high %v1338_v22, %v1342_v23  ;;  %v2668_v40 = vcombine.low %v1338_v22, %v1342_v23 }
 0x239   : > { %2224 = vmatpush1.bf16.msra.mxu1 %v2674_v38  ;;  %v1346_v38 = vld [vmem:[%s3982_s5 + $0x98] sm:$0xff] }
 0x23a   : > { %2225 = vmatprep.subr.bf16.mxu1 %v2683_v39  ;;  %v1350_v39 = vld [vmem:[%s3982_s5 + $0xb8] sm:$0xff] }
 0x23b   : > { %v2677_v41 = vcombine.high %v1346_v38, %v1350_v39  ;;  %v2676_v44 = vcombine.low %v1346_v38, %v1350_v39  ;;  %v2107_v39 = vsub.s32 2, %v3082_v13 }
 0x23d   : > { %2226 = vmatpush1.bf16.msra.mxu1 %v2682_v42  ;;  %v1354_v42 = vld [vmem:[%s3982_s5 + $0xd8] sm:$0xff] }
 0x23e   : > { %2227 = vmatprep.subr.bf16.mxu1 %v2691_v43  ;;  %v1358_v43 = vld [vmem:[%s3982_s5 + $0xf8] sm:$0xff] }
 0x23f   : > { %v2685_v45 = vcombine.high %v1354_v42, %v1358_v43 }
 0x241   : > { %2228 = vmatpush1.bf16.msra.mxu1 %v2690_v46  ;;  %v1362_v46 = vld [vmem:[%s3982_s5 + $0x118] sm:$0xff] }
 0x242   : > { %2229 = vmatprep.subr.bf16.mxu1 %v2699_v47  ;;  %v2684_v47 = vcombine.low %v1354_v42, %v1358_v43 }
 0x245   : > { %2230 = vmatpush1.bf16.msra.mxu1 %v2698_v50  ;;  %v1374_v50 = vld [vmem:[%s3982_s5 + $0x178] sm:$0xff] }
 0x246   : > { %2231 = vmatprep.subr.bf16.mxu1 %v2707_v51  ;;  %v2701_v52 = vcombine.high %v1370_v49, %v1374_v50 }
 0x249   : > { %2232 = vmatpush1.bf16.msra.mxu1 %v2706_v54  ;;  %v1382_v54 = vld [vmem:[%s3982_s5 + $0x1b8] sm:$0xff] }
 0x24a   : > { %2233 = vmatprep.subr.bf16.mxu1 %v2715_v55  ;;  %v2700_v55 = vcombine.low %v1370_v49, %v1374_v50  ;;  %v2709_v56 = vcombine.high %v1378_v53, %v1382_v54 }
 0x24d   : > { %2234 = vmatpush1.bf16.msra.mxu1 %v2714_v9  ;;  %v1390_v9 = vld [vmem:[%s3982_s5 + $0x1f8] sm:$0xff] }
 0x24e   : > { %2235 = vmatprep.subr.bf16.mxu1 %v2723_v58  ;;  %v2708_v58 = vcombine.low %v1378_v53, %v1382_v54  ;;  %v2717_v59 = vcombine.high %v1386_v57, %v1390_v9  ;;  %v2111_v53 = vsub.s32 3, %v3082_v13  ;;  %v3922_v54 = vsub.s32 4, %v3082_v13 }
 0x251   : > { %2236 = vmatpush1.bf16.msra.mxu1 %v2722_v61  ;;  %v1398_v61 = vld [vmem:[%s3982_s5 + $0x238] sm:$0xff] }
 0x252   : > { %2237 = vmatprep.subr.bf16.mxu1 %v2731_v62  ;;  %v2716_v62 = vcombine.low %v1386_v57, %v1390_v9  ;;  %v2725_v63 = vcombine.high %v1394_v60, %v1398_v61 }
 0x255   : > { %2238 = vmatpush1.bf16.msra.mxu1 %v2730_v1  ;;  %v1406_v1 = vld [vmem:[%s3982_s5 + $0x278] sm:$0xff] }
 0x256   : > { %2239 = vmatprep.subr.bf16.mxu1 %v2739_v2  ;;  %v2724_v2 = vcombine.low %v1394_v60, %v1398_v61  ;;  %v2733_v3 = vcombine.high %v1402_v0, %v1406_v1 }
 0x259   : > { %2240 = vmatpush1.bf16.msra.mxu1 %v2738_v5  ;;  %v1414_v5 = vld [vmem:[%s3982_s5 + $0x2b8] sm:$0xff] }
 0x25a   : > { %2241 = vmatprep.subr.bf16.mxu1 %v2747_v6  ;;  %v2732_v6 = vcombine.low %v1402_v0, %v1406_v1  ;;  %v2741_v7 = vcombine.high %v1410_v4, %v1414_v5 }
 0x25d   : > { %2242 = vmatpush1.bf16.msra.mxu1 %v2746_v10  ;;  %v1422_v10 = vld [vmem:[%s3982_s5 + $0x2f8] sm:$0xff] }
 0x25e   : > { %2243 = vmatprep.subr.bf16.mxu1 %v2755_v11  ;;  %v2740_v11 = vcombine.low %v1410_v4, %v1414_v5  ;;  %v2749_v12 = vcombine.high %v1418_v8, %v1422_v10 }
 0x261   : > { %2244 = vmatpush1.bf16.msra.mxu1 %v2754_v15  ;;  %v1430_v15 = vld [vmem:[%s3982_s5 + $0x338] sm:$0xff] }
 0x262   : > { %2245 = vmatprep.subr.bf16.mxu1 %v2763_v17  ;;  %v2748_v17 = vcombine.low %v1418_v8, %v1422_v10  ;;  %v2757_v18 = vcombine.high %v1426_v14, %v1430_v15  ;;  %v2119_v8 = vsub.s32 5, %v3082_v13 }
 0x265   : > { %2246 = vmatpush1.bf16.msra.mxu1 %v2762_v21  ;;  %v1438_v21 = vld [vmem:[%s3982_s5 + $0x378] sm:$0xff] }
 0x266   : > { %2247 = vmatprep.subr.bf16.mxu1 %v2771_v27  ;;  %v2756_v27 = vcombine.low %v1426_v14, %v1430_v15  ;;  %v2765_v29 = vcombine.high %v1434_v20, %v1438_v21 }
 0x269   : > { %2248 = vmatpush1.bf16.msra.mxu1 %v2770_v31  ;;  %v1446_v31 = vld [vmem:[%s3982_s5 + $0x3b8] sm:$0xff] }
 0x26a   : > { %2249 = vmatprep.subr.bf16.mxu1 %v2779_v32  ;;  %v2764_v32 = vcombine.low %v1434_v20, %v1438_v21  ;;  %v2773_v33 = vcombine.high %v1442_v30, %v1446_v31 }
 0x26d   : > { %2250 = vmatpush1.bf16.msra.mxu1 %v2778_v35  ;;  %v1454_v35 = vld [vmem:[%s3982_s5 + $0x3f8] sm:$0xff] }
 0x26e   : > { %2260 = vmatprep.subr.bf16.mxu1 %v2661_v36  ;;  %v2772_v36 = vcombine.low %v1442_v30, %v1446_v31  ;;  %v2781_v22 = vcombine.high %v1450_v34, %v1454_v35  ;;  %v2780_v23 = vcombine.low %v1450_v34, %v1454_v35 }
 0x270   : > { %2252 = vmatmul.mubr.bf16.vlgmr.msra.gmra.mrb[8].mxu1 %v3619_v24 }
 0x271   : > { %2261 = vmatpush1.bf16.msra.mxu1 %v2660_v25  ;;  %2292 = vmatprep.mubr.bf16.mxu1 %v3617_v19  ;;  %v1366_v19 = vld [vmem:[%s3982_s5 + $0x138] sm:$0xff]  ;;  %v3911_v25 = vld [vmem:[%s3983_s6] sm:$0xff] }
 0x272   : > { %2262 = vmatprep.subr.bf16.mxu1 %v2669_v37  ;;  %v2693_v48 = vcombine.high %v1362_v46, %v1366_v19  ;;  %v2692_v51 = vcombine.low %v1362_v46, %v1366_v19  ;;  %v2993_v37 = vld [vmem:[%s3096_s30] sm:$0xff] }
 0x273   : > { %v2301_v38 = vunpack.c.l.bf16 %v2993_v37  ;;  %v2302_v10 = vunpack.c.h.bf16 %v2993_v37 }
 0x275   : > { %2263 = vmatpush1.bf16.msra.mxu1 %v2668_v40  ;;  %v2100_v40 = vrot.slane %v3911_v25, %v3566_v26  ;;  %v2308_v42 = vrot.slane %v2301_v38, %v3566_v26  ;;  %v2316_v57 = vrot.slane %v2301_v38, %v3922_v54  ;;  %v2324_v14 = vrot.slane %v2302_v10, %v3566_v26 }
 0x276   : > { %2264 = vmatprep.subr.bf16.mxu1 %v2677_v41  ;;  %v2104_v41 = vrot.slane %v3911_v25, %v3572_v28  ;;  %v3925_v28 = vsub.s32 6, %v3082_v13  ;;  %v2127_v26 = vsub.s32 7, %v3082_v13  ;;  %v2332_v37 = vrot.slane %v2302_v10, %v3922_v54 }
 0x279   : > { %2265 = vmatpush1.bf16.msra.mxu1 %v2676_v44  ;;  %v2312_v44 = vrot.slane %v2301_v38, %v2107_v39 }
 0x27a   : > { %2266 = vmatprep.subr.bf16.mxu1 %v2685_v45 }
 0x27d   : > { %2267 = vmatpush1.bf16.msra.mxu1 %v2684_v47 }
 0x27e   : > { %2268 = vmatprep.subr.bf16.mxu1 %v2693_v48 }
 0x281   : > { %2269 = vmatpush1.bf16.msra.mxu1 %v2692_v51 }
 0x282   : > { %2270 = vmatprep.subr.bf16.mxu1 %v2701_v52 }
 0x285   : > { %2271 = vmatpush1.bf16.msra.mxu1 %v2700_v55  ;;  %v2108_v55 = vrot.slane %v3911_v25, %v2107_v39 }
 0x286   : > { %2272 = vmatprep.subr.bf16.mxu1 %v2709_v56  ;;  %v2112_v56 = vrot.slane %v3911_v25, %v2111_v53 }
 0x289   : > { %2273 = vmatpush1.bf16.msra.mxu1 %v2708_v58  ;;  %v2320_v58 = vrot.slane %v2301_v38, %v3925_v28  ;;  %v2336_v38 = vrot.slane %v2302_v10, %v3925_v28 }
 0x28a   : > { %2274 = vmatprep.subr.bf16.mxu1 %v2717_v59 }
 0x28d   : > { %2275 = vmatpush1.bf16.msra.mxu1 %v2716_v62 }
 0x28e   : > { %2276 = vmatprep.subr.bf16.mxu1 %v2725_v63 }
 0x291   : > { %2277 = vmatpush1.bf16.msra.mxu1 %v2724_v2 }
 0x292   : > { %2278 = vmatprep.subr.bf16.mxu1 %v2733_v3 }
 0x295   : > { %2279 = vmatpush1.bf16.msra.mxu1 %v2732_v6 }
 0x296   : > { %2280 = vmatprep.subr.bf16.mxu1 %v2741_v7 }
 0x299   : > { %2281 = vmatpush1.bf16.msra.mxu1 %v2740_v11  ;;  %v2116_v11 = vrot.slane %v3911_v25, %v3922_v54 }
 0x29a   : > { %2282 = vmatprep.subr.bf16.mxu1 %v2749_v12  ;;  %v2120_v12 = vrot.slane %v3911_v25, %v2119_v8 }
 0x29d   : > { %2283 = vmatpush1.bf16.msra.mxu1 %v2748_v17  ;;  %v2328_v17 = vrot.slane %v2302_v10, %v2107_v39 }
 0x29e   : > { %2284 = vmatprep.subr.bf16.mxu1 %v2757_v18 }
 0x2a1   : > { %2285 = vmatpush1.bf16.msra.mxu1 %v2756_v27 }
 0x2a2   : > { %2286 = vmatprep.subr.bf16.mxu1 %v2765_v29 }
 0x2a5   : > { %2287 = vmatpush1.bf16.msra.mxu1 %v2764_v32 }
 0x2a6   : > { %2288 = vmatprep.subr.bf16.mxu1 %v2773_v33 }
 0x2a9   : > { %2289 = vmatpush1.bf16.msra.mxu1 %v2772_v36 }
 0x2aa   : > { %2290 = vmatprep.subr.bf16.mxu1 %v2781_v22  ;;  %v2124_v22 = vrot.slane %v3911_v25, %v3925_v28 }
 0x2ad   : > { %2291 = vmatpush1.bf16.msra.mxu1 %v2780_v23  ;;  %v2128_v23 = vrot.slane %v3911_v25, %v2127_v26 }
 0x2b0   : > { %2293 = vmatmul.mubr.bf16.vlgmr.msra.gmra.mrb[12].mxu1 %v3619_v24 }
 0x2c3   : > { %v2171_v43 = vpop.f32.mrb[0].mxu1 }
 0x2c4   : > { %v2172_v24 = vadd.f32 %v2171_v43, %v2100_v40  ;;  %v2173_v45 = vpop.f32.mrb[1].mxu1 }
 0x2c5   : > { %v2174_v46 = vadd.f32 %v2173_v45, %v2104_v41  ;;  %v2175_v19 = vpop.f32.mrb[2].mxu1 }
 0x2c6   : > { %v2345_v47 = vadd.f32 %v2308_v42, %v2172_v24  ;;  %v2176_v48 = vpop.f32.mrb[3].mxu1 }
 0x2c7   : > { %v2346_v49 = vadd.f32 %v2312_v44, %v2174_v46 }
 0x2c8   : > { %v2353_v50 = vmax.f32 %v2345_v47, 0.0 }
 0x2c9   : > { %v2354_v51 = vmax.f32 %v2346_v49, 0.0 }
 0x2cb   : > { %v2782_v52 = vpack.c.bf16 %v2354_v51, %v2353_v50 }
 0x2cd   : > { %v2387_v5 = vrot.slane %v2782_v52, %v3099_v16  ;;  %v2458_v52 = vld [vmem:[%s273_s13] sm:$0xff] }
 0x303   : > { %v2212_v9 = vpop.f32.mrb[4].mxu1 }
 0x304   : > { %v2213_v59 = vadd.f32 %v2212_v9, %v2108_v55  ;;  %v2214_v60 = vpop.f32.mrb[5].mxu1 }
 0x305   : > { %v2215_v61 = vadd.f32 %v2214_v60, %v2112_v56  ;;  %v2216_v62 = vpop.f32.mrb[6].mxu1 }
 0x306   : > { %v2347_v63 = vadd.f32 %v2316_v57, %v2213_v59  ;;  %v2217_v0 = vpop.f32.mrb[7].mxu1 }
 0x307   : > { %v2348_v1 = vadd.f32 %v2320_v58, %v2215_v61 }
 0x308   : > { %v2355_v2 = vmax.f32 %v2347_v63, 0.0 }
 0x309   : > { %v2356_v3 = vmax.f32 %v2348_v1, 0.0 }
 0x30b   : > { %v2783_v4 = vpack.c.bf16 %v2356_v3, %v2355_v2 }
 0x30d   : > { %v2394_v6 = vrot.slane %v2783_v4, %v3099_v16 }
 0x30f   : > { %v3933_v7 = vcombine.low %v2387_v5, %v2394_v6 }
 0x311   : > { %v2417_v50 = vrot.slane %v3933_v7, %v3099_v16 }
 0x343   : > { %v2253_v15 = vpop.f32.mrb[8].mxu1 }
 0x344   : > { %v2254_v18 = vadd.f32 %v2253_v15, %v2116_v11  ;;  %v2255_v20 = vpop.f32.mrb[9].mxu1 }
 0x345   : > { %v2256_v21 = vadd.f32 %v2255_v20, %v2120_v12  ;;  %v2257_v27 = vpop.f32.mrb[10].mxu1 }
 0x346   : > { %v2349_v29 = vadd.f32 %v2324_v14, %v2254_v18  ;;  %v2258_v30 = vpop.f32.mrb[11].mxu1 }
 0x347   : > { %v2350_v31 = vadd.f32 %v2328_v17, %v2256_v21 }
 0x348   : > { %v2357_v32 = vmax.f32 %v2349_v29, 0.0 }
 0x349   : > { %v2358_v33 = vmax.f32 %v2350_v31, 0.0 }
 0x34b   : > { %v2784_v34 = vpack.c.bf16 %v2358_v33, %v2357_v32 }
 0x34d   : > { %v2401_v47 = vrot.slane %v2784_v34, %v3099_v16 }
 0x383   : > { %v2294_v13 = vpop.f32.mrb[12].mxu1 }
 0x384   : > { %v2295_v39 = vadd.f32 %v2294_v13, %v2124_v22  ;;  %v2296_v40 = vpop.f32.mrb[13].mxu1 }
 0x385   : > { %v2297_v41 = vadd.f32 %v2296_v40, %v2128_v23  ;;  %v2298_v42 = vpop.f32.mrb[14].mxu1 }
 0x386   : > { %v2351_v43 = vadd.f32 %v2332_v37, %v2295_v39  ;;  %v2299_v44 = vpop.f32.mrb[15].mxu1 }
 0x387   : > { %v2352_v24 = vadd.f32 %v2336_v38, %v2297_v41 }
 0x388   : > { %v2359_v45 = vmax.f32 %v2351_v43, 0.0 }
 0x389   : > { %v2360_v46 = vmax.f32 %v2352_v24, 0.0 }
 0x38b   : > { %v2785_v19 = vpack.c.bf16 %v2360_v46, %v2359_v45 }
 0x38d   : > { %v2408_v48 = vrot.slane %v2785_v19, %v3099_v16 }
 0x38f   : > { %v2410_v49 = vcombine.low %v2401_v47, %v2408_v48 }
 0x391   : > { %v2424_v51 = vrot.slane %v2410_v49, %v3099_v16 }
 0x393   : > { %v2425_v53 = vcombine.low %v2417_v50, %v2424_v51 }
 0x395   : > { %v2459_v54 = vsel %vm2457_vm0, %v2425_v53, %v2458_v52 }
 0x396   : > { %2460 = vst [vmem:[%s273_s13] sm:$0xff] %v2459_v54 }
 0x397 PF: > { %s17_s24 = sadd.s32 1, %s3000_s24  }
 0x398   : > { %p14_p4 = scmp.ge.s32.totalorder %s17_s24, 4  }
 0x39a   :  { %16 = sbr.rel (!%p14_p4) target bundleno = 1 (0x1), region = 94 }

</bundles_post_ra>
